<compile_context>
chip_gen: v6e
topology: v6e:2x2x1
jax: 0.10.0
libtpu: 0.0.40
codegen_flags: <defaults>
</compile_context>

<pallas_src>
import jax
import jax.numpy as jnp
from jax.experimental import pallas as pl
from jax.experimental.pallas import tpu as pltpu

# TPU-tile-friendly synthetic model sizes.
BATCH = 16     # number of "tweets" packed per call
SEQ = 8        # tokens per tweet
D_MODEL = 128  # hidden size (lane-aligned)
D_FFN = 256
VOCAB = 256

_PARAM_ORDER = ("emb", "wq", "wk", "wv", "wo", "ln1g", "ln1b",
                "w1", "b1", "w2", "b2", "ln2g", "ln2b")
_N_P = len(_PARAM_ORDER)  # 13


def _model_forward(ids, attn_bias, p):
    """One greedy 'generate()' stand-in.

    ids:       (M, 1) int32 token ids (M = BATCH * SEQ, flattened)
    attn_bias: (M, M) f32 additive bias (block-diagonal: tweets independent)
    p:         tuple of 13 loaded parameter arrays (weights in bf16)
    returns    (M, 1) int32 greedy output token ids
    """
    emb, wq, wk, wv, wo, ln1g, ln1b, w1, b1, w2, b2, ln2g, ln2b = p
    V, D = emb.shape
    M = ids.shape[0]
    scale = D ** -0.5

    # --- embedding lookup as bf16 one-hot matmul (MXU, f32 accumulate) ---
    vocab_iota = jax.lax.broadcasted_iota(jnp.int32, (M, V), 1)
    onehot = (vocab_iota == ids).astype(jnp.bfloat16)                 # (M, V) bf16
    x = jnp.dot(onehot, emb, preferred_element_type=jnp.float32)      # (M, D) f32

    # --- single-head self-attention (bf16 MXU operands, f32 softmax) ---
    x_bf = x.astype(jnp.bfloat16)
    q = jnp.dot(x_bf, wq, preferred_element_type=jnp.float32)
    k = jnp.dot(x_bf, wk, preferred_element_type=jnp.float32)
    v = jnp.dot(x_bf, wv, preferred_element_type=jnp.float32)
    # q . k^T without materializing a transpose of k.
    scores = jax.lax.dot_general(
        q.astype(jnp.bfloat16), k.astype(jnp.bfloat16),
        (((1,), (1,)), ((), ())),
        preferred_element_type=jnp.float32) * scale + attn_bias       # (M, M)
    scores = scores - jnp.max(scores, axis=-1, keepdims=True)
    pexp = jnp.exp(scores)
    pexp = pexp * pl.reciprocal(jnp.sum(pexp, axis=-1, keepdims=True),
                                approx=True)
    attn = jnp.dot(pexp.astype(jnp.bfloat16), v.astype(jnp.bfloat16),
                   preferred_element_type=jnp.float32)
    attn = jnp.dot(attn.astype(jnp.bfloat16), wo,
                   preferred_element_type=jnp.float32)

    # --- residual + layernorm 1 (f32) ---
    h = x + attn
    mu = jnp.mean(h, axis=-1, keepdims=True)
    var = jnp.mean((h - mu) ** 2, axis=-1, keepdims=True)
    h = (h - mu) * jax.lax.rsqrt(var + 1e-5) * ln1g + ln1b

    # --- FFN (bf16 MXU, f32 gelu) ---
    f = jnp.dot(h.astype(jnp.bfloat16), w1,
                preferred_element_type=jnp.float32) + b1
    f = jax.nn.gelu(f, approximate=True)
    f = jnp.dot(f.astype(jnp.bfloat16), w2,
                preferred_element_type=jnp.float32) + b2

    # --- residual + layernorm 2 (f32) ---
    h2 = h + f
    mu2 = jnp.mean(h2, axis=-1, keepdims=True)
    var2 = jnp.mean((h2 - mu2) ** 2, axis=-1, keepdims=True)
    h2 = (h2 - mu2) * jax.lax.rsqrt(var2 + 1e-5) * ln2g + ln2b

    # --- tied-embedding logits: contract D against emb in place (no emb.T) ---
    logits = jax.lax.dot_general(
        h2.astype(jnp.bfloat16), emb, (((1,), (1,)), ((), ())),
        preferred_element_type=jnp.float32)                           # (M, V)

    # --- greedy (argmax) decode ---
    m = jnp.max(logits, axis=-1, keepdims=True)
    idx = jax.lax.broadcasted_iota(jnp.int32, logits.shape, 1)
    out = jnp.min(jnp.where(logits >= m, idx, V), axis=-1, keepdims=True)
    return out.astype(jnp.int32)


def _back_translate_kernel(ids_ref, bias_ref, *refs):
    """Fused it->en->it: two greedy transformer passes back-to-back.

    The intermediate English token ids stay on-chip between passes.
    """
    out_ref = refs[2 * _N_P]
    p_it_en = tuple(r[...] for r in refs[:_N_P])
    p_en_it = tuple(r[...] for r in refs[_N_P:2 * _N_P])

    ids = ids_ref[...]                               # (M, 1) int32
    bias = bias_ref[...]                             # (M, M) f32

    en_ids = _model_forward(ids, bias, p_it_en)      # "model_it_en.generate"
    it_ids = _model_forward(en_ids, bias, p_en_it)   # "model_en_it.generate"
    out_ref[...] = it_ids


@jax.jit
def back_translate(token_ids, params_it_en, params_en_it):
    """Equivalent of BackTranslationModule.forward(text, type='tweet'):
    it -> en -> it, on token ids instead of strings, for a batch of tweets."""
    B, S = token_ids.shape
    M = B * S
    ids2d = token_ids.reshape(M, 1).astype(jnp.int32)

    # Block-diagonal attention bias: tokens only attend within their own tweet,
    # so batching does not change per-tweet forward-pass semantics.
    pos = jnp.arange(M, dtype=jnp.int32) // S
    attn_bias = jnp.where(pos[:, None] == pos[None, :],
                          0.0, -1e30).astype(jnp.float32)             # (M, M)

    args = ([ids2d, attn_bias]
            + [params_it_en[k] for k in _PARAM_ORDER]
            + [params_en_it[k] for k in _PARAM_ORDER])

    vmem_spec = pl.BlockSpec(memory_space=pltpu.MemorySpace.VMEM)
    out = pl.pallas_call(
        _back_translate_kernel,
        out_shape=jax.ShapeDtypeStruct((M, 1), jnp.int32),
        in_specs=[vmem_spec] * len(args),
        out_specs=vmem_spec,
    )(*args)
    return out.reshape(B, S)


def init_model_params(key, vocab=VOCAB, d_model=D_MODEL, d_ffn=D_FFN):
    ks = jax.random.split(key, 7)
    s = 0.02
    f32 = jnp.float32
    bf16 = jnp.bfloat16

    def w(k, shape):
        return (jax.random.normal(k, shape, f32) * s).astype(bf16)

    return dict(
        emb=w(ks[0], (vocab, d_model)),
        wq=w(ks[1], (d_model, d_model)),
        wk=w(ks[2], (d_model, d_model)),
        wv=w(ks[3], (d_model, d_model)),
        wo=w(ks[4], (d_model, d_model)),
        w1=w(ks[5], (d_model, d_ffn)),
        b1=jnp.zeros((1, d_ffn), f32),
        w2=w(ks[6], (d_ffn, d_model)),
        b2=jnp.zeros((1, d_model), f32),
        ln1g=jnp.ones((1, d_model), f32),
        ln1b=jnp.zeros((1, d_model), f32),
        ln2g=jnp.ones((1, d_model), f32),
        ln2b=jnp.zeros((1, d_model), f32),
    )


if __name__ == "__main__":
    key = jax.random.PRNGKey(0)
    k_ids, k_m1, k_m2 = jax.random.split(key, 3)

    # Deterministic batch of "Italian tweets" as token ids.
    it_token_ids = jax.random.randint(k_ids, (BATCH, SEQ), 0, VOCAB,
                                      dtype=jnp.int32)

    # Deterministic frozen weights for the two translation models.
    params_it_en = init_model_params(k_m1)
    params_en_it = init_model_params(k_m2)

    out_ids = back_translate(it_token_ids, params_it_en, params_en_it)
    out_ids = jax.block_until_ready(out_ids)

    assert out_ids.shape == (BATCH, SEQ)
    assert out_ids.dtype == jnp.int32
    assert bool(jnp.all((out_ids >= 0) & (out_ids < VOCAB)))
    print("KERNEL_OK")
</pallas_src>

<mosaic_0001>
module attributes {stable_mosaic.version = 11 : i64} {
  func.func @_back_translate_kernel(%arg0: memref<128x1xi32, #tpu.memory_space<vmem>>, %arg1: memref<128x128xf32, #tpu.memory_space<vmem>>, %arg2: memref<256x128xbf16, #tpu.memory_space<vmem>>, %arg3: memref<128x128xbf16, #tpu.memory_space<vmem>>, %arg4: memref<128x128xbf16, #tpu.memory_space<vmem>>, %arg5: memref<128x128xbf16, #tpu.memory_space<vmem>>, %arg6: memref<128x128xbf16, #tpu.memory_space<vmem>>, %arg7: memref<1x128xf32, #tpu.memory_space<vmem>>, %arg8: memref<1x128xf32, #tpu.memory_space<vmem>>, %arg9: memref<128x256xbf16, #tpu.memory_space<vmem>>, %arg10: memref<1x256xf32, #tpu.memory_space<vmem>>, %arg11: memref<256x128xbf16, #tpu.memory_space<vmem>>, %arg12: memref<1x128xf32, #tpu.memory_space<vmem>>, %arg13: memref<1x128xf32, #tpu.memory_space<vmem>>, %arg14: memref<1x128xf32, #tpu.memory_space<vmem>>, %arg15: memref<256x128xbf16, #tpu.memory_space<vmem>>, %arg16: memref<128x128xbf16, #tpu.memory_space<vmem>>, %arg17: memref<128x128xbf16, #tpu.memory_space<vmem>>, %arg18: memref<128x128xbf16, #tpu.memory_space<vmem>>, %arg19: memref<128x128xbf16, #tpu.memory_space<vmem>>, %arg20: memref<1x128xf32, #tpu.memory_space<vmem>>, %arg21: memref<1x128xf32, #tpu.memory_space<vmem>>, %arg22: memref<128x256xbf16, #tpu.memory_space<vmem>>, %arg23: memref<1x256xf32, #tpu.memory_space<vmem>>, %arg24: memref<256x128xbf16, #tpu.memory_space<vmem>>, %arg25: memref<1x128xf32, #tpu.memory_space<vmem>>, %arg26: memref<1x128xf32, #tpu.memory_space<vmem>>, %arg27: memref<1x128xf32, #tpu.memory_space<vmem>>, %arg28: memref<128x1xi32, #tpu.memory_space<vmem>>) attributes {dimension_semantics = [], scalar_prefetch = 0 : i64, scratch_operands = 0 : i64, tpu.core_type = #tpu.core_type<tc>} {
    %c0 = arith.constant 0 : index
    %c0_0 = arith.constant 0 : index
    %0 = vector.load %arg2[%c0, %c0_0] : memref<256x128xbf16, #tpu.memory_space<vmem>>, vector<256x128xbf16>
    %c0_1 = arith.constant 0 : index
    %c0_2 = arith.constant 0 : index
    %1 = vector.load %arg3[%c0_1, %c0_2] : memref<128x128xbf16, #tpu.memory_space<vmem>>, vector<128x128xbf16>
    %c0_3 = arith.constant 0 : index
    %c0_4 = arith.constant 0 : index
    %2 = vector.load %arg4[%c0_3, %c0_4] : memref<128x128xbf16, #tpu.memory_space<vmem>>, vector<128x128xbf16>
    %c0_5 = arith.constant 0 : index
    %c0_6 = arith.constant 0 : index
    %3 = vector.load %arg5[%c0_5, %c0_6] : memref<128x128xbf16, #tpu.memory_space<vmem>>, vector<128x128xbf16>
    %c0_7 = arith.constant 0 : index
    %c0_8 = arith.constant 0 : index
    %4 = vector.load %arg6[%c0_7, %c0_8] : memref<128x128xbf16, #tpu.memory_space<vmem>>, vector<128x128xbf16>
    %c0_9 = arith.constant 0 : index
    %c0_10 = arith.constant 0 : index
    %5 = vector.load %arg7[%c0_9, %c0_10] : memref<1x128xf32, #tpu.memory_space<vmem>>, vector<1x128xf32>
    %c0_11 = arith.constant 0 : index
    %c0_12 = arith.constant 0 : index
    %6 = vector.load %arg8[%c0_11, %c0_12] : memref<1x128xf32, #tpu.memory_space<vmem>>, vector<1x128xf32>
    %c0_13 = arith.constant 0 : index
    %c0_14 = arith.constant 0 : index
    %7 = vector.load %arg9[%c0_13, %c0_14] : memref<128x256xbf16, #tpu.memory_space<vmem>>, vector<128x256xbf16>
    %c0_15 = arith.constant 0 : index
    %c0_16 = arith.constant 0 : index
    %8 = vector.load %arg10[%c0_15, %c0_16] : memref<1x256xf32, #tpu.memory_space<vmem>>, vector<1x256xf32>
    %c0_17 = arith.constant 0 : index
    %c0_18 = arith.constant 0 : index
    %9 = vector.load %arg11[%c0_17, %c0_18] : memref<256x128xbf16, #tpu.memory_space<vmem>>, vector<256x128xbf16>
    %c0_19 = arith.constant 0 : index
    %c0_20 = arith.constant 0 : index
    %10 = vector.load %arg12[%c0_19, %c0_20] : memref<1x128xf32, #tpu.memory_space<vmem>>, vector<1x128xf32>
    %c0_21 = arith.constant 0 : index
    %c0_22 = arith.constant 0 : index
    %11 = vector.load %arg13[%c0_21, %c0_22] : memref<1x128xf32, #tpu.memory_space<vmem>>, vector<1x128xf32>
    %c0_23 = arith.constant 0 : index
    %c0_24 = arith.constant 0 : index
    %12 = vector.load %arg14[%c0_23, %c0_24] : memref<1x128xf32, #tpu.memory_space<vmem>>, vector<1x128xf32>
    %c0_25 = arith.constant 0 : index
    %c0_26 = arith.constant 0 : index
    %13 = vector.load %arg15[%c0_25, %c0_26] : memref<256x128xbf16, #tpu.memory_space<vmem>>, vector<256x128xbf16>
    %c0_27 = arith.constant 0 : index
    %c0_28 = arith.constant 0 : index
    %14 = vector.load %arg16[%c0_27, %c0_28] : memref<128x128xbf16, #tpu.memory_space<vmem>>, vector<128x128xbf16>
    %c0_29 = arith.constant 0 : index
    %c0_30 = arith.constant 0 : index
    %15 = vector.load %arg17[%c0_29, %c0_30] : memref<128x128xbf16, #tpu.memory_space<vmem>>, vector<128x128xbf16>
    %c0_31 = arith.constant 0 : index
    %c0_32 = arith.constant 0 : index
    %16 = vector.load %arg18[%c0_31, %c0_32] : memref<128x128xbf16, #tpu.memory_space<vmem>>, vector<128x128xbf16>
    %c0_33 = arith.constant 0 : index
    %c0_34 = arith.constant 0 : index
    %17 = vector.load %arg19[%c0_33, %c0_34] : memref<128x128xbf16, #tpu.memory_space<vmem>>, vector<128x128xbf16>
    %c0_35 = arith.constant 0 : index
    %c0_36 = arith.constant 0 : index
    %18 = vector.load %arg20[%c0_35, %c0_36] : memref<1x128xf32, #tpu.memory_space<vmem>>, vector<1x128xf32>
    %c0_37 = arith.constant 0 : index
    %c0_38 = arith.constant 0 : index
    %19 = vector.load %arg21[%c0_37, %c0_38] : memref<1x128xf32, #tpu.memory_space<vmem>>, vector<1x128xf32>
    %c0_39 = arith.constant 0 : index
    %c0_40 = arith.constant 0 : index
    %20 = vector.load %arg22[%c0_39, %c0_40] : memref<128x256xbf16, #tpu.memory_space<vmem>>, vector<128x256xbf16>
    %c0_41 = arith.constant 0 : index
    %c0_42 = arith.constant 0 : index
    %21 = vector.load %arg23[%c0_41, %c0_42] : memref<1x256xf32, #tpu.memory_space<vmem>>, vector<1x256xf32>
    %c0_43 = arith.constant 0 : index
    %c0_44 = arith.constant 0 : index
    %22 = vector.load %arg24[%c0_43, %c0_44] : memref<256x128xbf16, #tpu.memory_space<vmem>>, vector<256x128xbf16>
    %c0_45 = arith.constant 0 : index
    %c0_46 = arith.constant 0 : index
    %23 = vector.load %arg25[%c0_45, %c0_46] : memref<1x128xf32, #tpu.memory_space<vmem>>, vector<1x128xf32>
    %c0_47 = arith.constant 0 : index
    %c0_48 = arith.constant 0 : index
    %24 = vector.load %arg26[%c0_47, %c0_48] : memref<1x128xf32, #tpu.memory_space<vmem>>, vector<1x128xf32>
    %c0_49 = arith.constant 0 : index
    %c0_50 = arith.constant 0 : index
    %25 = vector.load %arg27[%c0_49, %c0_50] : memref<1x128xf32, #tpu.memory_space<vmem>>, vector<1x128xf32>
    %c0_51 = arith.constant 0 : index
    %c0_52 = arith.constant 0 : index
    %26 = vector.load %arg0[%c0_51, %c0_52] : memref<128x1xi32, #tpu.memory_space<vmem>>, vector<128x1xi32>
    %c0_53 = arith.constant 0 : index
    %c0_54 = arith.constant 0 : index
    %27 = vector.load %arg1[%c0_53, %c0_54] : memref<128x128xf32, #tpu.memory_space<vmem>>, vector<128x128xf32>
    %28 = tpu.iota {dimensions = array<i32: 1>} : vector<128x256xi32>
    %29 = vector.broadcast %26 : vector<128x1xi32> to vector<128x256xi32>
    %30 = arith.cmpi eq, %28, %29 : vector<128x256xi32>
    %31 = arith.extui %30 : vector<128x256xi1> to vector<128x256xi32>
    %32 = arith.sitofp %31 : vector<128x256xi32> to vector<128x256xf32>
    %33 = arith.truncf %32 : vector<128x256xf32> to vector<128x256xbf16>
    %cst = arith.constant dense<0.000000e+00> : vector<128x128xf32>
    %34 = tpu.matmul %33, %0, %cst {dimension_numbers = #tpu.dot_dimension_numbers<[1], [0], [0], [1], [0, 0, 1, 1], [], []>} : vector<128x256xbf16>, vector<256x128xbf16>, vector<128x128xf32> -> vector<128x128xf32>
    %35 = arith.truncf %34 : vector<128x128xf32> to vector<128x128xbf16>
    %cst_55 = arith.constant dense<0.000000e+00> : vector<128x128xf32>
    %36 = tpu.matmul %35, %1, %cst_55 {dimension_numbers = #tpu.dot_dimension_numbers<[1], [0], [0], [1], [0, 0, 1, 1], [], []>} : vector<128x128xbf16>, vector<128x128xbf16>, vector<128x128xf32> -> vector<128x128xf32>
    %cst_56 = arith.constant dense<0.000000e+00> : vector<128x128xf32>
    %37 = tpu.matmul %35, %2, %cst_56 {dimension_numbers = #tpu.dot_dimension_numbers<[1], [0], [0], [1], [0, 0, 1, 1], [], []>} : vector<128x128xbf16>, vector<128x128xbf16>, vector<128x128xf32> -> vector<128x128xf32>
    %cst_57 = arith.constant dense<0.000000e+00> : vector<128x128xf32>
    %38 = tpu.matmul %35, %3, %cst_57 {dimension_numbers = #tpu.dot_dimension_numbers<[1], [0], [0], [1], [0, 0, 1, 1], [], []>} : vector<128x128xbf16>, vector<128x128xbf16>, vector<128x128xf32> -> vector<128x128xf32>
    %39 = arith.truncf %36 : vector<128x128xf32> to vector<128x128xbf16>
    %40 = arith.truncf %37 : vector<128x128xf32> to vector<128x128xbf16>
    %cst_58 = arith.constant dense<0.000000e+00> : vector<128x128xf32>
    %41 = tpu.matmul %39, %40, %cst_58 {dimension_numbers = #tpu.dot_dimension_numbers<[1], [1], [0], [0], [0, 0, 1, 0], [], []>} : vector<128x128xbf16>, vector<128x128xbf16>, vector<128x128xf32> -> vector<128x128xf32>
    %cst_59 = arith.constant 0.0883883461 : f32
    %42 = vector.broadcast %cst_59 : f32 to vector<128x128xf32>
    %43 = arith.mulf %41, %42 : vector<128x128xf32>
    %44 = arith.addf %43, %27 : vector<128x128xf32>
    %cst_60 = arith.constant dense<0xFF800000> : vector<128xf32>
    %45 = vector.multi_reduction <maximumf>, %44, %cst_60 [1] : vector<128x128xf32> to vector<128xf32>
    %46 = vector.shape_cast %45 : vector<128xf32> to vector<128x1xf32>
    %47 = vector.broadcast %46 : vector<128x1xf32> to vector<128x128xf32>
    %48 = arith.subf %44, %47 : vector<128x128xf32>
    %49 = math.exp %48 : vector<128x128xf32>
    %cst_61 = arith.constant dense<0.000000e+00> : vector<128xf32>
    %50 = vector.multi_reduction <add>, %49, %cst_61 [1] : vector<128x128xf32> to vector<128xf32>
    %51 = vector.shape_cast %50 : vector<128xf32> to vector<128x1xf32>
    %52 = tpu.reciprocal %51 {approx = true} : vector<128x1xf32> -> vector<128x1xf32>
    %53 = vector.broadcast %52 : vector<128x1xf32> to vector<128x128xf32>
    %54 = arith.mulf %49, %53 : vector<128x128xf32>
    %55 = arith.truncf %54 : vector<128x128xf32> to vector<128x128xbf16>
    %56 = arith.truncf %38 : vector<128x128xf32> to vector<128x128xbf16>
    %cst_62 = arith.constant dense<0.000000e+00> : vector<128x128xf32>
    %57 = tpu.matmul %55, %56, %cst_62 {dimension_numbers = #tpu.dot_dimension_numbers<[1], [0], [0], [1], [0, 0, 1, 1], [], []>} : vector<128x128xbf16>, vector<128x128xbf16>, vector<128x128xf32> -> vector<128x128xf32>
    %58 = arith.truncf %57 : vector<128x128xf32> to vector<128x128xbf16>
    %cst_63 = arith.constant dense<0.000000e+00> : vector<128x128xf32>
    %59 = tpu.matmul %58, %4, %cst_63 {dimension_numbers = #tpu.dot_dimension_numbers<[1], [0], [0], [1], [0, 0, 1, 1], [], []>} : vector<128x128xbf16>, vector<128x128xbf16>, vector<128x128xf32> -> vector<128x128xf32>
    %60 = arith.addf %34, %59 : vector<128x128xf32>
    %cst_64 = arith.constant dense<0.000000e+00> : vector<128xf32>
    %61 = vector.multi_reduction <add>, %60, %cst_64 [1] : vector<128x128xf32> to vector<128xf32>
    %62 = vector.shape_cast %61 : vector<128xf32> to vector<128x1xf32>
    %cst_65 = arith.constant 1.280000e+02 : f32
    %63 = vector.broadcast %cst_65 : f32 to vector<128x1xf32>
    %64 = arith.divf %62, %63 : vector<128x1xf32>
    %65 = vector.broadcast %64 : vector<128x1xf32> to vector<128x128xf32>
    %66 = arith.subf %60, %65 : vector<128x128xf32>
    %67 = arith.mulf %66, %66 : vector<128x128xf32>
    %cst_66 = arith.constant dense<0.000000e+00> : vector<128xf32>
    %68 = vector.multi_reduction <add>, %67, %cst_66 [1] : vector<128x128xf32> to vector<128xf32>
    %69 = vector.shape_cast %68 : vector<128xf32> to vector<128x1xf32>
    %cst_67 = arith.constant 1.280000e+02 : f32
    %70 = vector.broadcast %cst_67 : f32 to vector<128x1xf32>
    %71 = arith.divf %69, %70 : vector<128x1xf32>
    %72 = vector.broadcast %64 : vector<128x1xf32> to vector<128x128xf32>
    %73 = arith.subf %60, %72 : vector<128x128xf32>
    %cst_68 = arith.constant 9.99999974E-6 : f32
    %74 = vector.broadcast %cst_68 : f32 to vector<128x1xf32>
    %75 = arith.addf %71, %74 : vector<128x1xf32>
    %76 = math.rsqrt %75 : vector<128x1xf32>
    %77 = vector.broadcast %76 : vector<128x1xf32> to vector<128x128xf32>
    %78 = arith.mulf %73, %77 : vector<128x128xf32>
    %79 = vector.broadcast %5 : vector<1x128xf32> to vector<128x128xf32>
    %80 = arith.mulf %78, %79 : vector<128x128xf32>
    %81 = vector.broadcast %6 : vector<1x128xf32> to vector<128x128xf32>
    %82 = arith.addf %80, %81 : vector<128x128xf32>
    %83 = arith.truncf %82 : vector<128x128xf32> to vector<128x128xbf16>
    %cst_69 = arith.constant dense<0.000000e+00> : vector<128x256xf32>
    %84 = tpu.matmul %83, %7, %cst_69 {dimension_numbers = #tpu.dot_dimension_numbers<[1], [0], [0], [1], [0, 0, 1, 1], [], []>} : vector<128x128xbf16>, vector<128x256xbf16>, vector<128x256xf32> -> vector<128x256xf32>
    %85 = vector.broadcast %8 : vector<1x256xf32> to vector<128x256xf32>
    %86 = arith.addf %84, %85 : vector<128x256xf32>
    %87 = arith.mulf %86, %86 : vector<128x256xf32>
    %88 = arith.mulf %86, %87 : vector<128x256xf32>
    %cst_70 = arith.constant 4.471500e-02 : f32
    %89 = vector.broadcast %cst_70 : f32 to vector<128x256xf32>
    %90 = arith.mulf %89, %88 : vector<128x256xf32>
    %91 = arith.addf %86, %90 : vector<128x256xf32>
    %cst_71 = arith.constant 0.797884583 : f32
    %92 = vector.broadcast %cst_71 : f32 to vector<128x256xf32>
    %93 = arith.mulf %92, %91 : vector<128x256xf32>
    %94 = math.tanh %93 : vector<128x256xf32>
    %cst_72 = arith.constant 1.000000e+00 : f32
    %95 = vector.broadcast %cst_72 : f32 to vector<128x256xf32>
    %96 = arith.addf %95, %94 : vector<128x256xf32>
    %cst_73 = arith.constant 5.000000e-01 : f32
    %97 = vector.broadcast %cst_73 : f32 to vector<128x256xf32>
    %98 = arith.mulf %97, %96 : vector<128x256xf32>
    %99 = arith.mulf %86, %98 : vector<128x256xf32>
    %100 = arith.truncf %99 : vector<128x256xf32> to vector<128x256xbf16>
    %cst_74 = arith.constant dense<0.000000e+00> : vector<128x128xf32>
    %101 = tpu.matmul %100, %9, %cst_74 {dimension_numbers = #tpu.dot_dimension_numbers<[1], [0], [0], [1], [0, 0, 1, 1], [], []>} : vector<128x256xbf16>, vector<256x128xbf16>, vector<128x128xf32> -> vector<128x128xf32>
    %102 = vector.broadcast %10 : vector<1x128xf32> to vector<128x128xf32>
    %103 = arith.addf %101, %102 : vector<128x128xf32>
    %104 = arith.addf %82, %103 : vector<128x128xf32>
    %cst_75 = arith.constant dense<0.000000e+00> : vector<128xf32>
    %105 = vector.multi_reduction <add>, %104, %cst_75 [1] : vector<128x128xf32> to vector<128xf32>
    %106 = vector.shape_cast %105 : vector<128xf32> to vector<128x1xf32>
    %cst_76 = arith.constant 1.280000e+02 : f32
    %107 = vector.broadcast %cst_76 : f32 to vector<128x1xf32>
    %108 = arith.divf %106, %107 : vector<128x1xf32>
    %109 = vector.broadcast %108 : vector<128x1xf32> to vector<128x128xf32>
    %110 = arith.subf %104, %109 : vector<128x128xf32>
    %111 = arith.mulf %110, %110 : vector<128x128xf32>
    %cst_77 = arith.constant dense<0.000000e+00> : vector<128xf32>
    %112 = vector.multi_reduction <add>, %111, %cst_77 [1] : vector<128x128xf32> to vector<128xf32>
    %113 = vector.shape_cast %112 : vector<128xf32> to vector<128x1xf32>
    %cst_78 = arith.constant 1.280000e+02 : f32
    %114 = vector.broadcast %cst_78 : f32 to vector<128x1xf32>
    %115 = arith.divf %113, %114 : vector<128x1xf32>
    %116 = vector.broadcast %108 : vector<128x1xf32> to vector<128x128xf32>
    %117 = arith.subf %104, %116 : vector<128x128xf32>
    %cst_79 = arith.constant 9.99999974E-6 : f32
    %118 = vector.broadcast %cst_79 : f32 to vector<128x1xf32>
    %119 = arith.addf %115, %118 : vector<128x1xf32>
    %120 = math.rsqrt %119 : vector<128x1xf32>
    %121 = vector.broadcast %120 : vector<128x1xf32> to vector<128x128xf32>
    %122 = arith.mulf %117, %121 : vector<128x128xf32>
    %123 = vector.broadcast %11 : vector<1x128xf32> to vector<128x128xf32>
    %124 = arith.mulf %122, %123 : vector<128x128xf32>
    %125 = vector.broadcast %12 : vector<1x128xf32> to vector<128x128xf32>
    %126 = arith.addf %124, %125 : vector<128x128xf32>
    %127 = arith.truncf %126 : vector<128x128xf32> to vector<128x128xbf16>
    %cst_80 = arith.constant dense<0.000000e+00> : vector<128x256xf32>
    %128 = tpu.matmul %127, %0, %cst_80 {dimension_numbers = #tpu.dot_dimension_numbers<[1], [1], [0], [0], [0, 0, 1, 0], [], []>} : vector<128x128xbf16>, vector<256x128xbf16>, vector<128x256xf32> -> vector<128x256xf32>
    %cst_81 = arith.constant dense<0xFF800000> : vector<128xf32>
    %129 = vector.multi_reduction <maximumf>, %128, %cst_81 [1] : vector<128x256xf32> to vector<128xf32>
    %130 = vector.shape_cast %129 : vector<128xf32> to vector<128x1xf32>
    %131 = tpu.iota {dimensions = array<i32: 1>} : vector<128x256xi32>
    %132 = vector.broadcast %130 : vector<128x1xf32> to vector<128x256xf32>
    %133 = arith.cmpf oge, %128, %132 : vector<128x256xf32>
    %c256_i32 = arith.constant 256 : i32
    %134 = vector.broadcast %c256_i32 : i32 to vector<128x256xi32>
    %135 = arith.select %133, %131, %134 : vector<128x256xi1>, vector<128x256xi32>
    %cst_82 = arith.constant dense<2147483647> : vector<128xi32>
    %136 = vector.multi_reduction <minsi>, %135, %cst_82 [1] : vector<128x256xi32> to vector<128xi32>
    %137 = vector.shape_cast %136 : vector<128xi32> to vector<128x1xi32>
    %138 = tpu.iota {dimensions = array<i32: 1>} : vector<128x256xi32>
    %139 = vector.broadcast %137 : vector<128x1xi32> to vector<128x256xi32>
    %140 = arith.cmpi eq, %138, %139 : vector<128x256xi32>
    %141 = arith.extui %140 : vector<128x256xi1> to vector<128x256xi32>
    %142 = arith.sitofp %141 : vector<128x256xi32> to vector<128x256xf32>
    %143 = arith.truncf %142 : vector<128x256xf32> to vector<128x256xbf16>
    %cst_83 = arith.constant dense<0.000000e+00> : vector<128x128xf32>
    %144 = tpu.matmul %143, %13, %cst_83 {dimension_numbers = #tpu.dot_dimension_numbers<[1], [0], [0], [1], [0, 0, 1, 1], [], []>} : vector<128x256xbf16>, vector<256x128xbf16>, vector<128x128xf32> -> vector<128x128xf32>
    %145 = arith.truncf %144 : vector<128x128xf32> to vector<128x128xbf16>
    %cst_84 = arith.constant dense<0.000000e+00> : vector<128x128xf32>
    %146 = tpu.matmul %145, %14, %cst_84 {dimension_numbers = #tpu.dot_dimension_numbers<[1], [0], [0], [1], [0, 0, 1, 1], [], []>} : vector<128x128xbf16>, vector<128x128xbf16>, vector<128x128xf32> -> vector<128x128xf32>
    %cst_85 = arith.constant dense<0.000000e+00> : vector<128x128xf32>
    %147 = tpu.matmul %145, %15, %cst_85 {dimension_numbers = #tpu.dot_dimension_numbers<[1], [0], [0], [1], [0, 0, 1, 1], [], []>} : vector<128x128xbf16>, vector<128x128xbf16>, vector<128x128xf32> -> vector<128x128xf32>
    %cst_86 = arith.constant dense<0.000000e+00> : vector<128x128xf32>
    %148 = tpu.matmul %145, %16, %cst_86 {dimension_numbers = #tpu.dot_dimension_numbers<[1], [0], [0], [1], [0, 0, 1, 1], [], []>} : vector<128x128xbf16>, vector<128x128xbf16>, vector<128x128xf32> -> vector<128x128xf32>
    %149 = arith.truncf %146 : vector<128x128xf32> to vector<128x128xbf16>
    %150 = arith.truncf %147 : vector<128x128xf32> to vector<128x128xbf16>
    %cst_87 = arith.constant dense<0.000000e+00> : vector<128x128xf32>
    %151 = tpu.matmul %149, %150, %cst_87 {dimension_numbers = #tpu.dot_dimension_numbers<[1], [1], [0], [0], [0, 0, 1, 0], [], []>} : vector<128x128xbf16>, vector<128x128xbf16>, vector<128x128xf32> -> vector<128x128xf32>
    %cst_88 = arith.constant 0.0883883461 : f32
    %152 = vector.broadcast %cst_88 : f32 to vector<128x128xf32>
    %153 = arith.mulf %151, %152 : vector<128x128xf32>
    %154 = arith.addf %153, %27 : vector<128x128xf32>
    %cst_89 = arith.constant dense<0xFF800000> : vector<128xf32>
    %155 = vector.multi_reduction <maximumf>, %154, %cst_89 [1] : vector<128x128xf32> to vector<128xf32>
    %156 = vector.shape_cast %155 : vector<128xf32> to vector<128x1xf32>
    %157 = vector.broadcast %156 : vector<128x1xf32> to vector<128x128xf32>
    %158 = arith.subf %154, %157 : vector<128x128xf32>
    %159 = math.exp %158 : vector<128x128xf32>
    %cst_90 = arith.constant dense<0.000000e+00> : vector<128xf32>
    %160 = vector.multi_reduction <add>, %159, %cst_90 [1] : vector<128x128xf32> to vector<128xf32>
    %161 = vector.shape_cast %160 : vector<128xf32> to vector<128x1xf32>
    %162 = tpu.reciprocal %161 {approx = true} : vector<128x1xf32> -> vector<128x1xf32>
    %163 = vector.broadcast %162 : vector<128x1xf32> to vector<128x128xf32>
    %164 = arith.mulf %159, %163 : vector<128x128xf32>
    %165 = arith.truncf %164 : vector<128x128xf32> to vector<128x128xbf16>
    %166 = arith.truncf %148 : vector<128x128xf32> to vector<128x128xbf16>
    %cst_91 = arith.constant dense<0.000000e+00> : vector<128x128xf32>
    %167 = tpu.matmul %165, %166, %cst_91 {dimension_numbers = #tpu.dot_dimension_numbers<[1], [0], [0], [1], [0, 0, 1, 1], [], []>} : vector<128x128xbf16>, vector<128x128xbf16>, vector<128x128xf32> -> vector<128x128xf32>
    %168 = arith.truncf %167 : vector<128x128xf32> to vector<128x128xbf16>
    %cst_92 = arith.constant dense<0.000000e+00> : vector<128x128xf32>
    %169 = tpu.matmul %168, %17, %cst_92 {dimension_numbers = #tpu.dot_dimension_numbers<[1], [0], [0], [1], [0, 0, 1, 1], [], []>} : vector<128x128xbf16>, vector<128x128xbf16>, vector<128x128xf32> -> vector<128x128xf32>
    %170 = arith.addf %144, %169 : vector<128x128xf32>
    %cst_93 = arith.constant dense<0.000000e+00> : vector<128xf32>
    %171 = vector.multi_reduction <add>, %170, %cst_93 [1] : vector<128x128xf32> to vector<128xf32>
    %172 = vector.shape_cast %171 : vector<128xf32> to vector<128x1xf32>
    %cst_94 = arith.constant 1.280000e+02 : f32
    %173 = vector.broadcast %cst_94 : f32 to vector<128x1xf32>
    %174 = arith.divf %172, %173 : vector<128x1xf32>
    %175 = vector.broadcast %174 : vector<128x1xf32> to vector<128x128xf32>
    %176 = arith.subf %170, %175 : vector<128x128xf32>
    %177 = arith.mulf %176, %176 : vector<128x128xf32>
    %cst_95 = arith.constant dense<0.000000e+00> : vector<128xf32>
    %178 = vector.multi_reduction <add>, %177, %cst_95 [1] : vector<128x128xf32> to vector<128xf32>
    %179 = vector.shape_cast %178 : vector<128xf32> to vector<128x1xf32>
    %cst_96 = arith.constant 1.280000e+02 : f32
    %180 = vector.broadcast %cst_96 : f32 to vector<128x1xf32>
    %181 = arith.divf %179, %180 : vector<128x1xf32>
    %182 = vector.broadcast %174 : vector<128x1xf32> to vector<128x128xf32>
    %183 = arith.subf %170, %182 : vector<128x128xf32>
    %cst_97 = arith.constant 9.99999974E-6 : f32
    %184 = vector.broadcast %cst_97 : f32 to vector<128x1xf32>
    %185 = arith.addf %181, %184 : vector<128x1xf32>
    %186 = math.rsqrt %185 : vector<128x1xf32>
    %187 = vector.broadcast %186 : vector<128x1xf32> to vector<128x128xf32>
    %188 = arith.mulf %183, %187 : vector<128x128xf32>
    %189 = vector.broadcast %18 : vector<1x128xf32> to vector<128x128xf32>
    %190 = arith.mulf %188, %189 : vector<128x128xf32>
    %191 = vector.broadcast %19 : vector<1x128xf32> to vector<128x128xf32>
    %192 = arith.addf %190, %191 : vector<128x128xf32>
    %193 = arith.truncf %192 : vector<128x128xf32> to vector<128x128xbf16>
    %cst_98 = arith.constant dense<0.000000e+00> : vector<128x256xf32>
    %194 = tpu.matmul %193, %20, %cst_98 {dimension_numbers = #tpu.dot_dimension_numbers<[1], [0], [0], [1], [0, 0, 1, 1], [], []>} : vector<128x128xbf16>, vector<128x256xbf16>, vector<128x256xf32> -> vector<128x256xf32>
    %195 = vector.broadcast %21 : vector<1x256xf32> to vector<128x256xf32>
    %196 = arith.addf %194, %195 : vector<128x256xf32>
    %197 = arith.mulf %196, %196 : vector<128x256xf32>
    %198 = arith.mulf %196, %197 : vector<128x256xf32>
    %cst_99 = arith.constant 4.471500e-02 : f32
    %199 = vector.broadcast %cst_99 : f32 to vector<128x256xf32>
    %200 = arith.mulf %199, %198 : vector<128x256xf32>
    %201 = arith.addf %196, %200 : vector<128x256xf32>
    %cst_100 = arith.constant 0.797884583 : f32
    %202 = vector.broadcast %cst_100 : f32 to vector<128x256xf32>
    %203 = arith.mulf %202, %201 : vector<128x256xf32>
    %204 = math.tanh %203 : vector<128x256xf32>
    %cst_101 = arith.constant 1.000000e+00 : f32
    %205 = vector.broadcast %cst_101 : f32 to vector<128x256xf32>
    %206 = arith.addf %205, %204 : vector<128x256xf32>
    %cst_102 = arith.constant 5.000000e-01 : f32
    %207 = vector.broadcast %cst_102 : f32 to vector<128x256xf32>
    %208 = arith.mulf %207, %206 : vector<128x256xf32>
    %209 = arith.mulf %196, %208 : vector<128x256xf32>
    %210 = arith.truncf %209 : vector<128x256xf32> to vector<128x256xbf16>
    %cst_103 = arith.constant dense<0.000000e+00> : vector<128x128xf32>
    %211 = tpu.matmul %210, %22, %cst_103 {dimension_numbers = #tpu.dot_dimension_numbers<[1], [0], [0], [1], [0, 0, 1, 1], [], []>} : vector<128x256xbf16>, vector<256x128xbf16>, vector<128x128xf32> -> vector<128x128xf32>
    %212 = vector.broadcast %23 : vector<1x128xf32> to vector<128x128xf32>
    %213 = arith.addf %211, %212 : vector<128x128xf32>
    %214 = arith.addf %192, %213 : vector<128x128xf32>
    %cst_104 = arith.constant dense<0.000000e+00> : vector<128xf32>
    %215 = vector.multi_reduction <add>, %214, %cst_104 [1] : vector<128x128xf32> to vector<128xf32>
    %216 = vector.shape_cast %215 : vector<128xf32> to vector<128x1xf32>
    %cst_105 = arith.constant 1.280000e+02 : f32
    %217 = vector.broadcast %cst_105 : f32 to vector<128x1xf32>
    %218 = arith.divf %216, %217 : vector<128x1xf32>
    %219 = vector.broadcast %218 : vector<128x1xf32> to vector<128x128xf32>
    %220 = arith.subf %214, %219 : vector<128x128xf32>
    %221 = arith.mulf %220, %220 : vector<128x128xf32>
    %cst_106 = arith.constant dense<0.000000e+00> : vector<128xf32>
    %222 = vector.multi_reduction <add>, %221, %cst_106 [1] : vector<128x128xf32> to vector<128xf32>
    %223 = vector.shape_cast %222 : vector<128xf32> to vector<128x1xf32>
    %cst_107 = arith.constant 1.280000e+02 : f32
    %224 = vector.broadcast %cst_107 : f32 to vector<128x1xf32>
    %225 = arith.divf %223, %224 : vector<128x1xf32>
    %226 = vector.broadcast %218 : vector<128x1xf32> to vector<128x128xf32>
    %227 = arith.subf %214, %226 : vector<128x128xf32>
    %cst_108 = arith.constant 9.99999974E-6 : f32
    %228 = vector.broadcast %cst_108 : f32 to vector<128x1xf32>
    %229 = arith.addf %225, %228 : vector<128x1xf32>
    %230 = math.rsqrt %229 : vector<128x1xf32>
    %231 = vector.broadcast %230 : vector<128x1xf32> to vector<128x128xf32>
    %232 = arith.mulf %227, %231 : vector<128x128xf32>
    %233 = vector.broadcast %24 : vector<1x128xf32> to vector<128x128xf32>
    %234 = arith.mulf %232, %233 : vector<128x128xf32>
    %235 = vector.broadcast %25 : vector<1x128xf32> to vector<128x128xf32>
    %236 = arith.addf %234, %235 : vector<128x128xf32>
    %237 = arith.truncf %236 : vector<128x128xf32> to vector<128x128xbf16>
    %cst_109 = arith.constant dense<0.000000e+00> : vector<128x256xf32>
    %238 = tpu.matmul %237, %13, %cst_109 {dimension_numbers = #tpu.dot_dimension_numbers<[1], [1], [0], [0], [0, 0, 1, 0], [], []>} : vector<128x128xbf16>, vector<256x128xbf16>, vector<128x256xf32> -> vector<128x256xf32>
    %cst_110 = arith.constant dense<0xFF800000> : vector<128xf32>
    %239 = vector.multi_reduction <maximumf>, %238, %cst_110 [1] : vector<128x256xf32> to vector<128xf32>
    %240 = vector.shape_cast %239 : vector<128xf32> to vector<128x1xf32>
    %241 = tpu.iota {dimensions = array<i32: 1>} : vector<128x256xi32>
    %242 = vector.broadcast %240 : vector<128x1xf32> to vector<128x256xf32>
    %243 = arith.cmpf oge, %238, %242 : vector<128x256xf32>
    %c256_i32_111 = arith.constant 256 : i32
    %244 = vector.broadcast %c256_i32_111 : i32 to vector<128x256xi32>
    %245 = arith.select %243, %241, %244 : vector<128x256xi1>, vector<128x256xi32>
    %cst_112 = arith.constant dense<2147483647> : vector<128xi32>
    %246 = vector.multi_reduction <minsi>, %245, %cst_112 [1] : vector<128x256xi32> to vector<128xi32>
    %247 = vector.shape_cast %246 : vector<128xi32> to vector<128x1xi32>
    %c0_113 = arith.constant 0 : index
    %c0_114 = arith.constant 0 : index
    %248 = vector.load %arg28[%c0_113, %c0_114] : memref<128x1xi32, #tpu.memory_space<vmem>>, vector<128x1xi32>
    tpu.vector_store %arg28[%c0_113, %c0_114], %247 {strides = array<i32>} : memref<128x1xi32, #tpu.memory_space<vmem>>, vector<128x1xi32>,
    return
  }
}

</mosaic_0001>

<bundles_post_ra>
// kernel: back_translate.1
= control target key start
LH: loop header
LB: loop body
LE: loop exit
PB: predicated region body
PF: predicated region fallthrough
CT: control target
= control target key end

     0   :  { %s12314_s0 = inlined_call_operand.vmem [shape: s32[128,1], index: 0, kind: input, shape index: {}]   ;;  %s12315_s1 = inlined_call_operand.vmem [shape: f32[128,128], index: 1, kind: input, shape index: {}]   ;;  %s12316_s2 = inlined_call_operand.vmem [shape: bf16[256,128], index: 2, kind: input, shape index: {}]   ;;  %s12317_s3 = inlined_call_operand.hbm [shape: bf16[128,128], index: 3, kind: input, shape index: {}]   ;;  %s12318_s4 = inlined_call_operand.hbm [shape: bf16[128,128], index: 4, kind: input, shape index: {}]   ;;  %s12319_s5 = inlined_call_operand.vmem [shape: bf16[128,128], index: 5, kind: input, shape index: {}]   ;;  %s12320_s6 = inlined_call_operand.hbm [shape: bf16[128,128], index: 6, kind: input, shape index: {}]   ;;  %s12321_s7 = inlined_call_operand.vmem [shape: f32[1,128], index: 7, kind: input, shape index: {}]   ;;  %s12322_s8 = inlined_call_operand.hbm [shape: f32[1,128], index: 8, kind: input, shape index: {}]   ;;  %s12323_s9 = inlined_call_operand.vmem [shape: bf16[128,256], index: 9, kind: input, shape index: {}]   ;;  %s12324_s10 = inlined_call_operand.vmem [shape: f32[1,256], index: 10, kind: input, shape index: {}]   ;;  %s12325_s11 = inlined_call_operand.hbm [shape: bf16[256,128], index: 11, kind: input, shape index: {}]   ;;  %s12326_s12 = inlined_call_operand.hbm [shape: f32[1,128], index: 12, kind: input, shape index: {}]   ;;  %s12327_s13 = inlined_call_operand.hbm [shape: f32[1,128], index: 13, kind: input, shape index: {}]   ;;  %s12328_s14 = inlined_call_operand.hbm [shape: f32[1,128], index: 14, kind: input, shape index: {}]   ;;  %s12329_s15 = inlined_call_operand.hbm [shape: bf16[256,128], index: 15, kind: input, shape index: {}]   ;;  %s12330_s16 = inlined_call_operand.hbm [shape: bf16[128,128], index: 16, kind: input, shape index: {}]   ;;  %s12331_s17 = inlined_call_operand.hbm [shape: bf16[128,128], index: 17, kind: input, shape index: {}]   ;;  %s12332_s18 = inlined_call_operand.hbm [shape: bf16[128,128], index: 18, kind: input, shape index: {}]   ;;  %s12333_s19 = inlined_call_operand.hbm [shape: bf16[128,128], index: 19, kind: input, shape index: {}]   ;;  %s12334_s20 = inlined_call_operand.vmem [shape: f32[1,128], index: 20, kind: input, shape index: {}]   ;;  %s12335_s21 = inlined_call_operand.vmem [shape: f32[1,128], index: 21, kind: input, shape index: {}]   ;;  %s12336_s22 = inlined_call_operand.hbm [shape: bf16[128,256], index: 22, kind: input, shape index: {}]   ;;  %s12337_s23 = inlined_call_operand.hbm [shape: f32[1,256], index: 23, kind: input, shape index: {}]   ;;  %s12338_s24 = inlined_call_operand.hbm [shape: bf16[256,128], index: 24, kind: input, shape index: {}]   ;;  %s12339_s25 = inlined_call_operand.vmem [shape: f32[1,128], index: 25, kind: input, shape index: {}]   ;;  %s12340_s26 = inlined_call_operand.vmem [shape: f32[1,128], index: 26, kind: input, shape index: {}]   ;;  %s12341_s27 = inlined_call_operand.vmem [shape: f32[1,128], index: 27, kind: input, shape index: {}]   ;;  %s12342_s28 = inlined_call_operand.vmem [shape: s32[128,1], index: 28, kind: output, shape index: {}]  }
   0x1   :  { %12376 = sst [smem:[#allocation46_spill]] %s12314_s0 }
   0x2   :  { %12377 = sst [smem:[#allocation47_spill]] %s12315_s1 }
   0x3   :  { %12378 = sst [smem:[#allocation48_spill]] %s12316_s2 }
   0x4   :  { %12379 = sst [smem:[#allocation49_spill]] %s12317_s3 }
   0x5   :  { %12380 = sst [smem:[#allocation50_spill]] %s12318_s4 }
   0x6   :  { %12381 = sst [smem:[#allocation51_spill]] %s12319_s5 }
   0x7   :  { %12382 = sst [smem:[#allocation52_spill]] %s12320_s6 }
   0x8   :  { %12383 = sst [smem:[#allocation53_spill]] %s12321_s7 }
   0x9   :  { %12384 = sst [smem:[#allocation54_spill]] %s12322_s8 }
   0xa   :  { %12385 = sst [smem:[#allocation55_spill]] %s12323_s9 }
   0xb   :  { %12386 = sst [smem:[#allocation56_spill]] %s12324_s10 }
   0xc   :  { %12387 = sst [smem:[#allocation57_spill]] %s12325_s11 }
   0xd   :  { %12388 = sst [smem:[#allocation58_spill]] %s12326_s12 }
   0xe   :  { %12389 = sst [smem:[#allocation59_spill]] %s12342_s28 }
   0xf   :  { %33 = vsyncpa [#allocation3], 0 }
  0x10   :  { %34 = vsyncpa [#allocation5], 0 }
  0x11   :  { %35 = vsyncpa [#allocation8], 0 }
  0x12   :  { %36 = vsyncpa [#allocation11], 0 }
  0x13   :  { %37 = vsyncpa [#allocation14], 0 }
  0x14   :  { %38 = vsyncpa [#allocation17], 0 }
  0x15   :  { %39 = vsyncpa [#allocation20], 0 }
  0x16   :  { %40 = vsyncpa [#allocation23], 0 }
  0x17   :  { %41 = vsyncpa [#allocation26], 0  ;;  %s8849_s8 = smov [#allocation4]   ;;  %s8850_s9 = smov [#allocation7]  }
  0x18   :  { %s65_s5 = sshll.u32 %s8849_s8, 4  ;;  %s94_s30 = sshll.u32 %s8850_s9, 4  ;;  %s66_s5 = int_to_ptr.vmem [resolvable:$true] %s65_s5  ;;  %s95_s30 = int_to_ptr.vmem [resolvable:$true] %s94_s30 }
  0x19   :  { %s8519_s3 = scalar_lea.vmem %s66_s5, 1024  ;;  %p8524_p1 = scmp.lt.s32.totalorder %s66_s5, %s66_s5 }
  0x1a   :  { %p8520_p0 = scmp.ne.s32.totalorder %s66_s5, %s8519_s3  ;;  %p8525_p2 = scmp.lt.s32.totalorder %s8519_s3, %s8519_s3 }
  0x1c   :  { %p8526_p3 = por %p8525_p2, %p8524_p1 }
  0x1e   :  { %p8527_p4 = pnand %p8526_p3, %p8520_p0 }
  0x20   :  { %8530 = shalt.err (!%p8527_p4)
}
  0x21   :  { %s8851_s6 = smov 64   ;;  %s8852_s10 = smov 4  }
  0x22   :  { %s12390_s29 = sld [smem:[#allocation50_spill]]  ;;  %s8539_s2 = scalar_lea.vmem %s95_s30, 16 }
  0x23   :  { %p8540_p5 = scmp.ne.s32.totalorder %s95_s30, %s8539_s2  ;;  %s8543_s7 = scalar_lea.vmem %s95_s30, 32 }
  0x24   :  { %p8544_p6 = scmp.lt.s32.totalorder %s95_s30, %s95_s30  ;;  %p8545_p7 = scmp.lt.s32.totalorder %s8543_s7, %s8539_s2 }
  0x26   :  { %p8546_p8 = por %p8545_p7, %p8544_p6 }
  0x28   :  { %71 = dma.hbm_to_vmem [thread:$0]  %s12390_s29, 1024, %s66_s5, [#allocation5], %s8851_s6, %s8851_s6, %s8852_s10  }
  0x29   :  { %p8547_p9 = pnand %p8546_p8, %p8540_p5 }
  0x2b   :  { %8550 = shalt.err (!%p8547_p9)
}
  0x2c   :  { %s12391_s4 = sld [smem:[#allocation54_spill]]  ;;  %s8853_s8 = smov [#allocation10]  }
  0x2d   :  { %s120_s9 = sshll.u32 %s8853_s8, 4  ;;  %s8854_s3 = smov [#allocation13]   ;;  %s121_s9 = int_to_ptr.vmem [resolvable:$true] %s120_s9 }
  0x2e   :  { %s140_s28 = sshll.u32 %s8854_s3, 4  ;;  %s8559_s0 = scalar_lea.vmem %s121_s9, 16  ;;  %s141_s28 = int_to_ptr.vmem [resolvable:$true] %s140_s28 }
  0x2f   :  { %p8560_p10 = scmp.ne.s32.totalorder %s121_s9, %s8559_s0  ;;  %s8563_s5 = scalar_lea.vmem %s121_s9, 32 }
  0x30   :  { %p8564_p11 = scmp.lt.s32.totalorder %s121_s9, %s121_s9  ;;  %p8565_p12 = scmp.lt.s32.totalorder %s8563_s5, %s8559_s0 }
  0x32   :  { %97 = dma.hbm_to_vmem [thread:$0]  %s12391_s4, 16, %s95_s30, [#allocation8]  }
  0x33   :  { %p8566_p13 = por %p8565_p12, %p8564_p11 }
  0x35   :  { %p8567_p0 = pnand %p8566_p13, %p8560_p10 }
  0x37   :  { %8570 = shalt.err (!%p8567_p0)
}
  0x38   :  { %s12392_s2 = sld [smem:[#allocation58_spill]]  ;;  %s8579_s7 = scalar_lea.vmem %s141_s28, 16 }
  0x39   :  { %p8580_p1 = scmp.ne.s32.totalorder %s141_s28, %s8579_s7  ;;  %s8583_s30 = scalar_lea.vmem %s141_s28, 32 }
  0x3a   :  { %p8584_p2 = scmp.lt.s32.totalorder %s141_s28, %s141_s28  ;;  %p8585_p3 = scmp.lt.s32.totalorder %s8583_s30, %s8579_s7 }
  0x3c   :  { %p8586_p4 = por %p8585_p3, %p8584_p2 }
  0x3e   :  { %123 = dma.hbm_to_vmem [thread:$0]  %s12392_s2, 16, %s121_s9, [#allocation11]  }
  0x3f   :  { %p8587_p5 = pnand %p8586_p4, %p8580_p1 }
  0x41   :  { %8590 = shalt.err (!%p8587_p5)
}
  0x42   :  { %143 = dma.hbm_to_vmem [thread:$0]  %s12328_s14, 16, %s141_s28, [#allocation14]  }
  0x43   :  { %s8855_s4 = smov [#allocation16]   ;;  %s8856_s3 = smov [#allocation19]  }
  0x44   :  { %s161_s8 = sshll.u32 %s8855_s4, 4  ;;  %s185_s0 = sshll.u32 %s8856_s3, 4  ;;  %s162_s8 = int_to_ptr.vmem [resolvable:$true] %s161_s8  ;;  %s186_s0 = int_to_ptr.vmem [resolvable:$true] %s185_s0 }
  0x45   :  { %s8599_s5 = scalar_lea.vmem %s162_s8, 1024  ;;  %p8604_p7 = scmp.lt.s32.totalorder %s162_s8, %s162_s8 }
  0x46   :  { %p8600_p6 = scmp.ne.s32.totalorder %s162_s8, %s8599_s5  ;;  %p8605_p8 = scmp.lt.s32.totalorder %s8599_s5, %s8599_s5 }
  0x48   :  { %p8606_p9 = por %p8605_p8, %p8604_p7 }
  0x4a   :  { %p8607_p10 = pnand %p8606_p9, %p8600_p6 }
  0x4c   :  { %8610 = shalt.err (!%p8607_p10)
}
  0x4d   :  { %167 = dma.hbm_to_vmem [thread:$0]  %s12330_s16, 1024, %s162_s8, [#allocation17], %s8851_s6, %s8851_s6, %s8852_s10  }
  0x4e   :  { %s8619_s14 = scalar_lea.vmem %s186_s0, 1024  ;;  %p8624_p12 = scmp.lt.s32.totalorder %s186_s0, %s186_s0 }
  0x4f   :  { %p8620_p11 = scmp.ne.s32.totalorder %s186_s0, %s8619_s14  ;;  %p8625_p13 = scmp.lt.s32.totalorder %s8619_s14, %s8619_s14 }
  0x51   :  { %p8626_p0 = por %p8625_p13, %p8624_p12 }
  0x53   :  { %p8627_p1 = pnand %p8626_p0, %p8620_p11 }
  0x55   :  { %8630 = shalt.err (!%p8627_p1)
}
  0x56   :  { %191 = dma.hbm_to_vmem [thread:$0]  %s12332_s18, 1024, %s186_s0, [#allocation20], %s8851_s6, %s8851_s6, %s8852_s10  }
  0x57   :  { %s8857_s2 = smov [#allocation22]  }
  0x58   :  { %s213_s7 = sshll.u32 %s8857_s2, 4  ;;  %s214_s7 = int_to_ptr.vmem [resolvable:$true] %s213_s7 }
  0x59   :  { %s8639_s30 = scalar_lea.vmem %s214_s7, 2048  ;;  %p8644_p3 = scmp.lt.s32.totalorder %s214_s7, %s214_s7 }
  0x5a   :  { %p8640_p2 = scmp.ne.s32.totalorder %s214_s7, %s8639_s30  ;;  %p8645_p4 = scmp.lt.s32.totalorder %s8639_s30, %s8639_s30 }
  0x5c   :  { %p8646_p5 = por %p8645_p4, %p8644_p3 }
  0x5e   :  { %p8647_p6 = pnand %p8646_p5, %p8640_p2 }
  0x60   :  { %8650 = shalt.err (!%p8647_p6)
}
  0x61   :  { %s8858_s16 = smov 128   ;;  %s8859_s12 = smov 8  }
  0x62   :  { %219 = dma.hbm_to_vmem [thread:$0]  %s12336_s22, 2048, %s214_s7, [#allocation23], %s8858_s16, %s8858_s16, %s8859_s12  }
  0x63   :  { %s8860_s8 = smov [#allocation2]   ;;  %s8861_s18 = smov [#allocation6]  }
  0x64   :  { %s53_s3 = sshll.u32 %s8860_s8, 4  ;;  %s79_s0 = sshll.u32 %s8861_s18, 4  ;;  %s54_s3 = int_to_ptr.vmem [resolvable:$true] %s53_s3  ;;  %s80_s0 = int_to_ptr.vmem [resolvable:$true] %s79_s0 }
  0x65   :  { %s8659_s5 = scalar_lea.vmem %s54_s3, 1024  ;;  %p8664_p8 = scmp.lt.s32.totalorder %s54_s3, %s54_s3 }
  0x66   :  { %p8660_p7 = scmp.ne.s32.totalorder %s54_s3, %s8659_s5  ;;  %p8665_p9 = scmp.lt.s32.totalorder %s8659_s5, %s8659_s5 }
  0x68   :  { %p8666_p10 = por %p8665_p9, %p8664_p8 }
  0x6a   :  { %p8667_p11 = pnand %p8666_p10, %p8660_p7 }
  0x6c   :  { %8670 = shalt.err (!%p8667_p11)
}
  0x6d   :  { %s12393_s14 = sld [smem:[#allocation49_spill]]  ;;  %s8679_s22 = scalar_lea.vmem %s80_s0, 1024 }
  0x6e   :  { %p8680_p12 = scmp.ne.s32.totalorder %s80_s0, %s8679_s22  ;;  %p8684_p13 = scmp.lt.s32.totalorder %s80_s0, %s80_s0 }
  0x6f   :  { %p8685_p0 = scmp.lt.s32.totalorder %s8679_s22, %s8679_s22 }
  0x71   :  { %p8686_p1 = por %p8685_p0, %p8684_p13 }
  0x73   :  { %59 = dma.hbm_to_vmem [thread:$0]  %s12393_s14, 1024, %s54_s3, [#allocation3], %s8851_s6, %s8851_s6, %s8852_s10  }
  0x74   :  { %p8687_p2 = pnand %p8686_p1, %p8680_p12 }
  0x76   :  { %8690 = shalt.err (!%p8687_p2)
}
  0x77   :  { %s12394_s2 = sld [smem:[#allocation52_spill]]  ;;  %s8862_s7 = smov [#allocation9]  }
  0x78   :  { %s107_s30 = sshll.u32 %s8862_s7, 4  ;;  %s8863_s16 = smov [#allocation12]   ;;  %s108_s30 = int_to_ptr.vmem [resolvable:$true] %s107_s30 }
  0x79   :  { %s130_s12 = sshll.u32 %s8863_s16, 4  ;;  %s8699_s1 = scalar_lea.vmem %s108_s30, 2048  ;;  %s131_s12 = int_to_ptr.vmem [resolvable:$true] %s130_s12 }
  0x7a   :  { %p8700_p3 = scmp.ne.s32.totalorder %s108_s30, %s8699_s1  ;;  %p8704_p4 = scmp.lt.s32.totalorder %s108_s30, %s108_s30 }
  0x7b   :  { %p8705_p5 = scmp.lt.s32.totalorder %s8699_s1, %s8699_s1 }
  0x7d   :  { %85 = dma.hbm_to_vmem [thread:$0]  %s12394_s2, 1024, %s80_s0, [#allocation5], %s8851_s6, %s8851_s6, %s8852_s10  }
  0x7e   :  { %p8706_p6 = por %p8705_p5, %p8704_p4 }
  0x80   :  { %p8707_p7 = pnand %p8706_p6, %p8700_p3 }
  0x82   :  { %8710 = shalt.err (!%p8707_p7)
}
  0x83   :  { %s12395_s3 = sld [smem:[#allocation57_spill]]  ;;  %s8719_s18 = scalar_lea.vmem %s131_s12, 16 }
  0x84   :  { %p8720_p8 = scmp.ne.s32.totalorder %s131_s12, %s8719_s18  ;;  %s8723_s0 = scalar_lea.vmem %s131_s12, 32 }
  0x85   :  { %p8724_p9 = scmp.lt.s32.totalorder %s131_s12, %s131_s12  ;;  %p8725_p10 = scmp.lt.s32.totalorder %s8723_s0, %s8719_s18 }
  0x87   :  { %p8726_p11 = por %p8725_p10, %p8724_p9 }
  0x89   :  { %113 = dma.hbm_to_vmem [thread:$0]  %s12395_s3, 2048, %s108_s30, [#allocation8], %s8851_s6, %s8851_s6, %s8852_s10  }
  0x8a   :  { %p8727_p12 = pnand %p8726_p11, %p8720_p8 }
  0x8c   :  { %8730 = shalt.err (!%p8727_p12)
}
  0x8d   :  { %133 = dma.hbm_to_vmem [thread:$0]  %s12327_s13, 16, %s131_s12, [#allocation11]  }
  0x8e   :  { %s8864_s11 = smov [#allocation15]   ;;  %s8865_s22 = smov [#allocation18]  }
  0x8f   :  { %s149_s14 = sshll.u32 %s8864_s11, 4  ;;  %s173_s28 = sshll.u32 %s8865_s22, 4  ;;  %s150_s14 = int_to_ptr.vmem [resolvable:$true] %s149_s14  ;;  %s174_s28 = int_to_ptr.vmem [resolvable:$true] %s173_s28 }
  0x90   :  { %s8739_s29 = scalar_lea.vmem %s150_s14, 2048  ;;  %p8744_p0 = scmp.lt.s32.totalorder %s150_s14, %s150_s14 }
  0x91   :  { %p8740_p13 = scmp.ne.s32.totalorder %s150_s14, %s8739_s29  ;;  %p8745_p1 = scmp.lt.s32.totalorder %s8739_s29, %s8739_s29 }
  0x93   :  { %p8746_p2 = por %p8745_p1, %p8744_p0 }
  0x95   :  { %p8747_p3 = pnand %p8746_p2, %p8740_p13 }
  0x97   :  { %8750 = shalt.err (!%p8747_p3)
}
  0x98   :  { %155 = dma.hbm_to_vmem [thread:$0]  %s12329_s15, 2048, %s150_s14, [#allocation14], %s8851_s6, %s8851_s6, %s8852_s10  }
  0x99   :  { %s8759_s13 = scalar_lea.vmem %s174_s28, 1024  ;;  %p8764_p5 = scmp.lt.s32.totalorder %s174_s28, %s174_s28 }
  0x9a   :  { %p8760_p4 = scmp.ne.s32.totalorder %s174_s28, %s8759_s13  ;;  %p8765_p6 = scmp.lt.s32.totalorder %s8759_s13, %s8759_s13 }
  0x9c   :  { %p8766_p7 = por %p8765_p6, %p8764_p5 }
  0x9e   :  { %p8767_p8 = pnand %p8766_p7, %p8760_p4 }
  0xa0   :  { %8770 = shalt.err (!%p8767_p8)
}
  0xa1   :  { %179 = dma.hbm_to_vmem [thread:$0]  %s12331_s17, 1024, %s174_s28, [#allocation17], %s8851_s6, %s8851_s6, %s8852_s10  }
  0xa2   :  { %s8866_s12 = smov [#allocation21]   ;;  %s8867_s4 = smov [#allocation24]  }
  0xa3   :  { %s197_s1 = sshll.u32 %s8866_s12, 4  ;;  %s226_s15 = sshll.u32 %s8867_s4, 4  ;;  %s198_s1 = int_to_ptr.vmem [resolvable:$true] %s197_s1  ;;  %s227_s15 = int_to_ptr.vmem [resolvable:$true] %s226_s15 }
  0xa4   :  { %s8779_s8 = scalar_lea.vmem %s198_s1, 1024  ;;  %p8784_p10 = scmp.lt.s32.totalorder %s198_s1, %s198_s1 }
  0xa5   :  { %p8780_p9 = scmp.ne.s32.totalorder %s198_s1, %s8779_s8  ;;  %p8785_p11 = scmp.lt.s32.totalorder %s8779_s8, %s8779_s8 }
  0xa7   :  { %p8786_p12 = por %p8785_p11, %p8784_p10 }
  0xa9   :  { %p8787_p13 = pnand %p8786_p12, %p8780_p9 }
  0xab   :  { %8790 = shalt.err (!%p8787_p13)
}
  0xac   :  { %203 = dma.hbm_to_vmem [thread:$0]  %s12333_s19, 1024, %s198_s1, [#allocation20], %s8851_s6, %s8851_s6, %s8852_s10  }
  0xad   :  { %s8799_s17 = scalar_lea.vmem %s227_s15, 32  ;;  %p8804_p1 = scmp.lt.s32.totalorder %s227_s15, %s227_s15 }
  0xae   :  { %p8800_p0 = scmp.ne.s32.totalorder %s227_s15, %s8799_s17  ;;  %p8805_p2 = scmp.lt.s32.totalorder %s8799_s17, %s8799_s17 }
  0xb0   :  { %p8806_p3 = por %p8805_p2, %p8804_p1 }
  0xb2   :  { %p8807_p4 = pnand %p8806_p3, %p8800_p0 }
  0xb4   :  { %8810 = shalt.err (!%p8807_p4)
}
  0xb5   :  { %229 = dma.hbm_to_vmem [thread:$0]  %s12337_s23, 32, %s227_s15, [#allocation23]  }
  0xb6   :  { %s8868_s9 = smov [#allocation25]  }
  0xb7   :  { %s235_s11 = sshll.u32 %s8868_s9, 4  ;;  %s236_s11 = int_to_ptr.vmem [resolvable:$true] %s235_s11 }
  0xb8   :  { %s8819_s14 = scalar_lea.vmem %s236_s11, 2048  ;;  %p8824_p6 = scmp.lt.s32.totalorder %s236_s11, %s236_s11 }
  0xb9   :  { %p8820_p5 = scmp.ne.s32.totalorder %s236_s11, %s8819_s14  ;;  %p8825_p7 = scmp.lt.s32.totalorder %s8819_s14, %s8819_s14 }
  0xbb   :  { %p8826_p8 = por %p8825_p7, %p8824_p6 }
  0xbd   :  { %p8827_p9 = pnand %p8826_p8, %p8820_p5 }
  0xbf   :  { %8830 = shalt.err (!%p8827_p9)
}
  0xc0   :  { %241 = dma.hbm_to_vmem [thread:$0]  %s12338_s24, 2048, %s236_s11, [#allocation26], %s8851_s6, %s8851_s6, %s8852_s10  }
  0xc1   :  { %8831 = dma.done.wait [#allocation3], 1024  }
  0xc2   :  { %8832 = vsyncadd [#allocation3], 4294966272 }
  0xc3   :  { %8833 = dma.done.wait [#allocation5], 2048  }
  0xc4   :  { %8834 = vsyncadd [#allocation5], 4294965248 }
  0xc5   :  { %8835 = dma.done.wait [#allocation8], 2064  }
  0xc6   :  { %8836 = vsyncadd [#allocation8], 4294965232 }
  0xc7   :  { %8837 = dma.done.wait [#allocation11], 32  }
  0xc8   :  { %8838 = vsyncadd [#allocation11], 4294967264 }
  0xc9   :  { %8839 = dma.done.wait [#allocation14], 2064  }
  0xca   :  { %8840 = vsyncadd [#allocation14], 4294965232 }
  0xcb   :  { %8841 = dma.done.wait [#allocation17], 2048  }
  0xcc   :  { %8842 = vsyncadd [#allocation17], 4294965248 }
  0xcd   :  { %8843 = dma.done.wait [#allocation20], 2048  }
  0xce   :  { %8844 = vsyncadd [#allocation20], 4294965248 }
  0xcf   :  { %8845 = dma.done.wait [#allocation23], 2080  }
  0xd0   :  { %8846 = vsyncadd [#allocation23], 4294965216 }
  0xd1   :  { %8847 = dma.done.wait [#allocation26], 2048  }
  0xd2   :  { %8848 = vsyncadd [#allocation26], 4294965248  ;;  %v12354_v0 = vmov 0   ;;  %s12396_s6 = sld [smem:[#allocation46_spill]]  ;;  %v7919_v33 = vld [vmem:[#allocation2 + $0x38] sm:$0xff]   ;;  %v12351_v35 = vlaneseq  ;;  %v7921_v49 = vld [vmem:[#allocation2 + $0x30] sm:$0xff]  }
  0xd3   :  { %7902 = vset.pattern.permute.xlu1 %v12354_v0  ;;  %7901 = vset.pattern.permute.xlu0 %v12354_v0  ;;  %s12397_s8 = sld [smem:[#allocation48_spill]]  ;;  %v12349_v42 = vmov 1.0|1.0   ;;  %v7923_v53 = vld [vmem:[#allocation2 + $0x28] sm:$0xff]   ;;  %v7925_v56 = vld [vmem:[#allocation2 + $0x20] sm:$0xff]   ;;  %v7927_v61 = vld [vmem:[#allocation2 + $0x18] sm:$0xff]  }
  0xd4   :  { %s12398_s0 = sld [smem:[#allocation51_spill]]  ;;  %v9196_v36 = vand.u32 127, %v12351_v35  ;;  %v7929_v63 = vld [vmem:[#allocation2 + $0x10] sm:$0xff]  }
  0xd5   :  { %s12401_s12 = sld [smem:[#allocation47_spill]] }
  0xd6   :  { %12399 = vst [vmem:[#allocation36_spill] sm:$0xff] %v9196_v36  ;;  %v9199_v39 = vadd.s32 128, %v9196_v36  ;;  %s12402_s5 = sld [smem:[#allocation55_spill]] }
  0xd7   :  { %s12403_s2 = sld [smem:[#allocation53_spill]] }
  0xd8   :  { %v599_v1 = vld [vmem:[%s12396_s6 + $0x10] sm:$0xff]  ;;  %v597_v2 = vld [vmem:[%s12396_s6] sm:$0xff]  ;;  %v600_v3 = vld [vmem:[%s12396_s6 + $0x18] sm:$0xff]  ;;  %12400 = vst [vmem:[#allocation37_spill] sm:$0xff] %v9199_v39  ;;  %s12413_s15 = sld [smem:[#allocation56_spill]] }
  0xd9   :  { %639 = vperm.xlu1 %7902, %v599_v1   ;;  %633 = vperm.xlu0 %7901, %v597_v2   ;;  %v598_v4 = vld [vmem:[%s12396_s6 + $0x8] sm:$0xff]  ;;  %v601_v6 = vld [vmem:[%s12396_s6 + $0x20] sm:$0xff]  ;;  %v7903_v7 = vld [vmem:[%s12397_s8 + $0x78] sm:$0xff]  }
  0xda   :  { %v602_v5 = vld [vmem:[%s12396_s6 + $0x28] sm:$0xff]  ;;  %v7904_v8 = vld [vmem:[%s12397_s8 + $0x38] sm:$0xff]   ;;  %6967 = vmatprep.subr.bf16.mxu0 %v7903_v7  ;;  %v7905_v10 = vld [vmem:[%s12397_s8 + $0x70] sm:$0xff]   ;;  %7863 = vmatprep.subr.bf16.mxu1 %v7903_v7 }
  0xdb   :  { %v606_v9 = vld [vmem:[%s12396_s6 + $0x48] sm:$0xff]  ;;  %v605_v11 = vld [vmem:[%s12396_s6 + $0x40] sm:$0xff]  ;;  %6968 = vmatpush3.bf16.msra.mxu0 %v7904_v8  ;;  %v7906_v12 = vld [vmem:[%s12397_s8 + $0x30] sm:$0xff]   ;;  %7871 = vmatpush3.bf16.msra.mxu1 %v7904_v8 }
  0xdc   :  { %6969 = vmatprep.subr.bf16.mxu0 %v7905_v10  ;;  %v7907_v13 = vld [vmem:[%s12397_s8 + $0x68] sm:$0xff]   ;;  %7864 = vmatprep.subr.bf16.mxu1 %v7905_v10  ;;  %v604_v14 = vld [vmem:[%s12396_s6 + $0x38] sm:$0xff]  ;;  %v603_v15 = vld [vmem:[%s12396_s6 + $0x30] sm:$0xff] }
  0xdd   :  { %642 = vperm.xlu1 %7902, %v600_v3   ;;  %636 = vperm.xlu0 %7901, %v598_v4   ;;  %v7908_v16 = vld [vmem:[%s12397_s8 + $0x28] sm:$0xff]   ;;  %v7909_v17 = vld [vmem:[%s12397_s8 + $0x60] sm:$0xff]   ;;  %v608_v18 = vld [vmem:[%s12396_s6 + $0x58] sm:$0xff] }
  0xde   :  { %v607_v19 = vld [vmem:[%s12396_s6 + $0x50] sm:$0xff]  ;;  %v7910_v20 = vld [vmem:[%s12397_s8 + $0x20] sm:$0xff]   ;;  %v7911_v21 = vld [vmem:[%s12397_s8 + $0x58] sm:$0xff]  }
  0xdf   :  { %6970 = vmatpush3.bf16.msra.mxu0 %v7906_v12  ;;  %7872 = vmatpush3.bf16.msra.mxu1 %v7906_v12  ;;  %v610_v22 = vld [vmem:[%s12396_s6 + $0x68] sm:$0xff]  ;;  %v609_v23 = vld [vmem:[%s12396_s6 + $0x60] sm:$0xff]  ;;  %v7912_v24 = vld [vmem:[%s12397_s8 + $0x18] sm:$0xff]  }
  0xe0   :  { %6971 = vmatprep.subr.bf16.mxu0 %v7907_v13  ;;  %7865 = vmatprep.subr.bf16.mxu1 %v7907_v13  ;;  %v7913_v25 = vld [vmem:[%s12397_s8 + $0x50] sm:$0xff]   ;;  %v612_v26 = vld [vmem:[%s12396_s6 + $0x78] sm:$0xff]  ;;  %v7915_v29 = vld [vmem:[%s12397_s8 + $0x48] sm:$0xff]  }
  0xe1   :  { %648 = vperm.xlu1 %7902, %v602_v5   ;;  %645 = vperm.xlu0 %7901, %v601_v6   ;;  %v611_v27 = vld [vmem:[%s12396_s6 + $0x70] sm:$0xff]  ;;  %v7916_v30 = vld [vmem:[%s12397_s8 + $0x8] sm:$0xff]   ;;  %v7917_v31 = vld [vmem:[%s12397_s8 + $0x40] sm:$0xff]  }
  0xe2   :  { %v7914_v28 = vld [vmem:[%s12397_s8 + $0x10] sm:$0xff]   ;;  %v7918_v32 = vld [vmem:[%s12397_s8] sm:$0xff]   ;;  %v7920_v34 = vld [vmem:[%s12398_s0 + $0x38] sm:$0xff]  }
  0xe3   :  { %6972 = vmatpush3.bf16.msra.mxu0 %v7908_v16  ;;  %7873 = vmatpush3.bf16.msra.mxu1 %v7908_v16  ;;  %v7922_v43 = vld [vmem:[%s12398_s0 + $0x30] sm:$0xff]   ;;  %v7924_v46 = vld [vmem:[%s12398_s0 + $0x28] sm:$0xff]   ;;  %v7926_v50 = vld [vmem:[%s12398_s0 + $0x20] sm:$0xff]  }
  0xe4   :  { %6973 = vmatprep.subr.bf16.mxu0 %v7909_v17  ;;  %7866 = vmatprep.subr.bf16.mxu1 %v7909_v17  ;;  %v7928_v62 = vld [vmem:[%s12398_s0 + $0x18] sm:$0xff]   ;;  %v7930_v1 = vld [vmem:[%s12398_s0 + $0x10] sm:$0xff]   ;;  %v7931_v2 = vld [vmem:[#allocation2 + $0x8] sm:$0xff]  }
  0xe5   :  { %660 = vperm.xlu1 %7902, %v606_v9   ;;  %657 = vperm.xlu0 %7901, %v605_v11   ;;  %v7932_v3 = vld [vmem:[%s12398_s0 + $0x8] sm:$0xff]   ;;  %v7933_v4 = vld [vmem:[#allocation2] sm:$0xff]   ;;  %v7935_v6 = vld [vmem:[#allocation4 + $0x38] sm:$0xff]  }
  0xe6   :  { %v7934_v5 = vld [vmem:[%s12398_s0] sm:$0xff]  }
  0xe7   :  { %6974 = vmatpush3.bf16.msra.mxu0 %v7910_v20  ;;  %7874 = vmatpush3.bf16.msra.mxu1 %v7910_v20 }
  0xe8   :  { %6975 = vmatprep.subr.bf16.mxu0 %v7911_v21  ;;  %7867 = vmatprep.subr.bf16.mxu1 %v7911_v21 }
  0xe9   :  { %654 = vperm.xlu1 %7902, %v604_v14   ;;  %651 = vperm.xlu0 %7901, %v603_v15  }
  0xeb   :  { %6976 = vmatpush3.bf16.msra.mxu0 %v7912_v24  ;;  %7875 = vmatpush3.bf16.msra.mxu1 %v7912_v24 }
  0xec   :  { %6977 = vmatprep.subr.bf16.mxu0 %v7913_v25  ;;  %7868 = vmatprep.subr.bf16.mxu1 %v7913_v25 }
  0xed   :  { %666 = vperm.xlu1 %7902, %v608_v18   ;;  %663 = vperm.xlu0 %7901, %v607_v19  }
  0xef   :  { %6978 = vmatpush3.bf16.msra.mxu0 %v7914_v28  ;;  %7876 = vmatpush3.bf16.msra.mxu1 %v7914_v28 }
  0xf0   :  { %6979 = vmatprep.subr.bf16.mxu0 %v7915_v29  ;;  %7869 = vmatprep.subr.bf16.mxu1 %v7915_v29 }
  0xf1   :  { %672 = vperm.xlu1 %7902, %v610_v22   ;;  %669 = vperm.xlu0 %7901, %v609_v23  }
  0xf3   :  { %6980 = vmatpush3.bf16.msra.mxu0 %v7916_v30  ;;  %7877 = vmatpush3.bf16.msra.mxu1 %v7916_v30 }
  0xf4   :  { %6981 = vmatprep.subr.bf16.mxu0 %v7917_v31  ;;  %7870 = vmatprep.subr.bf16.mxu1 %v7917_v31 }
  0xf5   :  { %678 = vperm.xlu1 %7902, %v612_v26   ;;  %675 = vperm.xlu0 %7901, %v611_v27   ;;  %v7936_v27 = vld [vmem:[#allocation4 + $0x30] sm:$0xff]  }
  0xf7   :  { %6982 = vmatpush3.bf16.msra.mxu0 %v7918_v32  ;;  %7878 = vmatpush3.bf16.msra.mxu1 %v7918_v32  ;;  %v7937_v32 = vld [vmem:[#allocation4 + $0x28] sm:$0xff]  }
  0xf8   :  { %7479 = vmatprep.subr.bf16.mxu1 %v7919_v33  ;;  %7543 = vmatprep.subr.bf16.mxu0 %v7920_v34 }
 0x154   :  { %v640_v37 = vpop.permute.xlu1 %639  ;;  %v634_v38 = vpop.permute.xlu0 %633 }
 0x155   :  { %vm685_vm0 = vcmp.eq.s32.totalorder %v9199_v39, %v640_v37  ;;  %vm681_vm3 = vcmp.eq.s32.totalorder %v9199_v39, %v634_v38  ;;  %vm680_vm5 = vcmp.eq.s32.totalorder %v9196_v36, %v634_v38  ;;  %vm684_vm9 = vcmp.eq.s32.totalorder %v9196_v36, %v640_v37 }
 0x158   :  { %v643_v40 = vpop.permute.xlu1 %642  ;;  %v637_v41 = vpop.permute.xlu0 %636 }
 0x159   :  { %vm687_vm1 = vcmp.eq.s32.totalorder %v9199_v39, %v643_v40  ;;  %vm682_vm2 = vcmp.eq.s32.totalorder %v9196_v36, %v637_v41  ;;  %vm683_vm4 = vcmp.eq.s32.totalorder %v9199_v39, %v637_v41  ;;  %vm686_vm10 = vcmp.eq.s32.totalorder %v9196_v36, %v643_v40 }
 0x15a   :  { %vm6717_vm6 = vmpackc.low %vm683_vm4, %vm681_vm3 }
 0x15b   :  { %6718 = vmatprep.mubr.msk.bf16.mxu0 %vm6717_vm6, %v12349_v42  ;;  %vm6719_vm7 = vmpackc.low %vm682_vm2, %vm680_vm5 }
 0x15c   :  { %v649_v44 = vpop.permute.xlu1 %648  ;;  %v646_v45 = vpop.permute.xlu0 %645  ;;  %6720 = vmatmul.mubr.msk.bf16.vlgmr.msra.gmra.mxu0 %vm6719_vm7, %v12349_v42  ;;  %vm6721_vm8 = vmpackc.low %vm687_vm1, %vm685_vm0 }
 0x15d   :  { %6722 = vmatprep.mubr.msk.bf16.mxu0 %vm6721_vm8, %v12349_v42  ;;  %7544 = vmatpush3.bf16.msra.mxu0 %v7920_v34  ;;  %vm691_vm11 = vcmp.eq.s32.totalorder %v9199_v39, %v649_v44  ;;  %vm689_vm12 = vcmp.eq.s32.totalorder %v9199_v39, %v646_v45  ;;  %vm6723_vm1 = vmpackc.low %vm686_vm10, %vm684_vm9  ;;  %vm690_vm5 = vcmp.eq.s32.totalorder %v9196_v36, %v649_v44  ;;  %v7938_v44 = vld [vmem:[#allocation4 + $0x20] sm:$0xff]  }
 0x15e   :  { %7545 = vmatprep.subr.bf16.mxu0 %v7922_v43  ;;  %vm6725_vm4 = vmpackc.low %vm691_vm11, %vm689_vm12  ;;  %vm688_vm6 = vcmp.eq.s32.totalorder %v9196_v36, %v646_v45 }
 0x160   :  { %v661_v47 = vpop.permute.xlu1 %660  ;;  %v658_v48 = vpop.permute.xlu0 %657 }
 0x161   :  { %vm698_vm13 = vcmp.eq.s32.totalorder %v9196_v36, %v661_v47  ;;  %vm696_vm14 = vcmp.eq.s32.totalorder %v9196_v36, %v658_v48  ;;  %vm697_vm15 = vcmp.eq.s32.totalorder %v9199_v39, %v658_v48  ;;  %vm699_vm0 = vcmp.eq.s32.totalorder %v9199_v39, %v661_v47  ;;  %7546 = vmatpush3.bf16.msra.mxu0 %v7922_v43 }
 0x162   :  { %vm6733_vm2 = vmpackc.low %vm699_vm0, %vm697_vm15  ;;  %7547 = vmatprep.subr.bf16.mxu0 %v7924_v46 }
 0x163   :  { %6734 = vmatprep.mubr.msk.bf16.mxu1 %vm6733_vm2, %v12349_v42  ;;  %vm6735_vm3 = vmpackc.low %vm698_vm13, %vm696_vm14 }
 0x164   :  { %v655_v51 = vpop.permute.xlu1 %654  ;;  %v652_v52 = vpop.permute.xlu0 %651  ;;  %6724 = vmatmul.mubr.msk.bf16.gmra.mxu0 %vm6723_vm1, %v12349_v42  ;;  %6736 = vmatmul.mubr.msk.bf16.vlgmr.msra.gmra.mxu1 %vm6735_vm3, %v12349_v42  ;;  %vm6727_vm13 = vmpackc.low %vm690_vm5, %vm688_vm6 }
 0x165   :  { %6726 = vmatprep.mubr.msk.bf16.mxu0 %vm6725_vm4, %v12349_v42  ;;  %7480 = vmatpush3.bf16.msra.mxu1 %v7919_v33  ;;  %vm695_vm7 = vcmp.eq.s32.totalorder %v9199_v39, %v655_v51  ;;  %vm693_vm8 = vcmp.eq.s32.totalorder %v9199_v39, %v652_v52  ;;  %vm694_vm4 = vcmp.eq.s32.totalorder %v9196_v36, %v655_v51 }
 0x166   :  { %7548 = vmatpush3.bf16.msra.mxu0 %v7924_v46  ;;  %7481 = vmatprep.subr.bf16.mxu1 %v7921_v49  ;;  %vm6729_vm0 = vmpackc.low %vm695_vm7, %vm693_vm8  ;;  %vm692_vm5 = vcmp.eq.s32.totalorder %v9196_v36, %v652_v52 }
 0x167   :  { %7549 = vmatprep.subr.bf16.mxu0 %v7926_v50 }
 0x168   :  { %v667_v54 = vpop.permute.xlu1 %666  ;;  %v664_v55 = vpop.permute.xlu0 %663 }
 0x169   :  { %vm702_vm9 = vcmp.eq.s32.totalorder %v9196_v36, %v667_v54  ;;  %vm703_vm10 = vcmp.eq.s32.totalorder %v9199_v39, %v667_v54  ;;  %vm700_vm11 = vcmp.eq.s32.totalorder %v9196_v36, %v664_v55  ;;  %vm701_vm12 = vcmp.eq.s32.totalorder %v9199_v39, %v664_v55  ;;  %7482 = vmatpush3.bf16.msra.mxu1 %v7921_v49  ;;  %v7939_v49 = vld [vmem:[#allocation4 + $0x18] sm:$0xff]  }
 0x16a   :  { %vm6737_vm14 = vmpackc.low %vm703_vm10, %vm701_vm12  ;;  %7550 = vmatpush3.bf16.msra.mxu0 %v7926_v50  ;;  %7483 = vmatprep.subr.bf16.mxu1 %v7923_v53 }
 0x16b   :  { %6738 = vmatprep.mubr.msk.bf16.mxu1 %vm6737_vm14, %v12349_v42  ;;  %vm6739_vm15 = vmpackc.low %vm702_vm9, %vm700_vm11  ;;  %7551 = vmatprep.subr.bf16.mxu0 %v7928_v62 }
 0x16c   :  { %v673_v57 = vpop.permute.xlu1 %672  ;;  %v670_v58 = vpop.permute.xlu0 %669  ;;  %6728 = vmatmul.mubr.msk.bf16.gmra.mxu0 %vm6727_vm13, %v12349_v42  ;;  %6740 = vmatmul.mubr.msk.bf16.gmra.mxu1 %vm6739_vm15, %v12349_v42  ;;  %vm6731_vm10 = vmpackc.low %vm694_vm4, %vm692_vm5 }
 0x16d   :  { %vm707_vm1 = vcmp.eq.s32.totalorder %v9199_v39, %v673_v57  ;;  %vm705_vm2 = vcmp.eq.s32.totalorder %v9199_v39, %v670_v58  ;;  %6730 = vmatprep.mubr.msk.bf16.mxu0 %vm6729_vm0, %v12349_v42  ;;  %7484 = vmatpush3.bf16.msra.mxu1 %v7923_v53  ;;  %vm706_vm6 = vcmp.eq.s32.totalorder %v9196_v36, %v673_v57 }
 0x16e   :  { %vm6741_vm3 = vmpackc.low %vm707_vm1, %vm705_vm2  ;;  %7485 = vmatprep.subr.bf16.mxu1 %v7925_v56  ;;  %vm704_vm9 = vcmp.eq.s32.totalorder %v9196_v36, %v670_v58  ;;  %7552 = vmatpush3.bf16.msra.mxu0 %v7928_v62 }
 0x16f   :  { %6742 = vmatprep.mubr.msk.bf16.mxu1 %vm6741_vm3, %v12349_v42  ;;  %vm6743_vm11 = vmpackc.low %vm706_vm6, %vm704_vm9  ;;  %7553 = vmatprep.subr.bf16.mxu0 %v7930_v1 }
 0x170   :  { %v679_v59 = vpop.permute.xlu1 %678  ;;  %v676_v60 = vpop.permute.xlu0 %675 }
 0x171   :  { %vm711_vm7 = vcmp.eq.s32.totalorder %v9199_v39, %v679_v59  ;;  %vm709_vm8 = vcmp.eq.s32.totalorder %v9199_v39, %v676_v60  ;;  %7486 = vmatpush3.bf16.msra.mxu1 %v7925_v56  ;;  %vm710_vm13 = vcmp.eq.s32.totalorder %v9196_v36, %v679_v59  ;;  %vm708_vm14 = vcmp.eq.s32.totalorder %v9196_v36, %v676_v60  ;;  %v7940_v60 = vld [vmem:[#allocation4 + $0x10] sm:$0xff]  }
 0x172   :  { %vm6745_vm12 = vmpackc.low %vm711_vm7, %vm709_vm8  ;;  %7487 = vmatprep.subr.bf16.mxu1 %v7927_v61  ;;  %7554 = vmatpush3.bf16.msra.mxu0 %v7930_v1  ;;  %v7941_v1 = vld [vmem:[#allocation4 + $0x8] sm:$0xff]  }
 0x173   :  { %vm6747_vm15 = vmpackc.low %vm710_vm13, %vm708_vm14  ;;  %7555 = vmatprep.subr.bf16.mxu0 %v7932_v3 }
 0x174   :  { %6732 = vmatmul.mubr.msk.bf16.gmra.mxu0 %vm6731_vm10, %v12349_v42  ;;  %6744 = vmatmul.mubr.msk.bf16.gmra.mxu1 %vm6743_vm11, %v12349_v42 }
 0x175   :  { %6746 = vmatprep.mubr.msk.bf16.mxu1 %vm6745_vm12, %v12349_v42  ;;  %7488 = vmatpush3.bf16.msra.mxu1 %v7927_v61 }
 0x176   :  { %7489 = vmatprep.subr.bf16.mxu1 %v7929_v63  ;;  %7556 = vmatpush3.bf16.msra.mxu0 %v7932_v3 }
 0x177   :  { %7557 = vmatprep.subr.bf16.mxu0 %v7934_v5 }
 0x179   :  { %7490 = vmatpush3.bf16.msra.mxu1 %v7929_v63 }
 0x17a   :  { %7491 = vmatprep.subr.bf16.mxu1 %v7931_v2  ;;  %7558 = vmatpush3.bf16.msra.mxu0 %v7934_v5 }
 0x17c   :  { %6748 = vmatmul.mubr.msk.bf16.gmra.mxu1 %vm6747_vm15, %v12349_v42 }
 0x17d   :  { %7492 = vmatpush3.bf16.msra.mxu1 %v7931_v2 }
 0x17e   :  { %7493 = vmatprep.subr.bf16.mxu1 %v7933_v4 }
 0x181   :  { %7494 = vmatpush3.bf16.msra.mxu1 %v7933_v4 }
 0x182   :  { %7511 = vmatprep.subr.bf16.mxu1 %v7935_v6 }
 0x21c   :  { %v6983_v7 = vpop.f32.mrf.mxu0 }
 0x21e   :  { %v6984_v8 = vpop.f32.mrf.mxu0 }
 0x21f   :  { %v9282_v11 = vadd.f32 %v6984_v8, %v6983_v7  ;;  %v7942_v7 = vld [vmem:[#allocation4] sm:$0xff]  }
 0x220   :  { %v6986_v9 = vpop.f32.mrf.mxu0 }
 0x222   :  { %v6987_v10 = vpop.f32.mrf.mxu0 }
 0x223   :  { %v9284_v12 = vadd.f32 %v6987_v10, %v6986_v9 }
 0x224   :  { %v6989_v13 = vpop.f32.mrf.mxu0  ;;  %v7007_v14 = vpop.f32.mrf.mxu1 }
 0x225   :  { %v9288_v15 = vpack.c.bf16 %v9284_v12, %v9282_v11 }
 0x226   :  { %v6990_v16 = vpop.f32.mrf.mxu0  ;;  %v7008_v17 = vpop.f32.mrf.mxu1 }
 0x227   :  { %7495 = vmatprep.mubr.bf16.mxu1 %v9288_v15  ;;  %7559 = vmatprep.mubr.bf16.mxu0 %v9288_v15  ;;  %v9292_v22 = vadd.f32 %v6990_v16, %v6989_v13  ;;  %v9314_v55 = vadd.f32 %v7008_v17, %v7007_v14 }
 0x228   :  { %v6992_v18 = vpop.f32.mrf.mxu0  ;;  %v7010_v19 = vpop.f32.mrf.mxu1 }
 0x22a   :  { %v6993_v20 = vpop.f32.mrf.mxu0  ;;  %v7011_v21 = vpop.f32.mrf.mxu1 }
 0x22b   :  { %v9294_v23 = vadd.f32 %v6993_v20, %v6992_v18  ;;  %v9308_v50 = vadd.f32 %v7011_v21, %v7010_v19 }
 0x22c   :  { %v6995_v24 = vpop.f32.mrf.mxu0  ;;  %v7013_v25 = vpop.f32.mrf.mxu1 }
 0x22d   :  { %v9298_v26 = vpack.c.bf16 %v9294_v23, %v9292_v22  ;;  %v989_v58 = vpack.c.bf16 %v9308_v50, %v9314_v55 }
 0x22e   :  { %v6996_v28 = vpop.f32.mrf.mxu0  ;;  %v7014_v29 = vpop.f32.mrf.mxu1 }
 0x22f   :  { %7496 = vmatmul.mubr.bf16.vlgmr.msra.gmra.mxu1 %v9298_v26  ;;  %7560 = vmatmul.mubr.bf16.vlgmr.msra.gmra.mxu0 %v9298_v26  ;;  %v9302_v37 = vadd.f32 %v6996_v28, %v6995_v24  ;;  %v9324_v2 = vadd.f32 %v7014_v29, %v7013_v25 }
 0x230   :  { %v6998_v30 = vpop.f32.mrf.mxu0  ;;  %v7016_v31 = vpop.f32.mrf.mxu1  ;;  %7512 = vmatpush3.bf16.msra.mxu1 %v7935_v6 }
 0x231   :  { %7513 = vmatprep.subr.bf16.mxu1 %v7936_v27 }
 0x232   :  { %v6999_v33 = vpop.f32.mrf.mxu0  ;;  %v7017_v34 = vpop.f32.mrf.mxu1 }
 0x233   :  { %v9304_v38 = vadd.f32 %v6999_v33, %v6998_v30  ;;  %v9320_v61 = vadd.f32 %v7017_v34, %v7016_v31 }
 0x234   :  { %v7001_v40 = vpop.f32.mrf.mxu0  ;;  %v7019_v41 = vpop.f32.mrf.mxu1  ;;  %7514 = vmatpush3.bf16.msra.mxu1 %v7936_v27 }
 0x235   :  { %v987_v43 = vpack.c.bf16 %v9304_v38, %v9302_v37  ;;  %7515 = vmatprep.subr.bf16.mxu1 %v7937_v32  ;;  %v990_v4 = vpack.c.bf16 %v9320_v61, %v9324_v2 }
 0x236   :  { %v7002_v45 = vpop.f32.mrf.mxu0  ;;  %v7020_v46 = vpop.f32.mrf.mxu1 }
 0x237   :  { %7499 = vmatprep.mubr.bf16.mxu1 %v987_v43  ;;  %7563 = vmatprep.mubr.bf16.mxu0 %v987_v43  ;;  %v9310_v53 = vadd.f32 %v7002_v45, %v7001_v40  ;;  %v9326_v3 = vadd.f32 %v7020_v46, %v7019_v41 }
 0x238   :  { %v7004_v47 = vpop.f32.mrf.mxu0  ;;  %v7022_v48 = vpop.f32.mrf.mxu1  ;;  %7516 = vmatpush3.bf16.msra.mxu1 %v7937_v32 }
 0x239   :  { %7517 = vmatprep.subr.bf16.mxu1 %v7938_v44 }
 0x23a   :  { %v7005_v51 = vpop.f32.mrf.mxu0  ;;  %v7023_v52 = vpop.f32.mrf.mxu1 }
 0x23b   :  { %v9312_v54 = vadd.f32 %v7005_v51, %v7004_v47  ;;  %v9322_v62 = vadd.f32 %v7023_v52, %v7022_v48 }
 0x23c   :  { %v7025_v56 = vpop.f32.mrf.mxu1  ;;  %7518 = vmatpush3.bf16.msra.mxu1 %v7938_v44 }
 0x23d   :  { %v988_v57 = vpack.c.bf16 %v9312_v54, %v9310_v53  ;;  %7519 = vmatprep.subr.bf16.mxu1 %v7939_v49  ;;  %v991_v5 = vpack.c.bf16 %v9322_v62, %v9326_v3 }
 0x23e   :  { %v7026_v59 = vpop.f32.mrf.mxu1 }
 0x23f   :  { %7500 = vmatmul.mubr.bf16.gmra.mxu1 %v988_v57  ;;  %7564 = vmatmul.mubr.bf16.gmra.mxu0 %v988_v57  ;;  %v9334_v9 = vadd.f32 %v7026_v59, %v7025_v56 }
 0x240   :  { %7503 = vmatprep.mubr.bf16.mxu1 %v989_v58  ;;  %7567 = vmatprep.mubr.bf16.mxu0 %v989_v58  ;;  %v7028_v63 = vpop.f32.mrf.mxu1 }
 0x241   :  { %7520 = vmatpush3.bf16.msra.mxu1 %v7939_v49 }
 0x242   :  { %7521 = vmatprep.subr.bf16.mxu1 %v7940_v60  ;;  %v7029_v6 = vpop.f32.mrf.mxu1 }
 0x243   :  { %v9332_v8 = vadd.f32 %v7029_v6, %v7028_v63 }
 0x245   :  { %7522 = vmatpush3.bf16.msra.mxu1 %v7940_v60  ;;  %v992_v10 = vpack.c.bf16 %v9332_v8, %v9334_v9 }
 0x246   :  { %7523 = vmatprep.subr.bf16.mxu1 %v7941_v1 }
 0x247   :  { %7504 = vmatmul.mubr.bf16.gmra.mxu1 %v990_v4  ;;  %7568 = vmatmul.mubr.bf16.gmra.mxu0 %v990_v4 }
 0x248   :  { %7507 = vmatprep.mubr.bf16.mxu1 %v991_v5  ;;  %7571 = vmatprep.mubr.bf16.mxu0 %v991_v5 }
 0x249   :  { %7524 = vmatpush3.bf16.msra.mxu1 %v7941_v1 }
 0x24a   :  { %7525 = vmatprep.subr.bf16.mxu1 %v7942_v7 }
 0x24d   :  { %7526 = vmatpush3.bf16.msra.mxu1 %v7942_v7 }
 0x24f   :  { %7508 = vmatmul.mubr.bf16.gmra.mxu1 %v992_v10  ;;  %7572 = vmatmul.mubr.bf16.gmra.mxu0 %v992_v10 }
 0x250   :  { %7527 = vmatprep.mubr.bf16.mxu1 %v9288_v15 }
 0x257   :  { %7528 = vmatmul.mubr.bf16.vlgmr.msra.gmra.mxu1 %v9298_v26 }
 0x258   :  { %7531 = vmatprep.mubr.bf16.mxu1 %v987_v43 }
 0x25f   :  { %7532 = vmatmul.mubr.bf16.gmra.mxu1 %v988_v57 }
 0x260   :  { %7535 = vmatprep.mubr.bf16.mxu1 %v989_v58 }
 0x267   :  { %7536 = vmatmul.mubr.bf16.gmra.mxu1 %v990_v4 }
 0x268   :  { %7539 = vmatprep.mubr.bf16.mxu1 %v991_v5 }
 0x26f   :  { %7540 = vmatmul.mubr.bf16.gmra.mxu1 %v992_v10 }
 0x2ef   :  { %v9340_v13 = vpop.f32.mrf.mxu1  ;;  %v9342_v14 = vpop.f32.mrf.mxu0 }
 0x2f1   :  { %v1075_v16 = vpop.f32.mrf.mxu1  ;;  %v9348_v19 = vpop.f32.mrf.mxu0 }
 0x2f3   :  { %v9344_v17 = vpop.f32.mrf.mxu1  ;;  %v7562_v21 = vpop.f32.mrf.mxu0 }
 0x2f4   :  { %v1429_v18 = vpack.c.bf16 %v9344_v17, %v9340_v13 }
 0x2f5   :  { %v1078_v15 = vpop.f32.mrf.mxu1  ;;  %v1368_v24 = vpop.f32.mrf.mxu0 }
 0x2f6   :  { %v1428_v20 = vpack.c.bf16 %v1078_v15, %v1075_v16 }
 0x2f8   :  { %7591 = vmatprep.mubr.bf16.mxu1 %v1428_v20 }
 0x2ff   :  { %v9350_v25 = vpop.f32.mrf.mxu1  ;;  %v7565_v26 = vpop.f32.mrf.mxu0 }
 0x301   :  { %v9352_v27 = vpop.f32.mrf.mxu1  ;;  %v1381_v28 = vpop.f32.mrf.mxu0 }
 0x303   :  { %v9354_v29 = vpop.f32.mrf.mxu1  ;;  %v7566_v30 = vpop.f32.mrf.mxu0 }
 0x304   :  { %v1431_v31 = vpack.c.bf16 %v9354_v29, %v9350_v25 }
 0x305   :  { %v9358_v32 = vpop.f32.mrf.mxu1  ;;  %v1384_v33 = vpop.f32.mrf.mxu0 }
 0x307   :  { %v9360_v34 = vpop.f32.mrf.mxu1  ;;  %v7569_v40 = vpop.f32.mrf.mxu0 }
 0x309   :  { %v9362_v41 = vpop.f32.mrf.mxu1  ;;  %v1397_v43 = vpop.f32.mrf.mxu0 }
 0x30b   :  { %v9364_v44 = vpop.f32.mrf.mxu1  ;;  %v7570_v45 = vpop.f32.mrf.mxu0 }
 0x30c   :  { %v1433_v46 = vpack.c.bf16 %v9364_v44, %v9360_v34  ;;  %v1730_v7 = vpack.c.bf16 %v7570_v45, %v7569_v40  ;;  %v1726_v45 = vpack.c.bf16 %v7562_v21, %v9342_v14  ;;  %v615_v34 = vld [vmem:[%s12401_s12 + $0x10] sm:$0xff] }
 0x30d   :  { %v9368_v47 = vpop.f32.mrf.mxu1  ;;  %v1400_v48 = vpop.f32.mrf.mxu0 }
 0x30e   :  { %v1729_v20 = vpack.c.bf16 %v1400_v48, %v1397_v43  ;;  %v1725_v48 = vpack.c.bf16 %v1368_v24, %v9348_v19 }
 0x30f   :  { %v9370_v49 = vpop.f32.mrf.mxu1  ;;  %v7573_v51 = vpop.f32.mrf.mxu0 }
 0x311   :  { %v9372_v52 = vpop.f32.mrf.mxu1  ;;  %v1413_v56 = vpop.f32.mrf.mxu0 }
 0x313   :  { %v9374_v57 = vpop.f32.mrf.mxu1  ;;  %v7574_v58 = vpop.f32.mrf.mxu0 }
 0x314   :  { %v1435_v59 = vpack.c.bf16 %v9374_v57, %v9370_v49  ;;  %v1732_v60 = vpack.c.bf16 %v7574_v58, %v7573_v51  ;;  %v1728_v58 = vpack.c.bf16 %v7566_v30, %v7565_v26 }
 0x315   :  { %v9378_v63 = vpop.f32.mrf.mxu1  ;;  %v1416_v1 = vpop.f32.mrf.mxu0 }
 0x316   :  { %v1731_v4 = vpack.c.bf16 %v1416_v1, %v1413_v56  ;;  %7607 = vmatprep.subr.bf16.mxu0 %v1732_v60  ;;  %v1727_v1 = vpack.c.bf16 %v1384_v33, %v1381_v28 }
 0x317   :  { %v7529_v5 = vpop.f32.mrf.mxu1  ;;  %7608 = vmatpush3.bf16.msra.mxu0 %v1732_v60 }
 0x318   :  { %7609 = vmatprep.subr.bf16.mxu0 %v1731_v4 }
 0x319   :  { %v1220_v6 = vpop.f32.mrf.mxu1 }
 0x31b   :  { %v7530_v10 = vpop.f32.mrf.mxu1  ;;  %7610 = vmatpush3.bf16.msra.mxu0 %v1731_v4 }
 0x31c   :  { %v1437_v16 = vpack.c.bf16 %v7530_v10, %v7529_v5  ;;  %7611 = vmatprep.subr.bf16.mxu0 %v1730_v7 }
 0x31d   :  { %v1223_v15 = vpop.f32.mrf.mxu1 }
 0x31e   :  { %v1436_v24 = vpack.c.bf16 %v1223_v15, %v1220_v6 }
 0x31f   :  { %v7533_v42 = vpop.f32.mrf.mxu1  ;;  %7612 = vmatpush3.bf16.msra.mxu0 %v1730_v7 }
 0x320   :  { %7613 = vmatprep.subr.bf16.mxu0 %v1729_v20 }
 0x321   :  { %v1236_v51 = vpop.f32.mrf.mxu1 }
 0x323   :  { %v7534_v35 = vpop.f32.mrf.mxu1  ;;  %7614 = vmatpush3.bf16.msra.mxu0 %v1729_v20  ;;  %v1430_v20 = vpack.c.bf16 %v9358_v32, %v9352_v27 }
 0x324   :  { %7615 = vmatprep.subr.bf16.mxu0 %v1728_v58  ;;  %v1439_v21 = vpack.c.bf16 %v7534_v35, %v7533_v42  ;;  %v1432_v35 = vpack.c.bf16 %v9368_v47, %v9362_v41  ;;  %v1434_v42 = vpack.c.bf16 %v9378_v63, %v9372_v52  ;;  %v614_v41 = vld [vmem:[%s12401_s12 + $0x8] sm:$0xff]  ;;  %v617_v63 = vld [vmem:[%s12401_s12 + $0x20] sm:$0xff] }
 0x325   :  { %v1239_v56 = vpop.f32.mrf.mxu1 }
 0x326   :  { %v1438_v19 = vpack.c.bf16 %v1239_v56, %v1236_v51 }
 0x327   :  { %v7537_v60 = vpop.f32.mrf.mxu1  ;;  %7616 = vmatpush3.bf16.msra.mxu0 %v1728_v58 }
 0x328   :  { %7617 = vmatprep.subr.bf16.mxu0 %v1727_v1 }
 0x329   :  { %v1252_v40 = vpop.f32.mrf.mxu1 }
 0x32b   :  { %v7538_v4 = vpop.f32.mrf.mxu1  ;;  %7618 = vmatpush3.bf16.msra.mxu0 %v1727_v1  ;;  %v619_v1 = vld [vmem:[%s12401_s12 + $0x30] sm:$0xff] }
 0x32c   :  { %7619 = vmatprep.subr.bf16.mxu0 %v1726_v45  ;;  %v1441_v10 = vpack.c.bf16 %v7538_v4, %v7537_v60  ;;  %v618_v60 = vld [vmem:[%s12401_s12 + $0x28] sm:$0xff] }
 0x32d   :  { %v1255_v43 = vpop.f32.mrf.mxu1 }
 0x32e   :  { %v1440_v14 = vpack.c.bf16 %v1255_v43, %v1252_v40 }
 0x32f   :  { %v7541_v5 = vpop.f32.mrf.mxu1  ;;  %7620 = vmatpush3.bf16.msra.mxu0 %v1726_v45 }
 0x330   :  { %7621 = vmatprep.subr.bf16.mxu0 %v1725_v48 }
 0x331   :  { %v1268_v26 = vpop.f32.mrf.mxu1 }
 0x333   :  { %v7542_v30 = vpop.f32.mrf.mxu1  ;;  %7622 = vmatpush3.bf16.msra.mxu0 %v1725_v48 }
 0x334   :  { %v1443_v7 = vpack.c.bf16 %v7542_v30, %v7541_v5  ;;  %v621_v30 = vld [vmem:[%s12401_s12 + $0x40] sm:$0xff] }
 0x335   :  { %v1271_v28 = vpop.f32.mrf.mxu1 }
 0x336   :  { %v1442_v33 = vpack.c.bf16 %v1271_v28, %v1268_v26  ;;  %7575 = vmatprep.subr.bf16.mxu1 %v1443_v7  ;;  %v620_v26 = vld [vmem:[%s12401_s12 + $0x38] sm:$0xff] }
 0x337   :  { %7576 = vmatpush3.bf16.xpose.msra.mxu1 %v1443_v7 }
 0x338   :  { %7577 = vmatprep.subr.bf16.mxu1 %v1442_v33 }
 0x33f   :  { %7578 = vmatpush3.bf16.xpose.msra.mxu1 %v1442_v33 }
 0x340   :  { %7579 = vmatprep.subr.bf16.mxu1 %v1441_v10 }
 0x347   :  { %7580 = vmatpush3.bf16.xpose.msra.mxu1 %v1441_v10 }
 0x348   :  { %7581 = vmatprep.subr.bf16.mxu1 %v1440_v14 }
 0x34f   :  { %7582 = vmatpush3.bf16.xpose.msra.mxu1 %v1440_v14 }
 0x350   :  { %7583 = vmatprep.subr.bf16.mxu1 %v1439_v21 }
 0x357   :  { %7584 = vmatpush3.bf16.xpose.msra.mxu1 %v1439_v21 }
 0x358   :  { %7585 = vmatprep.subr.bf16.mxu1 %v1438_v19 }
 0x35f   :  { %7586 = vmatpush3.bf16.xpose.msra.mxu1 %v1438_v19  ;;  %v623_v19 = vld [vmem:[%s12401_s12 + $0x50] sm:$0xff] }
 0x360   :  { %7587 = vmatprep.subr.bf16.mxu1 %v1437_v16 }
 0x367   :  { %7588 = vmatpush3.bf16.xpose.msra.mxu1 %v1437_v16 }
 0x368   :  { %7589 = vmatprep.subr.bf16.mxu1 %v1436_v24 }
 0x36f   :  { %7590 = vmatpush3.bf16.xpose.msra.mxu1 %v1436_v24  ;;  %v622_v24 = vld [vmem:[%s12401_s12 + $0x48] sm:$0xff] }
 0x376   :  { %7592 = vmatmul.mubr.bf16.vlgmr.msra.gmra.mxu1 %v1429_v18  ;;  %v613_v18 = vld [vmem:[%s12401_s12] sm:$0xff] }
 0x377   :  { %7595 = vmatprep.mubr.bf16.mxu1 %v1430_v20 }
 0x37e   :  { %7596 = vmatmul.mubr.bf16.gmra.mxu1 %v1431_v31 }
 0x37f   :  { %7599 = vmatprep.mubr.bf16.mxu1 %v1432_v35 }
 0x386   :  { %7600 = vmatmul.mubr.bf16.gmra.mxu1 %v1433_v46 }
 0x387   :  { %7603 = vmatprep.mubr.bf16.mxu1 %v1434_v42 }
 0x38e   :  { %7604 = vmatmul.mubr.bf16.gmra.mxu1 %v1435_v59  ;;  %v616_v59 = vld [vmem:[%s12401_s12 + $0x18] sm:$0xff] }
 0x38f   :  { %2351 = vmatprep.mubr.bf16.mxu1 %v12354_v0 }
 0x436   :  { %v7593_v13 = vpop.f32.mrf.mxu1 }
 0x437   :  { %v1543_v29 = vmul.f32 0.088388346, %v7593_v13 }
 0x438   :  { %v1478_v17 = vpop.f32.mrf.mxu1 }
 0x439   :  { %v1541_v25 = vmul.f32 0.088388346, %v1478_v17  ;;  %v9413_v49 = vadd.f32 %v1543_v29, %v615_v34 }
 0x43a   :  { %v7594_v27 = vpop.f32.mrf.mxu1 }
 0x43b   :  { %v9404_v31 = vadd.f32 %v1541_v25, %v613_v18  ;;  %v1544_v47 = vmul.f32 0.088388346, %v7594_v27  ;;  %v624_v25 = vld [vmem:[%s12401_s12 + $0x58] sm:$0xff]  ;;  %v625_v27 = vld [vmem:[%s12401_s12 + $0x60] sm:$0xff] }
 0x43c   :  { %v1481_v32 = vpop.f32.mrf.mxu1 }
 0x43d   :  { %v1542_v44 = vmul.f32 0.088388346, %v1481_v32  ;;  %1573 = vmax.xlane.f32.xlu0 %v9404_v31  ;;  %v9425_v51 = vadd.f32 %v1544_v47, %v616_v59  ;;  %v627_v47 = vld [vmem:[%s12401_s12 + $0x70] sm:$0xff] }
 0x43e   :  { %v7597_v46 = vpop.f32.mrf.mxu1 }
 0x43f   :  { %v9415_v52 = vadd.f32 %v1542_v44, %v614_v41  ;;  %v1547_v15 = vmul.f32 0.088388346, %v7597_v46 }
 0x440   :  { %v1494_v57 = vpop.f32.mrf.mxu1 }
 0x441   :  { %v1545_v6 = vmul.f32 0.088388346, %v1494_v57  ;;  %1577 = vmax.xlane.f32.xlu0 %v9413_v49  ;;  %1575 = vmax.xlane.f32.xlu1 %v9415_v52  ;;  %v9437_v43 = vadd.f32 %v1547_v15, %v619_v1  ;;  %v626_v57 = vld [vmem:[%s12401_s12 + $0x68] sm:$0xff]  ;;  %v628_v15 = vld [vmem:[%s12401_s12 + $0x78] sm:$0xff] }
 0x442   :  { %v7598_v16 = vpop.f32.mrf.mxu1 }
 0x443   :  { %v9427_v58 = vadd.f32 %v1545_v6, %v617_v63  ;;  %v1548_v4 = vmul.f32 0.088388346, %v7598_v16 }
 0x444   :  { %v1497_v56 = vpop.f32.mrf.mxu1 }
 0x445   :  { %v1546_v40 = vmul.f32 0.088388346, %v1497_v56  ;;  %1579 = vmax.xlane.f32.xlu0 %v9425_v51  ;;  %1581 = vmax.xlane.f32.xlu1 %v9427_v58  ;;  %v9449_v10 = vadd.f32 %v1548_v4, %v620_v26 }
 0x446   :  { %v7601_v45 = vpop.f32.mrf.mxu1 }
 0x447   :  { %v9439_v48 = vadd.f32 %v1546_v40, %v618_v60  ;;  %v1551_v33 = vmul.f32 0.088388346, %v7601_v45 }
 0x448   :  { %v1510_v5 = vpop.f32.mrf.mxu1 }
 0x449   :  { %v1549_v7 = vmul.f32 0.088388346, %v1510_v5  ;;  %1585 = vmax.xlane.f32.xlu1 %v9437_v43  ;;  %1583 = vmax.xlane.f32.xlu0 %v9439_v48  ;;  %v9461_v13 = vadd.f32 %v1551_v33, %v623_v19 }
 0x44a   :  { %v7602_v28 = vpop.f32.mrf.mxu1 }
 0x44b   :  { %v9451_v14 = vadd.f32 %v1549_v7, %v621_v30  ;;  %v1552_v42 = vmul.f32 0.088388346, %v7602_v28 }
 0x44c   :  { %v1513_v21 = vpop.f32.mrf.mxu1 }
 0x44d   :  { %v1550_v20 = vmul.f32 0.088388346, %v1513_v21  ;;  %1587 = vmax.xlane.f32.xlu0 %v9449_v10  ;;  %1589 = vmax.xlane.f32.xlu1 %v9451_v14  ;;  %v9473_v41 = vadd.f32 %v1552_v42, %v624_v25 }
 0x44e   :  { %v7605_v35 = vpop.f32.mrf.mxu1 }
 0x44f   :  { %v9463_v17 = vadd.f32 %v1550_v20, %v622_v24  ;;  %v1555_v34 = vmul.f32 0.088388346, %v7605_v35 }
 0x450   :  { %v1526_v18 = vpop.f32.mrf.mxu1 }
 0x451   :  { %v1553_v29 = vmul.f32 0.088388346, %v1526_v18  ;;  %1593 = vmax.xlane.f32.xlu1 %v9461_v13  ;;  %1591 = vmax.xlane.f32.xlu0 %v9463_v17  ;;  %v9485_v6 = vadd.f32 %v1555_v34, %v627_v47 }
 0x452   :  { %v7606_v32 = vpop.f32.mrf.mxu1 }
 0x453   :  { %v9475_v44 = vadd.f32 %v1553_v29, %v625_v27  ;;  %v1556_v63 = vmul.f32 0.088388346, %v7606_v32 }
 0x454   :  { %v1529_v46 = vpop.f32.mrf.mxu1 }
 0x455   :  { %v1554_v59 = vmul.f32 0.088388346, %v1529_v46  ;;  %1595 = vmax.xlane.f32.xlu0 %v9473_v41  ;;  %1597 = vmax.xlane.f32.xlu1 %v9475_v44  ;;  %v9494_v56 = vadd.f32 %v1556_v63, %v628_v15 }
 0x457   :  { %v9487_v16 = vadd.f32 %v1554_v59, %v626_v57 }
 0x459   :  { %1601 = vmax.xlane.f32.xlu1 %v9485_v6  ;;  %1599 = vmax.xlane.f32.xlu0 %v9487_v16 }
 0x45d   :  { %1603 = vmax.xlane.f32.xlu0 %v9494_v56 }
 0x4c6   :  { %v1574_v1 = vpop.xlane.xlu0 %1573 }
 0x4c7   :  { %v1605_v60 = vsub.f32 %v9404_v31, %v1574_v1 }
 0x4c9   :  { %v1621_v40 = vmul.f32 1.442695, %v1605_v60 }
 0x4ca   :  { %v1578_v45 = vpop.xlane.xlu0 %1577  ;;  %v1576_v4 = vpop.xlane.xlu1 %1575 }
 0x4cb   :  { %8079 = vpow2.f32 %v1621_v40  ;;  %v1607_v5 = vsub.f32 %v9413_v49, %v1578_v45  ;;  %v1606_v26 = vsub.f32 %v9415_v52, %v1576_v4 }
 0x4cd   :  { %v1625_v30 = vmul.f32 1.442695, %v1607_v5  ;;  %v1623_v7 = vmul.f32 1.442695, %v1606_v26 }
 0x4ce   :  { %v1580_v28 = vpop.xlane.xlu0 %1579  ;;  %v1582_v33 = vpop.xlane.xlu1 %1581 }
 0x4cf   :  { %8081 = vpow2.f32 %v1625_v30  ;;  %v1608_v21 = vsub.f32 %v9425_v51, %v1580_v28  ;;  %v1609_v19 = vsub.f32 %v9427_v58, %v1582_v33 }
 0x4d0   :  { %8083 = vpow2.f32 %v1623_v7 }
 0x4d1   :  { %v1627_v24 = vmul.f32 1.442695, %v1608_v21  ;;  %v1629_v31 = vmul.f32 1.442695, %v1609_v19 }
 0x4d2   :  { %v1586_v20 = vpop.xlane.xlu1 %1585  ;;  %v1584_v35 = vpop.xlane.xlu0 %1583 }
 0x4d3   :  { %8085 = vpow2.f32 %v1627_v24  ;;  %v1611_v42 = vsub.f32 %v9437_v43, %v1586_v20  ;;  %v1610_v49 = vsub.f32 %v9439_v48, %v1584_v35 }
 0x4d4   :  { %8087 = vpow2.f32 %v1629_v31 }
 0x4d5   :  { %v1633_v52 = vmul.f32 1.442695, %v1611_v42  ;;  %v1631_v18 = vmul.f32 1.442695, %v1610_v49 }
 0x4d6   :  { %v1588_v25 = vpop.xlane.xlu0 %1587  ;;  %v1590_v27 = vpop.xlane.xlu1 %1589 }
 0x4d7   :  { %8089 = vpow2.f32 %v1633_v52  ;;  %v1612_v51 = vsub.f32 %v9449_v10, %v1588_v25  ;;  %v1613_v58 = vsub.f32 %v9451_v14, %v1590_v27  ;;  %v7943_v52 = vld [vmem:[#allocation6 + $0x38] sm:$0xff]  }
 0x4d8   :  { %v9506_v29 = vpop.eup %8079  ;;  %8091 = vpow2.f32 %v1631_v18  ;;  %7639 = vmatprep.subr.bf16.mxu0 %v7943_v52 }
 0x4d9   :  { %v1635_v32 = vmul.f32 1.442695, %v1612_v51  ;;  %v1637_v34 = vmul.f32 1.442695, %v1613_v58  ;;  %1653 = vadd.xlane.f32.xlu1 %v9506_v29 }
 0x4da   :  { %v1594_v43 = vpop.xlane.xlu1 %1593  ;;  %v1592_v46 = vpop.xlane.xlu0 %1591 }
 0x4db   :  { %8093 = vpow2.f32 %v1635_v32  ;;  %v1615_v48 = vsub.f32 %v9461_v13, %v1594_v43  ;;  %v1614_v47 = vsub.f32 %v9463_v17, %v1592_v46 }
 0x4dc   :  { %v9511_v57 = vpop.eup %8081  ;;  %8095 = vpow2.f32 %v1637_v34 }
 0x4dd   :  { %v9513_v10 = vpop.eup %8083  ;;  %v1641_v14 = vmul.f32 1.442695, %v1615_v48  ;;  %v1639_v59 = vmul.f32 1.442695, %v1614_v47  ;;  %1657 = vadd.xlane.f32.xlu1 %v9511_v57 }
 0x4de   :  { %1655 = vadd.xlane.f32.xlu0 %v9513_v10  ;;  %v1596_v63 = vpop.xlane.xlu0 %1595  ;;  %v1598_v15 = vpop.xlane.xlu1 %1597 }
 0x4df   :  { %8097 = vpow2.f32 %v1641_v14  ;;  %v1616_v1 = vsub.f32 %v9473_v41, %v1596_v63  ;;  %v1617_v13 = vsub.f32 %v9475_v44, %v1598_v15 }
 0x4e0   :  { %v9519_v60 = vpop.eup %8085  ;;  %8099 = vpow2.f32 %v1639_v59 }
 0x4e1   :  { %v9521_v17 = vpop.eup %8087  ;;  %v1643_v40 = vmul.f32 1.442695, %v1616_v1  ;;  %v1645_v45 = vmul.f32 1.442695, %v1617_v13 }
 0x4e2   :  { %1661 = vadd.xlane.f32.xlu1 %v9521_v17  ;;  %1659 = vadd.xlane.f32.xlu0 %v9519_v60  ;;  %v1602_v4 = vpop.xlane.xlu1 %1601  ;;  %v1600_v5 = vpop.xlane.xlu0 %1599 }
 0x4e3   :  { %8101 = vpow2.f32 %v1643_v40  ;;  %v1619_v26 = vsub.f32 %v9485_v6, %v1602_v4  ;;  %v1618_v41 = vsub.f32 %v9487_v16, %v1600_v5 }
 0x4e4   :  { %v9527_v30 = vpop.eup %8089  ;;  %8103 = vpow2.f32 %v1645_v45 }
 0x4e5   :  { %v9529_v44 = vpop.eup %8091  ;;  %v1649_v7 = vmul.f32 1.442695, %v1619_v26  ;;  %v1647_v28 = vmul.f32 1.442695, %v1618_v41 }
 0x4e6   :  { %1665 = vadd.xlane.f32.xlu1 %v9527_v30  ;;  %1663 = vadd.xlane.f32.xlu0 %v9529_v44  ;;  %v1604_v33 = vpop.xlane.xlu0 %1603 }
 0x4e7   :  { %8105 = vpow2.f32 %v1649_v7  ;;  %v1620_v21 = vsub.f32 %v9494_v56, %v1604_v33  ;;  %v7944_v7 = vld [vmem:[#allocation6 + $0x30] sm:$0xff]  }
 0x4e8   :  { %v9534_v19 = vpop.eup %8093  ;;  %8107 = vpow2.f32 %v1647_v28 }
 0x4e9   :  { %v9536_v6 = vpop.eup %8095  ;;  %v1651_v16 = vmul.f32 1.442695, %v1620_v21 }
 0x4ea   :  { %1669 = vadd.xlane.f32.xlu1 %v9536_v6  ;;  %1667 = vadd.xlane.f32.xlu0 %v9534_v19 }
 0x4eb   :  { %8109 = vpow2.f32 %v1651_v16 }
 0x4ec   :  { %v9540_v24 = vpop.eup %8097 }
 0x4ed   :  { %v9542_v31 = vpop.eup %8099 }
 0x4ee   :  { %1673 = vadd.xlane.f32.xlu1 %v9540_v24  ;;  %1671 = vadd.xlane.f32.xlu0 %v9542_v31 }
 0x4f0   :  { %v9546_v56 = vpop.eup %8101 }
 0x4f1   :  { %v9548_v20 = vpop.eup %8103 }
 0x4f2   :  { %1677 = vadd.xlane.f32.xlu1 %v9548_v20  ;;  %1675 = vadd.xlane.f32.xlu0 %v9546_v56 }
 0x4f4   :  { %v9552_v35 = vpop.eup %8105 }
 0x4f5   :  { %v9554_v42 = vpop.eup %8107 }
 0x4f6   :  { %1681 = vadd.xlane.f32.xlu1 %v9552_v35  ;;  %1679 = vadd.xlane.f32.xlu0 %v9554_v42 }
 0x4f8   :  { %v9558_v49 = vpop.eup %8109 }
 0x4fa   :  { %1683 = vadd.xlane.f32.xlu0 %v9558_v49 }
 0x562   :  { %v1654_v18 = vpop.xlane.xlu1 %1653 }
 0x563   :  { %8111 = vrcp.f32 %v1654_v18 }
 0x566   :  { %v1658_v25 = vpop.xlane.xlu1 %1657 }
 0x567   :  { %v1656_v27 = vpop.xlane.xlu0 %1655 }
 0x568   :  { %8113 = vrcp.f32 %v1656_v27 }
 0x569   :  { %8115 = vrcp.f32 %v1658_v25 }
 0x56b   :  { %v1662_v51 = vpop.xlane.xlu1 %1661  ;;  %v1660_v58 = vpop.xlane.xlu0 %1659 }
 0x56c   :  { %8117 = vrcp.f32 %v1660_v58 }
 0x56d   :  { %8119 = vrcp.f32 %v1662_v51 }
 0x56f   :  { %v1666_v32 = vpop.xlane.xlu1 %1665  ;;  %v1664_v34 = vpop.xlane.xlu0 %1663 }
 0x570   :  { %8121 = vrcp.f32 %v1664_v34  ;;  %v8112_v43 = vpop.eup %8111 }
 0x571   :  { %8123 = vrcp.f32 %v1666_v32  ;;  %v1701_v14 = vmul.f32 %v8112_v43, %v9506_v29 }
 0x573   :  { %v1670_v46 = vpop.xlane.xlu1 %1669  ;;  %v1668_v48 = vpop.xlane.xlu0 %1667 }
 0x574   :  { %8125 = vrcp.f32 %v1668_v48 }
 0x575   :  { %v8114_v47 = vpop.eup %8113  ;;  %8127 = vrcp.f32 %v1670_v46 }
 0x576   :  { %v1702_v59 = vmul.f32 %v8114_v47, %v9513_v10  ;;  %v8116_v1 = vpop.eup %8115  ;;  %v7947_v47 = vld [vmem:[#allocation6 + $0x18] sm:$0xff]  }
 0x577   :  { %v1674_v63 = vpop.xlane.xlu1 %1673  ;;  %v1672_v15 = vpop.xlane.xlu0 %1671  ;;  %v1703_v5 = vmul.f32 %v8116_v1, %v9511_v57  ;;  %v7945_v57 = vld [vmem:[#allocation6 + $0x28] sm:$0xff]  }
 0x578   :  { %v1717_v13 = vpack.c.bf16 %v1702_v59, %v1701_v14  ;;  %8129 = vrcp.f32 %v1672_v15  ;;  %v7948_v15 = vld [vmem:[#allocation6 + $0x10] sm:$0xff]  }
 0x579   :  { %v8118_v40 = vpop.eup %8117  ;;  %8131 = vrcp.f32 %v1674_v63 }
 0x57a   :  { %7623 = vmatprep.mubr.bf16.mxu0 %v1717_v13  ;;  %v1704_v26 = vmul.f32 %v8118_v40, %v9519_v60  ;;  %v8120_v41 = vpop.eup %8119 }
 0x57b   :  { %v1678_v45 = vpop.xlane.xlu1 %1677  ;;  %v1676_v4 = vpop.xlane.xlu0 %1675  ;;  %v1705_v21 = vmul.f32 %v8120_v41, %v9521_v17 }
 0x57c   :  { %8133 = vrcp.f32 %v1676_v4  ;;  %v1718_v29 = vpack.c.bf16 %v1704_v26, %v1703_v5  ;;  %v7949_v5 = vld [vmem:[#allocation6 + $0x8] sm:$0xff]   ;;  %v7950_v26 = vld [vmem:[#allocation6] sm:$0xff]  }
 0x57d   :  { %v8122_v10 = vpop.eup %8121  ;;  %8135 = vrcp.f32 %v1678_v45 }
 0x57e   :  { %7624 = vmatmul.mubr.bf16.vlgmr.msra.gmra.mxu0 %v1718_v29  ;;  %v1706_v16 = vmul.f32 %v8122_v10, %v9529_v44  ;;  %v8124_v18 = vpop.eup %8123  ;;  %v7946_v44 = vld [vmem:[#allocation6 + $0x20] sm:$0xff]  }
 0x57f   :  { %v1682_v28 = vpop.xlane.xlu1 %1681  ;;  %v1680_v33 = vpop.xlane.xlu0 %1679  ;;  %7640 = vmatpush3.bf16.msra.mxu0 %v7943_v52  ;;  %v1707_v51 = vmul.f32 %v8124_v18, %v9527_v30 }
 0x580   :  { %8137 = vrcp.f32 %v1680_v33  ;;  %v1719_v25 = vpack.c.bf16 %v1706_v16, %v1705_v21  ;;  %7641 = vmatprep.subr.bf16.mxu0 %v7944_v7 }
 0x581   :  { %v8126_v60 = vpop.eup %8125  ;;  %8139 = vrcp.f32 %v1682_v28 }
 0x582   :  { %7627 = vmatprep.mubr.bf16.mxu0 %v1719_v25  ;;  %v1708_v58 = vmul.f32 %v8126_v60, %v9534_v19  ;;  %v8128_v32 = vpop.eup %8127 }
 0x583   :  { %v1684_v27 = vpop.xlane.xlu0 %1683  ;;  %7642 = vmatpush3.bf16.msra.mxu0 %v7944_v7  ;;  %v1709_v52 = vmul.f32 %v8128_v32, %v9536_v6 }
 0x584   :  { %8141 = vrcp.f32 %v1684_v27  ;;  %v1720_v17 = vpack.c.bf16 %v1708_v58, %v1707_v51  ;;  %7643 = vmatprep.subr.bf16.mxu0 %v7945_v57 }
 0x585   :  { %v8130_v34 = vpop.eup %8129 }
 0x586   :  { %7628 = vmatmul.mubr.bf16.gmra.mxu0 %v1720_v17  ;;  %v1710_v43 = vmul.f32 %v8130_v34, %v9542_v31  ;;  %v8132_v46 = vpop.eup %8131 }
 0x587   :  { %7644 = vmatpush3.bf16.msra.mxu0 %v7945_v57  ;;  %v1711_v19 = vmul.f32 %v8132_v46, %v9540_v24 }
 0x588   :  { %v1721_v48 = vpack.c.bf16 %v1710_v43, %v1709_v52  ;;  %7645 = vmatprep.subr.bf16.mxu0 %v7946_v44 }
 0x589   :  { %v8134_v30 = vpop.eup %8133 }
 0x58a   :  { %7631 = vmatprep.mubr.bf16.mxu0 %v1721_v48  ;;  %v1712_v14 = vmul.f32 %v8134_v30, %v9546_v56  ;;  %v8136_v59 = vpop.eup %8135 }
 0x58b   :  { %7646 = vmatpush3.bf16.msra.mxu0 %v7946_v44  ;;  %v1713_v31 = vmul.f32 %v8136_v59, %v9548_v20 }
 0x58c   :  { %v1722_v63 = vpack.c.bf16 %v1712_v14, %v1711_v19  ;;  %7647 = vmatprep.subr.bf16.mxu0 %v7947_v47 }
 0x58d   :  { %v8138_v1 = vpop.eup %8137 }
 0x58e   :  { %v8140_v6 = vpop.eup %8139  ;;  %7632 = vmatmul.mubr.bf16.gmra.mxu0 %v1722_v63  ;;  %v1714_v13 = vmul.f32 %v8138_v1, %v9554_v42 }
 0x58f   :  { %7648 = vmatpush3.bf16.msra.mxu0 %v7947_v47  ;;  %v1715_v24 = vmul.f32 %v8140_v6, %v9552_v35 }
 0x590   :  { %v1723_v45 = vpack.c.bf16 %v1714_v13, %v1713_v31  ;;  %7649 = vmatprep.subr.bf16.mxu0 %v7948_v15 }
 0x591   :  { %v8142_v40 = vpop.eup %8141 }
 0x592   :  { %v1716_v56 = vmul.f32 %v8142_v40, %v9558_v49  ;;  %7635 = vmatprep.mubr.bf16.mxu0 %v1723_v45 }
 0x593   :  { %7650 = vmatpush3.bf16.msra.mxu0 %v7948_v15 }
 0x594   :  { %v1724_v4 = vpack.c.bf16 %v1716_v56, %v1715_v24  ;;  %7651 = vmatprep.subr.bf16.mxu0 %v7949_v5 }
 0x596   :  { %7636 = vmatmul.mubr.bf16.gmra.mxu0 %v1724_v4 }
 0x597   :  { %7652 = vmatpush3.bf16.msra.mxu0 %v7949_v5 }
 0x598   :  { %7653 = vmatprep.subr.bf16.mxu0 %v7950_v26 }
 0x59b   :  { %7654 = vmatpush3.bf16.msra.mxu0 %v7950_v26 }
 0x63e   :  { %v7625_v20 = vpop.f32.mrf.mxu0 }
 0x640   :  { %v1767_v42 = vpop.f32.mrf.mxu0 }
 0x642   :  { %v7626_v41 = vpop.f32.mrf.mxu0 }
 0x643   :  { %v1831_v10 = vpack.c.bf16 %v7626_v41, %v7625_v20 }
 0x644   :  { %v1770_v29 = vpop.f32.mrf.mxu0 }
 0x645   :  { %v1830_v7 = vpack.c.bf16 %v1770_v29, %v1767_v42 }
 0x646   :  { %v7629_v28 = vpop.f32.mrf.mxu0 }
 0x647   :  { %7655 = vmatprep.mubr.bf16.mxu0 %v1830_v7 }
 0x648   :  { %v1783_v35 = vpop.f32.mrf.mxu0  ;;  %7656 = vmatmul.mubr.bf16.vlgmr.msra.gmra.mxu0 %v1831_v10 }
 0x64a   :  { %v7630_v49 = vpop.f32.mrf.mxu0 }
 0x64b   :  { %v1833_v16 = vpack.c.bf16 %v7630_v49, %v7629_v28 }
 0x64c   :  { %v1786_v33 = vpop.f32.mrf.mxu0 }
 0x64d   :  { %v1832_v21 = vpack.c.bf16 %v1786_v33, %v1783_v35 }
 0x64e   :  { %v7633_v18 = vpop.f32.mrf.mxu0 }
 0x64f   :  { %7659 = vmatprep.mubr.bf16.mxu0 %v1832_v21 }
 0x650   :  { %v1799_v25 = vpop.f32.mrf.mxu0  ;;  %7660 = vmatmul.mubr.bf16.gmra.mxu0 %v1833_v16 }
 0x652   :  { %v7634_v57 = vpop.f32.mrf.mxu0 }
 0x653   :  { %v1835_v51 = vpack.c.bf16 %v7634_v57, %v7633_v18 }
 0x654   :  { %v1802_v60 = vpop.f32.mrf.mxu0 }
 0x655   :  { %v1834_v27 = vpack.c.bf16 %v1802_v60, %v1799_v25 }
 0x656   :  { %v7637_v58 = vpop.f32.mrf.mxu0 }
 0x657   :  { %7663 = vmatprep.mubr.bf16.mxu0 %v1834_v27 }
 0x658   :  { %v1815_v32 = vpop.f32.mrf.mxu0  ;;  %7664 = vmatmul.mubr.bf16.gmra.mxu0 %v1835_v51 }
 0x65a   :  { %v7638_v17 = vpop.f32.mrf.mxu0 }
 0x65b   :  { %v1837_v52 = vpack.c.bf16 %v7638_v17, %v7637_v58 }
 0x65c   :  { %v1818_v44 = vpop.f32.mrf.mxu0 }
 0x65d   :  { %v1836_v34 = vpack.c.bf16 %v1818_v44, %v1815_v32 }
 0x65f   :  { %7667 = vmatprep.mubr.bf16.mxu0 %v1836_v34 }
 0x660   :  { %7668 = vmatmul.mubr.bf16.gmra.mxu0 %v1837_v52 }
 0x708   :  { %v7657_v43 = vpop.f32.mrf.mxu0 }
 0x709   :  { %v1985_v19 = vadd.f32 %v7657_v43, %v9292_v22 }
 0x70a   :  { %v1920_v46 = vpop.f32.mrf.mxu0 }
 0x70b   :  { %v1983_v48 = vadd.f32 %v9282_v11, %v1920_v46 }
 0x70c   :  { %v7658_v47 = vpop.f32.mrf.mxu0 }
 0x70d   :  { %1999 = vadd.xlane.f32.xlu1 %v1983_v48  ;;  %v1986_v15 = vadd.f32 %v7658_v47, %v9294_v23 }
 0x70e   :  { %v1923_v30 = vpop.f32.mrf.mxu0 }
 0x70f   :  { %v1984_v14 = vadd.f32 %v9284_v12, %v1923_v30 }
 0x710   :  { %v7661_v59 = vpop.f32.mrf.mxu0 }
 0x711   :  { %2003 = vadd.xlane.f32.xlu1 %v1985_v19  ;;  %2001 = vadd.xlane.f32.xlu0 %v1984_v14  ;;  %v9583_v11 = vadd.f32 %v7661_v59, %v9310_v53 }
 0x712   :  { %v1936_v63 = vpop.f32.mrf.mxu0 }
 0x713   :  { %v1987_v1 = vadd.f32 %v9302_v37, %v1936_v63 }
 0x714   :  { %v7662_v6 = vpop.f32.mrf.mxu0 }
 0x715   :  { %2005 = vadd.xlane.f32.xlu0 %v1986_v15  ;;  %2007 = vadd.xlane.f32.xlu1 %v1987_v1  ;;  %v9591_v23 = vadd.f32 %v7662_v6, %v9312_v54 }
 0x716   :  { %v1939_v31 = vpop.f32.mrf.mxu0 }
 0x717   :  { %v9586_v13 = vadd.f32 %v9304_v38, %v1939_v31 }
 0x718   :  { %v7665_v22 = vpop.f32.mrf.mxu0 }
 0x719   :  { %2011 = vadd.xlane.f32.xlu1 %v9583_v11  ;;  %2009 = vadd.xlane.f32.xlu0 %v9586_v13  ;;  %v9599_v38 = vadd.f32 %v7665_v22, %v9324_v2  ;;  %v7959_v22 = vld [vmem:[%s12402_s5 + $0x54] ss:$8 sps:$4 sm:$0xff]  }
 0x71a   :  { %v1952_v12 = vpop.f32.mrf.mxu0 }
 0x71b   :  { %v9594_v37 = vadd.f32 %v9314_v55, %v1952_v12 }
 0x71c   :  { %v7666_v40 = vpop.f32.mrf.mxu0 }
 0x71d   :  { %2013 = vadd.xlane.f32.xlu0 %v9591_v23  ;;  %2015 = vadd.xlane.f32.xlu1 %v9594_v37  ;;  %v9607_v55 = vadd.f32 %v7666_v40, %v9320_v61 }
 0x71e   :  { %v1955_v53 = vpop.f32.mrf.mxu0 }
 0x71f   :  { %v9602_v45 = vadd.f32 %v9308_v50, %v1955_v53 }
 0x720   :  { %v7669_v24 = vpop.f32.mrf.mxu0 }
 0x721   :  { %2019 = vadd.xlane.f32.xlu1 %v9599_v38  ;;  %2017 = vadd.xlane.f32.xlu0 %v9602_v45  ;;  %v9615_v50 = vadd.f32 %v7669_v24, %v9334_v9  ;;  %v7953_v9 = vld [vmem:[%s12402_s5 + $0x74] ss:$8 sps:$4 sm:$0xff]  }
 0x722   :  { %v1968_v54 = vpop.f32.mrf.mxu0  ;;  %2319 = vmatprep.subr.bf16.mxu1 %v7953_v9  ;;  %v7960_v9 = vld [vmem:[%s12402_s5 + $0x40] ss:$8 sps:$4 sm:$0xff]  }
 0x723   :  { %v9610_v56 = vadd.f32 %v9326_v3, %v1968_v54  ;;  %v7951_v3 = vld [vmem:[%s12402_s5 + $0x70] ss:$8 sps:$4 sm:$0xff]  }
 0x724   :  { %v7670_v4 = vpop.f32.mrf.mxu0  ;;  %2320 = vmatpush1.bf16.msra.mxu1 %v7951_v3 }
 0x725   :  { %2021 = vadd.xlane.f32.xlu0 %v9607_v55  ;;  %2023 = vadd.xlane.f32.xlu1 %v9610_v56  ;;  %v9623_v61 = vadd.f32 %v7670_v4, %v9332_v8 }
 0x726   :  { %v1971_v2 = vpop.f32.mrf.mxu0 }
 0x727   :  { %v9618_v5 = vadd.f32 %v9322_v62, %v1971_v2 }
 0x729   :  { %2027 = vadd.xlane.f32.xlu1 %v9615_v50  ;;  %2025 = vadd.xlane.f32.xlu0 %v9618_v5 }
 0x72d   :  { %2029 = vadd.xlane.f32.xlu0 %v9623_v61 }
 0x796   :  { %v2000_v62 = vpop.xlane.xlu1 %1999 }
 0x797   :  { %v2032_v26 = vmul.f32 0.0078125, %v2000_v62 }
 0x799   :  { %v9632_v20 = vsub.f32 %v1983_v48, %v2032_v26 }
 0x79a   :  { %v2004_v42 = vpop.xlane.xlu1 %2003  ;;  %v2002_v41 = vpop.xlane.xlu0 %2001 }
 0x79b   :  { %v2034_v8 = vmul.f32 0.0078125, %v2004_v42  ;;  %v2033_v29 = vmul.f32 0.0078125, %v2002_v41  ;;  %v2064_v7 = vmul.f32 %v9632_v20, %v9632_v20 }
 0x79d   :  { %2080 = vadd.xlane.f32.xlu1 %v2064_v7  ;;  %v9636_v10 = vsub.f32 %v1985_v19, %v2034_v8  ;;  %v9638_v28 = vsub.f32 %v1984_v14, %v2033_v29  ;;  %v7956_v19 = vld [vmem:[%s12402_s5 + $0x64] ss:$8 sps:$4 sm:$0xff]   ;;  %v7954_v14 = vld [vmem:[%s12402_s5 + $0x60] ss:$8 sps:$4 sm:$0xff]  }
 0x79e   :  { %v2006_v35 = vpop.xlane.xlu0 %2005  ;;  %v2008_v49 = vpop.xlane.xlu1 %2007  ;;  %2321 = vmatprep.subr.bf16.mxu1 %v7956_v19 }
 0x79f   :  { %v2035_v33 = vmul.f32 0.0078125, %v2006_v35  ;;  %v2036_v21 = vmul.f32 0.0078125, %v2008_v49  ;;  %v2066_v16 = vmul.f32 %v9636_v10, %v9636_v10  ;;  %v2065_v18 = vmul.f32 %v9638_v28, %v9638_v28  ;;  %2322 = vmatpush1.bf16.msra.mxu1 %v7954_v14  ;;  %v7963_v35 = vld [vmem:[%s12402_s5 + $0x30] ss:$8 sps:$4 sm:$0xff]  }
 0x7a0   :  { %2323 = vmatprep.subr.bf16.mxu1 %v7959_v22 }
 0x7a1   :  { %2084 = vadd.xlane.f32.xlu1 %v2066_v16  ;;  %2082 = vadd.xlane.f32.xlu0 %v2065_v18  ;;  %v9644_v25 = vsub.f32 %v1987_v1, %v2036_v21  ;;  %v9646_v57 = vsub.f32 %v1986_v15, %v2035_v33  ;;  %v7966_v18 = vld [vmem:[%s12402_s5 + $0x20] ss:$8 sps:$4 sm:$0xff]  }
 0x7a2   :  { %v2012_v60 = vpop.xlane.xlu1 %2011  ;;  %v2010_v27 = vpop.xlane.xlu0 %2009 }
 0x7a3   :  { %v2038_v51 = vmul.f32 0.0078125, %v2012_v60  ;;  %v2037_v58 = vmul.f32 0.0078125, %v2010_v27  ;;  %v2068_v32 = vmul.f32 %v9644_v25, %v9644_v25  ;;  %v2067_v17 = vmul.f32 %v9646_v57, %v9646_v57  ;;  %v7971_v27 = vld [vmem:[%s12402_s5 + $0x14] ss:$8 sps:$4 sm:$0xff]  }
 0x7a5   :  { %2088 = vadd.xlane.f32.xlu1 %v2068_v32  ;;  %2086 = vadd.xlane.f32.xlu0 %v2067_v17  ;;  %v9653_v44 = vsub.f32 %v9583_v11, %v2038_v51  ;;  %v9656_v34 = vsub.f32 %v9586_v13, %v2037_v58  ;;  %v7969_v51 = vld [vmem:[%s12402_s5 + $0x10] ss:$8 sps:$4 sm:$0xff]   ;;  %v7972_v58 = vld [vmem:[%s12402_s5] ss:$8 sps:$4 sm:$0xff]  }
 0x7a6   :  { %v2014_v52 = vpop.xlane.xlu0 %2013  ;;  %v2016_v43 = vpop.xlane.xlu1 %2015  ;;  %v8463_v32 = vld [vmem:[%s12397_s8 + $0x78] sm:$0xff]  }
 0x7a7   :  { %v2039_v46 = vmul.f32 0.0078125, %v2014_v52  ;;  %v2040_v48 = vmul.f32 0.0078125, %v2016_v43  ;;  %v2070_v47 = vmul.f32 %v9653_v44, %v9653_v44  ;;  %v2069_v30 = vmul.f32 %v9656_v34, %v9656_v34 }
 0x7a9   :  { %2092 = vadd.xlane.f32.xlu1 %v2070_v47  ;;  %2090 = vadd.xlane.f32.xlu0 %v2069_v30  ;;  %v9669_v59 = vsub.f32 %v9594_v37, %v2040_v48  ;;  %v9672_v63 = vsub.f32 %v9591_v23, %v2039_v46  ;;  %v7957_v37 = vld [vmem:[%s12402_s5 + $0x50] ss:$8 sps:$4 sm:$0xff]  }
 0x7aa   :  { %v2020_v15 = vpop.xlane.xlu1 %2019  ;;  %v2018_v1 = vpop.xlane.xlu0 %2017  ;;  %2324 = vmatpush1.bf16.msra.mxu1 %v7957_v37 }
 0x7ab   :  { %v2042_v6 = vmul.f32 0.0078125, %v2020_v15  ;;  %v2041_v31 = vmul.f32 0.0078125, %v2018_v1  ;;  %v2072_v11 = vmul.f32 %v9669_v59, %v9669_v59  ;;  %v2071_v13 = vmul.f32 %v9672_v63, %v9672_v63 }
 0x7ad   :  { %2096 = vadd.xlane.f32.xlu1 %v2072_v11  ;;  %2094 = vadd.xlane.f32.xlu0 %v2071_v13  ;;  %v9682_v12 = vsub.f32 %v9599_v38, %v2042_v6  ;;  %v9685_v23 = vsub.f32 %v9602_v45, %v2041_v31  ;;  %v7962_v38 = vld [vmem:[%s12402_s5 + $0x44] ss:$8 sps:$4 sm:$0xff]  }
 0x7ae   :  { %v2022_v40 = vpop.xlane.xlu0 %2021  ;;  %v2024_v53 = vpop.xlane.xlu1 %2023  ;;  %2325 = vmatprep.subr.bf16.mxu1 %v7962_v38 }
 0x7af   :  { %v2043_v24 = vmul.f32 0.0078125, %v2022_v40  ;;  %v2044_v54 = vmul.f32 0.0078125, %v2024_v53  ;;  %v2074_v4 = vmul.f32 %v9682_v12, %v9682_v12  ;;  %v2073_v2 = vmul.f32 %v9685_v23, %v9685_v23  ;;  %2326 = vmatpush1.bf16.msra.mxu1 %v7960_v9  ;;  %v9756_v9 = vld [vmem:[%s12403_s2] ss:$0 sm:$0xff] }
 0x7b1   :  { %2100 = vadd.xlane.f32.xlu1 %v2074_v4  ;;  %2098 = vadd.xlane.f32.xlu0 %v2073_v2  ;;  %v9698_v45 = vsub.f32 %v9610_v56, %v2044_v54  ;;  %v9701_v3 = vsub.f32 %v9607_v55, %v2043_v24  ;;  %v7965_v55 = vld [vmem:[%s12402_s5 + $0x34] ss:$8 sps:$4 sm:$0xff]  }
 0x7b2   :  { %v2028_v62 = vpop.xlane.xlu1 %2027  ;;  %v2026_v26 = vpop.xlane.xlu0 %2025  ;;  %2327 = vmatprep.subr.bf16.mxu1 %v7965_v55 }
 0x7b3   :  { %v2046_v42 = vmul.f32 0.0078125, %v2028_v62  ;;  %v2045_v41 = vmul.f32 0.0078125, %v2026_v26  ;;  %v2076_v8 = vmul.f32 %v9698_v45, %v9698_v45  ;;  %v2075_v29 = vmul.f32 %v9701_v3, %v9701_v3  ;;  %2328 = vmatpush1.bf16.msra.mxu1 %v7963_v35 }
 0x7b5   :  { %2104 = vadd.xlane.f32.xlu1 %v2076_v8  ;;  %2102 = vadd.xlane.f32.xlu0 %v2075_v29  ;;  %v9714_v56 = vsub.f32 %v9615_v50, %v2046_v42  ;;  %v9717_v7 = vsub.f32 %v9618_v5, %v2045_v41  ;;  %v7968_v50 = vld [vmem:[%s12402_s5 + $0x24] ss:$8 sps:$4 sm:$0xff]  }
 0x7b6   :  { %v2030_v49 = vpop.xlane.xlu0 %2029  ;;  %2329 = vmatprep.subr.bf16.mxu1 %v7968_v50 }
 0x7b7   :  { %v2047_v33 = vmul.f32 0.0078125, %v2030_v49  ;;  %v2078_v21 = vmul.f32 %v9714_v56, %v9714_v56  ;;  %v2077_v16 = vmul.f32 %v9717_v7, %v9717_v7  ;;  %2330 = vmatpush1.bf16.msra.mxu1 %v7966_v18  ;;  %v9760_v49 = vld [vmem:[#allocation7] ss:$0 sm:$0xff] }
 0x7b8   :  { %2331 = vmatprep.subr.bf16.mxu1 %v7971_v27 }
 0x7b9   :  { %2108 = vadd.xlane.f32.xlu1 %v2078_v21  ;;  %2106 = vadd.xlane.f32.xlu0 %v2077_v16  ;;  %v9730_v5 = vsub.f32 %v9623_v61, %v2047_v33  ;;  %v7974_v61 = vld [vmem:[%s12402_s5 + $0x4] ss:$8 sps:$4 sm:$0xff]   ;;  %s12445_s5 = sld [smem:[#allocation59_spill]] }
 0x7bb   :  { %v2079_v60 = vmul.f32 %v9730_v5, %v9730_v5  ;;  %2332 = vmatpush1.bf16.msra.mxu1 %v7969_v51 }
 0x7bc   :  { %2333 = vmatprep.subr.bf16.mxu1 %v7974_v61 }
 0x7bd   :  { %2110 = vadd.xlane.f32.xlu0 %v2079_v60 }
 0x7bf   :  { %2334 = vmatpush1.bf16.msra.mxu1 %v7972_v58 }
 0x7c0   :  { %7191 = vmatprep.subr.bf16.mxu1 %v8463_v32 }
 0x826   :  { %v2081_v17 = vpop.xlane.xlu1 %2080 }
 0x827   :  { %v2112_v52 = vmul.f32 0.0078125, %v2081_v17 }
 0x829   :  { %v2128_v43 = vadd.f32 1e-05, %v2112_v52 }
 0x82a   :  { %v2085_v46 = vpop.xlane.xlu1 %2084  ;;  %v2083_v48 = vpop.xlane.xlu0 %2082 }
 0x82b   :  { %8143 = vrsqrt.f32 %v2128_v43  ;;  %v2114_v47 = vmul.f32 0.0078125, %v2085_v46  ;;  %v2113_v30 = vmul.f32 0.0078125, %v2083_v48 }
 0x82d   :  { %v2129_v19 = vadd.f32 1e-05, %v2113_v30  ;;  %v2130_v14 = vadd.f32 1e-05, %v2114_v47  ;;  %v8465_v30 = vld [vmem:[%s12397_s8 + $0x70] sm:$0xff]  }
 0x82e   :  { %v2087_v15 = vpop.xlane.xlu0 %2086  ;;  %v2089_v1 = vpop.xlane.xlu1 %2088 }
 0x82f   :  { %v2115_v6 = vmul.f32 0.0078125, %v2087_v15  ;;  %8145 = vrsqrt.f32 %v2129_v19  ;;  %v2116_v11 = vmul.f32 0.0078125, %v2089_v1 }
 0x830   :  { %8147 = vrsqrt.f32 %v2130_v14 }
 0x831   :  { %v2131_v31 = vadd.f32 1e-05, %v2115_v6  ;;  %v2132_v40 = vadd.f32 1e-05, %v2116_v11 }
 0x832   :  { %v2091_v13 = vpop.xlane.xlu0 %2090  ;;  %v2093_v53 = vpop.xlane.xlu1 %2092 }
 0x833   :  { %v2117_v22 = vmul.f32 0.0078125, %v2091_v13  ;;  %8149 = vrsqrt.f32 %v2131_v31  ;;  %v2118_v2 = vmul.f32 0.0078125, %v2093_v53 }
 0x835   :  { %v2133_v37 = vadd.f32 1e-05, %v2117_v22  ;;  %v2134_v42 = vadd.f32 1e-05, %v2118_v2 }
 0x836   :  { %v2095_v24 = vpop.xlane.xlu0 %2094  ;;  %v2097_v29 = vpop.xlane.xlu1 %2096 }
 0x837   :  { %8151 = vrsqrt.f32 %v2133_v37  ;;  %v2119_v4 = vmul.f32 0.0078125, %v2095_v24  ;;  %v2120_v16 = vmul.f32 0.0078125, %v2097_v29 }
 0x838   :  { %v8144_v54 = vpop.eup %8143  ;;  %8153 = vrsqrt.f32 %v2132_v40 }
 0x839   :  { %v2160_v38 = vmul.f32 %v8144_v54, %v9632_v20  ;;  %v2135_v62 = vadd.f32 1e-05, %v2119_v4  ;;  %v2136_v17 = vadd.f32 1e-05, %v2120_v16  ;;  %v8467_v4 = vld [vmem:[%s12397_s8 + $0x68] sm:$0xff]  }
 0x83a   :  { %v2099_v41 = vpop.xlane.xlu0 %2098  ;;  %v2101_v46 = vpop.xlane.xlu1 %2100 }
 0x83b   :  { %v2182_v55 = vmul.f32 %v9756_v9, %v2160_v38  ;;  %8155 = vrsqrt.f32 %v2135_v62  ;;  %v2121_v20 = vmul.f32 0.0078125, %v2099_v41  ;;  %v2122_v19 = vmul.f32 0.0078125, %v2101_v46  ;;  %v8470_v46 = vld [vmem:[%s12397_s8 + $0x20] sm:$0xff]  }
 0x83c   :  { %v8146_v26 = vpop.eup %8145  ;;  %8157 = vrsqrt.f32 %v2134_v42 }
 0x83d   :  { %v2161_v8 = vmul.f32 %v8146_v26, %v9638_v28  ;;  %v8148_v35 = vpop.eup %8147  ;;  %v9764_v50 = vadd.f32 %v9760_v49, %v2182_v55  ;;  %v2137_v27 = vadd.f32 1e-05, %v2121_v20  ;;  %v2138_v22 = vadd.f32 1e-05, %v2122_v19 }
 0x83e   :  { %v2162_v28 = vmul.f32 %v8148_v35, %v9636_v10  ;;  %v2103_v32 = vpop.xlane.xlu0 %2102  ;;  %v8464_v10 = vld [vmem:[%s12397_s8 + $0x38] sm:$0xff]   ;;  %v2105_v40 = vpop.xlane.xlu1 %2104 }
 0x83f   :  { %v2183_v33 = vmul.f32 %v9756_v9, %v2161_v8  ;;  %8159 = vrsqrt.f32 %v2137_v27  ;;  %v2124_v2 = vmul.f32 0.0078125, %v2105_v40 }
 0x840   :  { %v8150_v21 = vpop.eup %8149  ;;  %v2184_v52 = vmul.f32 %v9756_v9, %v2162_v28  ;;  %8161 = vrsqrt.f32 %v2136_v17  ;;  %v8469_v28 = vld [vmem:[%s12397_s8 + $0x60] sm:$0xff]  }
 0x841   :  { %v9767_v18 = vadd.f32 %v9760_v49, %v2183_v33  ;;  %v2163_v60 = vmul.f32 %v8150_v21, %v9646_v57  ;;  %v2123_v57 = vmul.f32 0.0078125, %v2103_v32  ;;  %v2140_v29 = vadd.f32 1e-05, %v2124_v2  ;;  %v8475_v2 = vld [vmem:[%s12397_s8 + $0x48] sm:$0xff]  }
 0x842   :  { %v9787_v14 = vadd.f32 %v9760_v49, %v2184_v52  ;;  %v2109_v20 = vpop.xlane.xlu1 %2108 }
 0x843   :  { %v2220_v51 = vpack.c.bf16 %v9767_v18, %v9764_v50  ;;  %v2185_v61 = vmul.f32 %v9756_v9, %v2163_v60  ;;  %v2139_v1 = vadd.f32 1e-05, %v2123_v57  ;;  %v2126_v60 = vmul.f32 0.0078125, %v2109_v20  ;;  %v8471_v57 = vld [vmem:[%s12397_s8 + $0x58] sm:$0xff]  }
 0x844   :  { %v8152_v58 = vpop.eup %8151  ;;  %v7976_v20 = vld [vmem:[#allocation9 + $0x38] sm:$0xff]  }
 0x845   :  { %2352 = vmatmul.mubr.bf16.vlgmr.msra.gmra.mxu1 %v2220_v51  ;;  %v8154_v43 = vpop.eup %8153  ;;  %v9780_v48 = vadd.f32 %v9760_v49, %v2185_v61  ;;  %v2165_v47 = vmul.f32 %v8152_v58, %v9656_v34  ;;  %v2107_v34 = vpop.xlane.xlu0 %2106  ;;  %8163 = vrsqrt.f32 %v2139_v1 }
 0x846   :  { %2361 = vmatprep.mubr.bf16.mxu1 %v12354_v0  ;;  %7192 = vmatpush3.bf16.xpose.msra.mxu1 %v8464_v10  ;;  %v2164_v15 = vmul.f32 %v8154_v43, %v9644_v25  ;;  %v8466_v25 = vld [vmem:[%s12397_s8 + $0x30] sm:$0xff]   ;;  %v2125_v53 = vmul.f32 0.0078125, %v2107_v34  ;;  %8165 = vrsqrt.f32 %v2138_v22 }
 0x847   :  { %7193 = vmatprep.subr.bf16.mxu1 %v8465_v30  ;;  %v2221_v6 = vpack.c.bf16 %v9780_v48, %v9787_v14  ;;  %v2187_v31 = vmul.f32 %v9756_v9, %v2165_v47  ;;  %v8473_v34 = vld [vmem:[%s12397_s8 + $0x50] sm:$0xff]  }
 0x848   :  { %v8156_v11 = vpop.eup %8155  ;;  %v2186_v37 = vmul.f32 %v9756_v9, %v2164_v15  ;;  %v2141_v26 = vadd.f32 1e-05, %v2125_v53 }
 0x849   :  { %v8158_v13 = vpop.eup %8157  ;;  %v9799_v24 = vadd.f32 %v9760_v49, %v2187_v31  ;;  %v2167_v54 = vmul.f32 %v8156_v11, %v9672_v63  ;;  %v2111_v63 = vpop.xlane.xlu0 %2110  ;;  %v8472_v31 = vld [vmem:[%s12397_s8 + $0x18] sm:$0xff]  }
 0x84a   :  { %v9806_v38 = vadd.f32 %v9760_v49, %v2186_v37  ;;  %v2166_v62 = vmul.f32 %v8158_v13, %v9653_v44  ;;  %v8468_v44 = vld [vmem:[%s12397_s8 + $0x28] sm:$0xff]   ;;  %8167 = vrsqrt.f32 %v2141_v26  ;;  %v2127_v33 = vmul.f32 0.0078125, %v2111_v63 }
 0x84b   :  { %v2189_v41 = vmul.f32 %v9756_v9, %v2167_v54  ;;  %8169 = vrsqrt.f32 %v2140_v29  ;;  %v8474_v54 = vld [vmem:[%s12397_s8 + $0x10] sm:$0xff]  }
 0x84c   :  { %v2222_v42 = vpack.c.bf16 %v9799_v24, %v9806_v38  ;;  %v8160_v8 = vpop.eup %8159  ;;  %v2188_v55 = vmul.f32 %v9756_v9, %v2166_v62  ;;  %v2143_v61 = vadd.f32 1e-05, %v2127_v33  ;;  %v7978_v33 = vld [vmem:[#allocation9 + $0x30] sm:$0xff]  }
 0x84d   :  { %2362 = vmatmul.mubr.bf16.gmra.mxu1 %v2221_v6  ;;  %v8162_v35 = vpop.eup %8161  ;;  %v9818_v21 = vadd.f32 %v9760_v49, %v2189_v41  ;;  %v2169_v16 = vmul.f32 %v8160_v8, %v9685_v23  ;;  %v2142_v23 = vadd.f32 1e-05, %v2126_v60  ;;  %v7982_v60 = vld [vmem:[#allocation9 + $0x20] sm:$0xff]  }
 0x84e   :  { %2371 = vmatprep.mubr.bf16.mxu1 %v12354_v0  ;;  %7194 = vmatpush3.bf16.xpose.msra.mxu1 %v8466_v25  ;;  %v9825_v27 = vadd.f32 %v9760_v49, %v2188_v55  ;;  %v2168_v51 = vmul.f32 %v8162_v35, %v9669_v59  ;;  %8171 = vrsqrt.f32 %v2143_v61  ;;  %v8478_v55 = vld [vmem:[%s12397_s8] sm:$0xff]  }
 0x84f   :  { %7195 = vmatprep.subr.bf16.mxu1 %v8467_v4  ;;  %v2191_v32 = vmul.f32 %v9756_v9, %v2169_v16  ;;  %8173 = vrsqrt.f32 %v2142_v23  ;;  %v7975_v35 = vld [vmem:[#allocation9 + $0x78] sm:$0xff]   ;;  %v7979_v16 = vld [vmem:[#allocation9 + $0x68] sm:$0xff]  }
 0x850   :  { %v2223_v58 = vpack.c.bf16 %v9818_v21, %v9825_v27  ;;  %v2190_v52 = vmul.f32 %v9756_v9, %v2168_v51  ;;  %7127 = vmatprep.subr.bf16.mxu0 %v7975_v35  ;;  %v7983_v51 = vld [vmem:[#allocation9 + $0x58] sm:$0xff]   ;;  %v7988_v23 = vld [vmem:[#allocation9 + $0x8] sm:$0xff]  }
 0x851   :  { %v9837_v59 = vadd.f32 %v9760_v49, %v2191_v32  ;;  %7128 = vmatpush3.bf16.msra.mxu0 %v7976_v20  ;;  %v7984_v61 = vld [vmem:[#allocation9 + $0x18] sm:$0xff]   ;;  %v7986_v32 = vld [vmem:[#allocation9 + $0x10] sm:$0xff]  }
 0x852   :  { %v8164_v17 = vpop.eup %8163  ;;  %v9844_v47 = vadd.f32 %v9760_v49, %v2190_v52  ;;  %v7989_v52 = vld [vmem:[#allocation9 + $0x40] sm:$0xff]  }
 0x853   :  { %v8166_v43 = vpop.eup %8165  ;;  %12404 = vst [vmem:[#allocation38_spill] sm:$0xff] %v9837_v59  ;;  %v2171_v10 = vmul.f32 %v8164_v17, %v9701_v3  ;;  %v7987_v17 = vld [vmem:[#allocation9 + $0x48] sm:$0xff]  }
 0x854   :  { %v2170_v30 = vmul.f32 %v8166_v43, %v9682_v12  ;;  %v2224_v19 = vpack.c.bf16 %v9837_v59, %v9844_v47  ;;  %v7990_v43 = vld [vmem:[#allocation9] sm:$0xff]  }
 0x855   :  { %2372 = vmatmul.mubr.bf16.gmra.mxu1 %v2222_v42  ;;  %v2193_v15 = vmul.f32 %v9756_v9, %v2171_v10 }
 0x856   :  { %2381 = vmatprep.mubr.bf16.mxu1 %v12354_v0  ;;  %7196 = vmatpush3.bf16.xpose.msra.mxu1 %v8468_v44  ;;  %v2192_v3 = vmul.f32 %v9756_v9, %v2170_v30  ;;  %v7977_v44 = vld [vmem:[#allocation9 + $0x70] sm:$0xff]   ;;  %v411_v30 = vld [vmem:[%s12413_s15] sm:$0x3] }
 0x857   :  { %7197 = vmatprep.subr.bf16.mxu1 %v8469_v28  ;;  %v8168_v1 = vpop.eup %8167  ;;  %v9856_v11 = vadd.f32 %v9760_v49, %v2193_v15  ;;  %7129 = vmatprep.subr.bf16.mxu0 %v7977_v44  ;;  %v7981_v28 = vld [vmem:[#allocation9 + $0x60] sm:$0xff]  }
 0x858   :  { %v8170_v6 = vpop.eup %8169  ;;  %v2173_v12 = vmul.f32 %v8168_v1, %v9717_v7  ;;  %v9863_v13 = vadd.f32 %v9760_v49, %v2192_v3  ;;  %7130 = vmatpush3.bf16.msra.mxu0 %v7978_v33 }
 0x859   :  { %12405 = vst [vmem:[#allocation39_spill] sm:$0xff] %v9856_v11  ;;  %v2172_v22 = vmul.f32 %v8170_v6, %v9698_v45  ;;  %7131 = vmatprep.subr.bf16.mxu0 %v7979_v16 }
 0x85a   :  { %12406 = vst [vmem:[#allocation40_spill] sm:$0xff] %v9863_v13  ;;  %v2225_v37 = vpack.c.bf16 %v9856_v11, %v9863_v13  ;;  %v2195_v40 = vmul.f32 %v9756_v9, %v2173_v12 }
 0x85b   :  { %v8172_v25 = vpop.eup %8171  ;;  %v2194_v53 = vmul.f32 %v9756_v9, %v2172_v22 }
 0x85c   :  { %v8174_v7 = vpop.eup %8173  ;;  %v9875_v4 = vadd.f32 %v9760_v49, %v2195_v40  ;;  %v2175_v45 = vmul.f32 %v8172_v25, %v9730_v5  ;;  %v8476_v5 = vld [vmem:[%s12397_s8 + $0x8] sm:$0xff]  }
 0x85d   :  { %2382 = vmatmul.mubr.bf16.gmra.mxu1 %v2223_v58  ;;  %v9882_v62 = vadd.f32 %v9760_v49, %v2194_v53  ;;  %v2174_v26 = vmul.f32 %v8174_v7, %v9714_v56  ;;  %v8477_v56 = vld [vmem:[%s12397_s8 + $0x40] sm:$0xff]   ;;  %v7985_v58 = vld [vmem:[#allocation9 + $0x50] sm:$0xff]  }
 0x85e   :  { %2391 = vmatprep.mubr.bf16.mxu1 %v12354_v0  ;;  %7198 = vmatpush3.bf16.xpose.msra.mxu1 %v8470_v46  ;;  %12407 = vst [vmem:[#allocation41_spill] sm:$0xff] %v9875_v4  ;;  %v2197_v41 = vmul.f32 %v9756_v9, %v2175_v45  ;;  %v12411_v46 = vlaneseq }
 0x85f   :  { %7199 = vmatprep.subr.bf16.mxu1 %v8471_v57  ;;  %12408 = vst [vmem:[#allocation42_spill] sm:$0xff] %v9882_v62  ;;  %v2226_v42 = vpack.c.bf16 %v9875_v4, %v9882_v62  ;;  %v2196_v8 = vmul.f32 %v9756_v9, %v2174_v26 }
 0x860   :  { %v9894_v63 = vadd.f32 %v9760_v49, %v2197_v41  ;;  %v9908_v10 = vshrl.u32 %v12411_v46, 7 }
 0x861   :  { %v9900_v29 = vadd.f32 %v9760_v49, %v2196_v8  ;;  %v7980_v49 = vld [vmem:[#allocation9 + $0x28] sm:$0xff]  }
 0x862   :  { %12409 = vst [vmem:[#allocation43_spill] sm:$0xff] %v9894_v63  ;;  %7132 = vmatpush3.bf16.msra.mxu0 %v7980_v49  ;;  %12412 = vst [vmem:[#allocation45_spill] sm:$0xff] %v9908_v10  ;;  %v12353_v57 = vsub.s32 0, %v9908_v10 }
 0x863   :  { %12410 = vst [vmem:[#allocation44_spill] sm:$0xff] %v9900_v29  ;;  %v2227_v9 = vpack.c.bf16 %v9894_v63, %v9900_v29  ;;  %7133 = vmatprep.subr.bf16.mxu0 %v7981_v28 }
 0x864   :  { %v9917_v15 = vrot.slane %v411_v30, %v12353_v57 }
 0x865   :  { %2392 = vmatmul.mubr.bf16.gmra.mxu1 %v2224_v19  ;;  %v12352_v19 = vsub.s32 1, %v9908_v10 }
 0x866   :  { %2401 = vmatprep.mubr.bf16.mxu1 %v12354_v0  ;;  %7200 = vmatpush3.bf16.xpose.msra.mxu1 %v8472_v31 }
 0x867   :  { %7201 = vmatprep.subr.bf16.mxu1 %v8473_v34  ;;  %7134 = vmatpush3.bf16.msra.mxu0 %v7982_v60  ;;  %v9921_v1 = vrot.slane %v411_v30, %v12352_v19 }
 0x868   :  { %7135 = vmatprep.subr.bf16.mxu0 %v7983_v51 }
 0x86b   :  { %7136 = vmatpush3.bf16.msra.mxu0 %v7984_v61 }
 0x86c   :  { %7137 = vmatprep.subr.bf16.mxu0 %v7985_v58 }
 0x86d   :  { %2402 = vmatmul.mubr.bf16.gmra.mxu1 %v2225_v37 }
 0x86e   :  { %2411 = vmatprep.mubr.bf16.mxu1 %v12354_v0  ;;  %7202 = vmatpush3.bf16.xpose.msra.mxu1 %v8474_v54 }
 0x86f   :  { %7203 = vmatprep.subr.bf16.mxu1 %v8475_v2  ;;  %7138 = vmatpush3.bf16.msra.mxu0 %v7986_v32 }
 0x870   :  { %7139 = vmatprep.subr.bf16.mxu0 %v7987_v17 }
 0x873   :  { %7140 = vmatpush3.bf16.msra.mxu0 %v7988_v23 }
 0x874   :  { %7141 = vmatprep.subr.bf16.mxu0 %v7989_v52 }
 0x875   :  { %2412 = vmatmul.mubr.bf16.gmra.mxu1 %v2226_v42 }
 0x876   :  { %2421 = vmatprep.mubr.bf16.mxu1 %v12354_v0  ;;  %7204 = vmatpush3.bf16.xpose.msra.mxu1 %v8476_v5 }
 0x877   :  { %7205 = vmatprep.subr.bf16.mxu1 %v8477_v56  ;;  %7142 = vmatpush3.bf16.msra.mxu0 %v7990_v43 }
 0x87d   :  { %2422 = vmatmul.mubr.bf16.gmra.mxu1 %v2227_v9 }
 0x87e   :  { %7206 = vmatpush3.bf16.xpose.msra.mxu1 %v8478_v55 }
 0x905   :  { %v2353_v3 = vpop.f32.mrf.mxu1 }
 0x906   :  { %v9924_v6 = vadd.f32 %v2353_v3, %v9917_v15 }
 0x907   :  { %v2355_v31 = vpop.f32.mrf.mxu1 }
 0x908   :  { %v2432_v12 = vmul.f32 %v9924_v6, %v9924_v6  ;;  %v9929_v34 = vadd.f32 %v2355_v31, %v9921_v1 }
 0x909   :  { %v2357_v22 = vpop.f32.mrf.mxu1 }
 0x90a   :  { %v2464_v37 = vmul.f32 %v2432_v12, %v9924_v6  ;;  %v2433_v40 = vmul.f32 %v9929_v34, %v9929_v34  ;;  %v9935_v25 = vadd.f32 %v2357_v22, %v9917_v15 }
 0x90b   :  { %v2359_v53 = vpop.f32.mrf.mxu1 }
 0x90c   :  { %v2496_v7 = vmul.f32 0.044715, %v2464_v37  ;;  %v2465_v54 = vmul.f32 %v2433_v40, %v9929_v34  ;;  %v2434_v45 = vmul.f32 %v9935_v25, %v9935_v25  ;;  %v9941_v2 = vadd.f32 %v2359_v53, %v9921_v1 }
 0x90d   :  { %v2363_v26 = vpop.f32.mrf.mxu1 }
 0x90e   :  { %v2528_v42 = vadd.f32 %v2496_v7, %v9924_v6  ;;  %v2497_v41 = vmul.f32 0.044715, %v2465_v54  ;;  %v2466_v8 = vmul.f32 %v2434_v45, %v9935_v25  ;;  %v2435_v5 = vmul.f32 %v9941_v2, %v9941_v2 }
 0x90f   :  { %v9948_v56 = vadd.f32 %v2363_v26, %v9917_v15  ;;  %v2365_v9 = vpop.f32.mrf.mxu1 }
 0x910   :  { %v2560_v55 = vmul.f32 0.7978846, %v2528_v42  ;;  %v2498_v35 = vmul.f32 0.044715, %v2466_v8  ;;  %v2467_v20 = vmul.f32 %v2435_v5, %v9941_v2  ;;  %v2529_v44 = vadd.f32 %v2497_v41, %v9929_v34 }
 0x911   :  { %v2436_v33 = vmul.f32 %v9948_v56, %v9948_v56  ;;  %v9955_v16 = vadd.f32 %v2365_v9, %v9921_v1  ;;  %v2367_v49 = vpop.f32.mrf.mxu1 }
 0x912   :  { %8175 = vtanh.f32 %v2560_v55  ;;  %v2530_v28 = vadd.f32 %v2498_v35, %v9935_v25  ;;  %v2499_v60 = vmul.f32 0.044715, %v2467_v20  ;;  %v9962_v58 = vadd.f32 %v2367_v49, %v9917_v15 }
 0x913   :  { %v2468_v51 = vmul.f32 %v2436_v33, %v9948_v56  ;;  %v2437_v61 = vmul.f32 %v9955_v16, %v9955_v16  ;;  %v2369_v32 = vpop.f32.mrf.mxu1  ;;  %v2561_v43 = vmul.f32 0.7978846, %v2529_v44 }
 0x914   :  { %v2562_v17 = vmul.f32 0.7978846, %v2530_v28  ;;  %v2531_v23 = vadd.f32 %v2499_v60, %v9941_v2  ;;  %v9966_v52 = vadd.f32 %v2369_v32, %v9921_v1  ;;  %v2438_v3 = vmul.f32 %v9962_v58, %v9962_v58 }
 0x915   :  { %v2500_v46 = vmul.f32 0.044715, %v2468_v51  ;;  %v2469_v30 = vmul.f32 %v2437_v61, %v9955_v16  ;;  %v2373_v31 = vpop.f32.mrf.mxu1 }
 0x916   :  { %8177 = vtanh.f32 %v2562_v17  ;;  %v2439_v12 = vmul.f32 %v9966_v52, %v9966_v52  ;;  %v9974_v22 = vadd.f32 %v2373_v31, %v9917_v15  ;;  %v2563_v37 = vmul.f32 0.7978846, %v2531_v23 }
 0x917   :  { %v2532_v40 = vadd.f32 %v2500_v46, %v9948_v56  ;;  %v2501_v53 = vmul.f32 0.044715, %v2469_v30  ;;  %v2470_v7 = vmul.f32 %v2438_v3, %v9962_v58  ;;  %v2375_v54 = vpop.f32.mrf.mxu1  ;;  %8179 = vtanh.f32 %v2561_v43 }
 0x918   :  { %v2471_v45 = vmul.f32 %v2439_v12, %v9966_v52  ;;  %v2440_v26 = vmul.f32 %v9974_v22, %v9974_v22  ;;  %v9982_v42 = vadd.f32 %v2375_v54, %v9921_v1  ;;  %8181 = vtanh.f32 %v2563_v37 }
 0x919   :  { %v2564_v41 = vmul.f32 0.7978846, %v2532_v40  ;;  %v2533_v8 = vadd.f32 %v2501_v53, %v9955_v16  ;;  %v2502_v5 = vmul.f32 0.044715, %v2470_v7  ;;  %v2377_v9 = vpop.f32.mrf.mxu1 }
 0x91a   :  { %v2503_v55 = vmul.f32 0.044715, %v2471_v45  ;;  %v2472_v35 = vmul.f32 %v2440_v26, %v9974_v22  ;;  %v2441_v20 = vmul.f32 %v9982_v42, %v9982_v42  ;;  %v9989_v44 = vadd.f32 %v2377_v9, %v9917_v15 }
 0x91b   :  { %v2565_v33 = vmul.f32 0.7978846, %v2533_v8  ;;  %v2534_v49 = vadd.f32 %v2502_v5, %v9962_v58  ;;  %v2379_v28 = vpop.f32.mrf.mxu1  ;;  %8183 = vtanh.f32 %v2564_v41 }
 0x91c   :  { %v2535_v60 = vadd.f32 %v2503_v55, %v9966_v52  ;;  %v2504_v51 = vmul.f32 0.044715, %v2472_v35  ;;  %v2473_v61 = vmul.f32 %v2441_v20, %v9982_v42  ;;  %v2442_v32 = vmul.f32 %v9989_v44, %v9989_v44 }
 0x91d   :  { %v2566_v17 = vmul.f32 0.7978846, %v2534_v49  ;;  %v9997_v23 = vadd.f32 %v2379_v28, %v9921_v1  ;;  %v2383_v43 = vpop.f32.mrf.mxu1  ;;  %8185 = vtanh.f32 %v2565_v33 }
 0x91e   :  { %v2567_v46 = vmul.f32 0.7978846, %v2535_v60  ;;  %v2536_v30 = vadd.f32 %v2504_v51, %v9974_v22  ;;  %v2505_v3 = vmul.f32 0.044715, %v2473_v61  ;;  %v2474_v31 = vmul.f32 %v2442_v32, %v9989_v44 }
 0x91f   :  { %v8176_v12 = vpop.eup %8175  ;;  %v2443_v37 = vmul.f32 %v9997_v23, %v9997_v23  ;;  %v10004_v40 = vadd.f32 %v2383_v43, %v9917_v15  ;;  %v2385_v53 = vpop.f32.mrf.mxu1  ;;  %8187 = vtanh.f32 %v2566_v17 }
 0x920   :  { %v2624_v7 = vadd.f32 1.0, %v8176_v12  ;;  %v2568_v54 = vmul.f32 0.7978846, %v2536_v30  ;;  %v2537_v45 = vadd.f32 %v2505_v3, %v9982_v42  ;;  %v2506_v26 = vmul.f32 0.044715, %v2474_v31 }
 0x921   :  { %v2475_v41 = vmul.f32 %v2443_v37, %v9997_v23  ;;  %v2444_v8 = vmul.f32 %v10004_v40, %v10004_v40  ;;  %v10011_v5 = vadd.f32 %v2385_v53, %v9921_v1  ;;  %v2387_v9 = vpop.f32.mrf.mxu1  ;;  %8189 = vtanh.f32 %v2567_v46 }
 0x922   :  { %v2656_v55 = vmul.f32 0.5, %v2624_v7  ;;  %v2569_v35 = vmul.f32 0.7978846, %v2537_v45  ;;  %v10014_v20 = vadd.f32 %v2387_v9, %v9917_v15  ;;  %v2538_v49 = vadd.f32 %v2506_v26, %v9989_v44 }
 0x923   :  { %v8178_v33 = vpop.eup %8177  ;;  %v2507_v28 = vmul.f32 0.044715, %v2475_v41  ;;  %v2476_v60 = vmul.f32 %v2444_v8, %v10004_v40  ;;  %v2445_v51 = vmul.f32 %v10011_v5, %v10011_v5  ;;  %v2389_v61 = vpop.f32.mrf.mxu1  ;;  %8191 = vtanh.f32 %v2568_v54 }
 0x924   :  { %v10021_v32 = vmul.f32 %v2656_v55, %v9924_v6  ;;  %v2626_v17 = vadd.f32 1.0, %v8178_v33  ;;  %v2446_v43 = vmul.f32 %v10014_v20, %v10014_v20  ;;  %v2570_v46 = vmul.f32 0.7978846, %v2538_v49  ;;  %v8180_v37 = vpop.eup %8179 }
 0x925   :  { %v2539_v30 = vadd.f32 %v2507_v28, %v9997_v23  ;;  %v2508_v3 = vmul.f32 0.044715, %v2476_v60  ;;  %v2477_v31 = vmul.f32 %v2445_v51, %v10011_v5  ;;  %v2393_v12 = vpop.f32.mrf.mxu1  ;;  %v10029_v45 = vadd.f32 %v2389_v61, %v9921_v1  ;;  %v8182_v9 = vpop.eup %8181 }
 0x926   :  { %v2658_v53 = vmul.f32 0.5, %v2626_v17  ;;  %v2478_v7 = vmul.f32 %v2446_v43, %v10014_v20  ;;  %v10032_v6 = vadd.f32 %v2393_v12, %v9917_v15  ;;  %8193 = vtanh.f32 %v2569_v35 }
 0x927   :  { %v2571_v54 = vmul.f32 0.7978846, %v2539_v30  ;;  %v2540_v26 = vadd.f32 %v2508_v3, %v10004_v40  ;;  %v2509_v41 = vmul.f32 0.044715, %v2477_v31  ;;  %v2395_v8 = vpop.f32.mrf.mxu1  ;;  %8195 = vtanh.f32 %v2570_v46 }
 0x928   :  { %v2510_v55 = vmul.f32 0.044715, %v2478_v7  ;;  %v2447_v33 = vmul.f32 %v10029_v45, %v10029_v45  ;;  %v2448_v49 = vmul.f32 %v10032_v6, %v10032_v6  ;;  %v10040_v28 = vmul.f32 %v2658_v53, %v9935_v25  ;;  %v10046_v17 = vpop.eup %8183 }
 0x929   :  { %v2572_v60 = vmul.f32 0.7978846, %v2540_v26  ;;  %v2541_v35 = vadd.f32 %v2509_v41, %v10011_v5  ;;  %v10044_v51 = vadd.f32 %v2395_v8, %v9921_v1  ;;  %v2397_v61 = vpop.f32.mrf.mxu1  ;;  %8197 = vtanh.f32 %v2571_v54 }
 0x92a   :  { %v2542_v43 = vadd.f32 %v2510_v55, %v10014_v20  ;;  %v2479_v46 = vmul.f32 %v2447_v33, %v10029_v45  ;;  %v2480_v30 = vmul.f32 %v2448_v49, %v10032_v6  ;;  %v10054_v31 = vadd.f32 %v2397_v61, %v9917_v15  ;;  %v10056_v53 = vpop.eup %8185 }
 0x92b   :  { %8199 = vtanh.f32 %v2572_v60  ;;  %v2573_v3 = vmul.f32 0.7978846, %v2541_v35  ;;  %v2449_v25 = vmul.f32 %v10044_v51, %v10044_v51  ;;  %v2399_v12 = vpop.f32.mrf.mxu1  ;;  %v2625_v60 = vadd.f32 1.0, %v8180_v37 }
 0x92c   :  { %v2574_v7 = vmul.f32 0.7978846, %v2542_v43  ;;  %v2511_v26 = vmul.f32 0.044715, %v2479_v46  ;;  %v2512_v54 = vmul.f32 0.044715, %v2480_v30  ;;  %v10059_v41 = vadd.f32 %v2399_v12, %v9921_v1  ;;  %v10061_v8 = vpop.eup %8187 }
 0x92d   :  { %8201 = vtanh.f32 %v2573_v3  ;;  %v2481_v55 = vmul.f32 %v2449_v25, %v10044_v51  ;;  %v2450_v33 = vmul.f32 %v10054_v31, %v10054_v31  ;;  %v2403_v49 = vpop.f32.mrf.mxu1  ;;  %v2627_v25 = vadd.f32 1.0, %v8182_v9 }
 0x92e   :  { %8203 = vtanh.f32 %v2574_v7  ;;  %v2543_v35 = vadd.f32 %v2511_v26, %v10029_v45  ;;  %v2544_v61 = vadd.f32 %v2512_v54, %v10032_v6  ;;  %v2451_v43 = vmul.f32 %v10059_v41, %v10059_v41  ;;  %v8190_v46 = vpop.eup %8189 }
 0x92f   :  { %v2513_v30 = vmul.f32 0.044715, %v2481_v55  ;;  %v2482_v12 = vmul.f32 %v2450_v33, %v10054_v31  ;;  %v10072_v3 = vadd.f32 %v2403_v49, %v9917_v15  ;;  %v2405_v19 = vpop.f32.mrf.mxu1  ;;  %v2657_v7 = vmul.f32 0.5, %v2625_v60 }
 0x930   :  { %v2575_v57 = vmul.f32 0.7978846, %v2543_v35  ;;  %v2576_v0 = vmul.f32 0.7978846, %v2544_v61  ;;  %v2483_v37 = vmul.f32 %v2451_v43, %v10059_v41  ;;  %v10075_v26 = vpop.eup %8191  ;;  %v2659_v39 = vmul.f32 0.5, %v2627_v25 }
 0x931   :  { %v2545_v54 = vadd.f32 %v2513_v30, %v10044_v51  ;;  %v2514_v10 = vmul.f32 0.044715, %v2482_v12  ;;  %v2452_v55 = vmul.f32 %v10072_v3, %v10072_v3  ;;  %v2407_v33 = vpop.f32.mrf.mxu1  ;;  %v2720_v49 = vpack.c.bf16 %v10040_v28, %v10021_v32 }
 0x932   :  { %8205 = vtanh.f32 %v2575_v57  ;;  %v2515_v9 = vmul.f32 0.044715, %v2483_v37  ;;  %v10083_v35 = vadd.f32 %v2405_v19, %v9921_v1  ;;  %v2689_v30 = vmul.f32 %v2657_v7, %v9929_v34 }
 0x933   :  { %v2577_v61 = vmul.f32 0.7978846, %v2545_v54  ;;  %v2546_v60 = vadd.f32 %v2514_v10, %v10054_v31  ;;  %v2484_v43 = vmul.f32 %v2452_v55, %v10072_v3  ;;  %v2409_v12 = vpop.f32.mrf.mxu1  ;;  %v10088_v36 = vpop.eup %8193  ;;  %v2691_v63 = vmul.f32 %v2659_v39, %v9941_v2 }
 0x934   :  { %v2547_v25 = vadd.f32 %v2515_v9, %v10059_v41  ;;  %v2453_v57 = vmul.f32 %v10083_v35, %v10083_v35  ;;  %v10095_v19 = vadd.f32 %v2407_v33, %v9917_v15  ;;  %v10097_v32 = vpop.eup %8195  ;;  %8207 = vtanh.f32 %v2576_v0 }
 0x935   :  { %v2578_v10 = vmul.f32 0.7978846, %v2546_v60  ;;  %v2516_v28 = vmul.f32 0.044715, %v2484_v43  ;;  %v10100_v34 = vadd.f32 %v2409_v12, %v9921_v1  ;;  %v2413_v37 = vpop.f32.mrf.mxu1  ;;  %8209 = vtanh.f32 %v2577_v61 }
 0x936   :  { %v2721_v7 = vpack.c.bf16 %v2691_v63, %v2689_v30  ;;  %v2485_v54 = vmul.f32 %v2453_v57, %v10083_v35  ;;  %v2454_v39 = vmul.f32 %v10095_v19, %v10095_v19  ;;  %v10105_v2 = vpop.eup %8197  ;;  %v2579_v55 = vmul.f32 0.7978846, %v2547_v25 }
 0x937   :  { %v2548_v33 = vadd.f32 %v2516_v28, %v10072_v3  ;;  %v2455_v0 = vmul.f32 %v10100_v34, %v10100_v34  ;;  %v10111_v9 = vadd.f32 %v2413_v37, %v9917_v15  ;;  %v2415_v60 = vpop.f32.mrf.mxu1  ;;  %8211 = vtanh.f32 %v2578_v10 }
 0x938   :  { %v10113_v43 = vpop.eup %8199  ;;  %2870 = vmatprep.mubr.bf16.mxu0 %v2721_v7  ;;  %v2517_v63 = vmul.f32 0.044715, %v2485_v54  ;;  %v2486_v61 = vmul.f32 %v2454_v39, %v10095_v19  ;;  %v2629_v30 = vadd.f32 1.0, %v10056_v53  ;;  %v2631_v28 = vadd.f32 1.0, %v8190_v46 }
 0x939   :  { %v2580_v12 = vmul.f32 0.7978846, %v2548_v33  ;;  %2871 = vmatmul.mubr.bf16.vlgmr.msra.gmra.mxu0 %v2720_v49  ;;  %v2487_v25 = vmul.f32 %v2455_v0, %v10100_v34  ;;  %v2456_v57 = vmul.f32 %v10111_v9, %v10111_v9  ;;  %v2417_v37 = vpop.f32.mrf.mxu1  ;;  %v10124_v54 = vadd.f32 %v2415_v60, %v9921_v1 }
 0x93a   :  { %v10120_v29 = vpop.eup %8201  ;;  %v2549_v4 = vadd.f32 %v2517_v63, %v10083_v35  ;;  %v2518_v10 = vmul.f32 0.044715, %v2486_v61  ;;  %v2661_v7 = vmul.f32 0.5, %v2629_v30  ;;  %8213 = vtanh.f32 %v2579_v55 }
 0x93b   :  { %v10126_v39 = vpop.eup %8203  ;;  %v2519_v53 = vmul.f32 0.044715, %v2487_v25  ;;  %v2488_v49 = vmul.f32 %v2456_v57, %v10111_v9  ;;  %v2663_v33 = vmul.f32 0.5, %v2631_v28  ;;  %v2419_v0 = vpop.f32.mrf.mxu1  ;;  %v2457_v63 = vmul.f32 %v10124_v54, %v10124_v54 }
 0x93c   :  { %v2581_v62 = vmul.f32 0.7978846, %v2549_v4  ;;  %v2550_v46 = vadd.f32 %v2518_v10, %v10095_v19  ;;  %v2693_v11 = vmul.f32 %v2661_v7, %v9955_v16  ;;  %v2628_v55 = vadd.f32 1.0, %v10046_v17 }
 0x93d   :  { %v2551_v61 = vadd.f32 %v2519_v53, %v10100_v34  ;;  %v2520_v60 = vmul.f32 0.044715, %v2488_v49  ;;  %v2695_v30 = vmul.f32 %v2663_v33, %v9966_v52  ;;  %v2423_v25 = vpop.f32.mrf.mxu1  ;;  %8215 = vtanh.f32 %v2580_v12 }
 0x93e   :  { %v2489_v57 = vmul.f32 %v2457_v63, %v10124_v54  ;;  %v2630_v4 = vadd.f32 1.0, %v10061_v8  ;;  %v2582_v10 = vmul.f32 0.7978846, %v2550_v46  ;;  %v2660_v13 = vmul.f32 0.5, %v2628_v55 }
 0x93f   :  { %v10138_v28 = vpop.eup %8205  ;;  %v2583_v16 = vmul.f32 0.7978846, %v2551_v61  ;;  %v2723_v7 = vpack.c.bf16 %v2695_v30, %v2693_v11  ;;  %v2552_v59 = vadd.f32 %v2520_v60, %v10111_v9  ;;  %v10142_v52 = vadd.f32 %v2417_v37, %v9917_v15  ;;  %v2425_v17 = vpop.f32.mrf.mxu1 }
 0x940   :  { %v2521_v53 = vmul.f32 0.044715, %v2489_v57  ;;  %v2662_v49 = vmul.f32 0.5, %v2630_v4  ;;  %8217 = vtanh.f32 %v2581_v62  ;;  %v2692_v12 = vmul.f32 %v2660_v13, %v9948_v56 }
 0x941   :  { %2878 = vmatprep.mubr.bf16.mxu0 %v2723_v7  ;;  %v10146_v8 = vadd.f32 %v2419_v0, %v9921_v1  ;;  %v10148_v33 = vpop.eup %8207  ;;  %v2458_v63 = vmul.f32 %v10142_v52, %v10142_v52  ;;  %v10155_v37 = vadd.f32 %v2423_v25, %v9917_v15  ;;  %8219 = vtanh.f32 %v2582_v10  ;;  %v2427_v30 = vpop.f32.mrf.mxu1 }
 0x942   :  { %v2553_v11 = vadd.f32 %v2521_v53, %v10124_v54  ;;  %v2694_v46 = vmul.f32 %v2662_v49, %v9962_v58  ;;  %v10157_v61 = vpop.eup %8209  ;;  %v2633_v62 = vadd.f32 1.0, %v10088_v36  ;;  %v2635_v56 = vadd.f32 1.0, %v10105_v2 }
 0x943   :  { %v2459_v13 = vmul.f32 %v10146_v8, %v10146_v8  ;;  %8221 = vtanh.f32 %v2583_v16  ;;  %v2584_v0 = vmul.f32 0.7978846, %v2552_v59  ;;  %v2490_v58 = vmul.f32 %v2458_v63, %v10142_v52 }
 0x944   :  { %v2722_v60 = vpack.c.bf16 %v2694_v46, %v2692_v12  ;;  %v10164_v55 = vpop.eup %8211  ;;  %v2665_v57 = vmul.f32 0.5, %v2633_v62  ;;  %v2667_v4 = vmul.f32 0.5, %v2635_v56  ;;  %v10168_v10 = vadd.f32 %v2425_v17, %v9921_v1 }
 0x945   :  { %v2491_v25 = vmul.f32 %v2459_v13, %v10146_v8  ;;  %v2585_v7 = vmul.f32 0.7978846, %v2553_v11  ;;  %v2522_v36 = vmul.f32 0.044715, %v2490_v58  ;;  %v2460_v2 = vmul.f32 %v10155_v37, %v10155_v37  ;;  %v2429_v13 = vpop.f32.mrf.mxu1 }
 0x946   :  { %2879 = vmatmul.mubr.bf16.gmra.mxu0 %v2722_v60  ;;  %v2632_v59 = vadd.f32 1.0, %v10075_v26  ;;  %v2697_v53 = vmul.f32 %v2665_v57, %v9982_v42  ;;  %v2699_v49 = vmul.f32 %v2667_v4, %v9997_v23  ;;  %v2461_v12 = vmul.f32 %v10168_v10, %v10168_v10 }
 0x947   :  { %v2523_v16 = vmul.f32 0.044715, %v2491_v25  ;;  %v8214_v46 = vpop.eup %8213  ;;  %8223 = vtanh.f32 %v2584_v0  ;;  %v2554_v17 = vadd.f32 %v2522_v36, %v10142_v52  ;;  %v2634_v11 = vadd.f32 1.0, %v10097_v32 }
 0x948   :  { %v2664_v63 = vmul.f32 0.5, %v2632_v59  ;;  %v2725_v56 = vpack.c.bf16 %v2699_v49, %v2697_v53  ;;  %v2493_v26 = vmul.f32 %v2461_v12, %v10168_v10  ;;  %v10182_v42 = vadd.f32 %v2427_v30, %v9917_v15 }
 0x949   :  { %v2555_v62 = vadd.f32 %v2523_v16, %v10146_v8  ;;  %8225 = vtanh.f32 %v2585_v7  ;;  %v2492_v23 = vmul.f32 %v2460_v2, %v10155_v37  ;;  %v2666_v60 = vmul.f32 0.5, %v2634_v11 }
 0x94a   :  { %v10185_v58 = vpop.eup %8215  ;;  %2886 = vmatprep.mubr.bf16.mxu0 %v2725_v56  ;;  %v2525_v25 = vmul.f32 0.044715, %v2493_v26  ;;  %v2462_v32 = vmul.f32 %v10182_v42, %v10182_v42  ;;  %v10190_v57 = vadd.f32 %v2429_v13, %v9921_v1  ;;  %v2586_v4 = vmul.f32 0.7978846, %v2554_v17 }
 0x94b   :  { %v2587_v0 = vmul.f32 0.7978846, %v2555_v62  ;;  %v2696_v36 = vmul.f32 %v2664_v63, %v9974_v22  ;;  %v2698_v15 = vmul.f32 %v2666_v60, %v9989_v44  ;;  %v2637_v30 = vadd.f32 1.0, %v10120_v29 }
 0x94c   :  { %v2557_v7 = vadd.f32 %v2525_v25, %v10168_v10  ;;  %v2494_v2 = vmul.f32 %v2462_v32, %v10182_v42  ;;  %v2463_v59 = vmul.f32 %v10190_v57, %v10190_v57  ;;  %v2524_v53 = vmul.f32 0.044715, %v2492_v23 }
 0x94d   :  { %8227 = vtanh.f32 %v2587_v0  ;;  %v8218_v16 = vpop.eup %8217  ;;  %v2724_v49 = vpack.c.bf16 %v2698_v15, %v2696_v36  ;;  %v2639_v1 = vadd.f32 1.0, %v10138_v28  ;;  %v2669_v12 = vmul.f32 0.5, %v2637_v30 }
 0x94e   :  { %v2589_v17 = vmul.f32 0.7978846, %v2557_v7  ;;  %v2526_v22 = vmul.f32 0.044715, %v2494_v2  ;;  %v2495_v44 = vmul.f32 %v2463_v59, %v10190_v57  ;;  %v2636_v29 = vadd.f32 1.0, %v10113_v43  ;;  %v8220_v11 = vpop.eup %8219 }
 0x94f   :  { %8229 = vtanh.f32 %v2586_v4  ;;  %2887 = vmatmul.mubr.bf16.gmra.mxu0 %v2724_v49  ;;  %v2671_v63 = vmul.f32 0.5, %v2639_v1  ;;  %v2638_v13 = vadd.f32 1.0, %v10126_v39  ;;  %v2641_v62 = vadd.f32 1.0, %v10157_v61 }
 0x950   :  { %v8222_v56 = vpop.eup %8221  ;;  %v2558_v26 = vadd.f32 %v2526_v22, %v10182_v42  ;;  %v2527_v23 = vmul.f32 0.044715, %v2495_v44  ;;  %v2701_v28 = vmul.f32 %v2669_v12, %v10011_v5  ;;  %v2668_v60 = vmul.f32 0.5, %v2636_v29 }
 0x951   :  { %v2703_v0 = vmul.f32 %v2671_v63, %v10029_v45  ;;  %v2670_v25 = vmul.f32 0.5, %v2638_v13  ;;  %v2643_v32 = vadd.f32 1.0, %v8214_v46  ;;  %v2673_v43 = vmul.f32 0.5, %v2641_v62 }
 0x952   :  { %v2556_v4 = vadd.f32 %v2524_v53, %v10155_v37  ;;  %8231 = vtanh.f32 %v2589_v17  ;;  %v2559_v36 = vadd.f32 %v2527_v23, %v10190_v57  ;;  %v2700_v39 = vmul.f32 %v2668_v60, %v10004_v40 }
 0x953   :  { %v2727_v61 = vpack.c.bf16 %v2703_v0, %v2701_v28  ;;  %v2702_v15 = vmul.f32 %v2670_v25, %v10014_v20  ;;  %v2675_v30 = vmul.f32 0.5, %v2643_v32  ;;  %v2640_v7 = vadd.f32 1.0, %v10148_v33 }
 0x954   :  { %v8224_v5 = vpop.eup %8223  ;;  %v2590_v2 = vmul.f32 0.7978846, %v2558_v26  ;;  %v2591_v59 = vmul.f32 0.7978846, %v2559_v36  ;;  %v2705_v45 = vmul.f32 %v2673_v43, %v10044_v51  ;;  %v2642_v46 = vadd.f32 1.0, %v10164_v55 }
 0x955   :  { %2894 = vmatprep.mubr.bf16.mxu0 %v2727_v61  ;;  %v2726_v53 = vpack.c.bf16 %v2702_v15, %v2700_v39  ;;  %v2707_v49 = vmul.f32 %v2675_v30, %v10059_v41  ;;  %v2645_v1 = vadd.f32 1.0, %v8218_v16  ;;  %v2647_v12 = vadd.f32 1.0, %v8222_v56 }
 0x956   :  { %v8226_v40 = vpop.eup %8225  ;;  %v2588_v17 = vmul.f32 0.7978846, %v2556_v4  ;;  %8233 = vtanh.f32 %v2591_v59  ;;  %v2674_v20 = vmul.f32 0.5, %v2642_v46  ;;  %v2672_v33 = vmul.f32 0.5, %v2640_v7 }
 0x957   :  { %2895 = vmatmul.mubr.bf16.gmra.mxu0 %v2726_v53  ;;  %v2729_v22 = vpack.c.bf16 %v2707_v49, %v2705_v45  ;;  %v2677_v44 = vmul.f32 0.5, %v2645_v1  ;;  %v2679_v29 = vmul.f32 0.5, %v2647_v12  ;;  %8235 = vtanh.f32 %v2590_v2 }
 0x958   :  { %v2706_v51 = vmul.f32 %v2674_v20, %v10054_v31  ;;  %v2646_v13 = vadd.f32 1.0, %v8220_v11  ;;  %v2649_v16 = vadd.f32 1.0, %v8226_v40  ;;  %8237 = vtanh.f32 %v2588_v17 }
 0x959   :  { %2902 = vmatprep.mubr.bf16.mxu0 %v2729_v22  ;;  %v2711_v55 = vmul.f32 %v2679_v29, %v10100_v34  ;;  %v2709_v41 = vmul.f32 %v2677_v44, %v10083_v35  ;;  %v2704_v56 = vmul.f32 %v2672_v33, %v10032_v6  ;;  %v2644_v26 = vadd.f32 1.0, %v10185_v58 }
 0x95a   :  { %v8228_v63 = vpop.eup %8227  ;;  %v2678_v25 = vmul.f32 0.5, %v2646_v13  ;;  %v2681_v32 = vmul.f32 0.5, %v2649_v16  ;;  %v2648_v39 = vadd.f32 1.0, %v8224_v5 }
 0x95b   :  { %v2651_v62 = vadd.f32 1.0, %v8228_v63  ;;  %v2731_v28 = vpack.c.bf16 %v2711_v55, %v2709_v41  ;;  %v2728_v0 = vpack.c.bf16 %v2706_v51, %v2704_v56  ;;  %v2676_v31 = vmul.f32 0.5, %v2644_v26 }
 0x95c   :  { %v8230_v23 = vpop.eup %8229  ;;  %v2710_v35 = vmul.f32 %v2678_v25, %v10095_v19  ;;  %v2713_v4 = vmul.f32 %v2681_v32, %v10124_v54  ;;  %v2680_v46 = vmul.f32 0.5, %v2648_v39 }
 0x95d   :  { %v2683_v60 = vmul.f32 0.5, %v2651_v62  ;;  %v2650_v11 = vadd.f32 1.0, %v8230_v23  ;;  %v2708_v58 = vmul.f32 %v2676_v31, %v10072_v3 }
 0x95e   :  { %v2712_v3 = vmul.f32 %v2680_v46, %v10111_v9 }
 0x95f   :  { %v8232_v43 = vpop.eup %8231  ;;  %2903 = vmatmul.mubr.bf16.gmra.mxu0 %v2728_v0  ;;  %v2715_v34 = vmul.f32 %v2683_v60, %v10146_v8  ;;  %v2730_v30 = vpack.c.bf16 %v2710_v35, %v2708_v58  ;;  %v2682_v7 = vmul.f32 0.5, %v2650_v11 }
 0x960   :  { %2910 = vmatprep.mubr.bf16.mxu0 %v2731_v28  ;;  %v2653_v6 = vadd.f32 1.0, %v8232_v43 }
 0x961   :  { %v2733_v61 = vpack.c.bf16 %v2715_v34, %v2713_v4  ;;  %v2714_v54 = vmul.f32 %v2682_v7, %v10142_v52  ;;  %v10230_v52 = vld [vmem:[#allocation10] ss:$0 sm:$0xff] }
 0x962   :  { %v2685_v59 = vmul.f32 0.5, %v2653_v6 }
 0x963   :  { %v8234_v36 = vpop.eup %8233  ;;  %v2732_v12 = vpack.c.bf16 %v2714_v54, %v2712_v3  ;;  %v12414_v3 = vld [vmem:[#allocation38_spill] sm:$0xff] }
 0x964   :  { %v2655_v15 = vadd.f32 1.0, %v8234_v36  ;;  %v8236_v2 = vpop.eup %8235  ;;  %v2717_v49 = vmul.f32 %v2685_v59, %v10168_v10 }
 0x965   :  { %v8238_v8 = vpop.eup %8237  ;;  %v2654_v53 = vadd.f32 1.0, %v8236_v2 }
 0x966   :  { %v2687_v45 = vmul.f32 0.5, %v2655_v15  ;;  %v2652_v5 = vadd.f32 1.0, %v8238_v8 }
 0x967   :  { %2911 = vmatmul.mubr.bf16.gmra.mxu0 %v2730_v30  ;;  %v2686_v40 = vmul.f32 0.5, %v2654_v53 }
 0x968   :  { %2918 = vmatprep.mubr.bf16.mxu0 %v2733_v61  ;;  %v2719_v19 = vmul.f32 %v2687_v45, %v10190_v57  ;;  %v2684_v17 = vmul.f32 0.5, %v2652_v5 }
 0x969   :  { %v2718_v20 = vmul.f32 %v2686_v40, %v10182_v42 }
 0x96a   :  { %v2735_v1 = vpack.c.bf16 %v2719_v19, %v2717_v49  ;;  %v2716_v22 = vmul.f32 %v2684_v17, %v10155_v37  ;;  %v12415_v17 = vld [vmem:[#allocation40_spill] sm:$0xff] }
 0x96c   :  { %v2734_v33 = vpack.c.bf16 %v2718_v20, %v2716_v22 }
 0x96f   :  { %2919 = vmatmul.mubr.bf16.gmra.mxu0 %v2732_v12 }
 0x970   :  { %2926 = vmatprep.mubr.bf16.mxu0 %v2735_v1 }
 0x977   :  { %2927 = vmatmul.mubr.bf16.gmra.mxu0 %v2734_v33 }
 0x9f9   :  { %v7143_v57 = vpop.f32.mrf.mxu0 }
 0x9fb   :  { %v7144_v44 = vpop.f32.mrf.mxu0 }
 0x9fc   :  { %v7145_v10 = vadd.f32 %v7144_v44, %v7143_v57  ;;  %v12416_v44 = vld [vmem:[#allocation39_spill] sm:$0xff] }
 0x9fd   :  { %v7146_v29 = vpop.f32.mrf.mxu0 }
 0x9fe   :  { %v2873_v9 = vadd.f32 %v7145_v10, %v10230_v52 }
 0x9ff   :  { %v7147_v63 = vpop.f32.mrf.mxu0 }
 0xa00   :  { %v7148_v51 = vadd.f32 %v7147_v63, %v7146_v29  ;;  %v10234_v55 = vadd.f32 %v2873_v9, %v9764_v50 }
 0xa02   :  { %2951 = vadd.xlane.f32.xlu1 %v10234_v55  ;;  %v2876_v42 = vadd.f32 %v7148_v51, %v10230_v52 }
 0xa04   :  { %v10239_v37 = vadd.f32 %v2876_v42, %v9767_v18  ;;  %v12417_v42 = vld [vmem:[#allocation42_spill] sm:$0xff] }
 0xa06   :  { %v7149_v13 = vpop.f32.mrf.mxu0  ;;  %2953 = vadd.xlane.f32.xlu0 %v10239_v37 }
 0xa08   :  { %v7150_v41 = vpop.f32.mrf.mxu0 }
 0xa09   :  { %v7151_v16 = vadd.f32 %v7150_v41, %v7149_v13 }
 0xa0a   :  { %v7152_v62 = vpop.f32.mrf.mxu0 }
 0xa0b   :  { %v2881_v56 = vadd.f32 %v7151_v16, %v10230_v52 }
 0xa0c   :  { %v7153_v26 = vpop.f32.mrf.mxu0 }
 0xa0d   :  { %v7154_v23 = vadd.f32 %v7153_v26, %v7152_v62  ;;  %v10244_v50 = vadd.f32 %v2881_v56, %v9787_v14  ;;  %v12418_v26 = vld [vmem:[#allocation41_spill] sm:$0xff] }
 0xa0f   :  { %2955 = vadd.xlane.f32.xlu1 %v10244_v50  ;;  %v2884_v28 = vadd.f32 %v7154_v23, %v10230_v52  ;;  %v7155_v60 = vpop.f32.mrf.mxu0 }
 0xa11   :  { %v10249_v18 = vadd.f32 %v2884_v28, %v9780_v48  ;;  %v7156_v0 = vpop.f32.mrf.mxu0 }
 0xa12   :  { %v7157_v25 = vadd.f32 %v7156_v0, %v7155_v60 }
 0xa13   :  { %2957 = vadd.xlane.f32.xlu0 %v10249_v18  ;;  %v7158_v32 = vpop.f32.mrf.mxu0 }
 0xa14   :  { %v2889_v43 = vadd.f32 %v7157_v25, %v10230_v52 }
 0xa15   :  { %v7159_v31 = vpop.f32.mrf.mxu0 }
 0xa16   :  { %v7160_v34 = vadd.f32 %v7159_v31, %v7158_v32  ;;  %v10254_v14 = vadd.f32 %v2889_v43, %v9806_v38  ;;  %v12419_v32 = vld [vmem:[#allocation44_spill] sm:$0xff] }
 0xa17   :  { %v7161_v35 = vpop.f32.mrf.mxu0 }
 0xa18   :  { %2959 = vadd.xlane.f32.xlu1 %v10254_v14  ;;  %v2892_v11 = vadd.f32 %v7160_v34, %v10230_v52  ;;  %v12420_v34 = vld [vmem:[#allocation43_spill] sm:$0xff] }
 0xa19   :  { %v7162_v4 = vpop.f32.mrf.mxu0 }
 0xa1a   :  { %v7163_v48 = vadd.f32 %v7162_v4, %v7161_v35  ;;  %v10259_v6 = vadd.f32 %v2892_v11, %v9799_v24 }
 0xa1b   :  { %v7164_v36 = vpop.f32.mrf.mxu0 }
 0xa1c   :  { %v2897_v58 = vadd.f32 %v7163_v48, %v10230_v52  ;;  %2961 = vadd.xlane.f32.xlu0 %v10259_v6 }
 0xa1d   :  { %v7165_v39 = vpop.f32.mrf.mxu0 }
 0xa1e   :  { %v7166_v61 = vadd.f32 %v7165_v39, %v7164_v36  ;;  %v10264_v38 = vadd.f32 %v2897_v58, %v9825_v27 }
 0xa1f   :  { %v7167_v15 = vpop.f32.mrf.mxu0 }
 0xa20   :  { %2963 = vadd.xlane.f32.xlu1 %v10264_v38  ;;  %v2900_v30 = vadd.f32 %v7166_v61, %v10230_v52 }
 0xa21   :  { %v7168_v7 = vpop.f32.mrf.mxu0 }
 0xa22   :  { %v7169_v2 = vadd.f32 %v7168_v7, %v7167_v15  ;;  %v10269_v24 = vadd.f32 %v2900_v30, %v9818_v21 }
 0xa23   :  { %v7170_v59 = vpop.f32.mrf.mxu0 }
 0xa24   :  { %v2905_v45 = vadd.f32 %v7169_v2, %v10230_v52  ;;  %2965 = vadd.xlane.f32.xlu0 %v10269_v24 }
 0xa25   :  { %v7171_v46 = vpop.f32.mrf.mxu0 }
 0xa26   :  { %v7172_v8 = vadd.f32 %v7171_v46, %v7170_v59  ;;  %v10274_v27 = vadd.f32 %v2905_v45, %v9844_v47 }
 0xa27   :  { %v7173_v19 = vpop.f32.mrf.mxu0 }
 0xa28   :  { %2967 = vadd.xlane.f32.xlu1 %v10274_v27  ;;  %v2908_v54 = vadd.f32 %v7172_v8, %v10230_v52 }
 0xa29   :  { %v7174_v53 = vpop.f32.mrf.mxu0 }
 0xa2a   :  { %v7175_v49 = vadd.f32 %v7174_v53, %v7173_v19  ;;  %v10279_v21 = vadd.f32 %v2908_v54, %v12414_v3 }
 0xa2b   :  { %v7176_v5 = vpop.f32.mrf.mxu0 }
 0xa2c   :  { %v2913_v1 = vadd.f32 %v7175_v49, %v10230_v52  ;;  %2969 = vadd.xlane.f32.xlu0 %v10279_v21 }
 0xa2d   :  { %v7177_v12 = vpop.f32.mrf.mxu0 }
 0xa2e   :  { %v7178_v40 = vadd.f32 %v7177_v12, %v7176_v5  ;;  %v10284_v47 = vadd.f32 %v2913_v1, %v12415_v17 }
 0xa2f   :  { %v7179_v20 = vpop.f32.mrf.mxu0 }
 0xa30   :  { %2971 = vadd.xlane.f32.xlu1 %v10284_v47  ;;  %v2916_v22 = vadd.f32 %v7178_v40, %v10230_v52 }
 0xa31   :  { %v7180_v33 = vpop.f32.mrf.mxu0 }
 0xa32   :  { %v7181_v57 = vadd.f32 %v7180_v33, %v7179_v20  ;;  %v10289_v10 = vadd.f32 %v2916_v22, %v12416_v44 }
 0xa33   :  { %v7182_v29 = vpop.f32.mrf.mxu0 }
 0xa34   :  { %v2921_v9 = vadd.f32 %v7181_v57, %v10230_v52  ;;  %2973 = vadd.xlane.f32.xlu0 %v10289_v10 }
 0xa35   :  { %v7183_v63 = vpop.f32.mrf.mxu0 }
 0xa36   :  { %v7184_v51 = vadd.f32 %v7183_v63, %v7182_v29  ;;  %v10294_v13 = vadd.f32 %v2921_v9, %v12417_v42 }
 0xa37   :  { %v7185_v41 = vpop.f32.mrf.mxu0 }
 0xa38   :  { %2975 = vadd.xlane.f32.xlu1 %v10294_v13  ;;  %v2924_v16 = vadd.f32 %v7184_v51, %v10230_v52 }
 0xa39   :  { %v7186_v62 = vpop.f32.mrf.mxu0 }
 0xa3a   :  { %v7187_v56 = vadd.f32 %v7186_v62, %v7185_v41  ;;  %v10299_v23 = vadd.f32 %v2924_v16, %v12418_v26 }
 0xa3b   :  { %v7188_v28 = vpop.f32.mrf.mxu0 }
 0xa3c   :  { %v2929_v60 = vadd.f32 %v7187_v56, %v10230_v52  ;;  %2977 = vadd.xlane.f32.xlu0 %v10299_v23 }
 0xa3d   :  { %v7189_v0 = vpop.f32.mrf.mxu0 }
 0xa3e   :  { %v7190_v25 = vadd.f32 %v7189_v0, %v7188_v28  ;;  %v10304_v43 = vadd.f32 %v2929_v60, %v12419_v32 }
 0xa40   :  { %2979 = vadd.xlane.f32.xlu1 %v10304_v43  ;;  %v2932_v31 = vadd.f32 %v7190_v25, %v10230_v52 }
 0xa42   :  { %v10309_v35 = vadd.f32 %v2932_v31, %v12420_v34 }
 0xa44   :  { %2981 = vadd.xlane.f32.xlu0 %v10309_v35 }
 0xa8b   :  { %v2952_v11 = vpop.xlane.xlu1 %2951 }
 0xa8c   :  { %v2983_v4 = vmul.f32 0.0078125, %v2952_v11 }
 0xa8e   :  { %v10313_v48 = vsub.f32 %v10234_v55, %v2983_v4 }
 0xa8f   :  { %v2954_v36 = vpop.xlane.xlu0 %2953 }
 0xa90   :  { %v2984_v58 = vmul.f32 0.0078125, %v2954_v36  ;;  %v3015_v39 = vmul.f32 %v10313_v48, %v10313_v48 }
 0xa92   :  { %v10318_v61 = vsub.f32 %v10239_v37, %v2984_v58  ;;  %3031 = vadd.xlane.f32.xlu1 %v3015_v39 }
 0xa94   :  { %v3016_v52 = vmul.f32 %v10318_v61, %v10318_v61 }
 0xa96   :  { %3033 = vadd.xlane.f32.xlu0 %v3016_v52 }
 0xa98   :  { %v2956_v15 = vpop.xlane.xlu1 %2955 }
 0xa99   :  { %v2985_v30 = vmul.f32 0.0078125, %v2956_v15 }
 0xa9b   :  { %v10323_v7 = vsub.f32 %v10244_v50, %v2985_v30 }
 0xa9c   :  { %v2958_v55 = vpop.xlane.xlu0 %2957 }
 0xa9d   :  { %v2986_v2 = vmul.f32 0.0078125, %v2958_v55  ;;  %v3017_v59 = vmul.f32 %v10323_v7, %v10323_v7 }
 0xa9f   :  { %v10328_v45 = vsub.f32 %v10249_v18, %v2986_v2  ;;  %3035 = vadd.xlane.f32.xlu1 %v3017_v59 }
 0xaa1   :  { %v3018_v37 = vmul.f32 %v10328_v45, %v10328_v45  ;;  %v2960_v46 = vpop.xlane.xlu1 %2959 }
 0xaa2   :  { %v2987_v8 = vmul.f32 0.0078125, %v2960_v46 }
 0xaa3   :  { %3037 = vadd.xlane.f32.xlu0 %v3018_v37 }
 0xaa4   :  { %v10333_v19 = vsub.f32 %v10254_v14, %v2987_v8 }
 0xaa5   :  { %v2962_v50 = vpop.xlane.xlu0 %2961 }
 0xaa6   :  { %v2988_v54 = vmul.f32 0.0078125, %v2962_v50  ;;  %v3019_v53 = vmul.f32 %v10333_v19, %v10333_v19  ;;  %v10393_v50 = vld [vmem:[#allocation12] ss:$0 sm:$0xff] }
 0xaa8   :  { %v10338_v49 = vsub.f32 %v10259_v6, %v2988_v54  ;;  %3039 = vadd.xlane.f32.xlu1 %v3019_v53 }
 0xaa9   :  { %v2964_v18 = vpop.xlane.xlu1 %2963 }
 0xaaa   :  { %v2989_v3 = vmul.f32 0.0078125, %v2964_v18  ;;  %v3020_v5 = vmul.f32 %v10338_v49, %v10338_v49 }
 0xaac   :  { %v10343_v1 = vsub.f32 %v10264_v38, %v2989_v3  ;;  %3041 = vadd.xlane.f32.xlu0 %v3020_v5 }
 0xaad   :  { %v2966_v14 = vpop.xlane.xlu0 %2965 }
 0xaae   :  { %v2990_v12 = vmul.f32 0.0078125, %v2966_v14  ;;  %v3021_v40 = vmul.f32 %v10343_v1, %v10343_v1  ;;  %v10397_v14 = vld [vmem:[#allocation13] ss:$0 sm:$0xff] }
 0xab0   :  { %v10348_v17 = vsub.f32 %v10269_v24, %v2990_v12  ;;  %3043 = vadd.xlane.f32.xlu1 %v3021_v40 }
 0xab1   :  { %v2968_v6 = vpop.xlane.xlu1 %2967 }
 0xab2   :  { %v2991_v20 = vmul.f32 0.0078125, %v2968_v6  ;;  %v3022_v22 = vmul.f32 %v10348_v17, %v10348_v17 }
 0xab4   :  { %v10353_v33 = vsub.f32 %v10274_v27, %v2991_v20  ;;  %3045 = vadd.xlane.f32.xlu0 %v3022_v22 }
 0xab5   :  { %v2970_v38 = vpop.xlane.xlu0 %2969 }
 0xab6   :  { %v2992_v57 = vmul.f32 0.0078125, %v2970_v38  ;;  %v3023_v44 = vmul.f32 %v10353_v33, %v10353_v33 }
 0xab8   :  { %v10358_v29 = vsub.f32 %v10279_v21, %v2992_v57  ;;  %3047 = vadd.xlane.f32.xlu1 %v3023_v44 }
 0xab9   :  { %v2972_v24 = vpop.xlane.xlu1 %2971 }
 0xaba   :  { %v2993_v9 = vmul.f32 0.0078125, %v2972_v24  ;;  %v3024_v63 = vmul.f32 %v10358_v29, %v10358_v29 }
 0xabc   :  { %v10363_v51 = vsub.f32 %v10284_v47, %v2993_v9  ;;  %3049 = vadd.xlane.f32.xlu0 %v3024_v63 }
 0xabd   :  { %v2974_v27 = vpop.xlane.xlu0 %2973 }
 0xabe   :  { %v2994_v42 = vmul.f32 0.0078125, %v2974_v27  ;;  %v3025_v41 = vmul.f32 %v10363_v51, %v10363_v51 }
 0xac0   :  { %v10368_v16 = vsub.f32 %v10289_v10, %v2994_v42  ;;  %3051 = vadd.xlane.f32.xlu1 %v3025_v41 }
 0xac1   :  { %v2976_v21 = vpop.xlane.xlu1 %2975 }
 0xac2   :  { %v2995_v62 = vmul.f32 0.0078125, %v2976_v21  ;;  %v3026_v56 = vmul.f32 %v10368_v16, %v10368_v16 }
 0xac4   :  { %v10373_v26 = vsub.f32 %v10294_v13, %v2995_v62  ;;  %3053 = vadd.xlane.f32.xlu0 %v3026_v56 }
 0xac5   :  { %v2978_v47 = vpop.xlane.xlu0 %2977 }
 0xac6   :  { %v2996_v28 = vmul.f32 0.0078125, %v2978_v47  ;;  %v3027_v60 = vmul.f32 %v10373_v26, %v10373_v26 }
 0xac8   :  { %v10378_v0 = vsub.f32 %v10299_v23, %v2996_v28  ;;  %3055 = vadd.xlane.f32.xlu1 %v3027_v60 }
 0xac9   :  { %v2980_v10 = vpop.xlane.xlu1 %2979 }
 0xaca   :  { %v2997_v25 = vmul.f32 0.0078125, %v2980_v10  ;;  %v3028_v32 = vmul.f32 %v10378_v0, %v10378_v0 }
 0xacc   :  { %v10383_v31 = vsub.f32 %v10304_v43, %v2997_v25  ;;  %3057 = vadd.xlane.f32.xlu0 %v3028_v32 }
 0xacd   :  { %v2982_v13 = vpop.xlane.xlu0 %2981 }
 0xace   :  { %v2998_v34 = vmul.f32 0.0078125, %v2982_v13  ;;  %v3029_v11 = vmul.f32 %v10383_v31, %v10383_v31 }
 0xad0   :  { %v10388_v4 = vsub.f32 %v10309_v35, %v2998_v34  ;;  %3059 = vadd.xlane.f32.xlu1 %v3029_v11 }
 0xad2   :  { %v3030_v23 = vmul.f32 %v10388_v4, %v10388_v4 }
 0xad4   :  { %3061 = vadd.xlane.f32.xlu0 %v3030_v23 }
 0xb1b   :  { %v3032_v36 = vpop.xlane.xlu1 %3031 }
 0xb1c   :  { %v3063_v58 = vmul.f32 0.0078125, %v3032_v36 }
 0xb1e   :  { %v3079_v39 = vadd.f32 1e-05, %v3063_v58 }
 0xb1f   :  { %v3034_v52 = vpop.xlane.xlu0 %3033 }
 0xb20   :  { %8239 = vrsqrt.f32 %v3079_v39  ;;  %v3064_v43 = vmul.f32 0.0078125, %v3034_v52 }
 0xb22   :  { %v3080_v15 = vadd.f32 1e-05, %v3064_v43 }
 0xb24   :  { %8241 = vrsqrt.f32 %v3080_v15 }
 0xb28   :  { %v3036_v30 = vpop.xlane.xlu1 %3035 }
 0xb29   :  { %v3065_v55 = vmul.f32 0.0078125, %v3036_v30 }
 0xb2b   :  { %v3081_v2 = vadd.f32 1e-05, %v3065_v55 }
 0xb2c   :  { %v3038_v59 = vpop.xlane.xlu0 %3037 }
 0xb2d   :  { %v8240_v37 = vpop.eup %8239  ;;  %8243 = vrsqrt.f32 %v3081_v2  ;;  %v3066_v35 = vmul.f32 0.0078125, %v3038_v59 }
 0xb2e   :  { %v3111_v46 = vmul.f32 %v8240_v37, %v10313_v48 }
 0xb2f   :  { %v3082_v8 = vadd.f32 1e-05, %v3066_v35 }
 0xb30   :  { %v3133_v3 = vmul.f32 %v10393_v50, %v3111_v46 }
 0xb31   :  { %v8242_v54 = vpop.eup %8241  ;;  %8245 = vrsqrt.f32 %v3082_v8  ;;  %v3040_v53 = vpop.xlane.xlu1 %3039 }
 0xb32   :  { %v3112_v18 = vmul.f32 %v8242_v54, %v10318_v61  ;;  %v3067_v5 = vmul.f32 0.0078125, %v3040_v53  ;;  %v3155_v20 = vadd.f32 %v10397_v14, %v3133_v3 }
 0xb34   :  { %v3134_v12 = vmul.f32 %v10393_v50, %v3112_v18  ;;  %v3083_v40 = vadd.f32 1e-05, %v3067_v5 }
 0xb35   :  { %v3042_v6 = vpop.xlane.xlu0 %3041 }
 0xb36   :  { %v3156_v48 = vadd.f32 %v10397_v14, %v3134_v12  ;;  %8247 = vrsqrt.f32 %v3083_v40  ;;  %v3068_v22 = vmul.f32 0.0078125, %v3042_v6 }
 0xb38   :  { %v3171_v38 = vpack.c.bf16 %v3156_v48, %v3155_v20  ;;  %v3084_v57 = vadd.f32 1e-05, %v3068_v22 }
 0xb39   :  { %v3044_v24 = vpop.xlane.xlu1 %3043 }
 0xb3a   :  { %v8244_v44 = vpop.eup %8243  ;;  %7207 = vmatprep.mubr.bf16.mxu1 %v3171_v38  ;;  %8249 = vrsqrt.f32 %v3084_v57  ;;  %v3069_v61 = vmul.f32 0.0078125, %v3044_v24 }
 0xb3b   :  { %7208 = vmatmul.mubr.bf16.vlgmr.msra.gmra.mxu1 %v3171_v38  ;;  %v3113_v9 = vmul.f32 %v8244_v44, %v10323_v7 }
 0xb3c   :  { %v3085_v63 = vadd.f32 1e-05, %v3069_v61 }
 0xb3d   :  { %v3046_v42 = vpop.xlane.xlu0 %3045  ;;  %v3135_v62 = vmul.f32 %v10393_v50, %v3113_v9 }
 0xb3e   :  { %v8246_v27 = vpop.eup %8245  ;;  %8251 = vrsqrt.f32 %v3085_v63  ;;  %v3070_v41 = vmul.f32 0.0078125, %v3046_v42 }
 0xb3f   :  { %v3114_v21 = vmul.f32 %v8246_v27, %v10328_v45  ;;  %v3157_v10 = vadd.f32 %v10397_v14, %v3135_v62 }
 0xb40   :  { %v3086_v56 = vadd.f32 1e-05, %v3070_v41 }
 0xb41   :  { %v3136_v47 = vmul.f32 %v10393_v50, %v3114_v21  ;;  %v3048_v28 = vpop.xlane.xlu1 %3047 }
 0xb42   :  { %8253 = vrsqrt.f32 %v3086_v56  ;;  %v3071_v60 = vmul.f32 0.0078125, %v3048_v28 }
 0xb43   :  { %v3158_v25 = vadd.f32 %v10397_v14, %v3136_v47  ;;  %v8248_v7 = vpop.eup %8247 }
 0xb44   :  { %v3087_v32 = vadd.f32 1e-05, %v3071_v60  ;;  %v3115_v34 = vmul.f32 %v8248_v7, %v10333_v19 }
 0xb45   :  { %v3172_v13 = vpack.c.bf16 %v3158_v25, %v3157_v10  ;;  %v3050_v11 = vpop.xlane.xlu0 %3049 }
 0xb46   :  { %8255 = vrsqrt.f32 %v3087_v32  ;;  %v3072_v45 = vmul.f32 0.0078125, %v3050_v11  ;;  %v3137_v39 = vmul.f32 %v10393_v50, %v3115_v34 }
 0xb47   :  { %7209 = vmatprep.mubr.bf16.mxu1 %v3172_v13  ;;  %v8250_v23 = vpop.eup %8249 }
 0xb48   :  { %7210 = vmatmul.mubr.bf16.gmra.mxu1 %v3172_v13  ;;  %v3088_v36 = vadd.f32 1e-05, %v3072_v45  ;;  %v3116_v58 = vmul.f32 %v8250_v23, %v10338_v49  ;;  %v3159_v19 = vadd.f32 %v10397_v14, %v3137_v39 }
 0xb49   :  { %v3052_v52 = vpop.xlane.xlu1 %3051 }
 0xb4a   :  { %8257 = vrsqrt.f32 %v3088_v36  ;;  %v3073_v43 = vmul.f32 0.0078125, %v3052_v52  ;;  %v3138_v15 = vmul.f32 %v10393_v50, %v3116_v58 }
 0xb4b   :  { %v8252_v30 = vpop.eup %8251 }
 0xb4c   :  { %v3089_v55 = vadd.f32 1e-05, %v3073_v43  ;;  %v3160_v2 = vadd.f32 %v10397_v14, %v3138_v15  ;;  %v3117_v59 = vmul.f32 %v8252_v30, %v10343_v1 }
 0xb4d   :  { %v3054_v37 = vpop.xlane.xlu0 %3053 }
 0xb4e   :  { %8259 = vrsqrt.f32 %v3089_v55  ;;  %v3074_v35 = vmul.f32 0.0078125, %v3054_v37  ;;  %v3173_v46 = vpack.c.bf16 %v3160_v2, %v3159_v19  ;;  %v3139_v53 = vmul.f32 %v10393_v50, %v3117_v59 }
 0xb4f   :  { %v8254_v49 = vpop.eup %8253 }
 0xb50   :  { %v3090_v8 = vadd.f32 1e-05, %v3074_v35  ;;  %7211 = vmatprep.mubr.bf16.mxu1 %v3173_v46  ;;  %v3118_v54 = vmul.f32 %v8254_v49, %v10348_v17  ;;  %v3161_v1 = vadd.f32 %v10397_v14, %v3139_v53 }
 0xb51   :  { %v3056_v18 = vpop.xlane.xlu1 %3055  ;;  %7212 = vmatmul.mubr.bf16.gmra.mxu1 %v3173_v46 }
 0xb52   :  { %8261 = vrsqrt.f32 %v3090_v8  ;;  %v3075_v3 = vmul.f32 0.0078125, %v3056_v18  ;;  %v3140_v5 = vmul.f32 %v10393_v50, %v3118_v54 }
 0xb53   :  { %v8256_v12 = vpop.eup %8255 }
 0xb54   :  { %v3091_v40 = vadd.f32 1e-05, %v3075_v3  ;;  %v3162_v6 = vadd.f32 %v10397_v14, %v3140_v5  ;;  %v3119_v20 = vmul.f32 %v8256_v12, %v10353_v33 }
 0xb55   :  { %v3058_v48 = vpop.xlane.xlu0 %3057 }
 0xb56   :  { %8263 = vrsqrt.f32 %v3091_v40  ;;  %v3076_v22 = vmul.f32 0.0078125, %v3058_v48  ;;  %v3174_v17 = vpack.c.bf16 %v3162_v6, %v3161_v1  ;;  %v3141_v24 = vmul.f32 %v10393_v50, %v3119_v20 }
 0xb57   :  { %v8258_v38 = vpop.eup %8257 }
 0xb58   :  { %v3092_v57 = vadd.f32 1e-05, %v3076_v22  ;;  %7213 = vmatprep.mubr.bf16.mxu1 %v3174_v17  ;;  %v3120_v44 = vmul.f32 %v8258_v38, %v10358_v29  ;;  %v3163_v33 = vadd.f32 %v10397_v14, %v3141_v24 }
 0xb59   :  { %v3060_v61 = vpop.xlane.xlu1 %3059  ;;  %7214 = vmatmul.mubr.bf16.gmra.mxu1 %v3174_v17 }
 0xb5a   :  { %8265 = vrsqrt.f32 %v3092_v57  ;;  %v3077_v9 = vmul.f32 0.0078125, %v3060_v61  ;;  %v3142_v63 = vmul.f32 %v10393_v50, %v3120_v44 }
 0xb5b   :  { %v8260_v27 = vpop.eup %8259 }
 0xb5c   :  { %v3093_v42 = vadd.f32 1e-05, %v3077_v9  ;;  %v3164_v41 = vadd.f32 %v10397_v14, %v3142_v63  ;;  %v3121_v21 = vmul.f32 %v8260_v27, %v10363_v51 }
 0xb5d   :  { %v3062_v62 = vpop.xlane.xlu0 %3061 }
 0xb5e   :  { %8267 = vrsqrt.f32 %v3093_v42  ;;  %v3078_v56 = vmul.f32 0.0078125, %v3062_v62  ;;  %v3175_v29 = vpack.c.bf16 %v3164_v41, %v3163_v33  ;;  %v3143_v10 = vmul.f32 %v10393_v50, %v3121_v21 }
 0xb5f   :  { %v8262_v47 = vpop.eup %8261 }
 0xb60   :  { %v3094_v28 = vadd.f32 1e-05, %v3078_v56  ;;  %7215 = vmatprep.mubr.bf16.mxu1 %v3175_v29  ;;  %v3122_v60 = vmul.f32 %v8262_v47, %v10368_v16  ;;  %v3165_v32 = vadd.f32 %v10397_v14, %v3143_v10 }
 0xb61   :  { %7216 = vmatmul.mubr.bf16.gmra.mxu1 %v3175_v29 }
 0xb62   :  { %8269 = vrsqrt.f32 %v3094_v28  ;;  %v3144_v25 = vmul.f32 %v10393_v50, %v3122_v60 }
 0xb63   :  { %v8264_v7 = vpop.eup %8263 }
 0xb64   :  { %v3166_v51 = vadd.f32 %v10397_v14, %v3144_v25  ;;  %v3123_v13 = vmul.f32 %v8264_v7, %v10373_v26 }
 0xb66   :  { %v3176_v34 = vpack.c.bf16 %v3166_v51, %v3165_v32  ;;  %v3145_v16 = vmul.f32 %v10393_v50, %v3123_v13 }
 0xb67   :  { %v8266_v11 = vpop.eup %8265 }
 0xb68   :  { %7217 = vmatprep.mubr.bf16.mxu1 %v3176_v34  ;;  %v3124_v45 = vmul.f32 %v8266_v11, %v10378_v0  ;;  %v3167_v58 = vadd.f32 %v10397_v14, %v3145_v16 }
 0xb69   :  { %7218 = vmatmul.mubr.bf16.gmra.mxu1 %v3176_v34 }
 0xb6a   :  { %v3146_v23 = vmul.f32 %v10393_v50, %v3124_v45  ;;  %v12421_v45 = vld [vmem:[#allocation36_spill] sm:$0xff] }
 0xb6b   :  { %v8268_v36 = vpop.eup %8267 }
 0xb6c   :  { %v3168_v39 = vadd.f32 %v10397_v14, %v3146_v23  ;;  %v3125_v52 = vmul.f32 %v8268_v36, %v10383_v31  ;;  %v12422_v23 = vld [vmem:[#allocation37_spill] sm:$0xff] }
 0xb6e   :  { %v3177_v43 = vpack.c.bf16 %v3168_v39, %v3167_v58  ;;  %v3147_v30 = vmul.f32 %v10393_v50, %v3125_v52 }
 0xb6f   :  { %v8270_v15 = vpop.eup %8269 }
 0xb70   :  { %7219 = vmatprep.mubr.bf16.mxu1 %v3177_v43  ;;  %v3126_v26 = vmul.f32 %v8270_v15, %v10388_v4  ;;  %v3169_v55 = vadd.f32 %v10397_v14, %v3147_v30 }
 0xb71   :  { %7220 = vmatmul.mubr.bf16.gmra.mxu1 %v3177_v43 }
 0xb72   :  { %v3148_v0 = vmul.f32 %v10393_v50, %v3126_v26 }
 0xb74   :  { %v3170_v19 = vadd.f32 %v10397_v14, %v3148_v0 }
 0xb76   :  { %v3178_v2 = vpack.c.bf16 %v3170_v19, %v3169_v55 }
 0xb78   :  { %7221 = vmatprep.mubr.bf16.mxu1 %v3178_v2 }
 0xb79   :  { %7222 = vmatmul.mubr.bf16.gmra.mxu1 %v3178_v2 }
 0xbfb   :  { %v10444_v59 = vpop.f32.mrf.mxu1 }
 0xbfd   :  { %v10446_v31 = vpop.f32.mrf.mxu1 }
 0xbfe   :  { %v3292_v37 = vmax.f32 %v10444_v59, %v10446_v31 }
 0xbff   :  { %v10450_v4 = vpop.f32.mrf.mxu1 }
 0xc00   :  { %3293 = vmax.xlane.f32.xlu1 %v3292_v37 }
 0xc01   :  { %v10452_v35 = vpop.f32.mrf.mxu1 }
 0xc02   :  { %v3295_v50 = vmax.f32 %v10450_v4, %v10452_v35 }
 0xc04   :  { %3296 = vmax.xlane.f32.xlu0 %v3295_v50 }
 0xc08   :  { %v10456_v14 = vpop.f32.mrf.mxu1 }
 0xc0a   :  { %v10458_v46 = vpop.f32.mrf.mxu1 }
 0xc0b   :  { %v3298_v49 = vmax.f32 %v10456_v14, %v10458_v46 }
 0xc0c   :  { %v10462_v8 = vpop.f32.mrf.mxu1 }
 0xc0d   :  { %3299 = vmax.xlane.f32.xlu1 %v3298_v49 }
 0xc0e   :  { %v10464_v54 = vpop.f32.mrf.mxu1 }
 0xc0f   :  { %v3301_v53 = vmax.f32 %v10462_v8, %v10464_v54 }
 0xc11   :  { %3302 = vmax.xlane.f32.xlu0 %v3301_v53  ;;  %v10468_v18 = vpop.f32.mrf.mxu1 }
 0xc13   :  { %v10470_v3 = vpop.f32.mrf.mxu1 }
 0xc14   :  { %v3304_v5 = vmax.f32 %v10468_v18, %v10470_v3 }
 0xc15   :  { %v10474_v12 = vpop.f32.mrf.mxu1 }
 0xc16   :  { %3305 = vmax.xlane.f32.xlu1 %v3304_v5 }
 0xc17   :  { %v10476_v40 = vpop.f32.mrf.mxu1 }
 0xc18   :  { %v3307_v1 = vmax.f32 %v10474_v12, %v10476_v40 }
 0xc19   :  { %v10480_v6 = vpop.f32.mrf.mxu1 }
 0xc1a   :  { %3308 = vmax.xlane.f32.xlu0 %v3307_v1 }
 0xc1b   :  { %v10482_v20 = vpop.f32.mrf.mxu1 }
 0xc1c   :  { %v3310_v48 = vmax.f32 %v10480_v6, %v10482_v20 }
 0xc1d   :  { %v10486_v22 = vpop.f32.mrf.mxu1 }
 0xc1e   :  { %3311 = vmax.xlane.f32.xlu1 %v3310_v48 }
 0xc1f   :  { %v10488_v17 = vpop.f32.mrf.mxu1 }
 0xc20   :  { %v3313_v38 = vmax.f32 %v10486_v22, %v10488_v17 }
 0xc21   :  { %v10492_v57 = vpop.f32.mrf.mxu1 }
 0xc22   :  { %3314 = vmax.xlane.f32.xlu0 %v3313_v38 }
 0xc23   :  { %v10494_v44 = vpop.f32.mrf.mxu1 }
 0xc24   :  { %v3316_v24 = vmax.f32 %v10492_v57, %v10494_v44 }
 0xc25   :  { %v10498_v61 = vpop.f32.mrf.mxu1 }
 0xc26   :  { %3317 = vmax.xlane.f32.xlu1 %v3316_v24 }
 0xc27   :  { %v10500_v9 = vpop.f32.mrf.mxu1 }
 0xc28   :  { %v3319_v63 = vmax.f32 %v10498_v61, %v10500_v9 }
 0xc29   :  { %v10504_v27 = vpop.f32.mrf.mxu1 }
 0xc2a   :  { %3320 = vmax.xlane.f32.xlu0 %v3319_v63 }
 0xc2b   :  { %v10506_v42 = vpop.f32.mrf.mxu1 }
 0xc2c   :  { %v3322_v33 = vmax.f32 %v10504_v27, %v10506_v42 }
 0xc2d   :  { %v10510_v41 = vpop.f32.mrf.mxu1 }
 0xc2e   :  { %3323 = vmax.xlane.f32.xlu1 %v3322_v33 }
 0xc2f   :  { %v10512_v21 = vpop.f32.mrf.mxu1 }
 0xc30   :  { %v3325_v62 = vmax.f32 %v10510_v41, %v10512_v21 }
 0xc31   :  { %v10516_v56 = vpop.f32.mrf.mxu1 }
 0xc32   :  { %3326 = vmax.xlane.f32.xlu0 %v3325_v62 }
 0xc33   :  { %v10518_v29 = vpop.f32.mrf.mxu1 }
 0xc34   :  { %v3328_v47 = vmax.f32 %v10516_v56, %v10518_v29 }
 0xc35   :  { %v10522_v28 = vpop.f32.mrf.mxu1 }
 0xc36   :  { %3329 = vmax.xlane.f32.xlu1 %v3328_v47 }
 0xc37   :  { %v10524_v60 = vpop.f32.mrf.mxu1 }
 0xc38   :  { %v3331_v10 = vmax.f32 %v10522_v28, %v10524_v60 }
 0xc39   :  { %v10528_v25 = vpop.f32.mrf.mxu1 }
 0xc3a   :  { %3332 = vmax.xlane.f32.xlu0 %v3331_v10 }
 0xc3b   :  { %v10530_v7 = vpop.f32.mrf.mxu1 }
 0xc3c   :  { %v3334_v32 = vmax.f32 %v10528_v25, %v10530_v7 }
 0xc3d   :  { %v10534_v51 = vpop.f32.mrf.mxu1 }
 0xc3e   :  { %3335 = vmax.xlane.f32.xlu1 %v3334_v32 }
 0xc3f   :  { %v10536_v13 = vpop.f32.mrf.mxu1 }
 0xc40   :  { %v3337_v34 = vmax.f32 %v10534_v51, %v10536_v13 }
 0xc42   :  { %3338 = vmax.xlane.f32.xlu0 %v3337_v34 }
 0xc89   :  { %v3294_v11 = vpop.xlane.xlu1 %3293 }
 0xc8a   :  { %vm3340_vm0 = vcmp.ge.f32.partialorder %v10444_v59, %v3294_v11  ;;  %vm3341_vm1 = vcmp.ge.f32.partialorder %v10446_v31, %v3294_v11 }
 0xc8b   :  { %v3372_v16 = vsel %vm3340_vm0, %v12421_v45, 256  ;;  %v3373_v36 = vsel %vm3341_vm1, %v12422_v23, 256 }
 0xc8c   :  { %vm3404_vm2 = vcmp.lt.s32.totalorder %v3372_v16, %v3373_v36 }
 0xc8d   :  { %v3297_v58 = vpop.xlane.xlu0 %3296  ;;  %v10544_v39 = vsel %vm3404_vm2, %v3372_v16, %v3373_v36 }
 0xc8e   :  { %vm3342_vm3 = vcmp.ge.f32.partialorder %v10450_v4, %v3297_v58  ;;  %vm3343_vm4 = vcmp.ge.f32.partialorder %v10452_v35, %v3297_v58  ;;  %v3407_v52 = vshra.s32 %v10544_v39, 16 }
 0xc8f   :  { %v3374_v43 = vsel %vm3342_vm3, %v12421_v45, 256  ;;  %v3375_v15 = vsel %vm3343_vm4, %v12422_v23, 256 }
 0xc90   :  { %vm3420_vm5 = vcmp.lt.s32.totalorder %v3374_v43, %v3375_v15  ;;  %v10551_v26 = vcvt.s32.f32 %v3407_v52 }
 0xc91   :  { %v10553_v30 = vsel %vm3420_vm5, %v3374_v43, %v3375_v15 }
 0xc92   :  { %3410 = vmin.xlane.f32.xlu1 %v10551_v26  ;;  %v3423_v0 = vshra.s32 %v10553_v30, 16 }
 0xc94   :  { %v10557_v55 = vcvt.s32.f32 %v3423_v0 }
 0xc96   :  { %v3300_v19 = vpop.xlane.xlu1 %3299  ;;  %3426 = vmin.xlane.f32.xlu0 %v10557_v55 }
 0xc97   :  { %vm3344_vm6 = vcmp.ge.f32.partialorder %v10456_v14, %v3300_v19  ;;  %vm3345_vm9 = vcmp.ge.f32.partialorder %v10458_v46, %v3300_v19 }
 0xc98   :  { %v3376_v2 = vsel %vm3344_vm6, %v12421_v45, 256  ;;  %v3377_v59 = vsel %vm3345_vm9, %v12422_v23, 256 }
 0xc99   :  { %vm3436_vm7 = vcmp.lt.s32.totalorder %v3376_v2, %v3377_v59 }
 0xc9a   :  { %v3303_v31 = vpop.xlane.xlu0 %3302  ;;  %v10564_v37 = vsel %vm3436_vm7, %v3376_v2, %v3377_v59 }
 0xc9b   :  { %vm3346_vm8 = vcmp.ge.f32.partialorder %v10462_v8, %v3303_v31  ;;  %vm3347_vm10 = vcmp.ge.f32.partialorder %v10464_v54, %v3303_v31  ;;  %v3439_v4 = vshra.s32 %v10564_v37, 16 }
 0xc9c   :  { %v3378_v35 = vsel %vm3346_vm8, %v12421_v45, 256  ;;  %v3379_v50 = vsel %vm3347_vm10, %v12422_v23, 256 }
 0xc9d   :  { %vm3452_vm11 = vcmp.lt.s32.totalorder %v3378_v35, %v3379_v50  ;;  %v10571_v14 = vcvt.s32.f32 %v3439_v4 }
 0xc9e   :  { %v10573_v46 = vsel %vm3452_vm11, %v3378_v35, %v3379_v50 }
 0xc9f   :  { %3442 = vmin.xlane.f32.xlu1 %v10571_v14  ;;  %v3455_v49 = vshra.s32 %v10573_v46, 16  ;;  %v3306_v53 = vpop.xlane.xlu1 %3305 }
 0xca0   :  { %vm3348_vm12 = vcmp.ge.f32.partialorder %v10468_v18, %v3306_v53  ;;  %vm3349_vm13 = vcmp.ge.f32.partialorder %v10470_v3, %v3306_v53 }
 0xca1   :  { %v10579_v8 = vcvt.s32.f32 %v3455_v49  ;;  %v3380_v54 = vsel %vm3348_vm12, %v12421_v45, 256  ;;  %v3381_v5 = vsel %vm3349_vm13, %v12422_v23, 256 }
 0xca2   :  { %vm3468_vm14 = vcmp.lt.s32.totalorder %v3380_v54, %v3381_v5 }
 0xca3   :  { %3458 = vmin.xlane.f32.xlu0 %v10579_v8  ;;  %v3309_v1 = vpop.xlane.xlu0 %3308  ;;  %v10584_v48 = vsel %vm3468_vm14, %v3380_v54, %v3381_v5 }
 0xca4   :  { %vm3350_vm15 = vcmp.ge.f32.partialorder %v10474_v12, %v3309_v1  ;;  %vm3351_vm0 = vcmp.ge.f32.partialorder %v10476_v40, %v3309_v1  ;;  %v3471_v18 = vshra.s32 %v10584_v48, 16 }
 0xca5   :  { %v3382_v3 = vsel %vm3350_vm15, %v12421_v45, 256  ;;  %v3383_v38 = vsel %vm3351_vm0, %v12422_v23, 256 }
 0xca6   :  { %vm3484_vm1 = vcmp.lt.s32.totalorder %v3382_v3, %v3383_v38  ;;  %v10591_v24 = vcvt.s32.f32 %v3471_v18 }
 0xca7   :  { %v3312_v63 = vpop.xlane.xlu1 %3311  ;;  %v10593_v33 = vsel %vm3484_vm1, %v3382_v3, %v3383_v38 }
 0xca8   :  { %vm3352_vm2 = vcmp.ge.f32.partialorder %v10480_v6, %v3312_v63  ;;  %vm3353_vm3 = vcmp.ge.f32.partialorder %v10482_v20, %v3312_v63  ;;  %3474 = vmin.xlane.f32.xlu1 %v10591_v24  ;;  %v3487_v12 = vshra.s32 %v10593_v33, 16 }
 0xca9   :  { %v3384_v40 = vsel %vm3352_vm2, %v12421_v45, 256  ;;  %v3385_v62 = vsel %vm3353_vm3, %v12422_v23, 256 }
 0xcaa   :  { %vm3500_vm4 = vcmp.lt.s32.totalorder %v3384_v40, %v3385_v62  ;;  %v10601_v47 = vcvt.s32.f32 %v3487_v12 }
 0xcab   :  { %v3315_v10 = vpop.xlane.xlu0 %3314  ;;  %v10603_v32 = vsel %vm3500_vm4, %v3384_v40, %v3385_v62 }
 0xcac   :  { %vm3354_vm5 = vcmp.ge.f32.partialorder %v10486_v22, %v3315_v10  ;;  %vm3355_vm6 = vcmp.ge.f32.partialorder %v10488_v17, %v3315_v10  ;;  %3490 = vmin.xlane.f32.xlu0 %v10601_v47  ;;  %v3503_v6 = vshra.s32 %v10603_v32, 16 }
 0xcad   :  { %v3386_v20 = vsel %vm3354_vm5, %v12421_v45, 256  ;;  %v3387_v34 = vsel %vm3355_vm6, %v12422_v23, 256 }
 0xcae   :  { %vm3516_vm9 = vcmp.lt.s32.totalorder %v3386_v20, %v3387_v34  ;;  %v10611_v11 = vcvt.s32.f32 %v3503_v6 }
 0xcaf   :  { %v3318_v16 = vpop.xlane.xlu1 %3317  ;;  %v10613_v36 = vsel %vm3516_vm9, %v3386_v20, %v3387_v34 }
 0xcb0   :  { %vm3356_vm7 = vcmp.ge.f32.partialorder %v10492_v57, %v3318_v16  ;;  %vm3357_vm8 = vcmp.ge.f32.partialorder %v10494_v44, %v3318_v16  ;;  %3506 = vmin.xlane.f32.xlu1 %v10611_v11  ;;  %v3519_v22 = vshra.s32 %v10613_v36, 16 }
 0xcb1   :  { %v3388_v17 = vsel %vm3356_vm7, %v12421_v45, 256  ;;  %v3389_v58 = vsel %vm3357_vm8, %v12422_v23, 256 }
 0xcb2   :  { %vm3532_vm10 = vcmp.lt.s32.totalorder %v3388_v17, %v3389_v58  ;;  %v10621_v52 = vcvt.s32.f32 %v3519_v22 }
 0xcb3   :  { %v3321_v43 = vpop.xlane.xlu0 %3320  ;;  %v10623_v15 = vsel %vm3532_vm10, %v3388_v17, %v3389_v58 }
 0xcb4   :  { %vm3358_vm11 = vcmp.ge.f32.partialorder %v10498_v61, %v3321_v43  ;;  %vm3359_vm12 = vcmp.ge.f32.partialorder %v10500_v9, %v3321_v43  ;;  %3522 = vmin.xlane.f32.xlu0 %v10621_v52  ;;  %v3535_v57 = vshra.s32 %v10623_v15, 16  ;;  %v7992_v43 = vld [vmem:[#allocation15 + $0x38] sm:$0xff]  }
 0xcb5   :  { %v3390_v44 = vsel %vm3358_vm11, %v12421_v45, 256  ;;  %v3391_v0 = vsel %vm3359_vm12, %v12422_v23, 256 }
 0xcb6   :  { %vm3548_vm13 = vcmp.lt.s32.totalorder %v3390_v44, %v3391_v0  ;;  %v10631_v19 = vcvt.s32.f32 %v3535_v57  ;;  %v7993_v57 = vld [vmem:[#allocation15 + $0x70] sm:$0xff]  }
 0xcb7   :  { %v3324_v2 = vpop.xlane.xlu1 %3323  ;;  %v10633_v59 = vsel %vm3548_vm13, %v3390_v44, %v3391_v0  ;;  %v7994_v44 = vld [vmem:[#allocation15 + $0x30] sm:$0xff]   ;;  %v7995_v0 = vld [vmem:[#allocation15 + $0x68] sm:$0xff]  }
 0xcb8   :  { %vm3360_vm14 = vcmp.ge.f32.partialorder %v10504_v27, %v3324_v2  ;;  %vm3361_vm15 = vcmp.ge.f32.partialorder %v10506_v42, %v3324_v2  ;;  %3538 = vmin.xlane.f32.xlu1 %v10631_v19  ;;  %v3551_v61 = vshra.s32 %v10633_v59, 16  ;;  %v7996_v2 = vld [vmem:[#allocation15 + $0x28] sm:$0xff]  }
 0xcb9   :  { %v3392_v9 = vsel %vm3360_vm14, %v12421_v45, 256  ;;  %v3393_v31 = vsel %vm3361_vm15, %v12422_v23, 256 }
 0xcba   :  { %vm3564_vm0 = vcmp.lt.s32.totalorder %v3392_v9, %v3393_v31  ;;  %v10641_v4 = vcvt.s32.f32 %v3551_v61  ;;  %v7997_v61 = vld [vmem:[#allocation15 + $0x60] sm:$0xff]  }
 0xcbb   :  { %v3327_v35 = vpop.xlane.xlu0 %3326  ;;  %v10643_v50 = vsel %vm3564_vm0, %v3392_v9, %v3393_v31  ;;  %v7998_v9 = vld [vmem:[#allocation15 + $0x20] sm:$0xff]   ;;  %v7999_v31 = vld [vmem:[#allocation15 + $0x58] sm:$0xff]  }
 0xcbc   :  { %vm3362_vm1 = vcmp.ge.f32.partialorder %v10510_v41, %v3327_v35  ;;  %vm3363_vm2 = vcmp.ge.f32.partialorder %v10512_v21, %v3327_v35  ;;  %3554 = vmin.xlane.f32.xlu0 %v10641_v4  ;;  %v3567_v27 = vshra.s32 %v10643_v50, 16  ;;  %v8000_v35 = vld [vmem:[#allocation15 + $0x18] sm:$0xff]  }
 0xcbd   :  { %v3394_v42 = vsel %vm3362_vm1, %v12421_v45, 256  ;;  %v3395_v49 = vsel %vm3363_vm2, %v12422_v23, 256 }
 0xcbe   :  { %vm3580_vm3 = vcmp.lt.s32.totalorder %v3394_v42, %v3395_v49  ;;  %v10651_v53 = vcvt.s32.f32 %v3567_v27  ;;  %v8001_v27 = vld [vmem:[#allocation15 + $0x50] sm:$0xff]  }
 0xcbf   :  { %v3330_v54 = vpop.xlane.xlu1 %3329  ;;  %v10653_v5 = vsel %vm3580_vm3, %v3394_v42, %v3395_v49  ;;  %v8002_v42 = vld [vmem:[#allocation15 + $0x10] sm:$0xff]   ;;  %v8003_v49 = vld [vmem:[#allocation15 + $0x48] sm:$0xff]  }
 0xcc0   :  { %vm3364_vm4 = vcmp.ge.f32.partialorder %v10516_v56, %v3330_v54  ;;  %vm3365_vm5 = vcmp.ge.f32.partialorder %v10518_v29, %v3330_v54  ;;  %3570 = vmin.xlane.f32.xlu1 %v10651_v53  ;;  %v3583_v41 = vshra.s32 %v10653_v5, 16  ;;  %v8004_v54 = vld [vmem:[#allocation15 + $0x8] sm:$0xff]  }
 0xcc1   :  { %v3396_v21 = vsel %vm3364_vm4, %v12421_v45, 256  ;;  %v3397_v1 = vsel %vm3365_vm5, %v12422_v23, 256 }
 0xcc2   :  { %vm3596_vm6 = vcmp.lt.s32.totalorder %v3396_v21, %v3397_v1  ;;  %v10661_v18 = vcvt.s32.f32 %v3583_v41  ;;  %v3406_v41 = vand.u32 65535, %v10544_v39  ;;  %v3438_v39 = vand.u32 65535, %v10564_v37 }
 0xcc3   :  { %v3333_v3 = vpop.xlane.xlu0 %3332  ;;  %v10663_v38 = vsel %vm3596_vm6, %v3396_v21, %v3397_v1  ;;  %v3470_v37 = vand.u32 65535, %v10584_v48 }
 0xcc4   :  { %vm3366_vm9 = vcmp.ge.f32.partialorder %v10522_v28, %v3333_v3  ;;  %vm3367_vm7 = vcmp.ge.f32.partialorder %v10524_v60, %v3333_v3  ;;  %3586 = vmin.xlane.f32.xlu0 %v10661_v18  ;;  %v3599_v56 = vshra.s32 %v10663_v38, 16  ;;  %v3408_v1 = vcvt.s32.f32 %v3406_v41 }
 0xcc5   :  { %v3398_v29 = vsel %vm3366_vm9, %v12421_v45, 256  ;;  %v3399_v63 = vsel %vm3367_vm7, %v12422_v23, 256  ;;  %v3422_v3 = vand.u32 65535, %v10553_v30  ;;  %v3454_v30 = vand.u32 65535, %v10573_v46 }
 0xcc6   :  { %vm3612_vm8 = vcmp.lt.s32.totalorder %v3398_v29, %v3399_v63  ;;  %v10671_v12 = vcvt.s32.f32 %v3599_v56 }
 0xcc7   :  { %v3336_v40 = vpop.xlane.xlu1 %3335  ;;  %v10673_v62 = vsel %vm3612_vm8, %v3398_v29, %v3399_v63  ;;  %v3424_v63 = vcvt.s32.f32 %v3422_v3 }
 0xcc8   :  { %vm3368_vm10 = vcmp.ge.f32.partialorder %v10528_v25, %v3336_v40  ;;  %vm3369_vm11 = vcmp.ge.f32.partialorder %v10530_v7, %v3336_v40  ;;  %3602 = vmin.xlane.f32.xlu1 %v10671_v12  ;;  %v3615_v28 = vshra.s32 %v10673_v62, 16 }
 0xcc9   :  { %v3400_v60 = vsel %vm3368_vm10, %v12421_v45, 256  ;;  %v3401_v10 = vsel %vm3369_vm11, %v12422_v23, 256 }
 0xcca   :  { %vm3628_vm12 = vcmp.lt.s32.totalorder %v3400_v60, %v3401_v10  ;;  %v10681_v6 = vcvt.s32.f32 %v3615_v28 }
 0xccb   :  { %v3339_v20 = vpop.xlane.xlu0 %3338  ;;  %v10683_v34 = vsel %vm3628_vm12, %v3400_v60, %v3401_v10  ;;  %v3440_v60 = vcvt.s32.f32 %v3438_v39 }
 0xccc   :  { %vm3370_vm13 = vcmp.ge.f32.partialorder %v10534_v51, %v3339_v20  ;;  %vm3371_vm14 = vcmp.ge.f32.partialorder %v10536_v13, %v3339_v20  ;;  %3618 = vmin.xlane.f32.xlu0 %v10681_v6  ;;  %v3631_v25 = vshra.s32 %v10683_v34, 16  ;;  %v7991_v13 = vld [vmem:[#allocation15 + $0x78] sm:$0xff]   ;;  %v3456_v20 = vcvt.s32.f32 %v3454_v30 }
 0xccd   :  { %v3402_v7 = vsel %vm3370_vm13, %v12421_v45, 256  ;;  %v3403_v16 = vsel %vm3371_vm14, %v12422_v23, 256  ;;  %7223 = vmatprep.subr.bf16.mxu0 %v7991_v13  ;;  %v8009_v30 = vld [vmem:[#allocation16 + $0x38] sm:$0xff]  }
 0xcce   :  { %vm3644_vm15 = vcmp.lt.s32.totalorder %v3402_v7, %v3403_v16  ;;  %v10691_v22 = vcvt.s32.f32 %v3631_v25  ;;  %7224 = vmatpush3.bf16.msra.mxu0 %v7992_v43  ;;  %v8005_v25 = vld [vmem:[#allocation15 + $0x40] sm:$0xff]   ;;  %7671 = vmatprep.subr.bf16.mxu1 %v8009_v30 }
 0xccf   :  { %v10693_v17 = vsel %vm3644_vm15, %v3402_v7, %v3403_v16  ;;  %7225 = vmatprep.subr.bf16.mxu0 %v7993_v57  ;;  %v8006_v7 = vld [vmem:[#allocation15] sm:$0xff]   ;;  %v3472_v16 = vcvt.s32.f32 %v3470_v37  ;;  %7672 = vmatpush3.bf16.msra.mxu1 %v8009_v30 }
 0xcd0   :  { %3634 = vmin.xlane.f32.xlu1 %v10691_v22  ;;  %v3647_v58 = vshra.s32 %v10693_v17, 16 }
 0xcd2   :  { %v10697_v51 = vcvt.s32.f32 %v3647_v58  ;;  %7226 = vmatpush3.bf16.msra.mxu0 %v7994_v44 }
 0xcd3   :  { %7227 = vmatprep.subr.bf16.mxu0 %v7995_v0 }
 0xcd4   :  { %3650 = vmin.xlane.f32.xlu0 %v10697_v51 }
 0xcd6   :  { %7228 = vmatpush3.bf16.msra.mxu0 %v7996_v2 }
 0xcd7   :  { %7229 = vmatprep.subr.bf16.mxu0 %v7997_v61 }
 0xcda   :  { %7230 = vmatpush3.bf16.msra.mxu0 %v7998_v9 }
 0xcdb   :  { %7231 = vmatprep.subr.bf16.mxu0 %v7999_v31 }
 0xcde   :  { %7232 = vmatpush3.bf16.msra.mxu0 %v8000_v35 }
 0xcdf   :  { %7233 = vmatprep.subr.bf16.mxu0 %v8001_v27 }
 0xce2   :  { %7234 = vmatpush3.bf16.msra.mxu0 %v8002_v42 }
 0xce3   :  { %7235 = vmatprep.subr.bf16.mxu0 %v8003_v49 }
 0xce6   :  { %7236 = vmatpush3.bf16.msra.mxu0 %v8004_v54 }
 0xce7   :  { %7237 = vmatprep.subr.bf16.mxu0 %v8005_v25 }
 0xcea   :  { %7238 = vmatpush3.bf16.msra.mxu0 %v8006_v7 }
 0xd1b   :  { %v10701_v21 = vpop.xlane.xlu1 %3410 }
 0xd1c   :  { %vm3412_vm0 = vcmp.eq.f32.partialorder %v10551_v26, %v10701_v21 }
 0xd1d   :  { %v3413_v56 = vsel %vm3412_vm0, %v3408_v1, inf }
 0xd1e   :  { %3414 = vmin.xlane.f32.xlu1 %v3413_v56 }
 0xd1f   :  { %v10706_v29 = vpop.xlane.xlu0 %3426 }
 0xd20   :  { %vm3428_vm1 = vcmp.eq.f32.partialorder %v10557_v55, %v10706_v29 }
 0xd21   :  { %v3429_v40 = vsel %vm3428_vm1, %v3424_v63, inf }
 0xd22   :  { %3430 = vmin.xlane.f32.xlu0 %v3429_v40 }
 0xd28   :  { %v10711_v28 = vpop.xlane.xlu1 %3442 }
 0xd29   :  { %vm3444_vm2 = vcmp.eq.f32.partialorder %v10571_v14, %v10711_v28  ;;  %v3486_v14 = vand.u32 65535, %v10593_v33  ;;  %v3518_v33 = vand.u32 65535, %v10613_v36  ;;  %v3550_v36 = vand.u32 65535, %v10633_v59 }
 0xd2a   :  { %v3445_v26 = vsel %vm3444_vm2, %v3440_v60, inf  ;;  %v3582_v59 = vand.u32 65535, %v10653_v5  ;;  %v3614_v5 = vand.u32 65535, %v10673_v62  ;;  %v3646_v62 = vand.u32 65535, %v10693_v17  ;;  %v8012_v17 = vld [vmem:[#allocation16 + $0x28] sm:$0xff]  }
 0xd2b   :  { %3446 = vmin.xlane.f32.xlu1 %v3445_v26  ;;  %v3488_v43 = vcvt.s32.f32 %v3486_v14  ;;  %v3520_v2 = vcvt.s32.f32 %v3518_v33  ;;  %v3552_v35 = vcvt.s32.f32 %v3550_v36  ;;  %v8010_v26 = vld [vmem:[#allocation16 + $0x30] sm:$0xff]  }
 0xd2c   :  { %v10716_v10 = vpop.xlane.xlu0 %3458  ;;  %v3584_v54 = vcvt.s32.f32 %v3582_v59  ;;  %v3616_v56 = vcvt.s32.f32 %v3614_v5  ;;  %v3648_v60 = vcvt.s32.f32 %v3646_v62  ;;  %7673 = vmatprep.subr.bf16.mxu1 %v8010_v26 }
 0xd2d   :  { %vm3460_vm3 = vcmp.eq.f32.partialorder %v10579_v8, %v10716_v10  ;;  %v3502_v8 = vand.u32 65535, %v10603_v32  ;;  %v3534_v32 = vand.u32 65535, %v10623_v15  ;;  %v3566_v15 = vand.u32 65535, %v10643_v50  ;;  %7674 = vmatpush3.bf16.msra.mxu1 %v8010_v26 }
 0xd2e   :  { %v3461_v55 = vsel %vm3460_vm3, %v3456_v20, inf  ;;  %v3598_v50 = vand.u32 65535, %v10663_v38  ;;  %v3630_v38 = vand.u32 65535, %v10683_v34  ;;  %7675 = vmatprep.subr.bf16.mxu1 %v8012_v17  ;;  %v3417_v20 = vcvt.f32.s32 %v10701_v21  ;;  %v8008_v21 = vld [vmem:[#allocation18 + $0x30] sm:$0xff]  }
 0xd2f   :  { %3462 = vmin.xlane.f32.xlu0 %v3461_v55  ;;  %v3504_v44 = vcvt.s32.f32 %v3502_v8  ;;  %v3536_v9 = vcvt.s32.f32 %v3534_v32  ;;  %v3568_v42 = vcvt.s32.f32 %v3566_v15  ;;  %v12423_v8 = vmov 1.0|1.0  }
 0xd30   :  { %v3600_v1 = vcvt.s32.f32 %v3598_v50  ;;  %v3632_v40 = vcvt.s32.f32 %v3630_v38  ;;  %v3418_v55 = vshll.u32 %v3417_v20, 16 }
 0xd31   :  { %v10721_v46 = vpop.xlane.xlu1 %3474  ;;  %7676 = vmatpush3.bf16.msra.mxu1 %v8012_v17 }
 0xd32   :  { %vm3476_vm4 = vcmp.eq.f32.partialorder %v10591_v24, %v10721_v46 }
 0xd33   :  { %v3477_v58 = vsel %vm3476_vm4, %v3472_v16, inf }
 0xd34   :  { %3478 = vmin.xlane.f32.xlu1 %v3477_v58 }
 0xd35   :  { %v10726_v13 = vpop.xlane.xlu0 %3490 }
 0xd36   :  { %vm3492_vm5 = vcmp.eq.f32.partialorder %v10601_v47, %v10726_v13  ;;  %v3497_v15 = vcvt.f32.s32 %v10726_v13 }
 0xd37   :  { %v3493_v48 = vsel %vm3492_vm5, %v3488_v43, inf }
 0xd38   :  { %3494 = vmin.xlane.f32.xlu0 %v3493_v48  ;;  %v3498_v59 = vshll.u32 %v3497_v15, 16  ;;  %v8018_v15 = vld [vmem:[#allocation18 + $0x10] sm:$0xff]  }
 0xd39   :  { %v10731_v57 = vpop.xlane.xlu1 %3506 }
 0xd3a   :  { %vm3508_vm6 = vcmp.eq.f32.partialorder %v10611_v11, %v10731_v57  ;;  %v3513_v50 = vcvt.f32.s32 %v10731_v57 }
 0xd3b   :  { %v3509_v24 = vsel %vm3508_vm6, %v3504_v44, inf  ;;  %v3465_v44 = vcvt.f32.s32 %v10716_v10 }
 0xd3c   :  { %3510 = vmin.xlane.f32.xlu1 %v3509_v24  ;;  %v8011_v24 = vld [vmem:[#allocation18 + $0x28] sm:$0xff]   ;;  %v3514_v13 = vshll.u32 %v3513_v50, 16 }
 0xd3d   :  { %v10736_v0 = vpop.xlane.xlu0 %3522 }
 0xd3e   :  { %vm3524_vm9 = vcmp.eq.f32.partialorder %v10621_v52, %v10736_v0 }
 0xd3f   :  { %v3525_v47 = vsel %vm3524_vm9, %v3520_v2, inf }
 0xd40   :  { %3526 = vmin.xlane.f32.xlu0 %v3525_v47  ;;  %v3466_v47 = vshll.u32 %v3465_v44, 16 }
 0xd41   :  { %v10741_v61 = vpop.xlane.xlu1 %3538 }
 0xd42   :  { %vm3540_vm7 = vcmp.eq.f32.partialorder %v10631_v19, %v10741_v61 }
 0xd43   :  { %v3541_v11 = vsel %vm3540_vm7, %v3536_v9, inf }
 0xd44   :  { %3542 = vmin.xlane.f32.xlu1 %v3541_v11  ;;  %v8014_v11 = vld [vmem:[#allocation18 + $0x20] sm:$0xff]  }
 0xd45   :  { %v10746_v31 = vpop.xlane.xlu0 %3554 }
 0xd46   :  { %vm3556_vm8 = vcmp.eq.f32.partialorder %v10641_v4, %v10746_v31  ;;  %v3561_v62 = vcvt.f32.s32 %v10746_v31 }
 0xd47   :  { %v3557_v52 = vsel %vm3556_vm8, %v3552_v35, inf  ;;  %v3481_v35 = vcvt.f32.s32 %v10721_v46 }
 0xd48   :  { %3558 = vmin.xlane.f32.xlu0 %v3557_v52 }
 0xd49   :  { %v10751_v27 = vpop.xlane.xlu1 %3570  ;;  %v3482_v46 = vshll.u32 %v3481_v35, 16  ;;  %v8016_v35 = vld [vmem:[#allocation18 + $0x18] sm:$0xff]  }
 0xd4a   :  { %vm3572_vm10 = vcmp.eq.f32.partialorder %v10651_v53, %v10751_v27  ;;  %v3577_v26 = vcvt.f32.s32 %v10751_v27 }
 0xd4b   :  { %v3573_v19 = vsel %vm3572_vm10, %v3568_v42, inf }
 0xd4c   :  { %3574 = vmin.xlane.f32.xlu1 %v3573_v19 }
 0xd4d   :  { %v10756_v49 = vpop.xlane.xlu0 %3586 }
 0xd4e   :  { %vm3588_vm11 = vcmp.eq.f32.partialorder %v10661_v18, %v10756_v49 }
 0xd4f   :  { %v3589_v4 = vsel %vm3588_vm11, %v3584_v54, inf }
 0xd50   :  { %3590 = vmin.xlane.f32.xlu0 %v3589_v4 }
 0xd51   :  { %v10761_v41 = vpop.xlane.xlu1 %3602 }
 0xd52   :  { %vm3604_vm12 = vcmp.eq.f32.partialorder %v10671_v12, %v10761_v41 }
 0xd53   :  { %v3605_v53 = vsel %vm3604_vm12, %v3600_v1, inf  ;;  %v3529_v1 = vcvt.f32.s32 %v10736_v0 }
 0xd54   :  { %3606 = vmin.xlane.f32.xlu1 %v3605_v53 }
 0xd55   :  { %v10766_v3 = vpop.xlane.xlu0 %3618 }
 0xd56   :  { %vm3620_vm13 = vcmp.eq.f32.partialorder %v10681_v6, %v10766_v3  ;;  %v8007_v6 = vld [vmem:[#allocation18 + $0x38] sm:$0xff]  }
 0xd57   :  { %v3621_v18 = vsel %vm3620_vm13, %v3616_v56, inf  ;;  %7703 = vmatprep.subr.bf16.mxu0 %v8007_v6  ;;  %v3530_v56 = vshll.u32 %v3529_v1, 16 }
 0xd58   :  { %3622 = vmin.xlane.f32.xlu0 %v3621_v18  ;;  %v3545_v18 = vcvt.f32.s32 %v10741_v61 }
 0xd59   :  { %v10771_v63 = vpop.xlane.xlu1 %3634 }
 0xd5a   :  { %vm3636_vm14 = vcmp.eq.f32.partialorder %v10691_v22, %v10771_v63  ;;  %v8013_v22 = vld [vmem:[#allocation16 + $0x20] sm:$0xff]   ;;  %v3641_v44 = vcvt.f32.s32 %v10771_v63 }
 0xd5b   :  { %v3637_v12 = vsel %vm3636_vm14, %v3632_v40, inf  ;;  %7677 = vmatprep.subr.bf16.mxu1 %v8013_v22 }
 0xd5c   :  { %3638 = vmin.xlane.f32.xlu1 %v3637_v12  ;;  %7678 = vmatpush3.bf16.msra.mxu1 %v8013_v22  ;;  %v3593_v22 = vcvt.f32.s32 %v10756_v49 }
 0xd5d   :  { %v10776_v39 = vpop.xlane.xlu0 %3650 }
 0xd5e   :  { %vm3652_vm15 = vcmp.eq.f32.partialorder %v10697_v51, %v10776_v39  ;;  %v3433_v51 = vcvt.f32.s32 %v10706_v29  ;;  %v3449_v29 = vcvt.f32.s32 %v10711_v28 }
 0xd5f   :  { %v3653_v34 = vsel %vm3652_vm15, %v3648_v60, inf }
 0xd60   :  { %3654 = vmin.xlane.f32.xlu0 %v3653_v34  ;;  %v3434_v16 = vshll.u32 %v3433_v51, 16  ;;  %v3450_v2 = vshll.u32 %v3449_v29, 16  ;;  %v3546_v34 = vshll.u32 %v3545_v18, 16  ;;  %v3578_v51 = vshll.u32 %v3577_v26, 16 }
 0xda7   :  { %v3415_v25 = vpop.xlane.xlu1 %3414 }
 0xda8   :  { %v3416_v7 = vcvt.f32.s32 %v3415_v25 }
 0xdaa   :  { %v3419_v14 = vadd.s32 %v3418_v55, %v3416_v7  ;;  %v3594_v7 = vshll.u32 %v3593_v22, 16 }
 0xdab   :  { %v3431_v37 = vpop.xlane.xlu0 %3430 }
 0xdac   :  { %v3432_v58 = vcvt.f32.s32 %v3431_v37  ;;  %vm3660_vm0 = vcmp.eq.s32.totalorder %v12421_v45, %v3419_v14  ;;  %vm3661_vm4 = vcmp.eq.s32.totalorder %v12422_v23, %v3419_v14  ;;  %v3609_v37 = vcvt.f32.s32 %v10761_v41 }
 0xdad   :  { %v3625_v14 = vcvt.f32.s32 %v10766_v3 }
 0xdae   :  { %v3435_v43 = vadd.s32 %v3434_v16, %v3432_v58 }
 0xdaf   :  { %v3626_v29 = vshll.u32 %v3625_v14, 16 }
 0xdb0   :  { %vm3662_vm1 = vcmp.eq.s32.totalorder %v12421_v45, %v3435_v43  ;;  %vm3663_vm2 = vcmp.eq.s32.totalorder %v12422_v23, %v3435_v43 }
 0xdb1   :  { %vm6868_vm3 = vmpackc.low %vm3662_vm1, %vm3660_vm0 }
 0xdb2   :  { %vm6866_vm5 = vmpackc.low %vm3663_vm2, %vm3661_vm4 }
 0xdb3   :  { %6867 = vmatprep.mubr.msk.bf16.mxu0 %vm6866_vm5, %v12423_v8 }
 0xdb4   :  { %v3447_v48 = vpop.xlane.xlu1 %3446  ;;  %6869 = vmatmul.mubr.msk.bf16.vlgmr.msra.gmra.mxu0 %vm6868_vm3, %v12423_v8 }
 0xdb5   :  { %v3448_v33 = vcvt.f32.s32 %v3447_v48  ;;  %7704 = vmatpush3.bf16.msra.mxu0 %v8007_v6  ;;  %v3562_v6 = vshll.u32 %v3561_v62, 16  ;;  %v8024_v62 = vld [vmem:[#allocation19 + $0x30] sm:$0xff]  }
 0xdb6   :  { %7705 = vmatprep.subr.bf16.mxu0 %v8008_v21 }
 0xdb7   :  { %v3451_v9 = vadd.s32 %v3450_v2, %v3448_v33 }
 0xdb8   :  { %v3463_v32 = vpop.xlane.xlu0 %3462 }
 0xdb9   :  { %v3464_v36 = vcvt.f32.s32 %v3463_v32  ;;  %7706 = vmatpush3.bf16.msra.mxu0 %v8008_v21  ;;  %vm3665_vm6 = vcmp.eq.s32.totalorder %v12422_v23, %v3451_v9  ;;  %vm3664_vm10 = vcmp.eq.s32.totalorder %v12421_v45, %v3451_v9  ;;  %v3610_v21 = vshll.u32 %v3609_v37, 16  ;;  %v8028_v37 = vld [vmem:[#allocation19 + $0x10] sm:$0xff]  }
 0xdba   :  { %7707 = vmatprep.subr.bf16.mxu0 %v8011_v24 }
 0xdbb   :  { %v3467_v28 = vadd.s32 %v3466_v47, %v3464_v36  ;;  %v3642_v47 = vshll.u32 %v3641_v44, 16 }
 0xdbd   :  { %vm3667_vm9 = vcmp.eq.s32.totalorder %v12422_v23, %v3467_v28  ;;  %vm3666_vm7 = vcmp.eq.s32.totalorder %v12421_v45, %v3467_v28  ;;  %7708 = vmatpush3.bf16.msra.mxu0 %v8011_v24  ;;  %v3479_v10 = vpop.xlane.xlu1 %3478  ;;  %v3657_v24 = vcvt.f32.s32 %v10776_v39  ;;  %v8015_v28 = vld [vmem:[#allocation16 + $0x18] sm:$0xff]  }
 0xdbe   :  { %vm6870_vm8 = vmpackc.low %vm3667_vm9, %vm3665_vm6  ;;  %7709 = vmatprep.subr.bf16.mxu0 %v8014_v11  ;;  %v3480_v52 = vcvt.f32.s32 %v3479_v10  ;;  %7679 = vmatprep.subr.bf16.mxu1 %v8015_v28  ;;  %v8017_v10 = vld [vmem:[#allocation16 + $0x10] sm:$0xff]  }
 0xdbf   :  { %6871 = vmatprep.mubr.msk.bf16.mxu0 %vm6870_vm8, %v12423_v8  ;;  %vm6872_vm11 = vmpackc.low %vm3666_vm7, %vm3664_vm10  ;;  %v3658_v9 = vshll.u32 %v3657_v24, 16  ;;  %7680 = vmatpush3.bf16.msra.mxu1 %v8015_v28 }
 0xdc0   :  { %6873 = vmatmul.mubr.msk.bf16.gmra.mxu0 %vm6872_vm11, %v12423_v8  ;;  %v3483_v19 = vadd.s32 %v3482_v46, %v3480_v52  ;;  %7681 = vmatprep.subr.bf16.mxu1 %v8017_v10  ;;  %v8019_v52 = vld [vmem:[#allocation16 + $0x8] sm:$0xff]  }
 0xdc1   :  { %7710 = vmatpush3.bf16.msra.mxu0 %v8014_v11  ;;  %v3495_v42 = vpop.xlane.xlu0 %3494  ;;  %v8020_v46 = vld [vmem:[#allocation18 + $0x8] sm:$0xff]  }
 0xdc2   :  { %v3496_v54 = vcvt.f32.s32 %v3495_v42  ;;  %vm3669_vm12 = vcmp.eq.s32.totalorder %v12422_v23, %v3483_v19  ;;  %vm3668_vm0 = vcmp.eq.s32.totalorder %v12421_v45, %v3483_v19  ;;  %7711 = vmatprep.subr.bf16.mxu0 %v8016_v35  ;;  %v8021_v42 = vld [vmem:[#allocation16] sm:$0xff]  }
 0xdc3   :  { %7682 = vmatpush3.bf16.msra.mxu1 %v8017_v10 }
 0xdc4   :  { %v3499_v4 = vadd.s32 %v3498_v59, %v3496_v54  ;;  %7683 = vmatprep.subr.bf16.mxu1 %v8019_v52  ;;  %v8023_v59 = vld [vmem:[#allocation19 + $0x38] sm:$0xff]  }
 0xdc5   :  { %v3511_v5 = vpop.xlane.xlu1 %3510  ;;  %7712 = vmatpush3.bf16.msra.mxu0 %v8016_v35 }
 0xdc6   :  { %v3512_v53 = vcvt.f32.s32 %v3511_v5  ;;  %vm3671_vm13 = vcmp.eq.s32.totalorder %v12422_v23, %v3499_v4  ;;  %vm3670_vm14 = vcmp.eq.s32.totalorder %v12421_v45, %v3499_v4  ;;  %7713 = vmatprep.subr.bf16.mxu0 %v8018_v15 }
 0xdc7   :  { %vm6874_vm15 = vmpackc.low %vm3671_vm13, %vm3669_vm12  ;;  %7684 = vmatpush3.bf16.msra.mxu1 %v8019_v52 }
 0xdc8   :  { %6875 = vmatprep.mubr.msk.bf16.mxu0 %vm6874_vm15, %v12423_v8  ;;  %vm6876_vm1 = vmpackc.low %vm3670_vm14, %vm3668_vm0  ;;  %v3515_v0 = vadd.s32 %v3514_v13, %v3512_v53  ;;  %7685 = vmatprep.subr.bf16.mxu1 %v8021_v42 }
 0xdc9   :  { %6877 = vmatmul.mubr.msk.bf16.gmra.mxu0 %vm6876_vm1, %v12423_v8  ;;  %v3527_v57 = vpop.xlane.xlu0 %3526 }
 0xdca   :  { %v3528_v38 = vcvt.f32.s32 %v3527_v57  ;;  %vm3673_vm2 = vcmp.eq.s32.totalorder %v12422_v23, %v3515_v0  ;;  %vm3672_vm6 = vcmp.eq.s32.totalorder %v12421_v45, %v3515_v0  ;;  %7714 = vmatpush3.bf16.msra.mxu0 %v8018_v15 }
 0xdcb   :  { %7715 = vmatprep.subr.bf16.mxu0 %v8020_v46  ;;  %7686 = vmatpush3.bf16.msra.mxu1 %v8021_v42 }
 0xdcc   :  { %v3531_v40 = vadd.s32 %v3530_v56, %v3528_v38  ;;  %7735 = vmatprep.subr.bf16.mxu1 %v8023_v59 }
 0xdcd   :  { %v3543_v12 = vpop.xlane.xlu1 %3542 }
 0xdce   :  { %v3544_v60 = vcvt.f32.s32 %v3543_v12  ;;  %vm3675_vm3 = vcmp.eq.s32.totalorder %v12422_v23, %v3531_v40  ;;  %vm3674_vm4 = vcmp.eq.s32.totalorder %v12421_v45, %v3531_v40  ;;  %7716 = vmatpush3.bf16.msra.mxu0 %v8020_v46 }
 0xdcf   :  { %vm6878_vm5 = vmpackc.low %vm3675_vm3, %vm3673_vm2 }
 0xdd0   :  { %6879 = vmatprep.mubr.msk.bf16.mxu0 %vm6878_vm5, %v12423_v8  ;;  %vm6880_vm9 = vmpackc.low %vm3674_vm4, %vm3672_vm6  ;;  %v3547_v31 = vadd.s32 %v3546_v34, %v3544_v60  ;;  %v8025_v34 = vld [vmem:[#allocation19 + $0x28] sm:$0xff]  }
 0xdd1   :  { %6881 = vmatmul.mubr.msk.bf16.gmra.mxu0 %vm6880_vm9, %v12423_v8  ;;  %v3559_v61 = vpop.xlane.xlu0 %3558 }
 0xdd2   :  { %v3560_v30 = vcvt.f32.s32 %v3559_v61  ;;  %vm3677_vm8 = vcmp.eq.s32.totalorder %v12422_v23, %v3547_v31  ;;  %vm3676_vm11 = vcmp.eq.s32.totalorder %v12421_v45, %v3547_v31 }
 0xdd4   :  { %v3563_v17 = vadd.s32 %v3562_v6, %v3560_v30 }
 0xdd5   :  { %v3575_v20 = vpop.xlane.xlu1 %3574 }
 0xdd6   :  { %vm3678_vm7 = vcmp.eq.s32.totalorder %v12421_v45, %v3563_v17  ;;  %v3576_v25 = vcvt.f32.s32 %v3575_v20  ;;  %vm3679_vm10 = vcmp.eq.s32.totalorder %v12422_v23, %v3563_v17  ;;  %v8026_v17 = vld [vmem:[#allocation19 + $0x20] sm:$0xff]  }
 0xdd7   :  { %vm6882_vm12 = vmpackc.low %vm3679_vm10, %vm3677_vm8 }
 0xdd8   :  { %6883 = vmatprep.mubr.msk.bf16.mxu0 %vm6882_vm12, %v12423_v8  ;;  %vm6884_vm13 = vmpackc.low %vm3678_vm7, %vm3676_vm11  ;;  %v3579_v49 = vadd.s32 %v3578_v51, %v3576_v25  ;;  %v8027_v25 = vld [vmem:[#allocation19 + $0x18] sm:$0xff]  }
 0xdd9   :  { %6885 = vmatmul.mubr.msk.bf16.gmra.mxu0 %vm6884_vm13, %v12423_v8  ;;  %v3591_v27 = vpop.xlane.xlu0 %3590 }
 0xdda   :  { %v3592_v55 = vcvt.f32.s32 %v3591_v27  ;;  %vm3681_vm15 = vcmp.eq.s32.totalorder %v12422_v23, %v3579_v49  ;;  %vm3680_vm1 = vcmp.eq.s32.totalorder %v12421_v45, %v3579_v49 }
 0xddc   :  { %v3595_v16 = vadd.s32 %v3594_v7, %v3592_v55 }
 0xddd   :  { %v3607_v58 = vpop.xlane.xlu1 %3606 }
 0xdde   :  { %vm3682_vm14 = vcmp.eq.s32.totalorder %v12421_v45, %v3595_v16  ;;  %v3608_v43 = vcvt.f32.s32 %v3607_v58  ;;  %vm3683_vm0 = vcmp.eq.s32.totalorder %v12422_v23, %v3595_v16  ;;  %v8029_v58 = vld [vmem:[#allocation19 + $0x8] sm:$0xff]  }
 0xddf   :  { %vm6886_vm2 = vmpackc.low %vm3683_vm0, %vm3681_vm15 }
 0xde0   :  { %6887 = vmatprep.mubr.msk.bf16.mxu0 %vm6886_vm2, %v12423_v8  ;;  %vm6888_vm3 = vmpackc.low %vm3682_vm14, %vm3680_vm1  ;;  %v3611_v3 = vadd.s32 %v3610_v21, %v3608_v43 }
 0xde1   :  { %6889 = vmatmul.mubr.msk.bf16.gmra.mxu0 %vm6888_vm3, %v12423_v8  ;;  %v3623_v41 = vpop.xlane.xlu0 %3622 }
 0xde2   :  { %v3624_v48 = vcvt.f32.s32 %v3623_v41  ;;  %vm3685_vm5 = vcmp.eq.s32.totalorder %v12422_v23, %v3611_v3  ;;  %vm3684_vm9 = vcmp.eq.s32.totalorder %v12421_v45, %v3611_v3 }
 0xde4   :  { %v3627_v33 = vadd.s32 %v3626_v29, %v3624_v48  ;;  %v8030_v48 = vld [vmem:[#allocation19] sm:$0xff]  }
 0xde5   :  { %v3639_v2 = vpop.xlane.xlu1 %3638 }
 0xde6   :  { %vm3686_vm4 = vcmp.eq.s32.totalorder %v12421_v45, %v3627_v33  ;;  %v3640_v32 = vcvt.f32.s32 %v3639_v2  ;;  %vm3687_vm6 = vcmp.eq.s32.totalorder %v12422_v23, %v3627_v33 }
 0xde7   :  { %vm6890_vm7 = vmpackc.low %vm3687_vm6, %vm3685_vm5 }
 0xde8   :  { %6891 = vmatprep.mubr.msk.bf16.mxu0 %vm6890_vm7, %v12423_v8  ;;  %vm6892_vm8 = vmpackc.low %vm3686_vm4, %vm3684_vm9  ;;  %v3643_v39 = vadd.s32 %v3642_v47, %v3640_v32 }
 0xde9   :  { %6893 = vmatmul.mubr.msk.bf16.gmra.mxu0 %vm6892_vm8, %v12423_v8  ;;  %v3655_v63 = vpop.xlane.xlu0 %3654 }
 0xdea   :  { %v3656_v36 = vcvt.f32.s32 %v3655_v63  ;;  %vm3689_vm11 = vcmp.eq.s32.totalorder %v12422_v23, %v3643_v39  ;;  %vm3688_vm13 = vcmp.eq.s32.totalorder %v12421_v45, %v3643_v39 }
 0xdec   :  { %v3659_v11 = vadd.s32 %v3658_v9, %v3656_v36 }
 0xdee   :  { %vm3690_vm10 = vcmp.eq.s32.totalorder %v12421_v45, %v3659_v11  ;;  %vm3691_vm12 = vcmp.eq.s32.totalorder %v12422_v23, %v3659_v11 }
 0xdef   :  { %vm6894_vm14 = vmpackc.low %vm3691_vm12, %vm3689_vm11 }
 0xdf0   :  { %6895 = vmatprep.mubr.msk.bf16.mxu0 %vm6894_vm14, %v12423_v8  ;;  %vm6896_vm15 = vmpackc.low %vm3690_vm10, %vm3688_vm13 }
 0xdf1   :  { %6897 = vmatmul.mubr.msk.bf16.gmra.mxu0 %vm6896_vm15, %v12423_v8  ;;  %v8022_v8 = vld [vmem:[#allocation18] sm:$0xff]  }
 0xdf2   :  { %7717 = vmatprep.subr.bf16.mxu0 %v8022_v8 }
 0xdf3   :  { %7718 = vmatpush3.bf16.msra.mxu0 %v8022_v8 }
 0xe74   :  { %v7239_v19 = vpop.f32.mrf.mxu0 }
 0xe76   :  { %v7240_v54 = vpop.f32.mrf.mxu0 }
 0xe77   :  { %v10844_v1 = vadd.f32 %v7240_v54, %v7239_v19 }
 0xe78   :  { %v7242_v50 = vpop.f32.mrf.mxu0 }
 0xe7a   :  { %v7243_v4 = vpop.f32.mrf.mxu0 }
 0xe7b   :  { %v10846_v5 = vadd.f32 %v7243_v4, %v7242_v50 }
 0xe7d   :  { %v10850_v53 = vpack.c.bf16 %v10846_v5, %v10844_v1 }
 0xe7f   :  { %7687 = vmatprep.mubr.bf16.mxu1 %v10850_v53  ;;  %7719 = vmatprep.mubr.bf16.mxu0 %v10850_v53 }
 0xe80   :  { %v7245_v13 = vpop.f32.mrf.mxu0 }
 0xe82   :  { %v7246_v57 = vpop.f32.mrf.mxu0 }
 0xe83   :  { %v10854_v38 = vadd.f32 %v7246_v57, %v7245_v13 }
 0xe84   :  { %v7248_v56 = vpop.f32.mrf.mxu0 }
 0xe86   :  { %v7249_v0 = vpop.f32.mrf.mxu0 }
 0xe87   :  { %v10856_v18 = vadd.f32 %v7249_v0, %v7248_v56 }
 0xe89   :  { %v10860_v40 = vpack.c.bf16 %v10856_v18, %v10854_v38  ;;  %v7251_v12 = vpop.f32.mrf.mxu0 }
 0xe8b   :  { %7688 = vmatmul.mubr.bf16.vlgmr.msra.gmra.mxu1 %v10860_v40  ;;  %7720 = vmatmul.mubr.bf16.vlgmr.msra.gmra.mxu0 %v10860_v40  ;;  %v7252_v60 = vpop.f32.mrf.mxu0 }
 0xe8c   :  { %7736 = vmatpush3.bf16.msra.mxu1 %v8023_v59  ;;  %v10864_v31 = vadd.f32 %v7252_v60, %v7251_v12 }
 0xe8d   :  { %7737 = vmatprep.subr.bf16.mxu1 %v8024_v62  ;;  %v7254_v61 = vpop.f32.mrf.mxu0 }
 0xe8f   :  { %v7255_v6 = vpop.f32.mrf.mxu0 }
 0xe90   :  { %7738 = vmatpush3.bf16.msra.mxu1 %v8024_v62  ;;  %v10866_v30 = vadd.f32 %v7255_v6, %v7254_v61 }
 0xe91   :  { %7739 = vmatprep.subr.bf16.mxu1 %v8025_v34  ;;  %v7257_v26 = vpop.f32.mrf.mxu0 }
 0xe92   :  { %v10870_v22 = vpack.c.bf16 %v10866_v30, %v10864_v31 }
 0xe93   :  { %v7258_v20 = vpop.f32.mrf.mxu0 }
 0xe94   :  { %7740 = vmatpush3.bf16.msra.mxu1 %v8025_v34  ;;  %7691 = vmatprep.mubr.bf16.mxu1 %v10870_v22  ;;  %v10874_v7 = vadd.f32 %v7258_v20, %v7257_v26 }
 0xe95   :  { %7723 = vmatprep.mubr.bf16.mxu0 %v10870_v22  ;;  %v7260_v51 = vpop.f32.mrf.mxu0  ;;  %7741 = vmatprep.subr.bf16.mxu1 %v8026_v17 }
 0xe97   :  { %v7261_v27 = vpop.f32.mrf.mxu0 }
 0xe98   :  { %7742 = vmatpush3.bf16.msra.mxu1 %v8026_v17  ;;  %v10876_v49 = vadd.f32 %v7261_v27, %v7260_v51 }
 0xe99   :  { %7743 = vmatprep.subr.bf16.mxu1 %v8027_v25  ;;  %v7263_v55 = vpop.f32.mrf.mxu0 }
 0xe9a   :  { %v3968_v16 = vpack.c.bf16 %v10876_v49, %v10874_v7 }
 0xe9b   :  { %v7264_v14 = vpop.f32.mrf.mxu0 }
 0xe9c   :  { %7744 = vmatpush3.bf16.msra.mxu1 %v8027_v25  ;;  %7724 = vmatmul.mubr.bf16.gmra.mxu0 %v3968_v16  ;;  %v10880_v41 = vadd.f32 %v7264_v14, %v7263_v55 }
 0xe9d   :  { %7692 = vmatmul.mubr.bf16.gmra.mxu1 %v3968_v16  ;;  %v7266_v43 = vpop.f32.mrf.mxu0  ;;  %7745 = vmatprep.subr.bf16.mxu1 %v8028_v37 }
 0xe9f   :  { %v7267_v21 = vpop.f32.mrf.mxu0 }
 0xea0   :  { %7746 = vmatpush3.bf16.msra.mxu1 %v8028_v37  ;;  %v10882_v29 = vadd.f32 %v7267_v21, %v7266_v43 }
 0xea1   :  { %7747 = vmatprep.subr.bf16.mxu1 %v8029_v58  ;;  %v7269_v3 = vpop.f32.mrf.mxu0 }
 0xea2   :  { %v3969_v44 = vpack.c.bf16 %v10882_v29, %v10880_v41 }
 0xea3   :  { %v7270_v33 = vpop.f32.mrf.mxu0 }
 0xea4   :  { %7748 = vmatpush3.bf16.msra.mxu1 %v8029_v58  ;;  %7695 = vmatprep.mubr.bf16.mxu1 %v3969_v44  ;;  %v10886_v32 = vadd.f32 %v7270_v33, %v7269_v3 }
 0xea5   :  { %7727 = vmatprep.mubr.bf16.mxu0 %v3969_v44  ;;  %v7272_v24 = vpop.f32.mrf.mxu0  ;;  %7749 = vmatprep.subr.bf16.mxu1 %v8030_v48 }
 0xea7   :  { %v7273_v2 = vpop.f32.mrf.mxu0 }
 0xea8   :  { %7750 = vmatpush3.bf16.msra.mxu1 %v8030_v48  ;;  %v10888_v47 = vadd.f32 %v7273_v2, %v7272_v24 }
 0xea9   :  { %v7275_v63 = vpop.f32.mrf.mxu0 }
 0xeaa   :  { %v3970_v9 = vpack.c.bf16 %v10888_v47, %v10886_v32 }
 0xeab   :  { %v7276_v39 = vpop.f32.mrf.mxu0 }
 0xeac   :  { %7696 = vmatmul.mubr.bf16.gmra.mxu1 %v3970_v9  ;;  %7728 = vmatmul.mubr.bf16.gmra.mxu0 %v3970_v9  ;;  %v10892_v28 = vadd.f32 %v7276_v39, %v7275_v63 }
 0xead   :  { %v7278_v36 = vpop.f32.mrf.mxu0 }
 0xeaf   :  { %v7279_v11 = vpop.f32.mrf.mxu0 }
 0xeb0   :  { %v10894_v35 = vadd.f32 %v7279_v11, %v7278_v36 }
 0xeb1   :  { %v7281_v10 = vpop.f32.mrf.mxu0 }
 0xeb2   :  { %v3971_v15 = vpack.c.bf16 %v10894_v35, %v10892_v28 }
 0xeb3   :  { %v7282_v52 = vpop.f32.mrf.mxu0 }
 0xeb4   :  { %7699 = vmatprep.mubr.bf16.mxu1 %v3971_v15  ;;  %7731 = vmatprep.mubr.bf16.mxu0 %v3971_v15  ;;  %v10898_v8 = vadd.f32 %v7282_v52, %v7281_v10 }
 0xeb5   :  { %v7284_v46 = vpop.f32.mrf.mxu0 }
 0xeb7   :  { %v7285_v42 = vpop.f32.mrf.mxu0 }
 0xeb8   :  { %v10900_v59 = vadd.f32 %v7285_v42, %v7284_v46 }
 0xeba   :  { %v3972_v19 = vpack.c.bf16 %v10900_v59, %v10898_v8 }
 0xebc   :  { %7700 = vmatmul.mubr.bf16.gmra.mxu1 %v3972_v19  ;;  %7732 = vmatmul.mubr.bf16.gmra.mxu0 %v3972_v19 }
 0xebd   :  { %7751 = vmatprep.mubr.bf16.mxu1 %v10850_v53 }
 0xec4   :  { %7752 = vmatmul.mubr.bf16.vlgmr.msra.gmra.mxu1 %v10860_v40 }
 0xec5   :  { %7755 = vmatprep.mubr.bf16.mxu1 %v10870_v22 }
 0xecc   :  { %7756 = vmatmul.mubr.bf16.gmra.mxu1 %v3968_v16 }
 0xecd   :  { %7759 = vmatprep.mubr.bf16.mxu1 %v3969_v44 }
 0xed4   :  { %7760 = vmatmul.mubr.bf16.gmra.mxu1 %v3970_v9 }
 0xed5   :  { %7763 = vmatprep.mubr.bf16.mxu1 %v3971_v15 }
 0xedc   :  { %7764 = vmatmul.mubr.bf16.gmra.mxu1 %v3972_v19 }
 0xf4b   :  { %v10907_v54 = vpop.f32.mrf.mxu1  ;;  %v7721_v50 = vpop.f32.mrf.mxu0 }
 0xf4d   :  { %v4055_v4 = vpop.f32.mrf.mxu1  ;;  %v4200_v13 = vpop.f32.mrf.mxu0 }
 0xf4f   :  { %v10909_v57 = vpop.f32.mrf.mxu1  ;;  %v7722_v56 = vpop.f32.mrf.mxu0 }
 0xf50   :  { %v4409_v53 = vpack.c.bf16 %v10909_v57, %v10907_v54  ;;  %v10913_v0 = vpack.c.bf16 %v7722_v56, %v7721_v50 }
 0xf51   :  { %v4058_v40 = vpop.f32.mrf.mxu1  ;;  %v4203_v62 = vpop.f32.mrf.mxu0 }
 0xf52   :  { %v4408_v12 = vpack.c.bf16 %v4058_v40, %v4055_v4  ;;  %v10915_v60 = vpack.c.bf16 %v4203_v62, %v4200_v13 }
 0xf54   :  { %7783 = vmatprep.mubr.bf16.mxu0 %v4408_v12 }
 0xf5c   :  { %v7725_v6 = vpop.f32.mrf.mxu0 }
 0xf5d   :  { %v10917_v34 = vpop.f32.mrf.mxu1 }
 0xf5e   :  { %v4216_v25 = vpop.f32.mrf.mxu0 }
 0xf5f   :  { %v10919_v61 = vpop.f32.mrf.mxu1 }
 0xf60   :  { %v7726_v51 = vpop.f32.mrf.mxu0 }
 0xf61   :  { %v10921_v26 = vpop.f32.mrf.mxu1  ;;  %v4419_v52 = vpack.c.bf16 %v7726_v51, %v7725_v6 }
 0xf62   :  { %v4219_v27 = vpop.f32.mrf.mxu0 }
 0xf63   :  { %v10925_v22 = vpop.f32.mrf.mxu1 }
 0xf64   :  { %v4410_v20 = vpack.c.bf16 %v10925_v22, %v10919_v61 }
 0xf6c   :  { %v10929_v55 = vpop.f32.mrf.mxu1  ;;  %v7729_v37 = vpop.f32.mrf.mxu0 }
 0xf6e   :  { %v10931_v16 = vpop.f32.mrf.mxu1  ;;  %v4232_v43 = vpop.f32.mrf.mxu0 }
 0xf70   :  { %v10933_v14 = vpop.f32.mrf.mxu1  ;;  %v7730_v48 = vpop.f32.mrf.mxu0 }
 0xf71   :  { %v4421_v13 = vpack.c.bf16 %v7730_v48, %v7729_v37 }
 0xf72   :  { %v10937_v21 = vpop.f32.mrf.mxu1  ;;  %v4235_v44 = vpop.f32.mrf.mxu0 }
 0xf7c   :  { %v10941_v33 = vpop.f32.mrf.mxu1  ;;  %v7733_v24 = vpop.f32.mrf.mxu0 }
 0xf7e   :  { %v10943_v2 = vpop.f32.mrf.mxu1  ;;  %v4248_v63 = vpop.f32.mrf.mxu0 }
 0xf80   :  { %v10945_v9 = vpop.f32.mrf.mxu1  ;;  %v7734_v39 = vpop.f32.mrf.mxu0 }
 0xf81   :  { %v4423_v11 = vpack.c.bf16 %v7734_v39, %v7733_v24  ;;  %v4420_v24 = vpack.c.bf16 %v4235_v44, %v4232_v43  ;;  %v12428_v57 = vpack.c.bf16 %v10945_v9, %v10941_v33  ;;  %v8481_v9 = vld [vmem:[%s12401_s12 + $0x8] sm:$0xff] }
 0xf82   :  { %v10949_v10 = vpop.f32.mrf.mxu1  ;;  %v4251_v15 = vpop.f32.mrf.mxu0 }
 0xf83   :  { %v4422_v46 = vpack.c.bf16 %v4251_v15, %v4248_v63  ;;  %7767 = vmatprep.subr.bf16.mxu0 %v4423_v11  ;;  %v12427_v54 = vpack.c.bf16 %v10949_v10, %v10943_v2 }
 0xf84   :  { %v7753_v42 = vpop.f32.mrf.mxu1  ;;  %7768 = vmatpush3.bf16.xpose.msra.mxu0 %v4423_v11 }
 0xf85   :  { %7769 = vmatprep.subr.bf16.mxu0 %v4422_v46 }
 0xf86   :  { %v4345_v19 = vpop.f32.mrf.mxu1 }
 0xf88   :  { %v7754_v50 = vpop.f32.mrf.mxu1 }
 0xf8a   :  { %v4348_v4 = vpop.f32.mrf.mxu1 }
 0xf8c   :  { %v7757_v56 = vpop.f32.mrf.mxu1  ;;  %7770 = vmatpush3.bf16.xpose.msra.mxu0 %v4422_v46  ;;  %v4418_v46 = vpack.c.bf16 %v4219_v27, %v4216_v25  ;;  %v4706_v25 = vpack.c.bf16 %v7754_v50, %v7753_v42  ;;  %v12425_v27 = vpack.c.bf16 %v10937_v21, %v10931_v16 }
 0xf8d   :  { %7771 = vmatprep.subr.bf16.mxu0 %v4421_v13 }
 0xf8e   :  { %v4361_v40 = vpop.f32.mrf.mxu1 }
 0xf90   :  { %v7758_v62 = vpop.f32.mrf.mxu1 }
 0xf91   :  { %v4708_v6 = vpack.c.bf16 %v7758_v62, %v7757_v56 }
 0xf92   :  { %v4364_v12 = vpop.f32.mrf.mxu1 }
 0xf93   :  { %v4707_v51 = vpack.c.bf16 %v4364_v12, %v4361_v40 }
 0xf94   :  { %v7761_v39 = vpop.f32.mrf.mxu1  ;;  %7772 = vmatpush3.bf16.xpose.msra.mxu0 %v4421_v13  ;;  %v8483_v13 = vld [vmem:[%s12401_s12 + $0x20] sm:$0xff] }
 0xf95   :  { %7773 = vmatprep.subr.bf16.mxu0 %v4420_v24 }
 0xf96   :  { %v4377_v36 = vpop.f32.mrf.mxu1 }
 0xf98   :  { %v7762_v63 = vpop.f32.mrf.mxu1 }
 0xf99   :  { %v4710_v43 = vpack.c.bf16 %v7762_v63, %v7761_v39 }
 0xf9a   :  { %v4380_v15 = vpop.f32.mrf.mxu1 }
 0xf9b   :  { %v4709_v44 = vpack.c.bf16 %v4380_v15, %v4377_v36  ;;  %v8485_v15 = vld [vmem:[%s12401_s12 + $0x28] sm:$0xff] }
 0xf9c   :  { %v7765_v11 = vpop.f32.mrf.mxu1  ;;  %7774 = vmatpush3.bf16.xpose.msra.mxu0 %v4420_v24  ;;  %v8484_v24 = vld [vmem:[%s12401_s12 + $0x30] sm:$0xff] }
 0xf9d   :  { %7775 = vmatprep.subr.bf16.mxu0 %v4419_v52 }
 0xf9e   :  { %v4393_v58 = vpop.f32.mrf.mxu1 }
 0xfa0   :  { %v7766_v3 = vpop.f32.mrf.mxu1 }
 0xfa1   :  { %v4712_v37 = vpack.c.bf16 %v7766_v3, %v7765_v11  ;;  %v8480_v3 = vld [vmem:[%s12401_s12 + $0x10] sm:$0xff] }
 0xfa2   :  { %v4396_v48 = vpop.f32.mrf.mxu1 }
 0xfa3   :  { %v4711_v17 = vpack.c.bf16 %v4396_v48, %v4393_v58  ;;  %7799 = vmatprep.subr.bf16.mxu1 %v4712_v37 }
 0xfa4   :  { %7776 = vmatpush3.bf16.xpose.msra.mxu0 %v4419_v52  ;;  %7800 = vmatpush3.bf16.msra.mxu1 %v4712_v37 }
 0xfa5   :  { %7777 = vmatprep.subr.bf16.mxu0 %v4418_v46  ;;  %7801 = vmatprep.subr.bf16.mxu1 %v4711_v17 }
 0xfa8   :  { %7802 = vmatpush3.bf16.msra.mxu1 %v4711_v17  ;;  %v4705_v17 = vpack.c.bf16 %v4348_v4, %v4345_v19  ;;  %v8482_v19 = vld [vmem:[%s12401_s12 + $0x18] sm:$0xff] }
 0xfa9   :  { %7803 = vmatprep.subr.bf16.mxu1 %v4710_v43 }
 0xfac   :  { %7778 = vmatpush3.bf16.xpose.msra.mxu0 %v4418_v46  ;;  %7804 = vmatpush3.bf16.msra.mxu1 %v4710_v43  ;;  %v8486_v43 = vld [vmem:[%s12401_s12 + $0x38] sm:$0xff] }
 0xfad   :  { %7779 = vmatprep.subr.bf16.mxu0 %v10913_v0  ;;  %7805 = vmatprep.subr.bf16.mxu1 %v4709_v44 }
 0xfb0   :  { %7806 = vmatpush3.bf16.msra.mxu1 %v4709_v44 }
 0xfb1   :  { %7807 = vmatprep.subr.bf16.mxu1 %v4708_v6 }
 0xfb4   :  { %7780 = vmatpush3.bf16.xpose.msra.mxu0 %v10913_v0  ;;  %7808 = vmatpush3.bf16.msra.mxu1 %v4708_v6  ;;  %v12424_v0 = vpack.c.bf16 %v10921_v26, %v10917_v34 }
 0xfb5   :  { %7781 = vmatprep.subr.bf16.mxu0 %v10915_v60  ;;  %7809 = vmatprep.subr.bf16.mxu1 %v4707_v51 }
 0xfb8   :  { %7810 = vmatpush3.bf16.msra.mxu1 %v4707_v51  ;;  %v8487_v51 = vld [vmem:[%s12401_s12 + $0x40] sm:$0xff] }
 0xfb9   :  { %7811 = vmatprep.subr.bf16.mxu1 %v4706_v25 }
 0xfbc   :  { %7782 = vmatpush3.bf16.xpose.msra.mxu0 %v10915_v60  ;;  %7812 = vmatpush3.bf16.msra.mxu1 %v4706_v25  ;;  %v12426_v60 = vpack.c.bf16 %v10933_v14, %v10929_v55  ;;  %v8479_v55 = vld [vmem:[%s12401_s12] sm:$0xff] }
 0xfbd   :  { %7813 = vmatprep.subr.bf16.mxu1 %v4705_v17 }
 0xfc0   :  { %7814 = vmatpush3.bf16.msra.mxu1 %v4705_v17 }
 0xfc3   :  { %7784 = vmatmul.mubr.bf16.vlgmr.msra.gmra.mxu0 %v4409_v53  ;;  %v12429_v53 = vmov 0  }
 0xfc4   :  { %7787 = vmatprep.mubr.bf16.mxu0 %v4410_v20 }
 0xfcb   :  { %7788 = vmatmul.mubr.bf16.gmra.mxu0 %v12424_v0 }
 0xfcc   :  { %7791 = vmatprep.mubr.bf16.mxu0 %v12425_v27 }
 0xfd3   :  { %7792 = vmatmul.mubr.bf16.gmra.mxu0 %v12426_v60  ;;  %v8488_v60 = vld [vmem:[%s12401_s12 + $0x50] sm:$0xff] }
 0xfd4   :  { %7795 = vmatprep.mubr.bf16.mxu0 %v12427_v54 }
 0xfdb   :  { %7796 = vmatmul.mubr.bf16.gmra.mxu0 %v12428_v57 }
 0xfdc   :  { %5330 = vmatprep.mubr.bf16.mxu0 %v12429_v53 }
0x1083   :  { %v7785_v34 = vpop.f32.mrf.mxu0 }
0x1084   :  { %v4523_v20 = vmul.f32 0.088388346, %v7785_v34  ;;  %v8489_v34 = vld [vmem:[%s12401_s12 + $0x48] sm:$0xff] }
0x1085   :  { %v4458_v61 = vpop.f32.mrf.mxu0 }
0x1086   :  { %v4521_v26 = vmul.f32 0.088388346, %v4458_v61  ;;  %v10988_v33 = vadd.f32 %v8480_v3, %v4523_v20 }
0x1087   :  { %v7786_v22 = vpop.f32.mrf.mxu0 }
0x1088   :  { %v10982_v16 = vadd.f32 %v8479_v55, %v4521_v26  ;;  %v4524_v2 = vmul.f32 0.088388346, %v7786_v22  ;;  %v8490_v55 = vld [vmem:[%s12401_s12 + $0x58] sm:$0xff] }
0x1089   :  { %v4461_v14 = vpop.f32.mrf.mxu0 }
0x108a   :  { %v4522_v58 = vmul.f32 0.088388346, %v4461_v14  ;;  %4553 = vmax.xlane.f32.xlu1 %v10982_v16  ;;  %v11000_v50 = vadd.f32 %v8482_v19, %v4524_v2  ;;  %v8493_v19 = vld [vmem:[%s12401_s12 + $0x68] sm:$0xff] }
0x108b   :  { %v7789_v21 = vpop.f32.mrf.mxu0 }
0x108c   :  { %v10993_v36 = vadd.f32 %v8481_v9, %v4522_v58  ;;  %v4527_v4 = vmul.f32 0.088388346, %v7789_v21  ;;  %v8491_v21 = vld [vmem:[%s12401_s12 + $0x60] sm:$0xff] }
0x108d   :  { %v4474_v10 = vpop.f32.mrf.mxu0 }
0x108e   :  { %v4525_v52 = vmul.f32 0.088388346, %v4474_v10  ;;  %4557 = vmax.xlane.f32.xlu1 %v10988_v33  ;;  %4555 = vmax.xlane.f32.xlu0 %v10993_v36  ;;  %v11012_v39 = vadd.f32 %v8484_v24, %v4527_v4  ;;  %v8492_v10 = vld [vmem:[%s12401_s12 + $0x70] sm:$0xff] }
0x108f   :  { %v7790_v42 = vpop.f32.mrf.mxu0 }
0x1090   :  { %v11005_v56 = vadd.f32 %v8483_v13, %v4525_v52  ;;  %v4528_v63 = vmul.f32 0.088388346, %v7790_v42  ;;  %v8494_v13 = vld [vmem:[%s12401_s12 + $0x78] sm:$0xff] }
0x1091   :  { %v4477_v40 = vpop.f32.mrf.mxu0 }
0x1092   :  { %v4526_v62 = vmul.f32 0.088388346, %v4477_v40  ;;  %4559 = vmax.xlane.f32.xlu0 %v11000_v50  ;;  %4561 = vmax.xlane.f32.xlu1 %v11005_v56  ;;  %v11024_v44 = vadd.f32 %v8486_v43, %v4528_v63 }
0x1093   :  { %v7793_v12 = vpop.f32.mrf.mxu0 }
0x1094   :  { %v11017_v11 = vadd.f32 %v8485_v15, %v4526_v62  ;;  %v4531_v6 = vmul.f32 0.088388346, %v7793_v12 }
0x1095   :  { %v4490_v37 = vpop.f32.mrf.mxu0 }
0x1096   :  { %v4529_v48 = vmul.f32 0.088388346, %v4490_v37  ;;  %4565 = vmax.xlane.f32.xlu1 %v11012_v39  ;;  %4563 = vmax.xlane.f32.xlu0 %v11017_v11  ;;  %v11036_v54 = vadd.f32 %v8488_v60, %v4531_v6 }
0x1097   :  { %v7794_v46 = vpop.f32.mrf.mxu0 }
0x1098   :  { %v11029_v25 = vadd.f32 %v8487_v51, %v4529_v48  ;;  %v4532_v57 = vmul.f32 0.088388346, %v7794_v46 }
0x1099   :  { %v4493_v17 = vpop.f32.mrf.mxu0 }
0x109a   :  { %v4530_v0 = vmul.f32 0.088388346, %v4493_v17  ;;  %4567 = vmax.xlane.f32.xlu0 %v11024_v44  ;;  %4569 = vmax.xlane.f32.xlu1 %v11029_v25  ;;  %v11048_v14 = vadd.f32 %v8490_v55, %v4532_v57 }
0x109b   :  { %v7797_v27 = vpop.f32.mrf.mxu0 }
0x109c   :  { %v11041_v61 = vadd.f32 %v8489_v34, %v4530_v0  ;;  %v4535_v58 = vmul.f32 0.088388346, %v7797_v27 }
0x109d   :  { %v4506_v26 = vpop.f32.mrf.mxu0 }
0x109e   :  { %v4533_v22 = vmul.f32 0.088388346, %v4506_v26  ;;  %4573 = vmax.xlane.f32.xlu1 %v11036_v54  ;;  %4571 = vmax.xlane.f32.xlu0 %v11041_v61  ;;  %v11060_v52 = vadd.f32 %v8492_v10, %v4535_v58 }
0x109f   :  { %v7798_v20 = vpop.f32.mrf.mxu0 }
0x10a0   :  { %v11053_v3 = vadd.f32 %v8491_v21, %v4533_v22  ;;  %v4536_v42 = vmul.f32 0.088388346, %v7798_v20 }
0x10a1   :  { %v4509_v2 = vpop.f32.mrf.mxu0 }
0x10a2   :  { %v4534_v9 = vmul.f32 0.088388346, %v4509_v2  ;;  %4575 = vmax.xlane.f32.xlu0 %v11048_v14  ;;  %4577 = vmax.xlane.f32.xlu1 %v11053_v3  ;;  %v11072_v40 = vadd.f32 %v8494_v13, %v4536_v42 }
0x10a4   :  { %v11065_v4 = vadd.f32 %v8493_v19, %v4534_v9 }
0x10a6   :  { %4581 = vmax.xlane.f32.xlu1 %v11060_v52  ;;  %4579 = vmax.xlane.f32.xlu0 %v11065_v4 }
0x10aa   :  { %4583 = vmax.xlane.f32.xlu0 %v11072_v40 }
0x1113   :  { %v4554_v62 = vpop.xlane.xlu1 %4553 }
0x1114   :  { %v4585_v12 = vsub.f32 %v10982_v16, %v4554_v62 }
0x1116   :  { %v4601_v24 = vmul.f32 1.442695, %v4585_v12 }
0x1117   :  { %v4558_v63 = vpop.xlane.xlu1 %4557  ;;  %v4556_v15 = vpop.xlane.xlu0 %4555 }
0x1118   :  { %8271 = vpow2.f32 %v4601_v24  ;;  %v4587_v37 = vsub.f32 %v10988_v33, %v4558_v63  ;;  %v4586_v48 = vsub.f32 %v10993_v36, %v4556_v15 }
0x111a   :  { %v4605_v46 = vmul.f32 1.442695, %v4587_v37  ;;  %v4603_v43 = vmul.f32 1.442695, %v4586_v48 }
0x111b   :  { %v4560_v6 = vpop.xlane.xlu0 %4559  ;;  %v4562_v51 = vpop.xlane.xlu1 %4561 }
0x111c   :  { %8273 = vpow2.f32 %v4605_v46  ;;  %v4588_v17 = vsub.f32 %v11000_v50, %v4560_v6  ;;  %v4589_v0 = vsub.f32 %v11005_v56, %v4562_v51 }
0x111d   :  { %8275 = vpow2.f32 %v4603_v43 }
0x111e   :  { %v4607_v27 = vmul.f32 1.442695, %v4588_v17  ;;  %v4609_v16 = vmul.f32 1.442695, %v4589_v0 }
0x111f   :  { %v4566_v60 = vpop.xlane.xlu1 %4565  ;;  %v4564_v57 = vpop.xlane.xlu0 %4563 }
0x1120   :  { %8277 = vpow2.f32 %v4607_v27  ;;  %v4591_v34 = vsub.f32 %v11012_v39, %v4566_v60  ;;  %v4590_v33 = vsub.f32 %v11017_v11, %v4564_v57 }
0x1121   :  { %8279 = vpow2.f32 %v4609_v16 }
0x1122   :  { %v4613_v36 = vmul.f32 1.442695, %v4591_v34  ;;  %v4611_v26 = vmul.f32 1.442695, %v4590_v33 }
0x1123   :  { %v4568_v22 = vpop.xlane.xlu0 %4567  ;;  %v4570_v20 = vpop.xlane.xlu1 %4569 }
0x1124   :  { %8281 = vpow2.f32 %v4613_v36  ;;  %v4592_v50 = vsub.f32 %v11024_v44, %v4568_v22  ;;  %v4593_v56 = vsub.f32 %v11029_v25, %v4570_v20  ;;  %v8031_v36 = vld [vmem:[#allocation21 + $0x38] sm:$0xff]  }
0x1125   :  { %v11084_v55 = vpop.eup %8271  ;;  %8283 = vpow2.f32 %v4611_v26  ;;  %7831 = vmatprep.subr.bf16.mxu1 %v8031_v36 }
0x1126   :  { %v4615_v58 = vmul.f32 1.442695, %v4592_v50  ;;  %v4617_v21 = vmul.f32 1.442695, %v4593_v56  ;;  %4633 = vadd.xlane.f32.xlu1 %v11084_v55 }
0x1127   :  { %v4574_v39 = vpop.xlane.xlu1 %4573  ;;  %v4572_v2 = vpop.xlane.xlu0 %4571 }
0x1128   :  { %8285 = vpow2.f32 %v4615_v58  ;;  %v4595_v11 = vsub.f32 %v11036_v54, %v4574_v39  ;;  %v4594_v9 = vsub.f32 %v11041_v61, %v4572_v2 }
0x1129   :  { %v11089_v10 = vpop.eup %8273  ;;  %8287 = vpow2.f32 %v4617_v21 }
0x112a   :  { %v11091_v44 = vpop.eup %8275  ;;  %v4621_v25 = vmul.f32 1.442695, %v4595_v11  ;;  %v4619_v42 = vmul.f32 1.442695, %v4594_v9  ;;  %4637 = vadd.xlane.f32.xlu1 %v11089_v10 }
0x112b   :  { %4635 = vadd.xlane.f32.xlu0 %v11091_v44  ;;  %v4576_v19 = vpop.xlane.xlu0 %4575  ;;  %v4578_v13 = vpop.xlane.xlu1 %4577 }
0x112c   :  { %8289 = vpow2.f32 %v4621_v25  ;;  %v4596_v62 = vsub.f32 %v11048_v14, %v4576_v19  ;;  %v4597_v54 = vsub.f32 %v11053_v3, %v4578_v13 }
0x112d   :  { %v11097_v12 = vpop.eup %8277  ;;  %8291 = vpow2.f32 %v4619_v42 }
0x112e   :  { %v11099_v61 = vpop.eup %8279  ;;  %v4623_v24 = vmul.f32 1.442695, %v4596_v62  ;;  %v4625_v63 = vmul.f32 1.442695, %v4597_v54 }
0x112f   :  { %4641 = vadd.xlane.f32.xlu1 %v11099_v61  ;;  %4639 = vadd.xlane.f32.xlu0 %v11097_v12  ;;  %v4582_v15 = vpop.xlane.xlu1 %4581  ;;  %v4580_v37 = vpop.xlane.xlu0 %4579 }
0x1130   :  { %8293 = vpow2.f32 %v4623_v24  ;;  %v4599_v48 = vsub.f32 %v11060_v52, %v4582_v15  ;;  %v4598_v14 = vsub.f32 %v11065_v4, %v4580_v37 }
0x1131   :  { %v11105_v46 = vpop.eup %8281  ;;  %8295 = vpow2.f32 %v4625_v63 }
0x1132   :  { %v11107_v3 = vpop.eup %8283  ;;  %v4629_v43 = vmul.f32 1.442695, %v4599_v48  ;;  %v4627_v6 = vmul.f32 1.442695, %v4598_v14 }
0x1133   :  { %4645 = vadd.xlane.f32.xlu1 %v11105_v46  ;;  %4643 = vadd.xlane.f32.xlu0 %v11107_v3  ;;  %v4584_v51 = vpop.xlane.xlu0 %4583 }
0x1134   :  { %8297 = vpow2.f32 %v4629_v43  ;;  %v4600_v17 = vsub.f32 %v11072_v40, %v4584_v51  ;;  %v8032_v43 = vld [vmem:[#allocation21 + $0x30] sm:$0xff]  }
0x1135   :  { %v11112_v0 = vpop.eup %8285  ;;  %8299 = vpow2.f32 %v4627_v6 }
0x1136   :  { %v11114_v52 = vpop.eup %8287  ;;  %v4631_v4 = vmul.f32 1.442695, %v4600_v17 }
0x1137   :  { %4649 = vadd.xlane.f32.xlu1 %v11114_v52  ;;  %4647 = vadd.xlane.f32.xlu0 %v11112_v0 }
0x1138   :  { %8301 = vpow2.f32 %v4631_v4 }
0x1139   :  { %v11118_v27 = vpop.eup %8289 }
0x113a   :  { %v11120_v16 = vpop.eup %8291 }
0x113b   :  { %4653 = vadd.xlane.f32.xlu1 %v11118_v27  ;;  %4651 = vadd.xlane.f32.xlu0 %v11120_v16 }
0x113d   :  { %v11124_v40 = vpop.eup %8293 }
0x113e   :  { %v11126_v60 = vpop.eup %8295 }
0x113f   :  { %4657 = vadd.xlane.f32.xlu1 %v11126_v60  ;;  %4655 = vadd.xlane.f32.xlu0 %v11124_v40 }
0x1141   :  { %v11130_v57 = vpop.eup %8297 }
0x1142   :  { %v11132_v34 = vpop.eup %8299 }
0x1143   :  { %4661 = vadd.xlane.f32.xlu1 %v11130_v57  ;;  %4659 = vadd.xlane.f32.xlu0 %v11132_v34 }
0x1145   :  { %v11136_v33 = vpop.eup %8301 }
0x1147   :  { %4663 = vadd.xlane.f32.xlu0 %v11136_v33 }
0x11af   :  { %v4634_v26 = vpop.xlane.xlu1 %4633 }
0x11b0   :  { %8303 = vrcp.f32 %v4634_v26 }
0x11b3   :  { %v4638_v22 = vpop.xlane.xlu1 %4637 }
0x11b4   :  { %v4636_v20 = vpop.xlane.xlu0 %4635 }
0x11b5   :  { %8305 = vrcp.f32 %v4636_v20 }
0x11b6   :  { %8307 = vrcp.f32 %v4638_v22 }
0x11b8   :  { %v4642_v50 = vpop.xlane.xlu1 %4641  ;;  %v4640_v56 = vpop.xlane.xlu0 %4639 }
0x11b9   :  { %8309 = vrcp.f32 %v4640_v56 }
0x11ba   :  { %8311 = vrcp.f32 %v4642_v50 }
0x11bc   :  { %v4646_v58 = vpop.xlane.xlu1 %4645  ;;  %v4644_v21 = vpop.xlane.xlu0 %4643 }
0x11bd   :  { %8313 = vrcp.f32 %v4644_v21  ;;  %v8304_v39 = vpop.eup %8303 }
0x11be   :  { %8315 = vrcp.f32 %v4646_v58  ;;  %v4681_v25 = vmul.f32 %v8304_v39, %v11084_v55 }
0x11c0   :  { %v4650_v2 = vpop.xlane.xlu1 %4649  ;;  %v4648_v11 = vpop.xlane.xlu0 %4647 }
0x11c1   :  { %8317 = vrcp.f32 %v4648_v11 }
0x11c2   :  { %v8306_v9 = vpop.eup %8305  ;;  %8319 = vrcp.f32 %v4650_v2 }
0x11c3   :  { %v4682_v42 = vmul.f32 %v8306_v9, %v11091_v44  ;;  %v8308_v62 = vpop.eup %8307  ;;  %v8035_v9 = vld [vmem:[#allocation21 + $0x18] sm:$0xff]  }
0x11c4   :  { %v4654_v19 = vpop.xlane.xlu1 %4653  ;;  %v4652_v13 = vpop.xlane.xlu0 %4651  ;;  %v4683_v63 = vmul.f32 %v8308_v62, %v11089_v10 }
0x11c5   :  { %v4697_v54 = vpack.c.bf16 %v4682_v42, %v4681_v25  ;;  %8321 = vrcp.f32 %v4652_v13  ;;  %v8036_v13 = vld [vmem:[#allocation21 + $0x10] sm:$0xff]  }
0x11c6   :  { %v8310_v24 = vpop.eup %8309  ;;  %8323 = vrcp.f32 %v4654_v19 }
0x11c7   :  { %7815 = vmatprep.mubr.bf16.mxu1 %v4697_v54  ;;  %v4684_v15 = vmul.f32 %v8310_v24, %v11097_v12  ;;  %v8312_v14 = vpop.eup %8311  ;;  %v8033_v12 = vld [vmem:[#allocation21 + $0x28] sm:$0xff]  }
0x11c8   :  { %v4658_v37 = vpop.xlane.xlu1 %4657  ;;  %v4656_v48 = vpop.xlane.xlu0 %4655  ;;  %v4685_v17 = vmul.f32 %v8312_v14, %v11099_v61 }
0x11c9   :  { %8325 = vrcp.f32 %v4656_v48  ;;  %v4698_v55 = vpack.c.bf16 %v4684_v15, %v4683_v63  ;;  %v8038_v48 = vld [vmem:[#allocation21] sm:$0xff]  }
0x11ca   :  { %v8314_v44 = vpop.eup %8313  ;;  %8327 = vrcp.f32 %v4658_v37  ;;  %v8037_v37 = vld [vmem:[#allocation21 + $0x8] sm:$0xff]  }
0x11cb   :  { %7816 = vmatmul.mubr.bf16.vlgmr.msra.gmra.mxu1 %v4698_v55  ;;  %v4686_v4 = vmul.f32 %v8314_v44, %v11107_v3  ;;  %v8316_v26 = vpop.eup %8315  ;;  %v8034_v3 = vld [vmem:[#allocation21 + $0x20] sm:$0xff]  }
0x11cc   :  { %v4662_v6 = vpop.xlane.xlu1 %4661  ;;  %v4660_v51 = vpop.xlane.xlu0 %4659  ;;  %7832 = vmatpush3.bf16.msra.mxu1 %v8031_v36  ;;  %v4687_v50 = vmul.f32 %v8316_v26, %v11105_v46 }
0x11cd   :  { %8329 = vrcp.f32 %v4660_v51  ;;  %v4699_v10 = vpack.c.bf16 %v4686_v4, %v4685_v17  ;;  %7833 = vmatprep.subr.bf16.mxu1 %v8032_v43 }
0x11ce   :  { %v8318_v22 = vpop.eup %8317  ;;  %8331 = vrcp.f32 %v4662_v6 }
0x11cf   :  { %7819 = vmatprep.mubr.bf16.mxu1 %v4699_v10  ;;  %v4688_v56 = vmul.f32 %v8318_v22, %v11112_v0  ;;  %v8320_v58 = vpop.eup %8319 }
0x11d0   :  { %v4664_v20 = vpop.xlane.xlu0 %4663  ;;  %7834 = vmatpush3.bf16.msra.mxu1 %v8032_v43  ;;  %v4689_v36 = vmul.f32 %v8320_v58, %v11114_v52 }
0x11d1   :  { %8333 = vrcp.f32 %v4664_v20  ;;  %v4700_v61 = vpack.c.bf16 %v4688_v56, %v4687_v50  ;;  %7835 = vmatprep.subr.bf16.mxu1 %v8033_v12 }
0x11d2   :  { %v8322_v21 = vpop.eup %8321 }
0x11d3   :  { %7820 = vmatmul.mubr.bf16.gmra.mxu1 %v4700_v61  ;;  %v4690_v39 = vmul.f32 %v8322_v21, %v11120_v16  ;;  %v8324_v2 = vpop.eup %8323 }
0x11d4   :  { %7836 = vmatpush3.bf16.msra.mxu1 %v8033_v12  ;;  %v4691_v0 = vmul.f32 %v8324_v2, %v11118_v27 }
0x11d5   :  { %v4701_v11 = vpack.c.bf16 %v4690_v39, %v4689_v36  ;;  %7837 = vmatprep.subr.bf16.mxu1 %v8034_v3 }
0x11d6   :  { %v8326_v46 = vpop.eup %8325 }
0x11d7   :  { %7823 = vmatprep.mubr.bf16.mxu1 %v4701_v11  ;;  %v4692_v25 = vmul.f32 %v8326_v46, %v11124_v40  ;;  %v8328_v42 = vpop.eup %8327 }
0x11d8   :  { %7838 = vmatpush3.bf16.msra.mxu1 %v8034_v3  ;;  %v4693_v16 = vmul.f32 %v8328_v42, %v11126_v60 }
0x11d9   :  { %v4702_v19 = vpack.c.bf16 %v4692_v25, %v4691_v0  ;;  %7839 = vmatprep.subr.bf16.mxu1 %v8035_v9 }
0x11da   :  { %v8330_v62 = vpop.eup %8329 }
0x11db   :  { %v8332_v52 = vpop.eup %8331  ;;  %7824 = vmatmul.mubr.bf16.gmra.mxu1 %v4702_v19  ;;  %v4694_v54 = vmul.f32 %v8330_v62, %v11132_v34 }
0x11dc   :  { %7840 = vmatpush3.bf16.msra.mxu1 %v8035_v9  ;;  %v4695_v27 = vmul.f32 %v8332_v52, %v11130_v57 }
0x11dd   :  { %v4703_v63 = vpack.c.bf16 %v4694_v54, %v4693_v16  ;;  %7841 = vmatprep.subr.bf16.mxu1 %v8036_v13 }
0x11de   :  { %v8334_v24 = vpop.eup %8333 }
0x11df   :  { %v4696_v40 = vmul.f32 %v8334_v24, %v11136_v33  ;;  %7827 = vmatprep.mubr.bf16.mxu1 %v4703_v63 }
0x11e0   :  { %7842 = vmatpush3.bf16.msra.mxu1 %v8036_v13 }
0x11e1   :  { %v4704_v15 = vpack.c.bf16 %v4696_v40, %v4695_v27  ;;  %7843 = vmatprep.subr.bf16.mxu1 %v8037_v37 }
0x11e3   :  { %7828 = vmatmul.mubr.bf16.gmra.mxu1 %v4704_v15 }
0x11e4   :  { %7844 = vmatpush3.bf16.msra.mxu1 %v8037_v37 }
0x11e5   :  { %7845 = vmatprep.subr.bf16.mxu1 %v8038_v48 }
0x11e8   :  { %7846 = vmatpush3.bf16.msra.mxu1 %v8038_v48  ;;  %v8041_v48 = vld [vmem:[#allocation22 + $0x74] ss:$8 sps:$4 sm:$0xff]  }
0x11e9   :  { %5298 = vmatprep.subr.bf16.mxu0 %v8041_v48 }
0x128b   :  { %v7817_v60 = vpop.f32.mrf.mxu1 }
0x128d   :  { %v4747_v34 = vpop.f32.mrf.mxu1 }
0x128f   :  { %v7818_v14 = vpop.f32.mrf.mxu1 }
0x1290   :  { %v4811_v44 = vpack.c.bf16 %v7818_v14, %v7817_v60 }
0x1291   :  { %v4750_v55 = vpop.f32.mrf.mxu1 }
0x1292   :  { %v4810_v43 = vpack.c.bf16 %v4750_v55, %v4747_v34 }
0x1293   :  { %v7821_v6 = vpop.f32.mrf.mxu1 }
0x1294   :  { %7847 = vmatprep.mubr.bf16.mxu1 %v4810_v43 }
0x1295   :  { %v4763_v57 = vpop.f32.mrf.mxu1  ;;  %7848 = vmatmul.mubr.bf16.vlgmr.msra.gmra.mxu1 %v4811_v44 }
0x1297   :  { %v7822_v33 = vpop.f32.mrf.mxu1 }
0x1298   :  { %v4813_v4 = vpack.c.bf16 %v7822_v33, %v7821_v6 }
0x1299   :  { %v4766_v51 = vpop.f32.mrf.mxu1 }
0x129a   :  { %v4812_v17 = vpack.c.bf16 %v4766_v51, %v4763_v57 }
0x129b   :  { %v7825_v26 = vpop.f32.mrf.mxu1 }
0x129c   :  { %7851 = vmatprep.mubr.bf16.mxu1 %v4812_v17 }
0x129d   :  { %v4779_v10 = vpop.f32.mrf.mxu1  ;;  %7852 = vmatmul.mubr.bf16.gmra.mxu1 %v4813_v4 }
0x129f   :  { %v7826_v12 = vpop.f32.mrf.mxu1 }
0x12a0   :  { %v4815_v50 = vpack.c.bf16 %v7826_v12, %v7825_v26 }
0x12a1   :  { %v4782_v22 = vpop.f32.mrf.mxu1 }
0x12a2   :  { %v4814_v20 = vpack.c.bf16 %v4782_v22, %v4779_v10 }
0x12a3   :  { %v7829_v56 = vpop.f32.mrf.mxu1 }
0x12a4   :  { %7855 = vmatprep.mubr.bf16.mxu1 %v4814_v20 }
0x12a5   :  { %v4795_v58 = vpop.f32.mrf.mxu1  ;;  %7856 = vmatmul.mubr.bf16.gmra.mxu1 %v4815_v50 }
0x12a7   :  { %v7830_v61 = vpop.f32.mrf.mxu1 }
0x12a8   :  { %v4817_v36 = vpack.c.bf16 %v7830_v61, %v7829_v56 }
0x12a9   :  { %v4798_v3 = vpop.f32.mrf.mxu1 }
0x12aa   :  { %v4816_v21 = vpack.c.bf16 %v4798_v3, %v4795_v58 }
0x12ac   :  { %7859 = vmatprep.mubr.bf16.mxu1 %v4816_v21 }
0x12ad   :  { %7860 = vmatmul.mubr.bf16.gmra.mxu1 %v4817_v36 }
0x1355   :  { %v7849_v39 = vpop.f32.mrf.mxu1 }
0x1356   :  { %v4965_v0 = vadd.f32 %v7849_v39, %v10854_v38 }
0x1357   :  { %v4900_v2 = vpop.f32.mrf.mxu1 }
0x1358   :  { %v4963_v11 = vadd.f32 %v10844_v1, %v4900_v2 }
0x1359   :  { %v7850_v9 = vpop.f32.mrf.mxu1 }
0x135a   :  { %4979 = vadd.xlane.f32.xlu1 %v4963_v11  ;;  %v4966_v13 = vadd.f32 %v7850_v9, %v10856_v18 }
0x135b   :  { %v4903_v46 = vpop.f32.mrf.mxu1 }
0x135c   :  { %v4964_v25 = vadd.f32 %v10846_v5, %v4903_v46 }
0x135d   :  { %v7853_v42 = vpop.f32.mrf.mxu1 }
0x135e   :  { %4983 = vadd.xlane.f32.xlu1 %v4965_v0  ;;  %4981 = vadd.xlane.f32.xlu0 %v4964_v25  ;;  %v4969_v1 = vadd.f32 %v7853_v42, %v10874_v7 }
0x135f   :  { %v4916_v19 = vpop.f32.mrf.mxu1 }
0x1360   :  { %v4967_v62 = vadd.f32 %v10864_v31, %v4916_v19 }
0x1361   :  { %v7854_v52 = vpop.f32.mrf.mxu1 }
0x1362   :  { %4985 = vadd.xlane.f32.xlu0 %v4966_v13  ;;  %4987 = vadd.xlane.f32.xlu1 %v4967_v62  ;;  %v11163_v38 = vadd.f32 %v7854_v52, %v10876_v49 }
0x1363   :  { %v4919_v16 = vpop.f32.mrf.mxu1 }
0x1364   :  { %v4968_v54 = vadd.f32 %v10866_v30, %v4919_v16 }
0x1365   :  { %v7857_v24 = vpop.f32.mrf.mxu1 }
0x1366   :  { %4991 = vadd.xlane.f32.xlu1 %v4969_v1  ;;  %4989 = vadd.xlane.f32.xlu0 %v4968_v54  ;;  %v11171_v7 = vadd.f32 %v7857_v24, %v10886_v32 }
0x1367   :  { %v4932_v5 = vpop.f32.mrf.mxu1 }
0x1368   :  { %v11166_v63 = vadd.f32 %v10880_v41, %v4932_v5 }
0x1369   :  { %v7858_v18 = vpop.f32.mrf.mxu1 }
0x136a   :  { %4993 = vadd.xlane.f32.xlu0 %v11163_v38  ;;  %4995 = vadd.xlane.f32.xlu1 %v11166_v63  ;;  %v11179_v41 = vadd.f32 %v7858_v18, %v10888_v47 }
0x136b   :  { %v4935_v31 = vpop.f32.mrf.mxu1 }
0x136c   :  { %v11174_v30 = vadd.f32 %v10882_v29, %v4935_v31 }
0x136d   :  { %v7861_v27 = vpop.f32.mrf.mxu1 }
0x136e   :  { %4999 = vadd.xlane.f32.xlu1 %v11171_v7  ;;  %4997 = vadd.xlane.f32.xlu0 %v11174_v30  ;;  %v11187_v29 = vadd.f32 %v7861_v27, %v10898_v8 }
0x136f   :  { %v4948_v49 = vpop.f32.mrf.mxu1 }
0x1370   :  { %v11182_v40 = vadd.f32 %v10892_v28, %v4948_v49  ;;  %v8039_v28 = vld [vmem:[#allocation22 + $0x70] ss:$8 sps:$4 sm:$0xff]  }
0x1371   :  { %v7862_v15 = vpop.f32.mrf.mxu1  ;;  %5299 = vmatpush1.bf16.msra.mxu0 %v8039_v28 }
0x1372   :  { %5001 = vadd.xlane.f32.xlu0 %v11179_v41  ;;  %5003 = vadd.xlane.f32.xlu1 %v11182_v40  ;;  %v11195_v47 = vadd.f32 %v7862_v15, %v10900_v59  ;;  %v8047_v15 = vld [vmem:[#allocation22 + $0x54] ss:$8 sps:$4 sm:$0xff]  }
0x1373   :  { %v4951_v32 = vpop.f32.mrf.mxu1 }
0x1374   :  { %v11190_v37 = vadd.f32 %v10894_v35, %v4951_v32 }
0x1376   :  { %5007 = vadd.xlane.f32.xlu1 %v11187_v29  ;;  %5005 = vadd.xlane.f32.xlu0 %v11190_v37 }
0x137a   :  { %5009 = vadd.xlane.f32.xlu0 %v11195_v47 }
0x13e3   :  { %v4980_v60 = vpop.xlane.xlu1 %4979 }
0x13e4   :  { %v5011_v34 = vmul.f32 0.0078125, %v4980_v60 }
0x13e6   :  { %v11198_v8 = vsub.f32 %v4963_v11, %v5011_v34 }
0x13e7   :  { %v4984_v14 = vpop.xlane.xlu1 %4983  ;;  %v4982_v35 = vpop.xlane.xlu0 %4981 }
0x13e8   :  { %v5013_v55 = vmul.f32 0.0078125, %v4984_v14  ;;  %v5012_v43 = vmul.f32 0.0078125, %v4982_v35  ;;  %v5043_v44 = vmul.f32 %v11198_v8, %v11198_v8 }
0x13ea   :  { %v11202_v6 = vsub.f32 %v4965_v0, %v5013_v55  ;;  %v11204_v59 = vsub.f32 %v4964_v25, %v5012_v43  ;;  %5059 = vadd.xlane.f32.xlu1 %v5043_v44  ;;  %v8050_v55 = vld [vmem:[#allocation22 + $0x44] ss:$8 sps:$4 sm:$0xff]  }
0x13eb   :  { %v4986_v57 = vpop.xlane.xlu0 %4985  ;;  %v4988_v33 = vpop.xlane.xlu1 %4987 }
0x13ec   :  { %v5014_v51 = vmul.f32 0.0078125, %v4986_v57  ;;  %v5015_v17 = vmul.f32 0.0078125, %v4988_v33  ;;  %v5045_v4 = vmul.f32 %v11202_v6, %v11202_v6  ;;  %v5044_v26 = vmul.f32 %v11204_v59, %v11204_v59 }
0x13ee   :  { %v11210_v10 = vsub.f32 %v4966_v13, %v5014_v51  ;;  %v11212_v12 = vsub.f32 %v4967_v62, %v5015_v17  ;;  %5063 = vadd.xlane.f32.xlu1 %v5045_v4  ;;  %5061 = vadd.xlane.f32.xlu0 %v5044_v26  ;;  %v8053_v17 = vld [vmem:[#allocation22 + $0x34] ss:$8 sps:$4 sm:$0xff]   ;;  %v8051_v4 = vld [vmem:[#allocation22 + $0x30] ss:$8 sps:$4 sm:$0xff]   ;;  %v8056_v26 = vld [vmem:[#allocation22 + $0x24] ss:$8 sps:$4 sm:$0xff]  }
0x13ef   :  { %v4992_v22 = vpop.xlane.xlu1 %4991  ;;  %v4990_v20 = vpop.xlane.xlu0 %4989 }
0x13f0   :  { %v5017_v50 = vmul.f32 0.0078125, %v4992_v22  ;;  %v5016_v56 = vmul.f32 0.0078125, %v4990_v20  ;;  %v5047_v58 = vmul.f32 %v11212_v12, %v11212_v12  ;;  %v5046_v61 = vmul.f32 %v11210_v10, %v11210_v10  ;;  %v8054_v22 = vld [vmem:[#allocation22 + $0x20] ss:$8 sps:$4 sm:$0xff]   ;;  %v8059_v20 = vld [vmem:[#allocation22 + $0x14] ss:$8 sps:$4 sm:$0xff]  }
0x13f2   :  { %v11218_v3 = vsub.f32 %v4969_v1, %v5017_v50  ;;  %v11220_v21 = vsub.f32 %v4968_v54, %v5016_v56  ;;  %5067 = vadd.xlane.f32.xlu1 %v5047_v58  ;;  %5065 = vadd.xlane.f32.xlu0 %v5046_v61  ;;  %v8044_v1 = vld [vmem:[#allocation22 + $0x64] ss:$8 sps:$4 sm:$0xff]   ;;  %v8042_v54 = vld [vmem:[#allocation22 + $0x60] ss:$8 sps:$4 sm:$0xff]   ;;  %v8057_v50 = vld [vmem:[#allocation22 + $0x10] ss:$8 sps:$4 sm:$0xff]  }
0x13f3   :  { %v4994_v36 = vpop.xlane.xlu0 %4993  ;;  %v4996_v39 = vpop.xlane.xlu1 %4995  ;;  %5300 = vmatprep.subr.bf16.mxu0 %v8044_v1  ;;  %v8062_v56 = vld [vmem:[#allocation22 + $0x4] ss:$8 sps:$4 sm:$0xff]   ;;  %v8060_v58 = vld [vmem:[#allocation22] ss:$8 sps:$4 sm:$0xff]  }
0x13f4   :  { %v5018_v2 = vmul.f32 0.0078125, %v4994_v36  ;;  %v5019_v11 = vmul.f32 0.0078125, %v4996_v39  ;;  %v5049_v9 = vmul.f32 %v11218_v3, %v11218_v3  ;;  %v5048_v46 = vmul.f32 %v11220_v21, %v11220_v21  ;;  %5301 = vmatpush1.bf16.msra.mxu0 %v8042_v54 }
0x13f5   :  { %5302 = vmatprep.subr.bf16.mxu0 %v8047_v15 }
0x13f6   :  { %v11227_v0 = vsub.f32 %v11163_v38, %v5018_v2  ;;  %v11230_v25 = vsub.f32 %v11166_v63, %v5019_v11  ;;  %5071 = vadd.xlane.f32.xlu1 %v5049_v9  ;;  %5069 = vadd.xlane.f32.xlu0 %v5048_v46 }
0x13f7   :  { %v5000_v42 = vpop.xlane.xlu1 %4999  ;;  %v4998_v19 = vpop.xlane.xlu0 %4997 }
0x13f8   :  { %v5021_v13 = vmul.f32 0.0078125, %v5000_v42  ;;  %v5020_v62 = vmul.f32 0.0078125, %v4998_v19  ;;  %v5051_v52 = vmul.f32 %v11230_v25, %v11230_v25  ;;  %v5050_v16 = vmul.f32 %v11227_v0, %v11227_v0 }
0x13fa   :  { %v11237_v24 = vsub.f32 %v11171_v7, %v5021_v13  ;;  %v11240_v5 = vsub.f32 %v11174_v30, %v5020_v62  ;;  %5075 = vadd.xlane.f32.xlu1 %v5051_v52  ;;  %5073 = vadd.xlane.f32.xlu0 %v5050_v16  ;;  %v8045_v7 = vld [vmem:[#allocation22 + $0x50] ss:$8 sps:$4 sm:$0xff]  }
0x13fb   :  { %v5002_v38 = vpop.xlane.xlu0 %5001  ;;  %v5004_v63 = vpop.xlane.xlu1 %5003  ;;  %5303 = vmatpush1.bf16.msra.mxu0 %v8045_v7 }
0x13fc   :  { %v5022_v18 = vmul.f32 0.0078125, %v5002_v38  ;;  %v5023_v31 = vmul.f32 0.0078125, %v5004_v63  ;;  %v5053_v27 = vmul.f32 %v11237_v24, %v11237_v24  ;;  %v5052_v49 = vmul.f32 %v11240_v5, %v11240_v5  ;;  %5304 = vmatprep.subr.bf16.mxu0 %v8050_v55 }
0x13fe   :  { %v11247_v32 = vsub.f32 %v11179_v41, %v5022_v18  ;;  %v11250_v30 = vsub.f32 %v11182_v40, %v5023_v31  ;;  %5079 = vadd.xlane.f32.xlu1 %v5053_v27  ;;  %5077 = vadd.xlane.f32.xlu0 %v5052_v49  ;;  %v8048_v41 = vld [vmem:[#allocation22 + $0x40] ss:$8 sps:$4 sm:$0xff]  }
0x13ff   :  { %v5008_v28 = vpop.xlane.xlu1 %5007  ;;  %v5006_v48 = vpop.xlane.xlu0 %5005  ;;  %5305 = vmatpush1.bf16.msra.mxu0 %v8048_v41 }
0x1400   :  { %v5025_v60 = vmul.f32 0.0078125, %v5008_v28  ;;  %v5024_v34 = vmul.f32 0.0078125, %v5006_v48  ;;  %v5055_v14 = vmul.f32 %v11250_v30, %v11250_v30  ;;  %v5054_v35 = vmul.f32 %v11247_v32, %v11247_v32  ;;  %5306 = vmatprep.subr.bf16.mxu0 %v8053_v17  ;;  %v11275_v48 = vld [vmem:[%s12334_s20] ss:$0 sm:$0xff] }
0x1402   :  { %v11257_v43 = vsub.f32 %v11187_v29, %v5025_v60  ;;  %v11260_v40 = vsub.f32 %v11190_v37, %v5024_v34  ;;  %5083 = vadd.xlane.f32.xlu1 %v5055_v14  ;;  %5081 = vadd.xlane.f32.xlu0 %v5054_v35 }
0x1403   :  { %v5010_v44 = vpop.xlane.xlu0 %5009  ;;  %5307 = vmatpush1.bf16.msra.mxu0 %v8051_v4 }
0x1404   :  { %v5026_v57 = vmul.f32 0.0078125, %v5010_v44  ;;  %v5057_v33 = vmul.f32 %v11257_v43, %v11257_v43  ;;  %v5056_v51 = vmul.f32 %v11260_v40, %v11260_v40  ;;  %5308 = vmatprep.subr.bf16.mxu0 %v8056_v26 }
0x1406   :  { %v11267_v29 = vsub.f32 %v11195_v47, %v5026_v57  ;;  %5087 = vadd.xlane.f32.xlu1 %v5057_v33  ;;  %5085 = vadd.xlane.f32.xlu0 %v5056_v51  ;;  %v8495_v47 = vld [vmem:[#allocation15 + $0x78] sm:$0xff]  }
0x1407   :  { %5309 = vmatpush1.bf16.msra.mxu0 %v8054_v22 }
0x1408   :  { %v5058_v37 = vmul.f32 %v11267_v29, %v11267_v29  ;;  %5310 = vmatprep.subr.bf16.mxu0 %v8059_v20 }
0x140a   :  { %5089 = vadd.xlane.f32.xlu0 %v5058_v37 }
0x140b   :  { %5311 = vmatpush1.bf16.msra.mxu0 %v8057_v50 }
0x140c   :  { %5312 = vmatprep.subr.bf16.mxu0 %v8062_v56 }
0x140f   :  { %5313 = vmatpush1.bf16.msra.mxu0 %v8060_v58 }
0x1410   :  { %7447 = vmatprep.subr.bf16.mxu0 %v8495_v47 }
0x1473   :  { %v5060_v61 = vpop.xlane.xlu1 %5059 }
0x1474   :  { %v5091_v36 = vmul.f32 0.0078125, %v5060_v61 }
0x1476   :  { %v5107_v39 = vadd.f32 1e-05, %v5091_v36 }
0x1477   :  { %v5064_v2 = vpop.xlane.xlu1 %5063  ;;  %v5062_v11 = vpop.xlane.xlu0 %5061 }
0x1478   :  { %8335 = vrsqrt.f32 %v5107_v39  ;;  %v5093_v9 = vmul.f32 0.0078125, %v5064_v2  ;;  %v5092_v46 = vmul.f32 0.0078125, %v5062_v11  ;;  %v8496_v11 = vld [vmem:[#allocation15 + $0x38] sm:$0xff]  }
0x147a   :  { %v5108_v42 = vadd.f32 1e-05, %v5092_v46  ;;  %v5109_v19 = vadd.f32 1e-05, %v5093_v9  ;;  %v8497_v46 = vld [vmem:[#allocation15 + $0x70] sm:$0xff]  }
0x147b   :  { %v5066_v13 = vpop.xlane.xlu0 %5065  ;;  %v5068_v62 = vpop.xlane.xlu1 %5067 }
0x147c   :  { %v5094_v52 = vmul.f32 0.0078125, %v5066_v13  ;;  %8337 = vrsqrt.f32 %v5108_v42  ;;  %v5095_v1 = vmul.f32 0.0078125, %v5068_v62 }
0x147d   :  { %8339 = vrsqrt.f32 %v5109_v19 }
0x147e   :  { %v5110_v16 = vadd.f32 1e-05, %v5094_v52  ;;  %v5111_v18 = vadd.f32 1e-05, %v5095_v1 }
0x147f   :  { %v5070_v54 = vpop.xlane.xlu0 %5069  ;;  %v5072_v31 = vpop.xlane.xlu1 %5071 }
0x1480   :  { %v5096_v38 = vmul.f32 0.0078125, %v5070_v54  ;;  %8341 = vrsqrt.f32 %v5110_v16  ;;  %v5097_v7 = vmul.f32 0.0078125, %v5072_v31  ;;  %v8498_v31 = vld [vmem:[#allocation15 + $0x30] sm:$0xff]  }
0x1482   :  { %v5112_v63 = vadd.f32 1e-05, %v5096_v38  ;;  %v5113_v14 = vadd.f32 1e-05, %v5097_v7 }
0x1483   :  { %v5074_v27 = vpop.xlane.xlu0 %5073  ;;  %v5076_v44 = vpop.xlane.xlu1 %5075 }
0x1484   :  { %8343 = vrsqrt.f32 %v5112_v63  ;;  %v5098_v15 = vmul.f32 0.0078125, %v5074_v27  ;;  %v5099_v4 = vmul.f32 0.0078125, %v5076_v44 }
0x1485   :  { %v8336_v49 = vpop.eup %8335  ;;  %8345 = vrsqrt.f32 %v5111_v18 }
0x1486   :  { %v5139_v28 = vmul.f32 %v8336_v49, %v11198_v8  ;;  %v5114_v60 = vadd.f32 1e-05, %v5098_v15  ;;  %v11282_v8 = vld [vmem:[%s12335_s21] ss:$0 sm:$0xff]  ;;  %v5115_v61 = vadd.f32 1e-05, %v5099_v4 }
0x1487   :  { %v5078_v35 = vpop.xlane.xlu0 %5077  ;;  %v5080_v2 = vpop.xlane.xlu1 %5079  ;;  %v8499_v15 = vld [vmem:[#allocation15 + $0x68] sm:$0xff]  }
0x1488   :  { %v5161_v55 = vmul.f32 %v11275_v48, %v5139_v28  ;;  %8347 = vrsqrt.f32 %v5114_v60  ;;  %v5100_v51 = vmul.f32 0.0078125, %v5078_v35  ;;  %v5101_v42 = vmul.f32 0.0078125, %v5080_v2  ;;  %v8502_v2 = vld [vmem:[#allocation15 + $0x20] sm:$0xff]  }
0x1489   :  { %v8338_v34 = vpop.eup %8337  ;;  %8349 = vrsqrt.f32 %v5113_v14 }
0x148a   :  { %v5140_v41 = vmul.f32 %v8338_v34, %v11204_v59  ;;  %v8340_v57 = vpop.eup %8339  ;;  %v11286_v37 = vadd.f32 %v11282_v8, %v5161_v55  ;;  %v5116_v20 = vadd.f32 1e-05, %v5100_v51  ;;  %v5117_v63 = vadd.f32 1e-05, %v5101_v42  ;;  %v8500_v51 = vld [vmem:[#allocation15 + $0x28] sm:$0xff]  }
0x148b   :  { %v5141_v59 = vmul.f32 %v8340_v57, %v11202_v6  ;;  %v5082_v47 = vpop.xlane.xlu0 %5081  ;;  %v5084_v18 = vpop.xlane.xlu1 %5083 }
0x148c   :  { %v5162_v33 = vmul.f32 %v11275_v48, %v5140_v41  ;;  %8351 = vrsqrt.f32 %v5116_v20  ;;  %v5102_v6 = vmul.f32 0.0078125, %v5082_v47  ;;  %v5103_v7 = vmul.f32 0.0078125, %v5084_v18 }
0x148d   :  { %v8342_v17 = vpop.eup %8341  ;;  %v5163_v36 = vmul.f32 %v11275_v48, %v5141_v59  ;;  %8353 = vrsqrt.f32 %v5115_v61  ;;  %v8501_v59 = vld [vmem:[#allocation15 + $0x60] sm:$0xff]  }
0x148e   :  { %v11289_v26 = vadd.f32 %v11282_v8, %v5162_v33  ;;  %v5142_v22 = vmul.f32 %v8342_v17, %v11210_v10  ;;  %v5118_v62 = vadd.f32 1e-05, %v5102_v6  ;;  %v5119_v44 = vadd.f32 1e-05, %v5103_v7  ;;  %v8503_v6 = vld [vmem:[#allocation15 + $0x58] sm:$0xff]  }
0x148f   :  { %v11303_v19 = vadd.f32 %v11282_v8, %v5163_v36  ;;  %v5086_v54 = vpop.xlane.xlu0 %5085  ;;  %v5088_v33 = vpop.xlane.xlu1 %5087 }
0x1490   :  { %v5199_v50 = vpack.c.bf16 %v11289_v26, %v11286_v37  ;;  %v5164_v56 = vmul.f32 %v11275_v48, %v5142_v22  ;;  %8355 = vrsqrt.f32 %v5118_v62  ;;  %v5105_v22 = vmul.f32 0.0078125, %v5088_v33  ;;  %v8063_v33 = vld [vmem:[#allocation25 + $0x78] sm:$0xff]  }
0x1491   :  { %v8344_v58 = vpop.eup %8343  ;;  %8357 = vrsqrt.f32 %v5117_v63  ;;  %7383 = vmatprep.subr.bf16.mxu1 %v8063_v33 }
0x1492   :  { %5331 = vmatmul.mubr.bf16.vlgmr.msra.gmra.mxu0 %v5199_v50  ;;  %v8346_v39 = vpop.eup %8345  ;;  %v11299_v10 = vadd.f32 %v11282_v8, %v5164_v56  ;;  %v5144_v9 = vmul.f32 %v8344_v58, %v11220_v21  ;;  %v5121_v36 = vadd.f32 1e-05, %v5105_v22  ;;  %v8071_v22 = vld [vmem:[#allocation25 + $0x58] sm:$0xff]  }
0x1493   :  { %5340 = vmatprep.mubr.bf16.mxu0 %v12429_v53  ;;  %7448 = vmatpush3.bf16.xpose.msra.mxu0 %v8496_v11  ;;  %v5143_v13 = vmul.f32 %v8346_v39, %v11212_v12  ;;  %v5104_v12 = vmul.f32 0.0078125, %v5086_v54  ;;  %v5090_v41 = vpop.xlane.xlu0 %5089 }
0x1494   :  { %7449 = vmatprep.subr.bf16.mxu0 %v8497_v46  ;;  %v5200_v52 = vpack.c.bf16 %v11299_v10, %v11303_v19  ;;  %v5166_v16 = vmul.f32 %v11275_v48, %v5144_v9 }
0x1495   :  { %v8348_v1 = vpop.eup %8347  ;;  %v5165_v21 = vmul.f32 %v11275_v48, %v5143_v13  ;;  %v5120_v34 = vadd.f32 1e-05, %v5104_v12 }
0x1496   :  { %v8350_v38 = vpop.eup %8349  ;;  %v11312_v27 = vadd.f32 %v11282_v8, %v5166_v16  ;;  %v5146_v49 = vmul.f32 %v8348_v1, %v11227_v0 }
0x1497   :  { %v11316_v28 = vadd.f32 %v11282_v8, %v5165_v21  ;;  %v5145_v60 = vmul.f32 %v8350_v38, %v11218_v3  ;;  %8359 = vrsqrt.f32 %v5120_v34  ;;  %v5106_v3 = vmul.f32 0.0078125, %v5090_v41  ;;  %v8508_v41 = vld [vmem:[#allocation15 + $0x8] sm:$0xff]  }
0x1498   :  { %v5168_v35 = vmul.f32 %v11275_v48, %v5146_v49  ;;  %8361 = vrsqrt.f32 %v5119_v44  ;;  %v8509_v44 = vld [vmem:[#allocation15 + $0x40] sm:$0xff]  }
0x1499   :  { %v5201_v14 = vpack.c.bf16 %v11312_v27, %v11316_v28  ;;  %v8352_v55 = vpop.eup %8351  ;;  %v5167_v0 = vmul.f32 %v11275_v48, %v5145_v60  ;;  %v5122_v56 = vadd.f32 1e-05, %v5106_v3  ;;  %v8067_v3 = vld [vmem:[#allocation25 + $0x68] sm:$0xff]  }
0x149a   :  { %5341 = vmatmul.mubr.bf16.gmra.mxu0 %v5200_v52  ;;  %v8354_v57 = vpop.eup %8353  ;;  %v11325_v17 = vadd.f32 %v11282_v8, %v5168_v35  ;;  %v5148_v4 = vmul.f32 %v8352_v55, %v11240_v5 }
0x149b   :  { %5350 = vmatprep.mubr.bf16.mxu0 %v12429_v53  ;;  %7450 = vmatpush3.bf16.xpose.msra.mxu0 %v8498_v31  ;;  %v11329_v20 = vadd.f32 %v11282_v8, %v5167_v0  ;;  %v5147_v50 = vmul.f32 %v8354_v57, %v11230_v25  ;;  %8363 = vrsqrt.f32 %v5122_v56  ;;  %v8510_v57 = vld [vmem:[#allocation15] sm:$0xff]   ;;  %v8073_v56 = vld [vmem:[#allocation25 + $0x50] sm:$0xff]  }
0x149c   :  { %7451 = vmatprep.subr.bf16.mxu0 %v8499_v15  ;;  %v5170_v47 = vmul.f32 %v11275_v48, %v5148_v4  ;;  %8365 = vrsqrt.f32 %v5121_v36  ;;  %v8068_v4 = vld [vmem:[#allocation25 + $0x28] sm:$0xff]   ;;  %v8077_v36 = vld [vmem:[#allocation25 + $0x40] sm:$0xff]  }
0x149d   :  { %v5202_v58 = vpack.c.bf16 %v11325_v17, %v11329_v20  ;;  %v8356_v61 = vpop.eup %8355  ;;  %v5169_v5 = vmul.f32 %v11275_v48, %v5147_v50  ;;  %v8072_v50 = vld [vmem:[#allocation25 + $0x18] sm:$0xff]  }
0x149e   :  { %v8358_v39 = vpop.eup %8357  ;;  %v11338_v11 = vadd.f32 %v11282_v8, %v5170_v47  ;;  %v5150_v25 = vmul.f32 %v8356_v61, %v11247_v32  ;;  %v8504_v32 = vld [vmem:[#allocation15 + $0x18] sm:$0xff]   ;;  %v8075_v47 = vld [vmem:[#allocation25 + $0x48] sm:$0xff]  }
0x149f   :  { %v11342_v9 = vadd.f32 %v11282_v8, %v5169_v5  ;;  %v5149_v46 = vmul.f32 %v8358_v39, %v11237_v24  ;;  %v8505_v24 = vld [vmem:[#allocation15 + $0x50] sm:$0xff]   ;;  %v8078_v5 = vld [vmem:[#allocation25] sm:$0xff]   ;;  %v561_v39 = vld [vmem:[#allocation24] sm:$0x3] }
0x14a0   :  { %v5172_v13 = vmul.f32 %v11275_v48, %v5150_v25  ;;  %v8076_v61 = vld [vmem:[#allocation25 + $0x8] sm:$0xff]  }
0x14a1   :  { %v5203_v42 = vpack.c.bf16 %v11338_v11, %v11342_v9  ;;  %v5171_v52 = vmul.f32 %v11275_v48, %v5149_v46 }
0x14a2   :  { %5351 = vmatmul.mubr.bf16.gmra.mxu0 %v5201_v14  ;;  %v11351_v1 = vadd.f32 %v11282_v8, %v5172_v13 }
0x14a3   :  { %5360 = vmatprep.mubr.bf16.mxu0 %v12429_v53  ;;  %7452 = vmatpush3.bf16.xpose.msra.mxu0 %v8500_v51  ;;  %v11355_v38 = vadd.f32 %v11282_v8, %v5171_v52  ;;  %v8066_v51 = vld [vmem:[#allocation25 + $0x30] sm:$0xff]  }
0x14a4   :  { %7453 = vmatprep.subr.bf16.mxu0 %v8501_v59  ;;  %v8360_v62 = vpop.eup %8359  ;;  %12430 = vst [vmem:[#allocation38_spill] sm:$0xff] %v11351_v1  ;;  %v8070_v59 = vld [vmem:[#allocation25 + $0x20] sm:$0xff]  }
0x14a5   :  { %v8362_v16 = vpop.eup %8361  ;;  %v5152_v54 = vmul.f32 %v8360_v62, %v11260_v40  ;;  %v5204_v21 = vpack.c.bf16 %v11351_v1, %v11355_v38  ;;  %v8506_v40 = vld [vmem:[#allocation15 + $0x10] sm:$0xff]  }
0x14a6   :  { %v5151_v63 = vmul.f32 %v8362_v16, %v11250_v30  ;;  %v8507_v30 = vld [vmem:[#allocation15 + $0x48] sm:$0xff]  }
0x14a7   :  { %v5174_v18 = vmul.f32 %v11275_v48, %v5152_v54 }
0x14a8   :  { %v8364_v31 = vpop.eup %8363  ;;  %v5173_v12 = vmul.f32 %v11275_v48, %v5151_v63 }
0x14a9   :  { %v8366_v49 = vpop.eup %8365  ;;  %v11364_v15 = vadd.f32 %v11282_v8, %v5174_v18  ;;  %v5154_v7 = vmul.f32 %v8364_v31, %v11267_v29 }
0x14aa   :  { %5361 = vmatmul.mubr.bf16.gmra.mxu0 %v5202_v58  ;;  %v11368_v60 = vadd.f32 %v11282_v8, %v5173_v12  ;;  %v5153_v34 = vmul.f32 %v8366_v49, %v11257_v43  ;;  %v8074_v58 = vld [vmem:[#allocation25 + $0x10] sm:$0xff]  }
0x14ab   :  { %5370 = vmatprep.mubr.bf16.mxu0 %v12429_v53  ;;  %7454 = vmatpush3.bf16.xpose.msra.mxu0 %v8502_v2  ;;  %12431 = vst [vmem:[#allocation40_spill] sm:$0xff] %v11364_v15  ;;  %v5176_v35 = vmul.f32 %v11275_v48, %v5154_v7  ;;  %v12435_v2 = vld [vmem:[#allocation45_spill] sm:$0xff] }
0x14ac   :  { %7455 = vmatprep.subr.bf16.mxu0 %v8503_v6  ;;  %12432 = vst [vmem:[#allocation39_spill] sm:$0xff] %v11368_v60  ;;  %v5205_v14 = vpack.c.bf16 %v11364_v15, %v11368_v60  ;;  %v5175_v55 = vmul.f32 %v11275_v48, %v5153_v34  ;;  %v8064_v48 = vld [vmem:[#allocation25 + $0x38] sm:$0xff]   ;;  %v12436_v25 = vsub.s32 0, %v12435_v2 }
0x14ad   :  { %v11377_v29 = vadd.f32 %v11282_v8, %v5176_v35  ;;  %7384 = vmatpush3.bf16.msra.mxu1 %v8064_v48 }
0x14ae   :  { %v11380_v0 = vadd.f32 %v11282_v8, %v5175_v55  ;;  %v8069_v8 = vld [vmem:[#allocation25 + $0x60] sm:$0xff]   ;;  %v11386_v6 = vrot.slane %v561_v39, %v12436_v25 }
0x14af   :  { %12433 = vst [vmem:[#allocation42_spill] sm:$0xff] %v11377_v29 }
0x14b0   :  { %12434 = vst [vmem:[#allocation41_spill] sm:$0xff] %v11380_v0  ;;  %v5206_v43 = vpack.c.bf16 %v11377_v29, %v11380_v0 }
0x14b2   :  { %5371 = vmatmul.mubr.bf16.gmra.mxu0 %v5203_v42  ;;  %v12437_v42 = vsub.s32 1, %v12435_v2 }
0x14b3   :  { %5380 = vmatprep.mubr.bf16.mxu0 %v12429_v53  ;;  %7456 = vmatpush3.bf16.xpose.msra.mxu0 %v8504_v32 }
0x14b4   :  { %7457 = vmatprep.subr.bf16.mxu0 %v8505_v24  ;;  %v11390_v13 = vrot.slane %v561_v39, %v12437_v42 }
0x14ba   :  { %5381 = vmatmul.mubr.bf16.gmra.mxu0 %v5204_v21 }
0x14bb   :  { %5390 = vmatprep.mubr.bf16.mxu0 %v12429_v53  ;;  %7458 = vmatpush3.bf16.xpose.msra.mxu0 %v8506_v40 }
0x14bc   :  { %7459 = vmatprep.subr.bf16.mxu0 %v8507_v30 }
0x14c2   :  { %5391 = vmatmul.mubr.bf16.gmra.mxu0 %v5205_v14 }
0x14c3   :  { %5400 = vmatprep.mubr.bf16.mxu0 %v12429_v53  ;;  %7460 = vmatpush3.bf16.xpose.msra.mxu0 %v8508_v41  ;;  %v8065_v53 = vld [vmem:[#allocation25 + $0x70] sm:$0xff]  }
0x14c4   :  { %7461 = vmatprep.subr.bf16.mxu0 %v8509_v44  ;;  %7385 = vmatprep.subr.bf16.mxu1 %v8065_v53 }
0x14c5   :  { %7386 = vmatpush3.bf16.msra.mxu1 %v8066_v51 }
0x14c6   :  { %7387 = vmatprep.subr.bf16.mxu1 %v8067_v3 }
0x14c9   :  { %7388 = vmatpush3.bf16.msra.mxu1 %v8068_v4 }
0x14ca   :  { %5401 = vmatmul.mubr.bf16.gmra.mxu0 %v5206_v43  ;;  %7389 = vmatprep.subr.bf16.mxu1 %v8069_v8 }
0x14cb   :  { %7462 = vmatpush3.bf16.xpose.msra.mxu0 %v8510_v57 }
0x14cd   :  { %7390 = vmatpush3.bf16.msra.mxu1 %v8070_v59 }
0x14ce   :  { %7391 = vmatprep.subr.bf16.mxu1 %v8071_v22 }
0x14d1   :  { %7392 = vmatpush3.bf16.msra.mxu1 %v8072_v50 }
0x14d2   :  { %7393 = vmatprep.subr.bf16.mxu1 %v8073_v56 }
0x14d5   :  { %7394 = vmatpush3.bf16.msra.mxu1 %v8074_v58 }
0x14d6   :  { %7395 = vmatprep.subr.bf16.mxu1 %v8075_v47 }
0x14d9   :  { %7396 = vmatpush3.bf16.msra.mxu1 %v8076_v61 }
0x14da   :  { %7397 = vmatprep.subr.bf16.mxu1 %v8077_v36 }
0x14dd   :  { %7398 = vmatpush3.bf16.msra.mxu1 %v8078_v5 }
0x1552   :  { %v5332_v46 = vpop.f32.mrf.mxu0 }
0x1553   :  { %v11393_v62 = vadd.f32 %v5332_v46, %v11386_v6 }
0x1554   :  { %v5334_v52 = vpop.f32.mrf.mxu0 }
0x1555   :  { %v5411_v16 = vmul.f32 %v11393_v62, %v11393_v62  ;;  %v11398_v32 = vadd.f32 %v5334_v52, %v11390_v13 }
0x1556   :  { %v5336_v54 = vpop.f32.mrf.mxu0 }
0x1557   :  { %v5443_v24 = vmul.f32 %v5411_v16, %v11393_v62  ;;  %v11402_v63 = vadd.f32 %v5336_v54, %v11386_v6  ;;  %v5412_v49 = vmul.f32 %v11398_v32, %v11398_v32 }
0x1558   :  { %v5338_v21 = vpop.f32.mrf.mxu0 }
0x1559   :  { %v5475_v18 = vmul.f32 0.044715, %v5443_v24  ;;  %v5413_v31 = vmul.f32 %v11402_v63, %v11402_v63  ;;  %v11407_v12 = vadd.f32 %v5338_v21, %v11390_v13  ;;  %v5444_v41 = vmul.f32 %v5412_v49, %v11398_v32 }
0x155a   :  { %v5342_v40 = vpop.f32.mrf.mxu0 }
0x155b   :  { %v5507_v7 = vadd.f32 %v5475_v18, %v11393_v62  ;;  %v5445_v30 = vmul.f32 %v5413_v31, %v11402_v63  ;;  %v11414_v34 = vadd.f32 %v5342_v40, %v11386_v6  ;;  %v5414_v55 = vmul.f32 %v11407_v12, %v11407_v12 }
0x155c   :  { %v5344_v14 = vpop.f32.mrf.mxu0  ;;  %v5476_v50 = vmul.f32 0.044715, %v5444_v41 }
0x155d   :  { %v5477_v35 = vmul.f32 0.044715, %v5445_v30  ;;  %v5415_v44 = vmul.f32 %v11414_v34, %v11414_v34  ;;  %v11422_v43 = vadd.f32 %v5344_v14, %v11390_v13  ;;  %v5539_v33 = vmul.f32 0.7978846, %v5507_v7 }
0x155e   :  { %v5346_v57 = vpop.f32.mrf.mxu0  ;;  %v5446_v59 = vmul.f32 %v5414_v55, %v11407_v12  ;;  %v5508_v16 = vadd.f32 %v5476_v50, %v11398_v32 }
0x155f   :  { %v5509_v48 = vadd.f32 %v5477_v35, %v11402_v63  ;;  %v5447_v53 = vmul.f32 %v5415_v44, %v11414_v34  ;;  %v5416_v51 = vmul.f32 %v11422_v43, %v11422_v43  ;;  %v11429_v3 = vadd.f32 %v5346_v57, %v11386_v6 }
0x1560   :  { %v5348_v4 = vpop.f32.mrf.mxu0  ;;  %8367 = vtanh.f32 %v5539_v33  ;;  %v5478_v46 = vmul.f32 0.044715, %v5446_v59 }
0x1561   :  { %v5541_v8 = vmul.f32 0.7978846, %v5509_v48  ;;  %v11433_v22 = vadd.f32 %v5348_v4, %v11390_v13  ;;  %v5479_v56 = vmul.f32 0.044715, %v5447_v53  ;;  %v5417_v58 = vmul.f32 %v11429_v3, %v11429_v3 }
0x1562   :  { %v5352_v47 = vpop.f32.mrf.mxu0  ;;  %v5448_v61 = vmul.f32 %v5416_v51, %v11422_v43  ;;  %v5510_v35 = vadd.f32 %v5478_v46, %v11407_v12  ;;  %v5540_v53 = vmul.f32 0.7978846, %v5508_v16 }
0x1563   :  { %v11439_v36 = vadd.f32 %v5352_v47, %v11386_v6  ;;  %8369 = vtanh.f32 %v5541_v8  ;;  %v5511_v5 = vadd.f32 %v5479_v56, %v11414_v34  ;;  %v5449_v39 = vmul.f32 %v5417_v58, %v11429_v3 }
0x1564   :  { %v5418_v2 = vmul.f32 %v11433_v22, %v11433_v22  ;;  %v5354_v25 = vpop.f32.mrf.mxu0  ;;  %v5480_v18 = vmul.f32 0.044715, %v5448_v61  ;;  %v5542_v47 = vmul.f32 0.7978846, %v5510_v35 }
0x1565   :  { %v5419_v42 = vmul.f32 %v11439_v36, %v11439_v36  ;;  %v11448_v52 = vadd.f32 %v5354_v25, %v11390_v13  ;;  %v5543_v54 = vmul.f32 0.7978846, %v5511_v5  ;;  %v5481_v24 = vmul.f32 0.044715, %v5449_v39 }
0x1566   :  { %v5356_v21 = vpop.f32.mrf.mxu0  ;;  %v5450_v30 = vmul.f32 %v5418_v2, %v11433_v22  ;;  %v5512_v51 = vadd.f32 %v5480_v18, %v11422_v43 }
0x1567   :  { %v5451_v31 = vmul.f32 %v5419_v42, %v11439_v36  ;;  %v5420_v49 = vmul.f32 %v11448_v52, %v11448_v52  ;;  %v11455_v40 = vadd.f32 %v5356_v21, %v11386_v6  ;;  %v5513_v7 = vadd.f32 %v5481_v24, %v11429_v3 }
0x1568   :  { %v5358_v14 = vpop.f32.mrf.mxu0  ;;  %8371 = vtanh.f32 %v5543_v54  ;;  %v5482_v59 = vmul.f32 0.044715, %v5450_v30  ;;  %v5544_v16 = vmul.f32 0.7978846, %v5512_v51 }
0x1569   :  { %v5483_v55 = vmul.f32 0.044715, %v5451_v31  ;;  %v5452_v41 = vmul.f32 %v5420_v49, %v11448_v52  ;;  %v5421_v44 = vmul.f32 %v11455_v40, %v11455_v40  ;;  %v5545_v57 = vmul.f32 0.7978846, %v5513_v7 }
0x156a   :  { %v11464_v33 = vadd.f32 %v5358_v14, %v11390_v13  ;;  %v5362_v48 = vpop.f32.mrf.mxu0  ;;  %v5514_v21 = vadd.f32 %v5482_v59, %v11433_v22 }
0x156b   :  { %v5515_v4 = vadd.f32 %v5483_v55, %v11439_v36  ;;  %v5453_v8 = vmul.f32 %v5421_v44, %v11455_v40  ;;  %8373 = vtanh.f32 %v5545_v57  ;;  %v11472_v56 = vadd.f32 %v5362_v48, %v11386_v6 }
0x156c   :  { %v5422_v50 = vmul.f32 %v11464_v33, %v11464_v33  ;;  %v5364_v58 = vpop.f32.mrf.mxu0  ;;  %v5484_v5 = vmul.f32 0.044715, %v5452_v41  ;;  %8375 = vtanh.f32 %v5540_v53 }
0x156d   :  { %v5547_v61 = vmul.f32 0.7978846, %v5515_v4  ;;  %v5485_v39 = vmul.f32 0.044715, %v5453_v8  ;;  %v5423_v25 = vmul.f32 %v11472_v56, %v11472_v56  ;;  %v11478_v46 = vadd.f32 %v5364_v58, %v11390_v13  ;;  %v8368_v24 = vpop.eup %8367 }
0x156e   :  { %v5454_v2 = vmul.f32 %v5422_v50, %v11464_v33  ;;  %v5366_v42 = vpop.f32.mrf.mxu0  ;;  %8377 = vtanh.f32 %v5542_v47  ;;  %v5516_v14 = vadd.f32 %v5484_v5, %v11448_v52  ;;  %v5603_v8 = vadd.f32 1.0, %v8368_v24 }
0x156f   :  { %v11481_v54 = vadd.f32 %v5366_v42, %v11386_v6  ;;  %v5517_v18 = vadd.f32 %v5485_v39, %v11455_v40  ;;  %v5455_v31 = vmul.f32 %v5423_v25, %v11472_v56  ;;  %v5424_v49 = vmul.f32 %v11478_v46, %v11478_v46 }
0x1570   :  { %v5368_v7 = vpop.f32.mrf.mxu0  ;;  %v8370_v30 = vpop.eup %8369  ;;  %8379 = vtanh.f32 %v5547_v61  ;;  %v5486_v41 = vmul.f32 0.044715, %v5454_v2  ;;  %v5546_v50 = vmul.f32 0.7978846, %v5514_v21  ;;  %v5548_v2 = vmul.f32 0.7978846, %v5516_v14 }
0x1571   :  { %v5425_v35 = vmul.f32 %v11481_v54, %v11481_v54  ;;  %v5549_v55 = vmul.f32 0.7978846, %v5517_v18  ;;  %v5487_v44 = vmul.f32 0.044715, %v5455_v31  ;;  %v5456_v48 = vmul.f32 %v5424_v49, %v11478_v46 }
0x1572   :  { %v5372_v57 = vpop.f32.mrf.mxu0  ;;  %v11494_v51 = vadd.f32 %v5368_v7, %v11390_v13  ;;  %v5605_v59 = vadd.f32 1.0, %v8370_v30  ;;  %8381 = vtanh.f32 %v5544_v16  ;;  %v5518_v18 = vadd.f32 %v5486_v41, %v11464_v33 }
0x1573   :  { %v5457_v53 = vmul.f32 %v5425_v35, %v11481_v54  ;;  %v11497_v4 = vadd.f32 %v5372_v57, %v11386_v6  ;;  %v5519_v47 = vadd.f32 %v5487_v44, %v11472_v56  ;;  %8383 = vtanh.f32 %v5549_v55 }
0x1574   :  { %v5374_v58 = vpop.f32.mrf.mxu0  ;;  %v5426_v5 = vmul.f32 %v11494_v51, %v11494_v51  ;;  %v5488_v24 = vmul.f32 0.044715, %v5456_v48  ;;  %8385 = vtanh.f32 %v5546_v50  ;;  %v5635_v35 = vmul.f32 0.5, %v5603_v8 }
0x1575   :  { %v5489_v61 = vmul.f32 0.044715, %v5457_v53  ;;  %v5427_v39 = vmul.f32 %v11497_v4, %v11497_v4  ;;  %v8372_v42 = vpop.eup %8371  ;;  %v11509_v49 = vadd.f32 %v5374_v58, %v11390_v13  ;;  %v5637_v14 = vmul.f32 0.5, %v5605_v59 }
0x1576   :  { %v5376_v25 = vpop.f32.mrf.mxu0  ;;  %v5458_v21 = vmul.f32 %v5426_v5, %v11494_v51  ;;  %v5551_v55 = vmul.f32 0.7978846, %v5519_v47  ;;  %v5607_v41 = vadd.f32 1.0, %v8372_v42  ;;  %8387 = vtanh.f32 %v5548_v2 }
0x1577   :  { %v5521_v16 = vadd.f32 %v5489_v61, %v11481_v54  ;;  %v5459_v31 = vmul.f32 %v5427_v39, %v11497_v4  ;;  %v11512_v44 = vadd.f32 %v5376_v25, %v11386_v6  ;;  %v5428_v48 = vmul.f32 %v11509_v49, %v11509_v49 }
0x1578   :  { %v5378_v7 = vpop.f32.mrf.mxu0  ;;  %v8374_v30 = vpop.eup %8373  ;;  %v5550_v50 = vmul.f32 0.7978846, %v5518_v18  ;;  %v5520_v61 = vadd.f32 %v5488_v24, %v11478_v46  ;;  %v5490_v58 = vmul.f32 0.044715, %v5458_v21  ;;  %v11526_v42 = vmul.f32 %v5635_v35, %v11393_v62 }
0x1579   :  { %v5553_v57 = vmul.f32 0.7978846, %v5521_v16  ;;  %v5429_v5 = vmul.f32 %v11512_v44, %v11512_v44  ;;  %v8376_v8 = vpop.eup %8375  ;;  %v5609_v59 = vadd.f32 1.0, %v8374_v30  ;;  %v5491_v47 = vmul.f32 0.044715, %v5459_v31 }
0x157a   :  { %v5382_v53 = vpop.f32.mrf.mxu0  ;;  %v11520_v39 = vadd.f32 %v5378_v7, %v11390_v13  ;;  %v11529_v18 = vmul.f32 %v5637_v14, %v11402_v63  ;;  %8389 = vtanh.f32 %v5551_v55  ;;  %v5460_v24 = vmul.f32 %v5428_v48, %v11509_v49 }
0x157b   :  { %v11523_v2 = vadd.f32 %v5382_v53, %v11386_v6  ;;  %v8378_v16 = vpop.eup %8377  ;;  %v5639_v21 = vmul.f32 0.5, %v5607_v41  ;;  %8391 = vtanh.f32 %v5553_v57  ;;  %v5461_v31 = vmul.f32 %v5429_v5, %v11512_v44 }
0x157c   :  { %v5384_v25 = vpop.f32.mrf.mxu0  ;;  %v5430_v7 = vmul.f32 %v11520_v39, %v11520_v39  ;;  %v5552_v23 = vmul.f32 0.7978846, %v5520_v61  ;;  %v5522_v62 = vadd.f32 %v5490_v58, %v11494_v51  ;;  %v5604_v35 = vadd.f32 1.0, %v8376_v8 }
0x157d   :  { %v8380_v53 = vpop.eup %8379  ;;  %v5431_v63 = vmul.f32 %v11523_v2, %v11523_v2  ;;  %v5641_v14 = vmul.f32 0.5, %v5609_v59  ;;  %8393 = vtanh.f32 %v5550_v50  ;;  %v5523_v55 = vadd.f32 %v5491_v47, %v11497_v4 }
0x157e   :  { %v5386_v30 = vpop.f32.mrf.mxu0  ;;  %v5462_v41 = vmul.f32 %v5430_v7, %v11520_v39  ;;  %v5699_v5 = vpack.c.bf16 %v11529_v18, %v11526_v42  ;;  %v5492_v45 = vmul.f32 0.044715, %v5460_v24  ;;  %v5606_v29 = vadd.f32 1.0, %v8378_v16 }
0x157f   :  { %v8382_v48 = vpop.eup %8381  ;;  %v5636_v61 = vmul.f32 0.5, %v5604_v35  ;;  %v11543_v58 = vmul.f32 %v5639_v21, %v11414_v34  ;;  %v5611_v0 = vadd.f32 1.0, %v8380_v53  ;;  %v5493_v15 = vmul.f32 0.044715, %v5461_v31 }
0x1580   :  { %v5388_v57 = vpop.f32.mrf.mxu0  ;;  %v11546_v8 = vadd.f32 %v5384_v25, %v11390_v13  ;;  %v8384_v59 = vpop.eup %8383  ;;  %8395 = vtanh.f32 %v5552_v23  ;;  %v5554_v47 = vmul.f32 0.7978846, %v5522_v62  ;;  %v5463_v7 = vmul.f32 %v5431_v63, %v11523_v2 }
0x1581   :  { %v5638_v60 = vmul.f32 0.5, %v5606_v29  ;;  %v11550_v42 = vmul.f32 %v5641_v14, %v11429_v3  ;;  %v5555_v18 = vmul.f32 0.7978846, %v5523_v55  ;;  %v5494_v24 = vmul.f32 0.044715, %v5462_v41  ;;  %v8386_v21 = vpop.eup %8385 }
0x1582   :  { %v5392_v50 = vpop.f32.mrf.mxu0  ;;  %v5432_v34 = vmul.f32 %v11546_v8, %v11546_v8  ;;  %v5524_v25 = vadd.f32 %v5492_v45, %v11509_v49  ;;  %v5668_v31 = vmul.f32 %v5636_v61, %v11398_v32  ;;  %v11558_v53 = vadd.f32 %v5386_v30, %v11386_v6 }
0x1583   :  { %v5670_v23 = vmul.f32 %v5638_v60, %v11407_v12  ;;  %v5643_v29 = vmul.f32 0.5, %v5611_v0  ;;  %v5613_v62 = vadd.f32 1.0, %v8384_v59  ;;  %v5525_v3 = vadd.f32 %v5493_v15, %v11512_v44  ;;  %v11562_v14 = vpop.eup %8387 }
0x1584   :  { %v5394_v16 = vpop.f32.mrf.mxu0  ;;  %v5464_v63 = vmul.f32 %v5432_v34, %v11546_v8  ;;  %v5495_v55 = vmul.f32 0.044715, %v5463_v7  ;;  %v5433_v45 = vmul.f32 %v11558_v53, %v11558_v53  ;;  %v11567_v32 = vadd.f32 %v5388_v57, %v11390_v13 }
0x1585   :  { %v5700_v41 = vpack.c.bf16 %v5670_v23, %v5668_v31  ;;  %8397 = vtanh.f32 %v5554_v47  ;;  %v5526_v60 = vadd.f32 %v5494_v24, %v11520_v39  ;;  %v11571_v12 = vadd.f32 %v5392_v50, %v11386_v6 }
0x1586   :  { %v5396_v35 = vpop.f32.mrf.mxu0  ;;  %v5496_v0 = vmul.f32 0.044715, %v5464_v63  ;;  %8399 = vtanh.f32 %v5555_v18  ;;  %v5556_v15 = vmul.f32 0.7978846, %v5524_v25  ;;  %v5465_v30 = vmul.f32 %v5433_v45, %v11558_v53 }
0x1587   :  { %5849 = vmatprep.mubr.bf16.mxu1 %v5700_v41  ;;  %v5434_v61 = vmul.f32 %v11567_v32, %v11567_v32  ;;  %v8390_v7 = vpop.eup %8389  ;;  %v11577_v57 = vmul.f32 %v5643_v29, %v11439_v36  ;;  %v5557_v47 = vmul.f32 0.7978846, %v5525_v3  ;;  %v5608_v34 = vadd.f32 1.0, %v8382_v48 }
0x1588   :  { %v5398_v59 = vpop.f32.mrf.mxu0  ;;  %v5528_v24 = vadd.f32 %v5496_v0, %v11546_v8  ;;  %5850 = vmatmul.mubr.bf16.vlgmr.msra.gmra.mxu1 %v5699_v5  ;;  %v8392_v50 = vpop.eup %8391  ;;  %v5645_v31 = vmul.f32 0.5, %v5613_v62  ;;  %v5527_v18 = vadd.f32 %v5495_v55, %v11523_v2  ;;  %v5610_v23 = vadd.f32 1.0, %v8386_v21 }
0x1589   :  { %v5466_v25 = vmul.f32 %v5434_v61, %v11567_v32  ;;  %v5558_v63 = vmul.f32 0.7978846, %v5526_v60  ;;  %v5435_v41 = vmul.f32 %v11571_v12, %v11571_v12  ;;  %v5640_v45 = vmul.f32 0.5, %v5608_v34 }
0x158a   :  { %v11585_v36 = vadd.f32 %v5394_v16, %v11390_v13  ;;  %v8394_v29 = vpop.eup %8393  ;;  %8401 = vtanh.f32 %v5556_v15  ;;  %v5497_v3 = vmul.f32 0.044715, %v5465_v30  ;;  %v5642_v48 = vmul.f32 0.5, %v5610_v23  ;;  %v5402_v0 = vpop.f32.mrf.mxu0 }
0x158b   :  { %v5498_v5 = vmul.f32 0.044715, %v5466_v25  ;;  %v5615_v62 = vadd.f32 1.0, %v8390_v7  ;;  %v5617_v1 = vadd.f32 1.0, %v8392_v50  ;;  %8403 = vtanh.f32 %v5557_v47 }
0x158c   :  { %v5560_v55 = vmul.f32 0.7978846, %v5528_v24  ;;  %v5672_v60 = vmul.f32 %v5640_v45, %v11422_v43  ;;  %v5674_v61 = vmul.f32 %v5642_v48, %v11433_v22  ;;  %v5436_v16 = vmul.f32 %v11585_v36, %v11585_v36  ;;  %v5404_v25 = vpop.f32.mrf.mxu0 }
0x158d   :  { %v5530_v21 = vadd.f32 %v5498_v5, %v11567_v32  ;;  %v11592_v34 = vpop.eup %8395  ;;  %8405 = vtanh.f32 %v5558_v63  ;;  %v5559_v15 = vmul.f32 0.7978846, %v5527_v18  ;;  %v5467_v30 = vmul.f32 %v5435_v41, %v11571_v12 }
0x158e   :  { %v11596_v7 = vadd.f32 %v5396_v35, %v11386_v6  ;;  %v5529_v47 = vadd.f32 %v5497_v3, %v11558_v53  ;;  %v5702_v50 = vpack.c.bf16 %v5674_v61, %v5672_v60  ;;  %v5468_v43 = vmul.f32 %v5436_v16, %v11585_v36 }
0x158f   :  { %v5562_v24 = vmul.f32 0.7978846, %v5530_v21  ;;  %v5647_v22 = vmul.f32 0.5, %v5615_v62  ;;  %v5701_v23 = vpack.c.bf16 %v11550_v42, %v11543_v58  ;;  %v11605_v18 = vadd.f32 %v5398_v59, %v11390_v13 }
0x1590   :  { %v5437_v63 = vmul.f32 %v11596_v7, %v11596_v7  ;;  %v5649_v41 = vmul.f32 0.5, %v5617_v1  ;;  %8407 = vtanh.f32 %v5560_v55  ;;  %5857 = vmatprep.mubr.bf16.mxu1 %v5702_v50  ;;  %v5500_v35 = vmul.f32 0.044715, %v5468_v43  ;;  %v5406_v55 = vpop.f32.mrf.mxu0 }
0x1591   :  { %v11608_v45 = vadd.f32 %v5402_v0, %v11386_v6  ;;  %v5499_v3 = vmul.f32 0.044715, %v5467_v30  ;;  %5858 = vmatmul.mubr.bf16.gmra.mxu1 %v5701_v23  ;;  %v5438_v58 = vmul.f32 %v11605_v18, %v11605_v18  ;;  %v5612_v42 = vadd.f32 1.0, %v11562_v14 }
0x1592   :  { %v5469_v5 = vmul.f32 %v5437_v63, %v11596_v7  ;;  %v8398_v48 = vpop.eup %8397  ;;  %v5561_v62 = vmul.f32 0.7978846, %v5529_v47  ;;  %8409 = vtanh.f32 %v5562_v24  ;;  %v5532_v1 = vadd.f32 %v5500_v35, %v11585_v36 }
0x1593   :  { %v5614_v59 = vadd.f32 1.0, %v8394_v29  ;;  %v8400_v21 = vpop.eup %8399  ;;  %v5470_v0 = vmul.f32 %v5438_v58, %v11605_v18  ;;  %v5644_v61 = vmul.f32 0.5, %v5612_v42  ;;  %v11617_v16 = vadd.f32 %v5404_v25, %v11390_v13 }
0x1594   :  { %v5501_v60 = vmul.f32 0.044715, %v5469_v5  ;;  %v5677_v30 = vmul.f32 %v5645_v31, %v11455_v40  ;;  %8411 = vtanh.f32 %v5559_v15  ;;  %v5564_v50 = vmul.f32 0.7978846, %v5532_v1  ;;  %v5408_v31 = vpop.f32.mrf.mxu0 }
0x1595   :  { %v5439_v14 = vmul.f32 %v11608_v45, %v11608_v45  ;;  %v11623_v47 = vmul.f32 %v5647_v22, %v11472_v56  ;;  %v5502_v24 = vmul.f32 0.044715, %v5470_v0  ;;  %v5646_v43 = vmul.f32 0.5, %v5614_v59 }
0x1596   :  { %v5533_v29 = vadd.f32 %v5501_v60, %v11596_v7  ;;  %v11627_v23 = vmul.f32 %v5649_v41, %v11481_v54  ;;  %8413 = vtanh.f32 %v5561_v62  ;;  %v5531_v25 = vadd.f32 %v5499_v3, %v11571_v12 }
0x1597   :  { %v5440_v40 = vmul.f32 %v11617_v16, %v11617_v16  ;;  %v8402_v15 = vpop.eup %8401  ;;  %8415 = vtanh.f32 %v5564_v50  ;;  %v5534_v63 = vadd.f32 %v5502_v24, %v11605_v18  ;;  %v5676_v56 = vmul.f32 %v5644_v61, %v11448_v52 }
0x1598   :  { %v5678_v22 = vmul.f32 %v5646_v43, %v11464_v33  ;;  %v8404_v35 = vpop.eup %8403  ;;  %v5619_v5 = vadd.f32 1.0, %v8400_v21  ;;  %v5471_v54 = vmul.f32 %v5439_v14, %v11608_v45  ;;  %v11638_v3 = vadd.f32 %v5406_v55, %v11386_v6 }
0x1599   :  { %v5472_v41 = vmul.f32 %v5440_v40, %v11617_v16  ;;  %v5565_v58 = vmul.f32 0.7978846, %v5533_v29  ;;  %v5566_v42 = vmul.f32 0.7978846, %v5534_v63  ;;  %v11641_v1 = vadd.f32 %v5408_v31, %v11390_v13 }
0x159a   :  { %v5704_v62 = vpack.c.bf16 %v5678_v22, %v5676_v56  ;;  %v8406_v59 = vpop.eup %8405  ;;  %v5703_v52 = vpack.c.bf16 %v5677_v30, %v11577_v57  ;;  %v5441_v33 = vmul.f32 %v11638_v3, %v11638_v3  ;;  %v5616_v21 = vadd.f32 1.0, %v11592_v34 }
0x159b   :  { %v5504_v60 = vmul.f32 0.044715, %v5472_v41  ;;  %v5563_v0 = vmul.f32 0.7978846, %v5531_v25  ;;  %8417 = vtanh.f32 %v5566_v42  ;;  %v5442_v6 = vmul.f32 %v11641_v1, %v11641_v1 }
0x159c   :  { %5865 = vmatprep.mubr.bf16.mxu1 %v5704_v62  ;;  %v5618_v55 = vadd.f32 1.0, %v8398_v48  ;;  %v5621_v61 = vadd.f32 1.0, %v8404_v35  ;;  %v5503_v50 = vmul.f32 0.044715, %v5471_v54  ;;  %v5473_v14 = vmul.f32 %v5441_v33, %v11638_v3 }
0x159d   :  { %v5536_v13 = vadd.f32 %v5504_v60, %v11617_v16  ;;  %5866 = vmatmul.mubr.bf16.gmra.mxu1 %v5703_v52  ;;  %v8408_v57 = vpop.eup %8407  ;;  %v5474_v30 = vmul.f32 %v5442_v6, %v11641_v1  ;;  %v5648_v29 = vmul.f32 0.5, %v5616_v21  ;;  %v5620_v34 = vadd.f32 1.0, %v8402_v15 }
0x159e   :  { %v5650_v24 = vmul.f32 0.5, %v5618_v55  ;;  %8419 = vtanh.f32 %v5565_v58  ;;  %v5505_v25 = vmul.f32 0.044715, %v5473_v14  ;;  %v5622_v40 = vadd.f32 1.0, %v8406_v59 }
0x159f   :  { %v5568_v43 = vmul.f32 0.7978846, %v5536_v13  ;;  %v8410_v31 = vpop.eup %8409  ;;  %8421 = vtanh.f32 %v5563_v0  ;;  %v5506_v48 = vmul.f32 0.044715, %v5474_v30  ;;  %v5680_v63 = vmul.f32 %v5648_v29, %v11478_v46 }
0x15a0   :  { %v5682_v56 = vmul.f32 %v5650_v24, %v11494_v51  ;;  %v5535_v22 = vadd.f32 %v5503_v50, %v11608_v45  ;;  %v5537_v35 = vadd.f32 %v5505_v25, %v11638_v3  ;;  %v5652_v54 = vmul.f32 0.5, %v5620_v34 }
0x15a1   :  { %8423 = vtanh.f32 %v5568_v43  ;;  %v8412_v41 = vpop.eup %8411  ;;  %v5538_v15 = vadd.f32 %v5506_v48, %v11641_v1  ;;  %v5654_v42 = vmul.f32 0.5, %v5622_v40  ;;  %v5653_v62 = vmul.f32 0.5, %v5621_v61 }
0x15a2   :  { %v5706_v58 = vpack.c.bf16 %v5682_v56, %v5680_v63  ;;  %v5569_v59 = vmul.f32 0.7978846, %v5537_v35  ;;  %v5705_v60 = vpack.c.bf16 %v11627_v23, %v11623_v47  ;;  %v5624_v52 = vadd.f32 1.0, %v8408_v57 }
0x15a3   :  { %v8414_v46 = vpop.eup %8413  ;;  %v5570_v33 = vmul.f32 0.7978846, %v5538_v15  ;;  %v5684_v51 = vmul.f32 %v5652_v54, %v11509_v49  ;;  %v5686_v21 = vmul.f32 %v5654_v42, %v11520_v39  ;;  %v5626_v0 = vadd.f32 1.0, %v8410_v31 }
0x15a4   :  { %5873 = vmatprep.mubr.bf16.mxu1 %v5706_v58  ;;  %v8416_v6 = vpop.eup %8415  ;;  %v5651_v55 = vmul.f32 0.5, %v5619_v5  ;;  %v5567_v50 = vmul.f32 0.7978846, %v5535_v22  ;;  %v5656_v13 = vmul.f32 0.5, %v5624_v52  ;;  %v5685_v30 = vmul.f32 %v5653_v62, %v11512_v44 }
0x15a5   :  { %5874 = vmatmul.mubr.bf16.gmra.mxu1 %v5705_v60  ;;  %8425 = vtanh.f32 %v5570_v33  ;;  %v5708_v61 = vpack.c.bf16 %v5686_v21, %v5684_v51  ;;  %v5658_v14 = vmul.f32 0.5, %v5626_v0  ;;  %v5625_v47 = vadd.f32 1.0, %v8414_v46 }
0x15a6   :  { %8427 = vtanh.f32 %v5569_v59  ;;  %v5688_v23 = vmul.f32 %v5656_v13, %v11546_v8  ;;  %v5628_v57 = vadd.f32 1.0, %v8416_v6  ;;  %v5683_v29 = vmul.f32 %v5651_v55, %v11497_v4 }
0x15a7   :  { %5881 = vmatprep.mubr.bf16.mxu1 %v5708_v61  ;;  %v5690_v49 = vmul.f32 %v5658_v14, %v11567_v32  ;;  %v5623_v5 = vadd.f32 1.0, %v8412_v41  ;;  %8429 = vtanh.f32 %v5567_v50  ;;  %v5657_v43 = vmul.f32 0.5, %v5625_v47 }
0x15a8   :  { %v8418_v39 = vpop.eup %8417  ;;  %v5707_v25 = vpack.c.bf16 %v5685_v30, %v5683_v29  ;;  %v5660_v31 = vmul.f32 0.5, %v5628_v57 }
0x15a9   :  { %v5710_v24 = vpack.c.bf16 %v5690_v49, %v5688_v23  ;;  %v5630_v34 = vadd.f32 1.0, %v8418_v39  ;;  %v5655_v63 = vmul.f32 0.5, %v5623_v5  ;;  %v5689_v32 = vmul.f32 %v5657_v43, %v11558_v53 }
0x15aa   :  { %v5692_v4 = vmul.f32 %v5660_v31, %v11585_v36 }
0x15ab   :  { %v8420_v40 = vpop.eup %8419  ;;  %v5662_v44 = vmul.f32 0.5, %v5630_v34  ;;  %v5687_v54 = vmul.f32 %v5655_v63, %v11523_v2 }
0x15ac   :  { %v8422_v48 = vpop.eup %8421  ;;  %v5629_v22 = vadd.f32 1.0, %v8420_v40 }
0x15ad   :  { %5882 = vmatmul.mubr.bf16.gmra.mxu1 %v5707_v25  ;;  %v5694_v8 = vmul.f32 %v5662_v44, %v11605_v18  ;;  %v5627_v41 = vadd.f32 1.0, %v8422_v48  ;;  %v5709_v62 = vpack.c.bf16 %v5689_v32, %v5687_v54 }
0x15ae   :  { %v8424_v56 = vpop.eup %8423  ;;  %5889 = vmatprep.mubr.bf16.mxu1 %v5710_v24  ;;  %v5661_v42 = vmul.f32 0.5, %v5629_v22 }
0x15af   :  { %v5632_v35 = vadd.f32 1.0, %v8424_v56  ;;  %v5712_v15 = vpack.c.bf16 %v5694_v8, %v5692_v4  ;;  %v5659_v46 = vmul.f32 0.5, %v5627_v41 }
0x15b0   :  { %v5693_v53 = vmul.f32 %v5661_v42, %v11596_v7 }
0x15b1   :  { %v5664_v52 = vmul.f32 0.5, %v5632_v35  ;;  %v5691_v21 = vmul.f32 %v5659_v46, %v11571_v12 }
0x15b2   :  { %v8426_v58 = vpop.eup %8425 }
0x15b3   :  { %v8428_v59 = vpop.eup %8427  ;;  %v5634_v60 = vadd.f32 1.0, %v8426_v58  ;;  %v5696_v36 = vmul.f32 %v5664_v52, %v11617_v16  ;;  %v5711_v50 = vpack.c.bf16 %v5693_v53, %v5691_v21  ;;  %v11678_v16 = vld [vmem:[%s12339_s25] ss:$0 sm:$0xff] }
0x15b4   :  { %v8430_v33 = vpop.eup %8429  ;;  %v5633_v51 = vadd.f32 1.0, %v8428_v59 }
0x15b5   :  { %5890 = vmatmul.mubr.bf16.gmra.mxu1 %v5709_v62  ;;  %v5666_v18 = vmul.f32 0.5, %v5634_v60  ;;  %v5631_v0 = vadd.f32 1.0, %v8430_v33 }
0x15b6   :  { %5897 = vmatprep.mubr.bf16.mxu1 %v5712_v15  ;;  %v5665_v55 = vmul.f32 0.5, %v5633_v51 }
0x15b7   :  { %v5698_v2 = vmul.f32 %v5666_v18, %v11641_v1  ;;  %v5663_v13 = vmul.f32 0.5, %v5631_v0 }
0x15b8   :  { %v5697_v61 = vmul.f32 %v5665_v55, %v11638_v3 }
0x15b9   :  { %v5714_v6 = vpack.c.bf16 %v5698_v2, %v5696_v36  ;;  %v5695_v14 = vmul.f32 %v5663_v13, %v11608_v45 }
0x15bb   :  { %v5713_v30 = vpack.c.bf16 %v5697_v61, %v5695_v14 }
0x15bd   :  { %5898 = vmatmul.mubr.bf16.gmra.mxu1 %v5711_v50 }
0x15be   :  { %5905 = vmatprep.mubr.bf16.mxu1 %v5714_v6 }
0x15c5   :  { %5906 = vmatmul.mubr.bf16.gmra.mxu1 %v5713_v30 }
0x1648   :  { %v7399_v7 = vpop.f32.mrf.mxu1 }
0x164a   :  { %v7400_v12 = vpop.f32.mrf.mxu1 }
0x164b   :  { %v7401_v1 = vadd.f32 %v7400_v12, %v7399_v7  ;;  %v12438_v12 = vld [vmem:[#allocation38_spill] sm:$0xff] }
0x164c   :  { %v7402_v47 = vpop.f32.mrf.mxu1 }
0x164d   :  { %v5852_v23 = vadd.f32 %v7401_v1, %v11678_v16 }
0x164e   :  { %v7403_v49 = vpop.f32.mrf.mxu1 }
0x164f   :  { %v7404_v57 = vadd.f32 %v7403_v49, %v7402_v47  ;;  %v11682_v39 = vadd.f32 %v5852_v23, %v11286_v37 }
0x1651   :  { %v5855_v45 = vadd.f32 %v7404_v57, %v11678_v16  ;;  %5930 = vadd.xlane.f32.xlu1 %v11682_v39  ;;  %v7405_v3 = vpop.f32.mrf.mxu1  ;;  %v12439_v57 = vld [vmem:[#allocation39_spill] sm:$0xff] }
0x1653   :  { %v11687_v29 = vadd.f32 %v5855_v45, %v11289_v26  ;;  %v7406_v5 = vpop.f32.mrf.mxu1 }
0x1654   :  { %v7407_v24 = vadd.f32 %v7406_v5, %v7405_v3 }
0x1655   :  { %5932 = vadd.xlane.f32.xlu0 %v11687_v29  ;;  %v7408_v34 = vpop.f32.mrf.mxu1 }
0x1656   :  { %v5860_v43 = vadd.f32 %v7407_v24, %v11678_v16 }
0x1657   :  { %v7409_v25 = vpop.f32.mrf.mxu1 }
0x1658   :  { %v7410_v40 = vadd.f32 %v7409_v25, %v7408_v34  ;;  %v11692_v37 = vadd.f32 %v5860_v43, %v11303_v19  ;;  %v12440_v34 = vld [vmem:[#allocation40_spill] sm:$0xff] }
0x165a   :  { %v5863_v31 = vadd.f32 %v7410_v40, %v11678_v16  ;;  %5934 = vadd.xlane.f32.xlu1 %v11692_v37 }
0x165c   :  { %v11697_v26 = vadd.f32 %v5863_v31, %v11299_v10 }
0x165d   :  { %v7411_v44 = vpop.f32.mrf.mxu1 }
0x165e   :  { %5936 = vadd.xlane.f32.xlu0 %v11697_v26 }
0x165f   :  { %v7412_v48 = vpop.f32.mrf.mxu1 }
0x1660   :  { %v7413_v63 = vadd.f32 %v7412_v48, %v7411_v44  ;;  %v12441_v48 = vld [vmem:[#allocation41_spill] sm:$0xff] }
0x1661   :  { %v7414_v56 = vpop.f32.mrf.mxu1 }
0x1662   :  { %v5868_v8 = vadd.f32 %v7413_v63, %v11678_v16 }
0x1663   :  { %v7415_v32 = vpop.f32.mrf.mxu1 }
0x1664   :  { %v7416_v22 = vadd.f32 %v7415_v32, %v7414_v56  ;;  %v11702_v19 = vadd.f32 %v5868_v8, %v11316_v28  ;;  %v12442_v8 = vld [vmem:[#allocation42_spill] sm:$0xff] }
0x1665   :  { %v7417_v4 = vpop.f32.mrf.mxu1 }
0x1666   :  { %v5871_v35 = vadd.f32 %v7416_v22, %v11678_v16  ;;  %5938 = vadd.xlane.f32.xlu1 %v11702_v19 }
0x1667   :  { %v7418_v54 = vpop.f32.mrf.mxu1 }
0x1668   :  { %v7419_v10 = vadd.f32 %v7418_v54, %v7417_v4  ;;  %v11707_v41 = vadd.f32 %v5871_v35, %v11312_v27 }
0x1669   :  { %v7420_v15 = vpop.f32.mrf.mxu1 }
0x166a   :  { %v5876_v58 = vadd.f32 %v7419_v10, %v11678_v16  ;;  %5940 = vadd.xlane.f32.xlu0 %v11707_v41 }
0x166b   :  { %v7421_v42 = vpop.f32.mrf.mxu1 }
0x166c   :  { %v7422_v62 = vadd.f32 %v7421_v42, %v7420_v15  ;;  %v11712_v28 = vadd.f32 %v5876_v58, %v11329_v20 }
0x166d   :  { %v7423_v59 = vpop.f32.mrf.mxu1 }
0x166e   :  { %v5879_v60 = vadd.f32 %v7422_v62, %v11678_v16  ;;  %5942 = vadd.xlane.f32.xlu1 %v11712_v28 }
0x166f   :  { %v7424_v52 = vpop.f32.mrf.mxu1 }
0x1670   :  { %v7425_v46 = vadd.f32 %v7424_v52, %v7423_v59  ;;  %v11717_v27 = vadd.f32 %v5879_v60, %v11325_v17 }
0x1671   :  { %v7426_v33 = vpop.f32.mrf.mxu1 }
0x1672   :  { %v5884_v18 = vadd.f32 %v7425_v46, %v11678_v16  ;;  %5944 = vadd.xlane.f32.xlu0 %v11717_v27 }
0x1673   :  { %v7427_v53 = vpop.f32.mrf.mxu1 }
0x1674   :  { %v7428_v51 = vadd.f32 %v7427_v53, %v7426_v33  ;;  %v11722_v20 = vadd.f32 %v5884_v18, %v11342_v9 }
0x1675   :  { %v7429_v36 = vpop.f32.mrf.mxu1 }
0x1676   :  { %v5887_v2 = vadd.f32 %v7428_v51, %v11678_v16  ;;  %5946 = vadd.xlane.f32.xlu1 %v11722_v20 }
0x1677   :  { %v7430_v21 = vpop.f32.mrf.mxu1 }
0x1678   :  { %v7431_v0 = vadd.f32 %v7430_v21, %v7429_v36  ;;  %v11727_v17 = vadd.f32 %v5887_v2, %v11338_v11 }
0x1679   :  { %v7432_v6 = vpop.f32.mrf.mxu1 }
0x167a   :  { %v5892_v55 = vadd.f32 %v7431_v0, %v11678_v16  ;;  %5948 = vadd.xlane.f32.xlu0 %v11727_v17 }
0x167b   :  { %v7433_v50 = vpop.f32.mrf.mxu1 }
0x167c   :  { %v7434_v13 = vadd.f32 %v7433_v50, %v7432_v6  ;;  %v11732_v9 = vadd.f32 %v5892_v55, %v11355_v38 }
0x167d   :  { %v7435_v61 = vpop.f32.mrf.mxu1 }
0x167e   :  { %v5895_v14 = vadd.f32 %v7434_v13, %v11678_v16  ;;  %5950 = vadd.xlane.f32.xlu1 %v11732_v9 }
0x167f   :  { %v7436_v30 = vpop.f32.mrf.mxu1 }
0x1680   :  { %v7437_v7 = vadd.f32 %v7436_v30, %v7435_v61  ;;  %v11737_v11 = vadd.f32 %v5895_v14, %v12438_v12 }
0x1681   :  { %v7438_v1 = vpop.f32.mrf.mxu1 }
0x1682   :  { %v5900_v47 = vadd.f32 %v7437_v7, %v11678_v16  ;;  %5952 = vadd.xlane.f32.xlu0 %v11737_v11 }
0x1683   :  { %v7439_v23 = vpop.f32.mrf.mxu1 }
0x1684   :  { %v7440_v49 = vadd.f32 %v7439_v23, %v7438_v1  ;;  %v11742_v38 = vadd.f32 %v5900_v47, %v12439_v57 }
0x1685   :  { %v7441_v45 = vpop.f32.mrf.mxu1 }
0x1686   :  { %v5903_v3 = vadd.f32 %v7440_v49, %v11678_v16  ;;  %5954 = vadd.xlane.f32.xlu1 %v11742_v38 }
0x1687   :  { %v7442_v5 = vpop.f32.mrf.mxu1 }
0x1688   :  { %v7443_v24 = vadd.f32 %v7442_v5, %v7441_v45  ;;  %v11747_v43 = vadd.f32 %v5903_v3, %v12440_v34 }
0x1689   :  { %v7444_v25 = vpop.f32.mrf.mxu1 }
0x168a   :  { %v5908_v40 = vadd.f32 %v7443_v24, %v11678_v16  ;;  %5956 = vadd.xlane.f32.xlu0 %v11747_v43 }
0x168b   :  { %v7445_v31 = vpop.f32.mrf.mxu1 }
0x168c   :  { %v7446_v44 = vadd.f32 %v7445_v31, %v7444_v25  ;;  %v11752_v63 = vadd.f32 %v5908_v40, %v12441_v48 }
0x168e   :  { %v5911_v56 = vadd.f32 %v7446_v44, %v11678_v16  ;;  %5958 = vadd.xlane.f32.xlu1 %v11752_v63 }
0x1690   :  { %v11757_v32 = vadd.f32 %v5911_v56, %v12442_v8 }
0x1692   :  { %5960 = vadd.xlane.f32.xlu0 %v11757_v32 }
0x16da   :  { %v5931_v22 = vpop.xlane.xlu1 %5930 }
0x16db   :  { %v5962_v4 = vmul.f32 0.0078125, %v5931_v22 }
0x16dd   :  { %v11761_v35 = vsub.f32 %v11682_v39, %v5962_v4 }
0x16de   :  { %v5933_v54 = vpop.xlane.xlu0 %5932 }
0x16df   :  { %v5963_v10 = vmul.f32 0.0078125, %v5933_v54  ;;  %v5994_v15 = vmul.f32 %v11761_v35, %v11761_v35 }
0x16e1   :  { %v11766_v58 = vsub.f32 %v11687_v29, %v5963_v10  ;;  %6010 = vadd.xlane.f32.xlu1 %v5994_v15 }
0x16e3   :  { %v5995_v16 = vmul.f32 %v11766_v58, %v11766_v58  ;;  %v5935_v42 = vpop.xlane.xlu1 %5934 }
0x16e4   :  { %v5964_v62 = vmul.f32 0.0078125, %v5935_v42 }
0x16e5   :  { %6012 = vadd.xlane.f32.xlu0 %v5995_v16 }
0x16e6   :  { %v11771_v59 = vsub.f32 %v11692_v37, %v5964_v62 }
0x16e7   :  { %v5937_v39 = vpop.xlane.xlu0 %5936 }
0x16e8   :  { %v5965_v60 = vmul.f32 0.0078125, %v5937_v39  ;;  %v5996_v52 = vmul.f32 %v11771_v59, %v11771_v59 }
0x16ea   :  { %v11776_v46 = vsub.f32 %v11697_v26, %v5965_v60  ;;  %6014 = vadd.xlane.f32.xlu1 %v5996_v52 }
0x16ec   :  { %v5997_v29 = vmul.f32 %v11776_v46, %v11776_v46 }
0x16ee   :  { %6016 = vadd.xlane.f32.xlu0 %v5997_v29 }
0x16ef   :  { %v5939_v33 = vpop.xlane.xlu1 %5938 }
0x16f0   :  { %v5966_v18 = vmul.f32 0.0078125, %v5939_v33 }
0x16f2   :  { %v11781_v53 = vsub.f32 %v11702_v19, %v5966_v18 }
0x16f3   :  { %v5941_v37 = vpop.xlane.xlu0 %5940 }
0x16f4   :  { %v5967_v51 = vmul.f32 0.0078125, %v5941_v37  ;;  %v5998_v36 = vmul.f32 %v11781_v53, %v11781_v53  ;;  %v11844_v37 = vld [vmem:[%s12340_s26] ss:$0 sm:$0xff] }
0x16f6   :  { %v11786_v2 = vsub.f32 %v11707_v41, %v5967_v51  ;;  %6018 = vadd.xlane.f32.xlu1 %v5998_v36 }
0x16f7   :  { %v5943_v26 = vpop.xlane.xlu1 %5942 }
0x16f8   :  { %v5968_v21 = vmul.f32 0.0078125, %v5943_v26  ;;  %v5999_v0 = vmul.f32 %v11786_v2, %v11786_v2 }
0x16fa   :  { %v11791_v6 = vsub.f32 %v11712_v28, %v5968_v21  ;;  %6020 = vadd.xlane.f32.xlu0 %v5999_v0 }
0x16fb   :  { %v5945_v19 = vpop.xlane.xlu0 %5944 }
0x16fc   :  { %v5969_v55 = vmul.f32 0.0078125, %v5945_v19  ;;  %v6000_v50 = vmul.f32 %v11791_v6, %v11791_v6 }
0x16fe   :  { %v11796_v13 = vsub.f32 %v11717_v27, %v5969_v55  ;;  %6022 = vadd.xlane.f32.xlu1 %v6000_v50  ;;  %v11851_v55 = vld [vmem:[%s12341_s27] ss:$0 sm:$0xff] }
0x16ff   :  { %v5947_v41 = vpop.xlane.xlu1 %5946 }
0x1700   :  { %v5970_v61 = vmul.f32 0.0078125, %v5947_v41  ;;  %v6001_v14 = vmul.f32 %v11796_v13, %v11796_v13 }
0x1702   :  { %v11801_v30 = vsub.f32 %v11722_v20, %v5970_v61  ;;  %6024 = vadd.xlane.f32.xlu0 %v6001_v14 }
0x1703   :  { %v5949_v28 = vpop.xlane.xlu0 %5948 }
0x1704   :  { %v5971_v7 = vmul.f32 0.0078125, %v5949_v28  ;;  %v6002_v12 = vmul.f32 %v11801_v30, %v11801_v30 }
0x1706   :  { %v11806_v1 = vsub.f32 %v11727_v17, %v5971_v7  ;;  %6026 = vadd.xlane.f32.xlu1 %v6002_v12 }
0x1707   :  { %v5951_v27 = vpop.xlane.xlu1 %5950 }
0x1708   :  { %v5972_v47 = vmul.f32 0.0078125, %v5951_v27  ;;  %v6003_v23 = vmul.f32 %v11806_v1, %v11806_v1 }
0x170a   :  { %v11811_v49 = vsub.f32 %v11732_v9, %v5972_v47  ;;  %6028 = vadd.xlane.f32.xlu0 %v6003_v23 }
0x170b   :  { %v5953_v20 = vpop.xlane.xlu0 %5952 }
0x170c   :  { %v5973_v57 = vmul.f32 0.0078125, %v5953_v20  ;;  %v6004_v45 = vmul.f32 %v11811_v49, %v11811_v49 }
0x170e   :  { %v11816_v3 = vsub.f32 %v11737_v11, %v5973_v57  ;;  %6030 = vadd.xlane.f32.xlu1 %v6004_v45 }
0x170f   :  { %v5955_v17 = vpop.xlane.xlu1 %5954 }
0x1710   :  { %v5974_v5 = vmul.f32 0.0078125, %v5955_v17  ;;  %v6005_v24 = vmul.f32 %v11816_v3, %v11816_v3 }
0x1712   :  { %v11821_v34 = vsub.f32 %v11742_v38, %v5974_v5  ;;  %6032 = vadd.xlane.f32.xlu0 %v6005_v24 }
0x1713   :  { %v5957_v9 = vpop.xlane.xlu0 %5956 }
0x1714   :  { %v5975_v25 = vmul.f32 0.0078125, %v5957_v9  ;;  %v6006_v40 = vmul.f32 %v11821_v34, %v11821_v34 }
0x1716   :  { %v11826_v31 = vsub.f32 %v11747_v43, %v5975_v25  ;;  %6034 = vadd.xlane.f32.xlu1 %v6006_v40 }
0x1717   :  { %v5959_v11 = vpop.xlane.xlu1 %5958 }
0x1718   :  { %v5976_v44 = vmul.f32 0.0078125, %v5959_v11  ;;  %v6007_v48 = vmul.f32 %v11826_v31, %v11826_v31 }
0x171a   :  { %v11831_v56 = vsub.f32 %v11752_v63, %v5976_v44  ;;  %6036 = vadd.xlane.f32.xlu0 %v6007_v48 }
0x171b   :  { %v5961_v38 = vpop.xlane.xlu0 %5960 }
0x171c   :  { %v5977_v8 = vmul.f32 0.0078125, %v5961_v38  ;;  %v6008_v22 = vmul.f32 %v11831_v56, %v11831_v56 }
0x171e   :  { %v11836_v4 = vsub.f32 %v11757_v32, %v5977_v8  ;;  %6038 = vadd.xlane.f32.xlu1 %v6008_v22 }
0x1720   :  { %v6009_v43 = vmul.f32 %v11836_v4, %v11836_v4 }
0x1722   :  { %6040 = vadd.xlane.f32.xlu0 %v6009_v43 }
0x176a   :  { %v6011_v54 = vpop.xlane.xlu1 %6010 }
0x176b   :  { %v6042_v10 = vmul.f32 0.0078125, %v6011_v54 }
0x176d   :  { %v6058_v15 = vadd.f32 1e-05, %v6042_v10 }
0x176e   :  { %v6013_v16 = vpop.xlane.xlu0 %6012 }
0x176f   :  { %8431 = vrsqrt.f32 %v6058_v15  ;;  %v6043_v63 = vmul.f32 0.0078125, %v6013_v16 }
0x1771   :  { %v6059_v42 = vadd.f32 1e-05, %v6043_v63 }
0x1773   :  { %8433 = vrsqrt.f32 %v6059_v42  ;;  %v6015_v62 = vpop.xlane.xlu1 %6014 }
0x1774   :  { %v6044_v39 = vmul.f32 0.0078125, %v6015_v62 }
0x1776   :  { %v6060_v60 = vadd.f32 1e-05, %v6044_v39 }
0x1777   :  { %v6017_v52 = vpop.xlane.xlu0 %6016 }
0x1778   :  { %8435 = vrsqrt.f32 %v6060_v60  ;;  %v6045_v32 = vmul.f32 0.0078125, %v6017_v52 }
0x177a   :  { %v6061_v29 = vadd.f32 1e-05, %v6045_v32 }
0x177c   :  { %v8432_v33 = vpop.eup %8431  ;;  %8437 = vrsqrt.f32 %v6061_v29 }
0x177d   :  { %v6090_v18 = vmul.f32 %v8432_v33, %v11761_v35 }
0x177f   :  { %v6019_v51 = vpop.xlane.xlu1 %6018  ;;  %v6112_v0 = vmul.f32 %v11844_v37, %v6090_v18 }
0x1780   :  { %v8434_v36 = vpop.eup %8433  ;;  %v6046_v26 = vmul.f32 0.0078125, %v6019_v51 }
0x1781   :  { %v6091_v21 = vmul.f32 %v8434_v36, %v11766_v58  ;;  %v6134_v61 = vadd.f32 %v11851_v55, %v6112_v0 }
0x1782   :  { %v6062_v19 = vadd.f32 1e-05, %v6046_v26 }
0x1783   :  { %v6021_v50 = vpop.xlane.xlu0 %6020  ;;  %v6113_v35 = vmul.f32 %v11844_v37, %v6091_v21 }
0x1784   :  { %8439 = vrsqrt.f32 %v6062_v19  ;;  %v6047_v41 = vmul.f32 0.0078125, %v6021_v50 }
0x1785   :  { %v6135_v14 = vadd.f32 %v11851_v55, %v6113_v35  ;;  %v8436_v28 = vpop.eup %8435 }
0x1786   :  { %v6063_v7 = vadd.f32 1e-05, %v6047_v41  ;;  %v6092_v27 = vmul.f32 %v8436_v28, %v11771_v59 }
0x1787   :  { %v6023_v58 = vpop.xlane.xlu1 %6022  ;;  %v6150_v12 = vpack.c.bf16 %v6135_v14, %v6134_v61 }
0x1788   :  { %8441 = vrsqrt.f32 %v6063_v7  ;;  %v6048_v47 = vmul.f32 0.0078125, %v6023_v58  ;;  %v6114_v17 = vmul.f32 %v11844_v37, %v6092_v27 }
0x1789   :  { %7463 = vmatprep.mubr.bf16.mxu0 %v6150_v12  ;;  %v8438_v23 = vpop.eup %8437 }
0x178a   :  { %v6064_v20 = vadd.f32 1e-05, %v6048_v47  ;;  %7464 = vmatmul.mubr.bf16.vlgmr.msra.gmra.mxu0 %v6150_v12  ;;  %v6093_v45 = vmul.f32 %v8438_v23, %v11776_v46  ;;  %v6136_v40 = vadd.f32 %v11851_v55, %v6114_v17 }
0x178b   :  { %v6025_v57 = vpop.xlane.xlu0 %6024 }
0x178c   :  { %8443 = vrsqrt.f32 %v6064_v20  ;;  %v6049_v5 = vmul.f32 0.0078125, %v6025_v57  ;;  %v6115_v24 = vmul.f32 %v11844_v37, %v6093_v45 }
0x178e   :  { %v6065_v9 = vadd.f32 1e-05, %v6049_v5  ;;  %v6137_v59 = vadd.f32 %v11851_v55, %v6115_v24 }
0x178f   :  { %v6027_v25 = vpop.xlane.xlu1 %6026 }
0x1790   :  { %8445 = vrsqrt.f32 %v6065_v9  ;;  %v6050_v11 = vmul.f32 0.0078125, %v6027_v25  ;;  %v6151_v48 = vpack.c.bf16 %v6137_v59, %v6136_v40 }
0x1791   :  { %v8440_v44 = vpop.eup %8439 }
0x1792   :  { %v6066_v38 = vadd.f32 1e-05, %v6050_v11  ;;  %v6094_v8 = vmul.f32 %v8440_v44, %v11781_v53  ;;  %7465 = vmatprep.mubr.bf16.mxu0 %v6151_v48 }
0x1793   :  { %v6029_v46 = vpop.xlane.xlu0 %6028  ;;  %7466 = vmatmul.mubr.bf16.gmra.mxu0 %v6151_v48 }
0x1794   :  { %8447 = vrsqrt.f32 %v6066_v38  ;;  %v6051_v22 = vmul.f32 0.0078125, %v6029_v46  ;;  %v6116_v15 = vmul.f32 %v11844_v37, %v6094_v8 }
0x1795   :  { %v8442_v43 = vpop.eup %8441 }
0x1796   :  { %v6067_v54 = vadd.f32 1e-05, %v6051_v22  ;;  %v6095_v10 = vmul.f32 %v8442_v43, %v11786_v2  ;;  %v6138_v53 = vadd.f32 %v11851_v55, %v6116_v15 }
0x1797   :  { %v6031_v16 = vpop.xlane.xlu1 %6030 }
0x1798   :  { %8449 = vrsqrt.f32 %v6067_v54  ;;  %v6052_v63 = vmul.f32 0.0078125, %v6031_v16  ;;  %v6117_v42 = vmul.f32 %v11844_v37, %v6095_v10 }
0x1799   :  { %v8444_v62 = vpop.eup %8443 }
0x179a   :  { %v6068_v39 = vadd.f32 1e-05, %v6052_v63  ;;  %v6139_v60 = vadd.f32 %v11851_v55, %v6117_v42  ;;  %v6096_v52 = vmul.f32 %v8444_v62, %v11791_v6 }
0x179b   :  { %v6033_v32 = vpop.xlane.xlu0 %6032 }
0x179c   :  { %8451 = vrsqrt.f32 %v6068_v39  ;;  %v6053_v29 = vmul.f32 0.0078125, %v6033_v32  ;;  %v6152_v33 = vpack.c.bf16 %v6139_v60, %v6138_v53  ;;  %v6118_v36 = vmul.f32 %v11844_v37, %v6096_v52 }
0x179d   :  { %v8446_v2 = vpop.eup %8445 }
0x179e   :  { %v6069_v18 = vadd.f32 1e-05, %v6053_v29  ;;  %7467 = vmatprep.mubr.bf16.mxu0 %v6152_v33  ;;  %v6097_v51 = vmul.f32 %v8446_v2, %v11796_v13  ;;  %v6140_v6 = vadd.f32 %v11851_v55, %v6118_v36 }
0x179f   :  { %v6035_v26 = vpop.xlane.xlu1 %6034  ;;  %7468 = vmatmul.mubr.bf16.gmra.mxu0 %v6152_v33 }
0x17a0   :  { %8453 = vrsqrt.f32 %v6069_v18  ;;  %v6054_v21 = vmul.f32 0.0078125, %v6035_v26  ;;  %v6119_v0 = vmul.f32 %v11844_v37, %v6097_v51 }
0x17a1   :  { %v8448_v19 = vpop.eup %8447 }
0x17a2   :  { %v6070_v50 = vadd.f32 1e-05, %v6054_v21  ;;  %v6141_v35 = vadd.f32 %v11851_v55, %v6119_v0  ;;  %v6098_v41 = vmul.f32 %v8448_v19, %v11801_v30 }
0x17a3   :  { %v6037_v61 = vpop.xlane.xlu0 %6036 }
0x17a4   :  { %8455 = vrsqrt.f32 %v6070_v50  ;;  %v6055_v14 = vmul.f32 0.0078125, %v6037_v61  ;;  %v6153_v13 = vpack.c.bf16 %v6141_v35, %v6140_v6  ;;  %v6120_v12 = vmul.f32 %v11844_v37, %v6098_v41 }
0x17a5   :  { %v8450_v28 = vpop.eup %8449 }
0x17a6   :  { %v6071_v7 = vadd.f32 1e-05, %v6055_v14  ;;  %7469 = vmatprep.mubr.bf16.mxu0 %v6153_v13  ;;  %v6099_v58 = vmul.f32 %v8450_v28, %v11806_v1  ;;  %v6142_v30 = vadd.f32 %v11851_v55, %v6120_v12 }
0x17a7   :  { %v6039_v27 = vpop.xlane.xlu1 %6038  ;;  %7470 = vmatmul.mubr.bf16.gmra.mxu0 %v6153_v13 }
0x17a8   :  { %8457 = vrsqrt.f32 %v6071_v7  ;;  %v6056_v47 = vmul.f32 0.0078125, %v6039_v27  ;;  %v6121_v23 = vmul.f32 %v11844_v37, %v6099_v58 }
0x17a9   :  { %v8452_v20 = vpop.eup %8451 }
0x17aa   :  { %v6072_v57 = vadd.f32 1e-05, %v6056_v47  ;;  %v6143_v45 = vadd.f32 %v11851_v55, %v6121_v23  ;;  %v6100_v17 = vmul.f32 %v8452_v20, %v11811_v49 }
0x17ab   :  { %v6041_v5 = vpop.xlane.xlu0 %6040 }
0x17ac   :  { %8459 = vrsqrt.f32 %v6072_v57  ;;  %v6057_v24 = vmul.f32 0.0078125, %v6041_v5  ;;  %v6154_v1 = vpack.c.bf16 %v6143_v45, %v6142_v30  ;;  %v6122_v59 = vmul.f32 %v11844_v37, %v6100_v17 }
0x17ad   :  { %v8454_v9 = vpop.eup %8453 }
0x17ae   :  { %v6073_v25 = vadd.f32 1e-05, %v6057_v24  ;;  %7471 = vmatprep.mubr.bf16.mxu0 %v6154_v1  ;;  %v6101_v40 = vmul.f32 %v8454_v9, %v11816_v3  ;;  %v6144_v48 = vadd.f32 %v11851_v55, %v6122_v59 }
0x17af   :  { %7472 = vmatmul.mubr.bf16.gmra.mxu0 %v6154_v1 }
0x17b0   :  { %8461 = vrsqrt.f32 %v6073_v25  ;;  %v6123_v11 = vmul.f32 %v11844_v37, %v6101_v40 }
0x17b1   :  { %v8456_v44 = vpop.eup %8455 }
0x17b2   :  { %v6145_v49 = vadd.f32 %v11851_v55, %v6123_v11  ;;  %v6102_v38 = vmul.f32 %v8456_v44, %v11821_v34 }
0x17b4   :  { %v6155_v8 = vpack.c.bf16 %v6145_v49, %v6144_v48  ;;  %v6124_v3 = vmul.f32 %v11844_v37, %v6102_v38 }
0x17b5   :  { %v8458_v46 = vpop.eup %8457 }
0x17b6   :  { %7473 = vmatprep.mubr.bf16.mxu0 %v6155_v8  ;;  %v6103_v22 = vmul.f32 %v8458_v46, %v11826_v31  ;;  %v6146_v10 = vadd.f32 %v11851_v55, %v6124_v3 }
0x17b7   :  { %7474 = vmatmul.mubr.bf16.gmra.mxu0 %v6155_v8 }
0x17b8   :  { %v6125_v43 = vmul.f32 %v11844_v37, %v6103_v22  ;;  %v12443_v22 = vld [vmem:[#allocation36_spill] sm:$0xff] }
0x17b9   :  { %v8460_v54 = vpop.eup %8459 }
0x17ba   :  { %v6147_v15 = vadd.f32 %v11851_v55, %v6125_v43  ;;  %v6104_v16 = vmul.f32 %v8460_v54, %v11831_v56  ;;  %v12444_v43 = vld [vmem:[#allocation37_spill] sm:$0xff] }
0x17bc   :  { %v6156_v63 = vpack.c.bf16 %v6147_v15, %v6146_v10  ;;  %v6126_v62 = vmul.f32 %v11844_v37, %v6104_v16 }
0x17bd   :  { %v8462_v42 = vpop.eup %8461 }
0x17be   :  { %7475 = vmatprep.mubr.bf16.mxu0 %v6156_v63  ;;  %v6105_v34 = vmul.f32 %v8462_v42, %v11836_v4  ;;  %v6148_v39 = vadd.f32 %v11851_v55, %v6126_v62 }
0x17bf   :  { %7476 = vmatmul.mubr.bf16.gmra.mxu0 %v6156_v63 }
0x17c0   :  { %v6127_v31 = vmul.f32 %v11844_v37, %v6105_v34 }
0x17c2   :  { %v6149_v53 = vadd.f32 %v11851_v55, %v6127_v31 }
0x17c4   :  { %v6157_v60 = vpack.c.bf16 %v6149_v53, %v6148_v39 }
0x17c6   :  { %7477 = vmatprep.mubr.bf16.mxu0 %v6157_v60 }
0x17c7   :  { %7478 = vmatmul.mubr.bf16.gmra.mxu0 %v6157_v60 }
0x184a   :  { %v11898_v52 = vpop.f32.mrf.mxu0 }
0x184c   :  { %v11900_v56 = vpop.f32.mrf.mxu0 }
0x184d   :  { %v6271_v32 = vmax.f32 %v11898_v52, %v11900_v56 }
0x184e   :  { %v11904_v4 = vpop.f32.mrf.mxu0 }
0x184f   :  { %6272 = vmax.xlane.f32.xlu1 %v6271_v32 }
0x1850   :  { %v11906_v29 = vpop.f32.mrf.mxu0 }
0x1851   :  { %v6274_v37 = vmax.f32 %v11904_v4, %v11906_v29 }
0x1853   :  { %6275 = vmax.xlane.f32.xlu0 %v6274_v37  ;;  %v11910_v55 = vpop.f32.mrf.mxu0 }
0x1855   :  { %v11912_v33 = vpop.f32.mrf.mxu0 }
0x1856   :  { %v6277_v2 = vmax.f32 %v11910_v55, %v11912_v33 }
0x1857   :  { %v11916_v18 = vpop.f32.mrf.mxu0 }
0x1858   :  { %6278 = vmax.xlane.f32.xlu1 %v6277_v2 }
0x1859   :  { %v11918_v51 = vpop.f32.mrf.mxu0 }
0x185a   :  { %v6280_v36 = vmax.f32 %v11916_v18, %v11918_v51 }
0x185c   :  { %6281 = vmax.xlane.f32.xlu0 %v6280_v36 }
0x185f   :  { %v11922_v26 = vpop.f32.mrf.mxu0 }
0x1861   :  { %v11924_v21 = vpop.f32.mrf.mxu0 }
0x1862   :  { %v6283_v0 = vmax.f32 %v11922_v26, %v11924_v21 }
0x1863   :  { %v11928_v19 = vpop.f32.mrf.mxu0 }
0x1864   :  { %6284 = vmax.xlane.f32.xlu1 %v6283_v0 }
0x1865   :  { %v11930_v50 = vpop.f32.mrf.mxu0 }
0x1866   :  { %v6286_v6 = vmax.f32 %v11928_v19, %v11930_v50 }
0x1867   :  { %v11934_v35 = vpop.f32.mrf.mxu0 }
0x1868   :  { %6287 = vmax.xlane.f32.xlu0 %v6286_v6 }
0x1869   :  { %v11936_v41 = vpop.f32.mrf.mxu0 }
0x186a   :  { %v6289_v61 = vmax.f32 %v11934_v35, %v11936_v41 }
0x186b   :  { %v11940_v14 = vpop.f32.mrf.mxu0 }
0x186c   :  { %6290 = vmax.xlane.f32.xlu1 %v6289_v61 }
0x186d   :  { %v11942_v13 = vpop.f32.mrf.mxu0 }
0x186e   :  { %v6292_v28 = vmax.f32 %v11940_v14, %v11942_v13 }
0x186f   :  { %v11946_v7 = vpop.f32.mrf.mxu0 }
0x1870   :  { %6293 = vmax.xlane.f32.xlu0 %v6292_v28 }
0x1871   :  { %v11948_v58 = vpop.f32.mrf.mxu0 }
0x1872   :  { %v6295_v12 = vmax.f32 %v11946_v7, %v11948_v58 }
0x1873   :  { %v11952_v27 = vpop.f32.mrf.mxu0 }
0x1874   :  { %6296 = vmax.xlane.f32.xlu1 %v6295_v12 }
0x1875   :  { %v11954_v47 = vpop.f32.mrf.mxu0 }
0x1876   :  { %v6298_v23 = vmax.f32 %v11952_v27, %v11954_v47 }
0x1877   :  { %v11958_v20 = vpop.f32.mrf.mxu0 }
0x1878   :  { %6299 = vmax.xlane.f32.xlu0 %v6298_v23 }
0x1879   :  { %v11960_v57 = vpop.f32.mrf.mxu0 }
0x187a   :  { %v6301_v30 = vmax.f32 %v11958_v20, %v11960_v57 }
0x187b   :  { %v11964_v45 = vpop.f32.mrf.mxu0 }
0x187c   :  { %6302 = vmax.xlane.f32.xlu1 %v6301_v30 }
0x187d   :  { %v11966_v17 = vpop.f32.mrf.mxu0 }
0x187e   :  { %v6304_v5 = vmax.f32 %v11964_v45, %v11966_v17 }
0x187f   :  { %v11970_v24 = vpop.f32.mrf.mxu0 }
0x1880   :  { %6305 = vmax.xlane.f32.xlu0 %v6304_v5 }
0x1881   :  { %v11972_v1 = vpop.f32.mrf.mxu0 }
0x1882   :  { %v6307_v9 = vmax.f32 %v11970_v24, %v11972_v1 }
0x1883   :  { %v11976_v25 = vpop.f32.mrf.mxu0 }
0x1884   :  { %6308 = vmax.xlane.f32.xlu1 %v6307_v9 }
0x1885   :  { %v11978_v40 = vpop.f32.mrf.mxu0 }
0x1886   :  { %v6310_v59 = vmax.f32 %v11976_v25, %v11978_v40 }
0x1887   :  { %v11982_v11 = vpop.f32.mrf.mxu0 }
0x1888   :  { %6311 = vmax.xlane.f32.xlu0 %v6310_v59 }
0x1889   :  { %v11984_v44 = vpop.f32.mrf.mxu0 }
0x188a   :  { %v6313_v48 = vmax.f32 %v11982_v11, %v11984_v44 }
0x188b   :  { %v11988_v49 = vpop.f32.mrf.mxu0 }
0x188c   :  { %6314 = vmax.xlane.f32.xlu1 %v6313_v48 }
0x188d   :  { %v11990_v38 = vpop.f32.mrf.mxu0 }
0x188e   :  { %v6316_v8 = vmax.f32 %v11988_v49, %v11990_v38 }
0x1890   :  { %6317 = vmax.xlane.f32.xlu0 %v6316_v8 }
0x18d8   :  { %v6273_v46 = vpop.xlane.xlu1 %6272 }
0x18d9   :  { %vm6319_vm0 = vcmp.ge.f32.partialorder %v11898_v52, %v6273_v46  ;;  %vm6320_vm1 = vcmp.ge.f32.partialorder %v11900_v56, %v6273_v46 }
0x18da   :  { %v6351_v3 = vsel %vm6319_vm0, %v12443_v22, 256  ;;  %v6352_v54 = vsel %vm6320_vm1, %v12444_v43, 256 }
0x18db   :  { %vm6383_vm2 = vcmp.lt.s32.totalorder %v6351_v3, %v6352_v54 }
0x18dc   :  { %v11998_v10 = vsel %vm6383_vm2, %v6351_v3, %v6352_v54  ;;  %v6276_v15 = vpop.xlane.xlu0 %6275 }
0x18dd   :  { %vm6321_vm3 = vcmp.ge.f32.partialorder %v11904_v4, %v6276_v15  ;;  %vm6322_vm4 = vcmp.ge.f32.partialorder %v11906_v29, %v6276_v15  ;;  %v6386_v16 = vshra.s32 %v11998_v10, 16 }
0x18de   :  { %v6353_v63 = vsel %vm6321_vm3, %v12443_v22, 256  ;;  %v6354_v42 = vsel %vm6322_vm4, %v12444_v43, 256 }
0x18df   :  { %vm6399_vm5 = vcmp.lt.s32.totalorder %v6353_v63, %v6354_v42  ;;  %v12005_v34 = vcvt.s32.f32 %v6386_v16 }
0x18e0   :  { %v12007_v62 = vsel %vm6399_vm5, %v6353_v63, %v6354_v42 }
0x18e1   :  { %6389 = vmin.xlane.f32.xlu1 %v12005_v34  ;;  %v6402_v31 = vshra.s32 %v12007_v62, 16  ;;  %v6279_v39 = vpop.xlane.xlu1 %6278 }
0x18e2   :  { %vm6323_vm6 = vcmp.ge.f32.partialorder %v11910_v55, %v6279_v39  ;;  %vm6324_vm9 = vcmp.ge.f32.partialorder %v11912_v33, %v6279_v39 }
0x18e3   :  { %v12013_v53 = vcvt.s32.f32 %v6402_v31  ;;  %v6355_v60 = vsel %vm6323_vm6, %v12443_v22, 256  ;;  %v6356_v52 = vsel %vm6324_vm9, %v12444_v43, 256 }
0x18e4   :  { %vm6415_vm7 = vcmp.lt.s32.totalorder %v6355_v60, %v6356_v52 }
0x18e5   :  { %6405 = vmin.xlane.f32.xlu0 %v12013_v53  ;;  %v12018_v56 = vsel %vm6415_vm7, %v6355_v60, %v6356_v52  ;;  %v6282_v32 = vpop.xlane.xlu0 %6281 }
0x18e6   :  { %vm6325_vm8 = vcmp.ge.f32.partialorder %v11916_v18, %v6282_v32  ;;  %vm6326_vm10 = vcmp.ge.f32.partialorder %v11918_v51, %v6282_v32  ;;  %v6418_v4 = vshra.s32 %v12018_v56, 16 }
0x18e7   :  { %v6357_v29 = vsel %vm6325_vm8, %v12443_v22, 256  ;;  %v6358_v37 = vsel %vm6326_vm10, %v12444_v43, 256 }
0x18e8   :  { %vm6431_vm11 = vcmp.lt.s32.totalorder %v6357_v29, %v6358_v37  ;;  %v12025_v55 = vcvt.s32.f32 %v6418_v4 }
0x18e9   :  { %v12027_v33 = vsel %vm6431_vm11, %v6357_v29, %v6358_v37 }
0x18ea   :  { %6421 = vmin.xlane.f32.xlu1 %v12025_v55  ;;  %v6434_v2 = vshra.s32 %v12027_v33, 16 }
0x18ec   :  { %v12031_v0 = vcvt.s32.f32 %v6434_v2 }
0x18ed   :  { %v6285_v36 = vpop.xlane.xlu1 %6284 }
0x18ee   :  { %vm6327_vm12 = vcmp.ge.f32.partialorder %v11922_v26, %v6285_v36  ;;  %vm6328_vm13 = vcmp.ge.f32.partialorder %v11924_v21, %v6285_v36  ;;  %6437 = vmin.xlane.f32.xlu0 %v12031_v0 }
0x18ef   :  { %v6359_v18 = vsel %vm6327_vm12, %v12443_v22, 256  ;;  %v6360_v51 = vsel %vm6328_vm13, %v12444_v43, 256 }
0x18f0   :  { %vm6447_vm14 = vcmp.lt.s32.totalorder %v6359_v18, %v6360_v51 }
0x18f1   :  { %v12038_v6 = vsel %vm6447_vm14, %v6359_v18, %v6360_v51  ;;  %v6288_v61 = vpop.xlane.xlu0 %6287 }
0x18f2   :  { %vm6329_vm15 = vcmp.ge.f32.partialorder %v11928_v19, %v6288_v61  ;;  %vm6330_vm0 = vcmp.ge.f32.partialorder %v11930_v50, %v6288_v61  ;;  %v6450_v28 = vshra.s32 %v12038_v6, 16 }
0x18f3   :  { %v6361_v26 = vsel %vm6329_vm15, %v12443_v22, 256  ;;  %v6362_v21 = vsel %vm6330_vm0, %v12444_v43, 256 }
0x18f4   :  { %vm6463_vm1 = vcmp.lt.s32.totalorder %v6361_v26, %v6362_v21  ;;  %v12045_v12 = vcvt.s32.f32 %v6450_v28 }
0x18f5   :  { %v12047_v23 = vsel %vm6463_vm1, %v6361_v26, %v6362_v21  ;;  %v6291_v30 = vpop.xlane.xlu1 %6290 }
0x18f6   :  { %vm6331_vm2 = vcmp.ge.f32.partialorder %v11934_v35, %v6291_v30  ;;  %vm6332_vm3 = vcmp.ge.f32.partialorder %v11936_v41, %v6291_v30  ;;  %6453 = vmin.xlane.f32.xlu1 %v12045_v12  ;;  %v6466_v19 = vshra.s32 %v12047_v23, 16 }
0x18f7   :  { %v6363_v50 = vsel %vm6331_vm2, %v12443_v22, 256  ;;  %v6364_v5 = vsel %vm6332_vm3, %v12444_v43, 256 }
0x18f8   :  { %vm6479_vm4 = vcmp.lt.s32.totalorder %v6363_v50, %v6364_v5  ;;  %v12055_v9 = vcvt.s32.f32 %v6466_v19 }
0x18f9   :  { %v12057_v59 = vsel %vm6479_vm4, %v6363_v50, %v6364_v5  ;;  %v6294_v48 = vpop.xlane.xlu0 %6293 }
0x18fa   :  { %vm6333_vm5 = vcmp.ge.f32.partialorder %v11940_v14, %v6294_v48  ;;  %vm6334_vm6 = vcmp.ge.f32.partialorder %v11942_v13, %v6294_v48  ;;  %6469 = vmin.xlane.f32.xlu0 %v12055_v9  ;;  %v6482_v35 = vshra.s32 %v12057_v59, 16 }
0x18fb   :  { %v6365_v41 = vsel %vm6333_vm5, %v12443_v22, 256  ;;  %v6366_v8 = vsel %vm6334_vm6, %v12444_v43, 256 }
0x18fc   :  { %vm6495_vm9 = vcmp.lt.s32.totalorder %v6365_v41, %v6366_v8  ;;  %v12065_v46 = vcvt.s32.f32 %v6482_v35 }
0x18fd   :  { %v12067_v3 = vsel %vm6495_vm9, %v6365_v41, %v6366_v8  ;;  %v6297_v54 = vpop.xlane.xlu1 %6296 }
0x18fe   :  { %vm6335_vm7 = vcmp.ge.f32.partialorder %v11946_v7, %v6297_v54  ;;  %vm6336_vm8 = vcmp.ge.f32.partialorder %v11948_v58, %v6297_v54  ;;  %6485 = vmin.xlane.f32.xlu1 %v12065_v46  ;;  %v6498_v14 = vshra.s32 %v12067_v3, 16 }
0x18ff   :  { %v6367_v13 = vsel %vm6335_vm7, %v12443_v22, 256  ;;  %v6368_v15 = vsel %vm6336_vm8, %v12444_v43, 256 }
0x1900   :  { %vm6511_vm10 = vcmp.lt.s32.totalorder %v6367_v13, %v6368_v15  ;;  %v12075_v16 = vcvt.s32.f32 %v6498_v14 }
0x1901   :  { %v12077_v63 = vsel %vm6511_vm10, %v6367_v13, %v6368_v15  ;;  %v6300_v42 = vpop.xlane.xlu0 %6299 }
0x1902   :  { %vm6337_vm11 = vcmp.ge.f32.partialorder %v11952_v27, %v6300_v42  ;;  %vm6338_vm12 = vcmp.ge.f32.partialorder %v11954_v47, %v6300_v42  ;;  %6501 = vmin.xlane.f32.xlu0 %v12075_v16  ;;  %v6514_v7 = vshra.s32 %v12077_v63, 16 }
0x1903   :  { %v6369_v58 = vsel %vm6337_vm11, %v12443_v22, 256  ;;  %v6370_v31 = vsel %vm6338_vm12, %v12444_v43, 256 }
0x1904   :  { %vm6527_vm13 = vcmp.lt.s32.totalorder %v6369_v58, %v6370_v31  ;;  %v12085_v39 = vcvt.s32.f32 %v6514_v7 }
0x1905   :  { %v12087_v60 = vsel %vm6527_vm13, %v6369_v58, %v6370_v31  ;;  %v6303_v52 = vpop.xlane.xlu1 %6302 }
0x1906   :  { %vm6339_vm14 = vcmp.ge.f32.partialorder %v11958_v20, %v6303_v52  ;;  %vm6340_vm15 = vcmp.ge.f32.partialorder %v11960_v57, %v6303_v52  ;;  %6517 = vmin.xlane.f32.xlu1 %v12085_v39  ;;  %v6530_v27 = vshra.s32 %v12087_v60, 16 }
0x1907   :  { %v6371_v47 = vsel %vm6339_vm14, %v12443_v22, 256  ;;  %v6372_v32 = vsel %vm6340_vm15, %v12444_v43, 256 }
0x1908   :  { %vm6543_vm0 = vcmp.lt.s32.totalorder %v6371_v47, %v6372_v32  ;;  %v12095_v4 = vcvt.s32.f32 %v6530_v27  ;;  %v6417_v27 = vand.u32 65535, %v12018_v56  ;;  %v6449_v56 = vand.u32 65535, %v12038_v6 }
0x1909   :  { %v12097_v29 = vsel %vm6543_vm0, %v6371_v47, %v6372_v32  ;;  %v6306_v37 = vpop.xlane.xlu0 %6305 }
0x190a   :  { %vm6341_vm1 = vcmp.ge.f32.partialorder %v11964_v45, %v6306_v37  ;;  %vm6342_vm2 = vcmp.ge.f32.partialorder %v11966_v17, %v6306_v37  ;;  %6533 = vmin.xlane.f32.xlu0 %v12095_v4  ;;  %v6546_v20 = vshra.s32 %v12097_v29, 16  ;;  %v6419_v47 = vcvt.s32.f32 %v6417_v27 }
0x190b   :  { %v6373_v57 = vsel %vm6341_vm1, %v12443_v22, 256  ;;  %v6374_v2 = vsel %vm6342_vm2, %v12444_v43, 256 }
0x190c   :  { %vm6559_vm3 = vcmp.lt.s32.totalorder %v6373_v57, %v6374_v2  ;;  %v12105_v36 = vcvt.s32.f32 %v6546_v20 }
0x190d   :  { %v12107_v18 = vsel %vm6559_vm3, %v6373_v57, %v6374_v2  ;;  %v6309_v51 = vpop.xlane.xlu1 %6308  ;;  %v6451_v57 = vcvt.s32.f32 %v6449_v56 }
0x190e   :  { %vm6343_vm4 = vcmp.ge.f32.partialorder %v11970_v24, %v6309_v51  ;;  %vm6344_vm5 = vcmp.ge.f32.partialorder %v11972_v1, %v6309_v51  ;;  %6549 = vmin.xlane.f32.xlu1 %v12105_v36  ;;  %v6562_v45 = vshra.s32 %v12107_v18, 16 }
0x190f   :  { %v6375_v17 = vsel %vm6343_vm4, %v12443_v22, 256  ;;  %v6376_v61 = vsel %vm6344_vm5, %v12444_v43, 256 }
0x1910   :  { %vm6575_vm6 = vcmp.lt.s32.totalorder %v6375_v17, %v6376_v61  ;;  %v12115_v28 = vcvt.s32.f32 %v6562_v45  ;;  %v6481_v45 = vand.u32 65535, %v12057_v59  ;;  %v6513_v59 = vand.u32 65535, %v12077_v63 }
0x1911   :  { %v12117_v26 = vsel %vm6575_vm6, %v6375_v17, %v6376_v61  ;;  %v6312_v21 = vpop.xlane.xlu0 %6311  ;;  %v6545_v63 = vand.u32 65535, %v12097_v29 }
0x1912   :  { %vm6345_vm9 = vcmp.ge.f32.partialorder %v11976_v25, %v6312_v21  ;;  %vm6346_vm7 = vcmp.ge.f32.partialorder %v11978_v40, %v6312_v21  ;;  %6565 = vmin.xlane.f32.xlu0 %v12115_v28  ;;  %v6578_v24 = vshra.s32 %v12117_v26, 16  ;;  %v6483_v17 = vcvt.s32.f32 %v6481_v45 }
0x1913   :  { %v6377_v1 = vsel %vm6345_vm9, %v12443_v22, 256  ;;  %v6378_v30 = vsel %vm6346_vm7, %v12444_v43, 256  ;;  %v6577_v29 = vand.u32 65535, %v12117_v26 }
0x1914   :  { %vm6591_vm8 = vcmp.lt.s32.totalorder %v6377_v1, %v6378_v30  ;;  %v12125_v19 = vcvt.s32.f32 %v6578_v24 }
0x1915   :  { %v12127_v50 = vsel %vm6591_vm8, %v6377_v1, %v6378_v30  ;;  %v6315_v5 = vpop.xlane.xlu1 %6314  ;;  %v6515_v1 = vcvt.s32.f32 %v6513_v59 }
0x1916   :  { %vm6347_vm10 = vcmp.ge.f32.partialorder %v11982_v11, %v6315_v5  ;;  %vm6348_vm11 = vcmp.ge.f32.partialorder %v11984_v44, %v6315_v5  ;;  %6581 = vmin.xlane.f32.xlu1 %v12125_v19  ;;  %v6594_v25 = vshra.s32 %v12127_v50, 16 }
0x1917   :  { %v6379_v40 = vsel %vm6347_vm10, %v12443_v22, 256  ;;  %v6380_v48 = vsel %vm6348_vm11, %v12444_v43, 256 }
0x1918   :  { %vm6607_vm12 = vcmp.lt.s32.totalorder %v6379_v40, %v6380_v48  ;;  %v12135_v35 = vcvt.s32.f32 %v6594_v25 }
0x1919   :  { %v12137_v41 = vsel %vm6607_vm12, %v6379_v40, %v6380_v48  ;;  %v6318_v8 = vpop.xlane.xlu0 %6317  ;;  %v6547_v40 = vcvt.s32.f32 %v6545_v63 }
0x191a   :  { %vm6349_vm13 = vcmp.ge.f32.partialorder %v11988_v49, %v6318_v8  ;;  %vm6350_vm14 = vcmp.ge.f32.partialorder %v11990_v38, %v6318_v8  ;;  %6597 = vmin.xlane.f32.xlu0 %v12135_v35  ;;  %v6610_v11 = vshra.s32 %v12137_v41, 16  ;;  %v6385_v38 = vand.u32 65535, %v11998_v10 }
0x191b   :  { %v6381_v44 = vsel %vm6349_vm13, %v12443_v22, 256  ;;  %v6382_v54 = vsel %vm6350_vm14, %v12444_v43, 256  ;;  %v6401_v43 = vand.u32 65535, %v12007_v62  ;;  %v6433_v62 = vand.u32 65535, %v12027_v33 }
0x191c   :  { %vm6623_vm15 = vcmp.lt.s32.totalorder %v6381_v44, %v6382_v54  ;;  %v12145_v14 = vcvt.s32.f32 %v6610_v11  ;;  %v6387_v22 = vcvt.s32.f32 %v6385_v38  ;;  %v6465_v33 = vand.u32 65535, %v12047_v23 }
0x191d   :  { %v12147_v13 = vsel %vm6623_vm15, %v6381_v44, %v6382_v54  ;;  %v6403_v31 = vcvt.s32.f32 %v6401_v43  ;;  %v6435_v37 = vcvt.s32.f32 %v6433_v62  ;;  %v6497_v23 = vand.u32 65535, %v12067_v3 }
0x191e   :  { %6613 = vmin.xlane.f32.xlu1 %v12145_v14  ;;  %v6626_v15 = vshra.s32 %v12147_v13, 16  ;;  %v6467_v51 = vcvt.s32.f32 %v6465_v33  ;;  %v6529_v3 = vand.u32 65535, %v12087_v60  ;;  %v6561_v60 = vand.u32 65535, %v12107_v18 }
0x191f   :  { %v6499_v21 = vcvt.s32.f32 %v6497_v23  ;;  %v6579_v44 = vcvt.s32.f32 %v6577_v29  ;;  %v6593_v18 = vand.u32 65535, %v12127_v50  ;;  %v6609_v26 = vand.u32 65535, %v12137_v41 }
0x1920   :  { %v12151_v49 = vcvt.s32.f32 %v6626_v15  ;;  %v6531_v5 = vcvt.s32.f32 %v6529_v3  ;;  %v6563_v8 = vcvt.s32.f32 %v6561_v60  ;;  %v6625_v50 = vand.u32 65535, %v12147_v13 }
0x1921   :  { %v6595_v15 = vcvt.s32.f32 %v6593_v18 }
0x1922   :  { %6629 = vmin.xlane.f32.xlu0 %v12151_v49 }
0x196a   :  { %v12155_v42 = vpop.xlane.xlu1 %6389 }
0x196b   :  { %vm6391_vm0 = vcmp.eq.f32.partialorder %v12005_v34, %v12155_v42 }
0x196c   :  { %v6392_v7 = vsel %vm6391_vm0, %v6387_v22, inf  ;;  %v6611_v22 = vcvt.s32.f32 %v6609_v26  ;;  %vm6639_vm0 = vcmask 7168  }
0x196d   :  { %6393 = vmin.xlane.f32.xlu1 %v6392_v7  ;;  %v6627_v7 = vcvt.s32.f32 %v6625_v50 }
0x196e   :  { %v12160_v58 = vpop.xlane.xlu0 %6405 }
0x196f   :  { %vm6407_vm1 = vcmp.eq.f32.partialorder %v12013_v53, %v12160_v58  ;;  %v6412_v27 = vcvt.f32.s32 %v12160_v58 }
0x1970   :  { %v6408_v52 = vsel %vm6407_vm1, %v6403_v31, inf }
0x1971   :  { %6409 = vmin.xlane.f32.xlu0 %v6408_v52  ;;  %v6413_v62 = vshll.u32 %v6412_v27, 16 }
0x1973   :  { %v12165_v10 = vpop.xlane.xlu1 %6421 }
0x1974   :  { %vm6423_vm2 = vcmp.eq.f32.partialorder %v12025_v55, %v12165_v10 }
0x1975   :  { %v6424_v34 = vsel %vm6423_vm2, %v6419_v47, inf }
0x1976   :  { %6425 = vmin.xlane.f32.xlu1 %v6424_v34 }
0x1977   :  { %v12170_v32 = vpop.xlane.xlu0 %6437 }
0x1978   :  { %vm6439_vm3 = vcmp.eq.f32.partialorder %v12031_v0, %v12170_v32 }
0x1979   :  { %v6440_v53 = vsel %vm6439_vm3, %v6435_v37, inf }
0x197a   :  { %6441 = vmin.xlane.f32.xlu0 %v6440_v53  ;;  %v6444_v53 = vcvt.f32.s32 %v12170_v32 }
0x197f   :  { %v12175_v20 = vpop.xlane.xlu1 %6453 }
0x1980   :  { %vm6455_vm4 = vcmp.eq.f32.partialorder %v12045_v12, %v12175_v20  ;;  %v6460_v45 = vcvt.f32.s32 %v12175_v20 }
0x1981   :  { %v6456_v55 = vsel %vm6455_vm4, %v6451_v57, inf }
0x1982   :  { %6457 = vmin.xlane.f32.xlu1 %v6456_v55  ;;  %v6445_v55 = vshll.u32 %v6444_v53, 16  ;;  %v6461_v32 = vshll.u32 %v6460_v45, 16 }
0x1983   :  { %v12180_v2 = vpop.xlane.xlu0 %6469 }
0x1984   :  { %vm6471_vm5 = vcmp.eq.f32.partialorder %v12055_v9, %v12180_v2 }
0x1985   :  { %v6472_v0 = vsel %vm6471_vm5, %v6467_v51, inf }
0x1986   :  { %6473 = vmin.xlane.f32.xlu0 %v6472_v0 }
0x1987   :  { %v12185_v6 = vpop.xlane.xlu1 %6485 }
0x1988   :  { %vm6487_vm6 = vcmp.eq.f32.partialorder %v12065_v46, %v12185_v6 }
0x1989   :  { %v6488_v12 = vsel %vm6487_vm6, %v6483_v17, inf  ;;  %v6476_v17 = vcvt.f32.s32 %v12180_v2 }
0x198a   :  { %6489 = vmin.xlane.f32.xlu1 %v6488_v12 }
0x198b   :  { %v12190_v61 = vpop.xlane.xlu0 %6501  ;;  %v6477_v59 = vshll.u32 %v6476_v17, 16 }
0x198c   :  { %vm6503_vm9 = vcmp.eq.f32.partialorder %v12075_v16, %v12190_v61 }
0x198d   :  { %v6504_v9 = vsel %vm6503_vm9, %v6499_v21, inf }
0x198e   :  { %6505 = vmin.xlane.f32.xlu0 %v6504_v9  ;;  %v6492_v9 = vcvt.f32.s32 %v12185_v6 }
0x198f   :  { %v12195_v24 = vpop.xlane.xlu1 %6517 }
0x1990   :  { %vm6519_vm7 = vcmp.eq.f32.partialorder %v12085_v39, %v12195_v24 }
0x1991   :  { %v6520_v46 = vsel %vm6519_vm7, %v6515_v1, inf }
0x1992   :  { %6521 = vmin.xlane.f32.xlu1 %v6520_v46  ;;  %v6493_v46 = vshll.u32 %v6492_v9, 16 }
0x1993   :  { %v12200_v30 = vpop.xlane.xlu0 %6533 }
0x1994   :  { %vm6535_vm8 = vcmp.eq.f32.partialorder %v12095_v4, %v12200_v30  ;;  %v6540_v29 = vcvt.f32.s32 %v12200_v30 }
0x1995   :  { %v6536_v16 = vsel %vm6535_vm8, %v6531_v5, inf  ;;  %v6508_v5 = vcvt.f32.s32 %v12190_v61 }
0x1996   :  { %6537 = vmin.xlane.f32.xlu0 %v6536_v16 }
0x1997   :  { %v12205_v25 = vpop.xlane.xlu1 %6549  ;;  %v6509_v6 = vshll.u32 %v6508_v5, 16 }
0x1998   :  { %vm6551_vm10 = vcmp.eq.f32.partialorder %v12105_v36, %v12205_v25 }
0x1999   :  { %v6552_v39 = vsel %vm6551_vm10, %v6547_v40, inf  ;;  %v6524_v40 = vcvt.f32.s32 %v12195_v24  ;;  %v6541_v24 = vshll.u32 %v6540_v29, 16 }
0x199a   :  { %6553 = vmin.xlane.f32.xlu1 %v6552_v39 }
0x199b   :  { %v12210_v48 = vpop.xlane.xlu0 %6565  ;;  %v6525_v61 = vshll.u32 %v6524_v40, 16 }
0x199c   :  { %vm6567_vm11 = vcmp.eq.f32.partialorder %v12115_v28, %v12210_v48 }
0x199d   :  { %v6568_v4 = vsel %vm6567_vm11, %v6563_v8, inf }
0x199e   :  { %6569 = vmin.xlane.f32.xlu0 %v6568_v4 }
0x199f   :  { %v12215_v11 = vpop.xlane.xlu1 %6581 }
0x19a0   :  { %vm6583_vm12 = vcmp.eq.f32.partialorder %v12125_v19, %v12215_v11 }
0x19a1   :  { %v6584_v36 = vsel %vm6583_vm12, %v6579_v44, inf }
0x19a2   :  { %6585 = vmin.xlane.f32.xlu1 %v6584_v36  ;;  %v6556_v36 = vcvt.f32.s32 %v12205_v25 }
0x19a3   :  { %v12220_v54 = vpop.xlane.xlu0 %6597 }
0x19a4   :  { %vm6599_vm13 = vcmp.eq.f32.partialorder %v12135_v35, %v12220_v54  ;;  %v6396_v35 = vcvt.f32.s32 %v12155_v42  ;;  %v6557_v30 = vshll.u32 %v6556_v36, 16  ;;  %v6604_v27 = vcvt.f32.s32 %v12220_v54 }
0x19a5   :  { %v6600_v28 = vsel %vm6599_vm13, %v6595_v15, inf }
0x19a6   :  { %6601 = vmin.xlane.f32.xlu0 %v6600_v28  ;;  %v6397_v52 = vshll.u32 %v6396_v35, 16 }
0x19a7   :  { %v12225_v38 = vpop.xlane.xlu1 %6613 }
0x19a8   :  { %vm6615_vm14 = vcmp.eq.f32.partialorder %v12145_v14, %v12225_v38 }
0x19a9   :  { %v6616_v19 = vsel %vm6615_vm14, %v6611_v22, inf  ;;  %v6572_v22 = vcvt.f32.s32 %v12210_v48 }
0x19aa   :  { %6617 = vmin.xlane.f32.xlu1 %v6616_v19 }
0x19ab   :  { %v12230_v43 = vpop.xlane.xlu0 %6629  ;;  %v6573_v25 = vshll.u32 %v6572_v22, 16 }
0x19ac   :  { %vm6631_vm15 = vcmp.eq.f32.partialorder %v12151_v49, %v12230_v43  ;;  %v6428_v49 = vcvt.f32.s32 %v12165_v10 }
0x19ad   :  { %v6632_v41 = vsel %vm6631_vm15, %v6627_v7, inf }
0x19ae   :  { %6633 = vmin.xlane.f32.xlu0 %v6632_v41  ;;  %v6429_v58 = vshll.u32 %v6428_v49, 16  ;;  %v6588_v41 = vcvt.f32.s32 %v12215_v11  ;;  %v6605_v11 = vshll.u32 %v6604_v27, 16 }
0x19b0   :  { %v6589_v48 = vshll.u32 %v6588_v41, 16 }
0x19f6   :  { %v6394_v31 = vpop.xlane.xlu1 %6393 }
0x19f7   :  { %v6395_v13 = vcvt.f32.s32 %v6394_v31 }
0x19f9   :  { %v6398_v47 = vadd.s32 %v6397_v52, %v6395_v13 }
0x19fa   :  { %v6410_v14 = vpop.xlane.xlu0 %6409 }
0x19fb   :  { %6640 = vst.msk [vmem:[%s12445_s5] sm:$0xff] %vm6639_vm0, %v6398_v47  ;;  %v6411_v34 = vcvt.f32.s32 %v6410_v14 }
0x19fd   :  { %v6414_v37 = vadd.s32 %v6413_v62, %v6411_v34  ;;  %v6620_v62 = vcvt.f32.s32 %v12225_v38 }
0x19ff   :  { %6641 = vst.msk [vmem:[%s12445_s5 + $0x8] sm:$0xff] %vm6639_vm0, %v6414_v37  ;;  %v6426_v42 = vpop.xlane.xlu1 %6425  ;;  %v6621_v54 = vshll.u32 %v6620_v62, 16 }
0x1a00   :  { %v6427_v56 = vcvt.f32.s32 %v6426_v42  ;;  %v6636_v42 = vcvt.f32.s32 %v12230_v43 }
0x1a02   :  { %v6430_v57 = vadd.s32 %v6429_v58, %v6427_v56  ;;  %v6637_v38 = vshll.u32 %v6636_v42, 16 }
0x1a03   :  { %v6442_v33 = vpop.xlane.xlu0 %6441 }
0x1a04   :  { %6642 = vst.msk [vmem:[%s12445_s5 + $0x10] sm:$0xff] %vm6639_vm0, %v6430_v57  ;;  %v6443_v10 = vcvt.f32.s32 %v6442_v33 }
0x1a06   :  { %v6446_v51 = vadd.s32 %v6445_v55, %v6443_v10 }
0x1a08   :  { %6643 = vst.msk [vmem:[%s12445_s5 + $0x18] sm:$0xff] %vm6639_vm0, %v6446_v51 }
0x1a0b   :  { %v6458_v0 = vpop.xlane.xlu1 %6457 }
0x1a0c   :  { %v6459_v23 = vcvt.f32.s32 %v6458_v0 }
0x1a0e   :  { %v6462_v12 = vadd.s32 %v6461_v32, %v6459_v23 }
0x1a0f   :  { %v6474_v21 = vpop.xlane.xlu0 %6473 }
0x1a10   :  { %6644 = vst.msk [vmem:[%s12445_s5 + $0x20] sm:$0xff] %vm6639_vm0, %v6462_v12  ;;  %v6475_v20 = vcvt.f32.s32 %v6474_v21 }
0x1a12   :  { %v6478_v1 = vadd.s32 %v6477_v59, %v6475_v20 }
0x1a13   :  { %v6490_v3 = vpop.xlane.xlu1 %6489 }
0x1a14   :  { %6645 = vst.msk [vmem:[%s12445_s5 + $0x28] sm:$0xff] %vm6639_vm0, %v6478_v1  ;;  %v6491_v2 = vcvt.f32.s32 %v6490_v3 }
0x1a16   :  { %v6494_v63 = vadd.s32 %v6493_v46, %v6491_v2 }
0x1a17   :  { %v6506_v16 = vpop.xlane.xlu0 %6505 }
0x1a18   :  { %6646 = vst.msk [vmem:[%s12445_s5 + $0x30] sm:$0xff] %vm6639_vm0, %v6494_v63  ;;  %v6507_v60 = vcvt.f32.s32 %v6506_v16 }
0x1a1a   :  { %v6510_v39 = vadd.s32 %v6509_v6, %v6507_v60 }
0x1a1b   :  { %v6522_v8 = vpop.xlane.xlu1 %6521 }
0x1a1c   :  { %6647 = vst.msk [vmem:[%s12445_s5 + $0x38] sm:$0xff] %vm6639_vm0, %v6510_v39  ;;  %v6523_v4 = vcvt.f32.s32 %v6522_v8 }
0x1a1e   :  { %v6526_v44 = vadd.s32 %v6525_v61, %v6523_v4 }
0x1a1f   :  { %v6538_v18 = vpop.xlane.xlu0 %6537 }
0x1a20   :  { %6648 = vst.msk [vmem:[%s12445_s5 + $0x40] sm:$0xff] %vm6639_vm0, %v6526_v44  ;;  %v6539_v15 = vcvt.f32.s32 %v6538_v18 }
0x1a22   :  { %v6542_v26 = vadd.s32 %v6541_v24, %v6539_v15 }
0x1a23   :  { %v6554_v28 = vpop.xlane.xlu1 %6553 }
0x1a24   :  { %6649 = vst.msk [vmem:[%s12445_s5 + $0x48] sm:$0xff] %vm6639_vm0, %v6542_v26  ;;  %v6555_v50 = vcvt.f32.s32 %v6554_v28 }
0x1a26   :  { %v6558_v19 = vadd.s32 %v6557_v30, %v6555_v50 }
0x1a27   :  { %v6570_v7 = vpop.xlane.xlu0 %6569 }
0x1a28   :  { %6650 = vst.msk [vmem:[%s12445_s5 + $0x50] sm:$0xff] %vm6639_vm0, %v6558_v19  ;;  %v6571_v35 = vcvt.f32.s32 %v6570_v7 }
0x1a2a   :  { %v6574_v31 = vadd.s32 %v6573_v25, %v6571_v35 }
0x1a2b   :  { %v6586_v52 = vpop.xlane.xlu1 %6585 }
0x1a2c   :  { %6651 = vst.msk [vmem:[%s12445_s5 + $0x58] sm:$0xff] %vm6639_vm0, %v6574_v31  ;;  %v6587_v13 = vcvt.f32.s32 %v6586_v52 }
0x1a2e   :  { %v6590_v47 = vadd.s32 %v6589_v48, %v6587_v13 }
0x1a2f   :  { %v6602_v14 = vpop.xlane.xlu0 %6601 }
0x1a30   :  { %6652 = vst.msk [vmem:[%s12445_s5 + $0x60] sm:$0xff] %vm6639_vm0, %v6590_v47  ;;  %v6603_v34 = vcvt.f32.s32 %v6602_v14 }
0x1a32   :  { %v6606_v49 = vadd.s32 %v6605_v11, %v6603_v34 }
0x1a33   :  { %v6618_v37 = vpop.xlane.xlu1 %6617 }
0x1a34   :  { %6653 = vst.msk [vmem:[%s12445_s5 + $0x68] sm:$0xff] %vm6639_vm0, %v6606_v49  ;;  %v6619_v58 = vcvt.f32.s32 %v6618_v37 }
0x1a36   :  { %v6622_v53 = vadd.s32 %v6621_v54, %v6619_v58 }
0x1a37   :  { %v6634_v56 = vpop.xlane.xlu0 %6633 }
0x1a38   :  { %6654 = vst.msk [vmem:[%s12445_s5 + $0x70] sm:$0xff] %vm6639_vm0, %v6622_v53  ;;  %v6635_v57 = vcvt.f32.s32 %v6634_v56 }
0x1a3a   :  { %v6638_v33 = vadd.s32 %v6637_v38, %v6635_v57 }
0x1a3c   :  { %6655 = vst.msk [vmem:[%s12445_s5 + $0x78] sm:$0xff] %vm6639_vm0, %v6638_v33 }
0x1a3d   :  { %6660 = vsyncpa [#allocation3], 1 }
0x1a3e   :  { %6661 = vsyncpa [#allocation5], 1 }
0x1a3f   :  { %6662 = vsyncpa [#allocation8], 1 }
0x1a40   :  { %6663 = vsyncpa [#allocation11], 1 }
0x1a41   :  { %6664 = vsyncpa [#allocation14], 1 }
0x1a42   :  { %6665 = vsyncpa [#allocation17], 1 }
0x1a43   :  { %6666 = vsyncpa [#allocation20], 1 }
0x1a44   :  { %6667 = vsyncpa [#allocation23], 1 }
0x1a45   :  { %6668 = vsyncpa [#allocation26], 1 }

</bundles_post_ra>
